<compile_context>
chip_gen: v6e
topology: v6e:2x2x1
jax: 0.10.0
libtpu: 0.0.40
codegen_flags: <defaults>
</compile_context>

<pallas_src>
import numpy as np
import jax
import jax.numpy as jnp
from jax.experimental import pallas as pl
from jax.experimental.pallas import tpu as pltpu


def _gelu(v):
    # TODO(synk): PyTorch F.gelu default is the exact erf formulation; we use the
    # tanh approximation (EUP-friendly) which differs by ~1e-3.
    return jax.nn.gelu(v, approximate=True)


def _make_kernel(H, W, CIN, COUT):
    EPS = 1e-5

    def kernel(x_ref,
               wb1_ref, b1_ref, g1_ref, be1_ref,
               wb2_ref, b2_ref, g2_ref, be2_ref,
               Gs_ref, GT_ref,
               Rc_ref, Tc_ref, E_ref, Mavg_ref,
               wf1_ref, bf1_ref, wf2_ref, bf2_ref,
               wse1_ref, bse1_ref, wse2_ref, bse2_ref,
               wd_ref, bd_ref, gd_ref, bed_ref,
               ws_ref, spb_ref,
               o_ref):

        def shift_rows(y, d):
            # z[h, :] = y[h - d, :], zero filled outside [0, H).  d is static.
            if d == 0:
                return y
            z = jnp.zeros((abs(d), y.shape[1]), jnp.float32)
            if d > 0:
                return jnp.concatenate([z, y[:H - d, :]], axis=0)
            return jnp.concatenate([y[-d:, :], z], axis=0)

        def conv3x3(xb, w_ref, b):
            # xb: (H, W*cin) bf16.  w_ref[kh]: (W*cin, W*COUT) banded bf16 weights
            # (horizontal zero padding folded into the bands).  Vertical padding is
            # handled by shifting the per-tap products by one row.
            acc = jnp.dot(xb, w_ref[1], preferred_element_type=jnp.float32)
            acc = acc + shift_rows(
                jnp.dot(xb, w_ref[0], preferred_element_type=jnp.float32), 1)
            acc = acc + shift_rows(
                jnp.dot(xb, w_ref[2], preferred_element_type=jnp.float32), -1)
            return acc + b                                             # (H, W*COUT) f32

        def group_norm(y, gamma, beta):
            # Per-group (8 groups) mean/var over (H, W, group channels), fused
            # statistic dots.  Gs is pre-scaled by 1/(H*W*group_size).
            # Variance via E[x^2]-E[x]^2 with a clamp to >= 0 (single pass).
            s = jnp.sum(y, axis=0, keepdims=True)                      # (1, WC)
            sq = jnp.sum(y * y, axis=0, keepdims=True)                 # (1, WC)
            stats = jnp.dot(jnp.concatenate([s, sq], axis=0), Gs_ref[...],
                            preferred_element_type=jnp.float32)        # (2, 8)
            mean_g = stats[0:1, :]
            var_g = jnp.maximum(stats[1:2, :] - mean_g * mean_g, 0.0)
            inv_g = jax.lax.rsqrt(var_g + EPS)
            mi = jnp.dot(jnp.concatenate([mean_g, inv_g], axis=0), GT_ref[...],
                         preferred_element_type=jnp.float32)           # (2, WC)
            return (y - mi[0:1, :]) * mi[1:2, :] * gamma + beta

        x = x_ref[0]                                                   # (H, W*CIN) f32
        xb = x.astype(jnp.bfloat16)

        # ---- conv1 -> gn1 -> gelu ----
        out = conv3x3(xb, wb1_ref, b1_ref[...])
        out = _gelu(group_norm(out, g1_ref[...], be1_ref[...]))

        # ---- conv2 -> gn2 ----
        out = conv3x3(out.astype(jnp.bfloat16), wb2_ref, b2_ref[...])
        out = group_norm(out, g2_ref[...], be2_ref[...])               # (H, WC)

        # ---- CBAM channel attention ----
        # Both pooled branches pass through the biased 1x1-conv MLP and are then
        # summed, exactly as in the PyTorch reference.
        avg_c = jnp.dot(jnp.sum(out, axis=0, keepdims=True), Rc_ref[...],
                        preferred_element_type=jnp.float32)            # (1, COUT)
        colmax = jnp.max(out, axis=0, keepdims=True)                   # (1, WC)
        max_c = colmax[:, 0:COUT]
        for wi in range(1, W):
            max_c = jnp.maximum(max_c, colmax[:, wi * COUT:(wi + 1) * COUT])
        pooled = jnp.concatenate([avg_c, max_c], axis=0)               # (2, COUT)
        hmid = jnp.maximum(
            jnp.dot(pooled, wf1_ref[...], preferred_element_type=jnp.float32)
            + bf1_ref[...], 0.0)
        sfc = jnp.dot(hmid, wf2_ref[...],
                      preferred_element_type=jnp.float32) + bf2_ref[...]   # (2, COUT)
        ch = jax.nn.sigmoid(sfc[0:1, :] + sfc[1:2, :])                 # (1, COUT)
        out = out * jnp.dot(ch, Tc_ref[...],
                            preferred_element_type=jnp.float32)        # broadcast to lanes

        # ---- CBAM spatial attention (7x7 conv on [avg|max] channel-pooled maps) ----
        avg_m = jnp.dot(out, Mavg_ref[...],
                        preferred_element_type=jnp.float32)            # (H, W)
        segs = [jnp.max(out[:, wi * COUT:(wi + 1) * COUT], axis=1, keepdims=True)
                for wi in range(W)]
        max_m = jnp.concatenate(segs, axis=1)                          # (H, W)
        maps = jnp.concatenate([avg_m, max_m], axis=1)                 # (H, 2W)
        sp = jnp.full((H, W), spb_ref[0, 0], jnp.float32)
        for kh in range(7):
            sp = sp + shift_rows(
                jnp.dot(maps, ws_ref[kh], preferred_element_type=jnp.float32),
                3 - kh)
        sp = jax.nn.sigmoid(sp)                                        # (H, W)
        out = out * jnp.dot(sp, E_ref[...],
                            preferred_element_type=jnp.float32)        # (H, WC)

        # ---- SE block ----
        se_avg = jnp.dot(jnp.sum(out, axis=0, keepdims=True), Rc_ref[...],
                         preferred_element_type=jnp.float32)           # (1, COUT)
        se_h = jnp.maximum(
            jnp.dot(se_avg, wse1_ref[...], preferred_element_type=jnp.float32)
            + bse1_ref[...], 0.0)
        se_s = jax.nn.sigmoid(
            jnp.dot(se_h, wse2_ref[...], preferred_element_type=jnp.float32)
            + bse2_ref[...])                                           # (1, COUT)
        out = out * jnp.dot(se_s, Tc_ref[...],
                            preferred_element_type=jnp.float32)

        # ---- downsample identity path (1x1 conv as block-diag matmul + GroupNorm) ----
        ident = jnp.dot(xb, wd_ref[...],
                        preferred_element_type=jnp.float32) + bd_ref[...]
        ident = group_norm(ident, gd_ref[...], bed_ref[...])

        # ---- residual add + gelu; lane-dense store ----
        # TODO(synk): Dropout2d(0.1) is identity at inference; training-mode channel dropout not implemented.
        o_ref[0] = _gelu(out + ident)

    return kernel


def enhanced_residual_block(x_nchw, p):
    N, CIN, H, W = x_nchw.shape
    COUT = p["Tc"].shape[0]
    WC = W * COUT
    WCI = W * CIN

    # NCHW -> lane-dense (N, H, W*CIN) (free reshape/transpose in the wrapper).
    x = jnp.transpose(x_nchw, (0, 2, 3, 1)).reshape(N, H, WCI).astype(jnp.float32)

    kernel = _make_kernel(H, W, CIN, COUT)

    def full(shape):
        return pl.BlockSpec(shape, lambda n: (0,) * len(shape))

    in_specs = [
        pl.BlockSpec((1, H, WCI), lambda n: (n, 0, 0)),                       # x
        full((3, WCI, WC)), full((1, WC)), full((1, WC)), full((1, WC)),      # conv1 / gn1
        full((3, WC, WC)), full((1, WC)), full((1, WC)), full((1, WC)),       # conv2 / gn2
        full((WC, 8)), full((8, WC)),                                         # GN group matrices
        full((WC, COUT)), full((COUT, WC)), full((W, WC)), full((WC, W)),     # Rc, Tc, E, Mavg
        full((COUT, COUT // 8)), full((1, COUT // 8)),                        # CBAM fc1
        full((COUT // 8, COUT)), full((1, COUT)),                             # CBAM fc2
        full((COUT, COUT // 16)), full((1, COUT // 16)),                      # SE fc1
        full((COUT // 16, COUT)), full((1, COUT)),                            # SE fc2
        full((WCI, WC)), full((1, WC)), full((1, WC)), full((1, WC)),         # downsample
        full((7, 2 * W, W)),                                                  # 7x7 band weights
        pl.BlockSpec(memory_space=pltpu.MemorySpace.SMEM),                    # 7x7 bias scalar
    ]

    out = pl.pallas_call(
        kernel,
        out_shape=jax.ShapeDtypeStruct((N, H, WC), jnp.float32),
        grid=(N,),
        in_specs=in_specs,
        out_specs=pl.BlockSpec((1, H, WC), lambda n: (n, 0, 0)),
        compiler_params=pltpu.CompilerParams(dimension_semantics=("parallel",)),
    )(x,
      p["wb1"], p["b1t"], p["g1t"], p["be1t"],
      p["wb2"], p["b2t"], p["g2t"], p["be2t"],
      p["Gs"], p["GT"],
      p["Rc"], p["Tc"], p["E"], p["Mavg"],
      p["wf1"], p["bf1"], p["wf2"], p["bf2"],
      p["wse1"], p["bse1"], p["wse2"], p["bse2"],
      p["wdB"], p["bdt"], p["gdt"], p["bedt"],
      p["ws"], p["spb"])

    # lane-dense (N, H, W*COUT) -> NCHW (free in the wrapper).
    return jnp.transpose(out.reshape(N, H, W, COUT), (0, 3, 1, 2))


# ---------------- weight packing helpers (host side, numpy) ----------------

def _conv3x3_band_weights(wt, W):
    # torch (COUT, CIN, 3, 3) -> (3, W*CIN, W*COUT) banded bf16 matrices; the
    # horizontal zero padding is folded in by simply omitting out-of-range taps.
    wt = np.asarray(wt, np.float32)
    COUT, CIN = wt.shape[0], wt.shape[1]
    B = np.zeros((3, W * CIN, W * COUT), np.float32)
    for kh in range(3):
        for kw in range(3):
            blk = wt[:, :, kh, kw].T                      # (CIN, COUT)
            for w in range(W):
                wi = w + kw - 1
                if 0 <= wi < W:
                    B[kh, wi * CIN:(wi + 1) * CIN, w * COUT:(w + 1) * COUT] = blk
    return jnp.asarray(B, jnp.bfloat16)


def _blockdiag_1x1(wd, W):
    # torch 1x1 conv weight (COUT, CIN) -> block-diagonal (W*CIN, W*COUT) bf16.
    wd = np.asarray(wd, np.float32)
    COUT, CIN = wd.shape
    B = np.zeros((W * CIN, W * COUT), np.float32)
    for w in range(W):
        B[w * CIN:(w + 1) * CIN, w * COUT:(w + 1) * COUT] = wd.T
    return jnp.asarray(B, jnp.bfloat16)


def _spatial_band_weights(w77, W):
    # CBAM 7x7 spatial kernel (2, 7, 7) -> (7, 2*W, W) banded matrices over the
    # lane-concatenated [avg | max] maps; horizontal padding folded in.
    w77 = np.asarray(w77, np.float32)
    ws = np.zeros((7, 2 * W, W), np.float32)
    for kh in range(7):
        for kw in range(7):
            for w in range(W):
                wi = w + kw - 3
                if 0 <= wi < W:
                    ws[kh, wi, w] = w77[0, kh, kw]
                    ws[kh, W + wi, w] = w77[1, kh, kw]
    return jnp.asarray(ws)


def _tile_lanes(v, W):
    # per-channel (C,) vector -> (1, W*C) row with value at lane w*C + c = v[c]
    v = np.asarray(v, np.float32).reshape(-1)
    return jnp.asarray(np.tile(v, W)[None, :])


def init_params(key, cin, cout, h, w):
    ks = jax.random.split(key, 22)

    def nrm(k, shape, scale=0.1):
        return scale * jax.random.normal(k, shape, jnp.float32)

    hw = h * w
    gsize = cout // 8
    wc = w * cout

    # PyTorch-layout conv weights, re-packed below for the lane-dense kernel layout.
    w1 = np.asarray(nrm(ks[0], (cout, cin, 3, 3)))
    b1 = np.asarray(nrm(ks[1], (cout,)))
    g1 = np.asarray(1.0 + nrm(ks[2], (cout,)))
    be1 = np.asarray(nrm(ks[3], (cout,)))
    w2 = np.asarray(nrm(ks[4], (cout, cout, 3, 3)))
    b2 = np.asarray(nrm(ks[5], (cout,)))
    g2 = np.asarray(1.0 + nrm(ks[6], (cout,)))
    be2 = np.asarray(nrm(ks[7], (cout,)))
    wd = np.asarray(nrm(ks[16], (cout, cin)))
    bd = np.asarray(nrm(ks[17], (cout,)))
    gd = np.asarray(1.0 + nrm(ks[18], (cout,)))
    bed = np.asarray(nrm(ks[19], (cout,)))
    w77 = np.asarray(nrm(ks[20], (2, 7, 7)))

    lanes = np.arange(wc)
    lane_c = np.tile(np.arange(cout), w)                 # lane -> channel index

    Gs = np.zeros((wc, 8), np.float32)
    Gs[lanes, lane_c // gsize] = 1.0 / (hw * gsize)      # pre-scaled group sum
    GT = np.zeros((8, wc), np.float32)
    GT[lane_c // gsize, lanes] = 1.0                     # group -> lane broadcast
    Rc = np.zeros((wc, cout), np.float32)
    Rc[lanes, lane_c] = 1.0 / hw                         # per-channel spatial mean
    Tc = np.zeros((cout, wc), np.float32)
    Tc[lane_c, lanes] = 1.0                              # channel -> lane broadcast
    E = np.zeros((w, wc), np.float32)
    E[lanes // cout, lanes] = 1.0                        # column -> lane broadcast
    Mavg = np.zeros((wc, w), np.float32)
    Mavg[lanes, lanes // cout] = 1.0 / cout              # per-position channel mean

    return dict(
        wb1=_conv3x3_band_weights(w1, w), b1t=_tile_lanes(b1, w),
        g1t=_tile_lanes(g1, w), be1t=_tile_lanes(be1, w),
        wb2=_conv3x3_band_weights(w2, w), b2t=_tile_lanes(b2, w),
        g2t=_tile_lanes(g2, w), be2t=_tile_lanes(be2, w),
        Gs=jnp.asarray(Gs), GT=jnp.asarray(GT),
        Rc=jnp.asarray(Rc), Tc=jnp.asarray(Tc), E=jnp.asarray(E),
        Mavg=jnp.asarray(Mavg),
        wf1=nrm(ks[8], (cout, cout // 8)), bf1=nrm(ks[9], (1, cout // 8)),
        wf2=nrm(ks[10], (cout // 8, cout)), bf2=nrm(ks[11], (1, cout)),
        wse1=nrm(ks[12], (cout, cout // 16)), bse1=nrm(ks[13], (1, cout // 16)),
        wse2=nrm(ks[14], (cout // 16, cout)), bse2=nrm(ks[15], (1, cout)),
        wdB=_blockdiag_1x1(wd, w), bdt=_tile_lanes(bd, w),
        gdt=_tile_lanes(gd, w), bedt=_tile_lanes(bed, w),
        ws=_spatial_band_weights(w77, w),
        spb=nrm(ks[21], (1, 1)),
    )


if __name__ == "__main__":
    key = jax.random.PRNGKey(0)
    kx, kp = jax.random.split(key)
    # stride=1, cin != cout -> downsample path active; N even for v7x's 2 cores
    N, CIN, COUT, H, W = 2, 16, 32, 16, 16
    x = jax.random.normal(kx, (N, CIN, H, W), jnp.float32)   # PyTorch-style NCHW input
    params = init_params(kp, CIN, COUT, H, W)
    y = enhanced_residual_block(x, params)
    jax.block_until_ready(y)
    assert y.shape == (N, COUT, H, W), y.shape
    assert bool(jnp.all(jnp.isfinite(y)))
    print("KERNEL_OK")
</pallas_src>

<mosaic_0001>
module attributes {stable_mosaic.version = 11 : i64} {
  func.func @kernel(%arg0: i32, %arg1: memref<1x16x256xf32, #tpu.memory_space<vmem>>, %arg2: memref<3x256x512xbf16, #tpu.memory_space<vmem>>, %arg3: memref<1x512xf32, #tpu.memory_space<vmem>>, %arg4: memref<1x512xf32, #tpu.memory_space<vmem>>, %arg5: memref<1x512xf32, #tpu.memory_space<vmem>>, %arg6: memref<3x512x512xbf16, #tpu.memory_space<vmem>>, %arg7: memref<1x512xf32, #tpu.memory_space<vmem>>, %arg8: memref<1x512xf32, #tpu.memory_space<vmem>>, %arg9: memref<1x512xf32, #tpu.memory_space<vmem>>, %arg10: memref<512x8xf32, #tpu.memory_space<vmem>>, %arg11: memref<8x512xf32, #tpu.memory_space<vmem>>, %arg12: memref<512x32xf32, #tpu.memory_space<vmem>>, %arg13: memref<32x512xf32, #tpu.memory_space<vmem>>, %arg14: memref<16x512xf32, #tpu.memory_space<vmem>>, %arg15: memref<512x16xf32, #tpu.memory_space<vmem>>, %arg16: memref<32x4xf32, #tpu.memory_space<vmem>>, %arg17: memref<1x4xf32, #tpu.memory_space<vmem>>, %arg18: memref<4x32xf32, #tpu.memory_space<vmem>>, %arg19: memref<1x32xf32, #tpu.memory_space<vmem>>, %arg20: memref<32x2xf32, #tpu.memory_space<vmem>>, %arg21: memref<1x2xf32, #tpu.memory_space<vmem>>, %arg22: memref<2x32xf32, #tpu.memory_space<vmem>>, %arg23: memref<1x32xf32, #tpu.memory_space<vmem>>, %arg24: memref<256x512xbf16, #tpu.memory_space<vmem>>, %arg25: memref<1x512xf32, #tpu.memory_space<vmem>>, %arg26: memref<1x512xf32, #tpu.memory_space<vmem>>, %arg27: memref<1x512xf32, #tpu.memory_space<vmem>>, %arg28: memref<7x32x16xf32, #tpu.memory_space<vmem>>, %arg29: memref<1x1xf32, #tpu.memory_space<smem>>, %arg30: memref<1x16x512xf32, #tpu.memory_space<vmem>>) attributes {dimension_semantics = [#tpu.dimension_semantics<parallel>], iteration_bounds = array<i64: 2>, scalar_prefetch = 0 : i64, scratch_operands = 0 : i64, tpu.core_type = #tpu.core_type<tc>, window_params = [{transform_indices = @transform_0, window_bounds = array<i64: 1, 16, 256>}, {pipeline_mode = #tpu.pipeline_mode<synchronous>, transform_indices = @transform_1, window_bounds = array<i64: 3, 256, 512>}, {pipeline_mode = #tpu.pipeline_mode<synchronous>, transform_indices = @transform_2, window_bounds = array<i64: 1, 512>}, {pipeline_mode = #tpu.pipeline_mode<synchronous>, transform_indices = @transform_3, window_bounds = array<i64: 1, 512>}, {pipeline_mode = #tpu.pipeline_mode<synchronous>, transform_indices = @transform_4, window_bounds = array<i64: 1, 512>}, {pipeline_mode = #tpu.pipeline_mode<synchronous>, transform_indices = @transform_5, window_bounds = array<i64: 3, 512, 512>}, {pipeline_mode = #tpu.pipeline_mode<synchronous>, transform_indices = @transform_6, window_bounds = array<i64: 1, 512>}, {pipeline_mode = #tpu.pipeline_mode<synchronous>, transform_indices = @transform_7, window_bounds = array<i64: 1, 512>}, {pipeline_mode = #tpu.pipeline_mode<synchronous>, transform_indices = @transform_8, window_bounds = array<i64: 1, 512>}, {pipeline_mode = #tpu.pipeline_mode<synchronous>, transform_indices = @transform_9, window_bounds = array<i64: 512, 8>}, {pipeline_mode = #tpu.pipeline_mode<synchronous>, transform_indices = @transform_10, window_bounds = array<i64: 8, 512>}, {pipeline_mode = #tpu.pipeline_mode<synchronous>, transform_indices = @transform_11, window_bounds = array<i64: 512, 32>}, {pipeline_mode = #tpu.pipeline_mode<synchronous>, transform_indices = @transform_12, window_bounds = array<i64: 32, 512>}, {pipeline_mode = #tpu.pipeline_mode<synchronous>, transform_indices = @transform_13, window_bounds = array<i64: 16, 512>}, {pipeline_mode = #tpu.pipeline_mode<synchronous>, transform_indices = @transform_14, window_bounds = array<i64: 512, 16>}, {pipeline_mode = #tpu.pipeline_mode<synchronous>, transform_indices = @transform_15, window_bounds = array<i64: 32, 4>}, {pipeline_mode = #tpu.pipeline_mode<synchronous>, transform_indices = @transform_16, window_bounds = array<i64: 1, 4>}, {pipeline_mode = #tpu.pipeline_mode<synchronous>, transform_indices = @transform_17, window_bounds = array<i64: 4, 32>}, {pipeline_mode = #tpu.pipeline_mode<synchronous>, transform_indices = @transform_18, window_bounds = array<i64: 1, 32>}, {pipeline_mode = #tpu.pipeline_mode<synchronous>, transform_indices = @transform_19, window_bounds = array<i64: 32, 2>}, {pipeline_mode = #tpu.pipeline_mode<synchronous>, transform_indices = @transform_20, window_bounds = array<i64: 1, 2>}, {pipeline_mode = #tpu.pipeline_mode<synchronous>, transform_indices = @transform_21, window_bounds = array<i64: 2, 32>}, {pipeline_mode = #tpu.pipeline_mode<synchronous>, transform_indices = @transform_22, window_bounds = array<i64: 1, 32>}, {pipeline_mode = #tpu.pipeline_mode<synchronous>, transform_indices = @transform_23, window_bounds = array<i64: 256, 512>}, {pipeline_mode = #tpu.pipeline_mode<synchronous>, transform_indices = @transform_24, window_bounds = array<i64: 1, 512>}, {pipeline_mode = #tpu.pipeline_mode<synchronous>, transform_indices = @transform_25, window_bounds = array<i64: 1, 512>}, {pipeline_mode = #tpu.pipeline_mode<synchronous>, transform_indices = @transform_26, window_bounds = array<i64: 1, 512>}, {pipeline_mode = #tpu.pipeline_mode<synchronous>, transform_indices = @transform_27, window_bounds = array<i64: 7, 32, 16>}, {transform_indices = @transform_28, window_bounds = array<i64: 1, 1>}, {transform_indices = @transform_29, window_bounds = array<i64: 1, 16, 512>}]} {
    %c0 = arith.constant 0 : index
    %c0_0 = arith.constant 0 : index
    %c0_1 = arith.constant 0 : index
    %0 = vector.load %arg1[%c0, %c0_0, %c0_1] : memref<1x16x256xf32, #tpu.memory_space<vmem>>, vector<1x16x256xf32>
    %1 = vector.shape_cast %0 : vector<1x16x256xf32> to vector<16x256xf32>
    %2 = arith.truncf %1 : vector<16x256xf32> to vector<16x256xbf16>
    %c0_2 = arith.constant 0 : index
    %c0_3 = arith.constant 0 : index
    %3 = vector.load %arg3[%c0_2, %c0_3] : memref<1x512xf32, #tpu.memory_space<vmem>>, vector<1x512xf32>
    %c1 = arith.constant 1 : index
    %c0_4 = arith.constant 0 : index
    %c0_5 = arith.constant 0 : index
    %4 = vector.load %arg2[%c1, %c0_4, %c0_5] : memref<3x256x512xbf16, #tpu.memory_space<vmem>>, vector<1x256x512xbf16>
    %5 = vector.shape_cast %4 : vector<1x256x512xbf16> to vector<256x512xbf16>
    %cst = arith.constant dense<0.000000e+00> : vector<16x512xf32>
    %6 = tpu.matmul %2, %5, %cst {dimension_numbers = #tpu.dot_dimension_numbers<[1], [0], [0], [1], [0, 0, 1, 1], [], []>} : vector<16x256xbf16>, vector<256x512xbf16>, vector<16x512xf32> -> vector<16x512xf32>
    %c0_6 = arith.constant 0 : index
    %c0_7 = arith.constant 0 : index
    %c0_8 = arith.constant 0 : index
    %7 = vector.load %arg2[%c0_6, %c0_7, %c0_8] : memref<3x256x512xbf16, #tpu.memory_space<vmem>>, vector<1x256x512xbf16>
    %8 = vector.shape_cast %7 : vector<1x256x512xbf16> to vector<256x512xbf16>
    %cst_9 = arith.constant dense<0.000000e+00> : vector<16x512xf32>
    %9 = tpu.matmul %2, %8, %cst_9 {dimension_numbers = #tpu.dot_dimension_numbers<[1], [0], [0], [1], [0, 0, 1, 1], [], []>} : vector<16x256xbf16>, vector<256x512xbf16>, vector<16x512xf32> -> vector<16x512xf32>
    %cst_10 = arith.constant 0.000000e+00 : f32
    %10 = vector.broadcast %cst_10 : f32 to vector<1x512xf32>
    %11 = vector.extract_strided_slice %9 {offsets = [0, 0], sizes = [15, 512], strides = [1, 1]} : vector<16x512xf32> to vector<15x512xf32>
    %12 = tpu.concatenate %10, %11 in 0 : vector<1x512xf32>, vector<15x512xf32> -> vector<16x512xf32>
    %13 = arith.addf %6, %12 : vector<16x512xf32>
    %c2 = arith.constant 2 : index
    %c0_11 = arith.constant 0 : index
    %c0_12 = arith.constant 0 : index
    %14 = vector.load %arg2[%c2, %c0_11, %c0_12] : memref<3x256x512xbf16, #tpu.memory_space<vmem>>, vector<1x256x512xbf16>
    %15 = vector.shape_cast %14 : vector<1x256x512xbf16> to vector<256x512xbf16>
    %cst_13 = arith.constant dense<0.000000e+00> : vector<16x512xf32>
    %16 = tpu.matmul %2, %15, %cst_13 {dimension_numbers = #tpu.dot_dimension_numbers<[1], [0], [0], [1], [0, 0, 1, 1], [], []>} : vector<16x256xbf16>, vector<256x512xbf16>, vector<16x512xf32> -> vector<16x512xf32>
    %cst_14 = arith.constant 0.000000e+00 : f32
    %17 = vector.broadcast %cst_14 : f32 to vector<1x512xf32>
    %18 = vector.extract_strided_slice %16 {offsets = [1, 0], sizes = [15, 512], strides = [1, 1]} : vector<16x512xf32> to vector<15x512xf32>
    %19 = tpu.concatenate %18, %17 in 0 : vector<15x512xf32>, vector<1x512xf32> -> vector<16x512xf32>
    %20 = arith.addf %13, %19 : vector<16x512xf32>
    %21 = vector.broadcast %3 : vector<1x512xf32> to vector<16x512xf32>
    %22 = arith.addf %20, %21 : vector<16x512xf32>
    %c0_15 = arith.constant 0 : index
    %c0_16 = arith.constant 0 : index
    %23 = vector.load %arg4[%c0_15, %c0_16] : memref<1x512xf32, #tpu.memory_space<vmem>>, vector<1x512xf32>
    %c0_17 = arith.constant 0 : index
    %c0_18 = arith.constant 0 : index
    %24 = vector.load %arg5[%c0_17, %c0_18] : memref<1x512xf32, #tpu.memory_space<vmem>>, vector<1x512xf32>
    %cst_19 = arith.constant dense<0.000000e+00> : vector<512xf32>
    %25 = vector.multi_reduction <add>, %22, %cst_19 [0] : vector<16x512xf32> to vector<512xf32>
    %26 = vector.shape_cast %25 : vector<512xf32> to vector<1x512xf32>
    %27 = arith.mulf %22, %22 : vector<16x512xf32>
    %cst_20 = arith.constant dense<0.000000e+00> : vector<512xf32>
    %28 = vector.multi_reduction <add>, %27, %cst_20 [0] : vector<16x512xf32> to vector<512xf32>
    %29 = vector.shape_cast %28 : vector<512xf32> to vector<1x512xf32>
    %30 = tpu.concatenate %26, %29 in 0 : vector<1x512xf32>, vector<1x512xf32> -> vector<2x512xf32>
    %c0_21 = arith.constant 0 : index
    %c0_22 = arith.constant 0 : index
    %31 = vector.load %arg10[%c0_21, %c0_22] : memref<512x8xf32, #tpu.memory_space<vmem>>, vector<512x8xf32>
    %cst_23 = arith.constant dense<0.000000e+00> : vector<2x8xf32>
    %32 = tpu.matmul %30, %31, %cst_23 {dimension_numbers = #tpu.dot_dimension_numbers<[1], [0], [0], [1], [0, 0, 1, 1], [], []>} : vector<2x512xf32>, vector<512x8xf32>, vector<2x8xf32> -> vector<2x8xf32>
    %33 = vector.extract_strided_slice %32 {offsets = [0, 0], sizes = [1, 8], strides = [1, 1]} : vector<2x8xf32> to vector<1x8xf32>
    %34 = vector.extract_strided_slice %32 {offsets = [1, 0], sizes = [1, 8], strides = [1, 1]} : vector<2x8xf32> to vector<1x8xf32>
    %35 = arith.mulf %33, %33 : vector<1x8xf32>
    %36 = arith.subf %34, %35 : vector<1x8xf32>
    %cst_24 = arith.constant 0.000000e+00 : f32
    %37 = vector.broadcast %cst_24 : f32 to vector<1x8xf32>
    %38 = arith.maximumf %36, %37 : vector<1x8xf32>
    %cst_25 = arith.constant 9.99999974E-6 : f32
    %39 = vector.broadcast %cst_25 : f32 to vector<1x8xf32>
    %40 = arith.addf %38, %39 : vector<1x8xf32>
    %41 = math.rsqrt %40 : vector<1x8xf32>
    %42 = tpu.concatenate %33, %41 in 0 : vector<1x8xf32>, vector<1x8xf32> -> vector<2x8xf32>
    %c0_26 = arith.constant 0 : index
    %c0_27 = arith.constant 0 : index
    %43 = vector.load %arg11[%c0_26, %c0_27] : memref<8x512xf32, #tpu.memory_space<vmem>>, vector<8x512xf32>
    %cst_28 = arith.constant dense<0.000000e+00> : vector<2x512xf32>
    %44 = tpu.matmul %42, %43, %cst_28 {dimension_numbers = #tpu.dot_dimension_numbers<[1], [0], [0], [1], [0, 0, 1, 1], [], []>} : vector<2x8xf32>, vector<8x512xf32>, vector<2x512xf32> -> vector<2x512xf32>
    %45 = vector.extract_strided_slice %44 {offsets = [0, 0], sizes = [1, 512], strides = [1, 1]} : vector<2x512xf32> to vector<1x512xf32>
    %46 = vector.broadcast %45 : vector<1x512xf32> to vector<16x512xf32>
    %47 = arith.subf %22, %46 : vector<16x512xf32>
    %48 = vector.extract_strided_slice %44 {offsets = [1, 0], sizes = [1, 512], strides = [1, 1]} : vector<2x512xf32> to vector<1x512xf32>
    %49 = vector.broadcast %48 : vector<1x512xf32> to vector<16x512xf32>
    %50 = arith.mulf %47, %49 : vector<16x512xf32>
    %51 = vector.broadcast %23 : vector<1x512xf32> to vector<16x512xf32>
    %52 = arith.mulf %50, %51 : vector<16x512xf32>
    %53 = vector.broadcast %24 : vector<1x512xf32> to vector<16x512xf32>
    %54 = arith.addf %52, %53 : vector<16x512xf32>
    %55 = arith.mulf %54, %54 : vector<16x512xf32>
    %56 = arith.mulf %54, %55 : vector<16x512xf32>
    %cst_29 = arith.constant 4.471500e-02 : f32
    %57 = vector.broadcast %cst_29 : f32 to vector<16x512xf32>
    %58 = arith.mulf %57, %56 : vector<16x512xf32>
    %59 = arith.addf %54, %58 : vector<16x512xf32>
    %cst_30 = arith.constant 0.797884583 : f32
    %60 = vector.broadcast %cst_30 : f32 to vector<16x512xf32>
    %61 = arith.mulf %60, %59 : vector<16x512xf32>
    %62 = math.tanh %61 : vector<16x512xf32>
    %cst_31 = arith.constant 1.000000e+00 : f32
    %63 = vector.broadcast %cst_31 : f32 to vector<16x512xf32>
    %64 = arith.addf %63, %62 : vector<16x512xf32>
    %cst_32 = arith.constant 5.000000e-01 : f32
    %65 = vector.broadcast %cst_32 : f32 to vector<16x512xf32>
    %66 = arith.mulf %65, %64 : vector<16x512xf32>
    %67 = arith.mulf %54, %66 : vector<16x512xf32>
    %68 = arith.truncf %67 : vector<16x512xf32> to vector<16x512xbf16>
    %c0_33 = arith.constant 0 : index
    %c0_34 = arith.constant 0 : index
    %69 = vector.load %arg7[%c0_33, %c0_34] : memref<1x512xf32, #tpu.memory_space<vmem>>, vector<1x512xf32>
    %c1_35 = arith.constant 1 : index
    %c0_36 = arith.constant 0 : index
    %c0_37 = arith.constant 0 : index
    %70 = vector.load %arg6[%c1_35, %c0_36, %c0_37] : memref<3x512x512xbf16, #tpu.memory_space<vmem>>, vector<1x512x512xbf16>
    %71 = vector.shape_cast %70 : vector<1x512x512xbf16> to vector<512x512xbf16>
    %cst_38 = arith.constant dense<0.000000e+00> : vector<16x512xf32>
    %72 = tpu.matmul %68, %71, %cst_38 {dimension_numbers = #tpu.dot_dimension_numbers<[1], [0], [0], [1], [0, 0, 1, 1], [], []>} : vector<16x512xbf16>, vector<512x512xbf16>, vector<16x512xf32> -> vector<16x512xf32>
    %c0_39 = arith.constant 0 : index
    %c0_40 = arith.constant 0 : index
    %c0_41 = arith.constant 0 : index
    %73 = vector.load %arg6[%c0_39, %c0_40, %c0_41] : memref<3x512x512xbf16, #tpu.memory_space<vmem>>, vector<1x512x512xbf16>
    %74 = vector.shape_cast %73 : vector<1x512x512xbf16> to vector<512x512xbf16>
    %cst_42 = arith.constant dense<0.000000e+00> : vector<16x512xf32>
    %75 = tpu.matmul %68, %74, %cst_42 {dimension_numbers = #tpu.dot_dimension_numbers<[1], [0], [0], [1], [0, 0, 1, 1], [], []>} : vector<16x512xbf16>, vector<512x512xbf16>, vector<16x512xf32> -> vector<16x512xf32>
    %cst_43 = arith.constant 0.000000e+00 : f32
    %76 = vector.broadcast %cst_43 : f32 to vector<1x512xf32>
    %77 = vector.extract_strided_slice %75 {offsets = [0, 0], sizes = [15, 512], strides = [1, 1]} : vector<16x512xf32> to vector<15x512xf32>
    %78 = tpu.concatenate %76, %77 in 0 : vector<1x512xf32>, vector<15x512xf32> -> vector<16x512xf32>
    %79 = arith.addf %72, %78 : vector<16x512xf32>
    %c2_44 = arith.constant 2 : index
    %c0_45 = arith.constant 0 : index
    %c0_46 = arith.constant 0 : index
    %80 = vector.load %arg6[%c2_44, %c0_45, %c0_46] : memref<3x512x512xbf16, #tpu.memory_space<vmem>>, vector<1x512x512xbf16>
    %81 = vector.shape_cast %80 : vector<1x512x512xbf16> to vector<512x512xbf16>
    %cst_47 = arith.constant dense<0.000000e+00> : vector<16x512xf32>
    %82 = tpu.matmul %68, %81, %cst_47 {dimension_numbers = #tpu.dot_dimension_numbers<[1], [0], [0], [1], [0, 0, 1, 1], [], []>} : vector<16x512xbf16>, vector<512x512xbf16>, vector<16x512xf32> -> vector<16x512xf32>
    %cst_48 = arith.constant 0.000000e+00 : f32
    %83 = vector.broadcast %cst_48 : f32 to vector<1x512xf32>
    %84 = vector.extract_strided_slice %82 {offsets = [1, 0], sizes = [15, 512], strides = [1, 1]} : vector<16x512xf32> to vector<15x512xf32>
    %85 = tpu.concatenate %84, %83 in 0 : vector<15x512xf32>, vector<1x512xf32> -> vector<16x512xf32>
    %86 = arith.addf %79, %85 : vector<16x512xf32>
    %87 = vector.broadcast %69 : vector<1x512xf32> to vector<16x512xf32>
    %88 = arith.addf %86, %87 : vector<16x512xf32>
    %c0_49 = arith.constant 0 : index
    %c0_50 = arith.constant 0 : index
    %89 = vector.load %arg8[%c0_49, %c0_50] : memref<1x512xf32, #tpu.memory_space<vmem>>, vector<1x512xf32>
    %c0_51 = arith.constant 0 : index
    %c0_52 = arith.constant 0 : index
    %90 = vector.load %arg9[%c0_51, %c0_52] : memref<1x512xf32, #tpu.memory_space<vmem>>, vector<1x512xf32>
    %cst_53 = arith.constant dense<0.000000e+00> : vector<512xf32>
    %91 = vector.multi_reduction <add>, %88, %cst_53 [0] : vector<16x512xf32> to vector<512xf32>
    %92 = vector.shape_cast %91 : vector<512xf32> to vector<1x512xf32>
    %93 = arith.mulf %88, %88 : vector<16x512xf32>
    %cst_54 = arith.constant dense<0.000000e+00> : vector<512xf32>
    %94 = vector.multi_reduction <add>, %93, %cst_54 [0] : vector<16x512xf32> to vector<512xf32>
    %95 = vector.shape_cast %94 : vector<512xf32> to vector<1x512xf32>
    %96 = tpu.concatenate %92, %95 in 0 : vector<1x512xf32>, vector<1x512xf32> -> vector<2x512xf32>
    %c0_55 = arith.constant 0 : index
    %c0_56 = arith.constant 0 : index
    %97 = vector.load %arg10[%c0_55, %c0_56] : memref<512x8xf32, #tpu.memory_space<vmem>>, vector<512x8xf32>
    %cst_57 = arith.constant dense<0.000000e+00> : vector<2x8xf32>
    %98 = tpu.matmul %96, %97, %cst_57 {dimension_numbers = #tpu.dot_dimension_numbers<[1], [0], [0], [1], [0, 0, 1, 1], [], []>} : vector<2x512xf32>, vector<512x8xf32>, vector<2x8xf32> -> vector<2x8xf32>
    %99 = vector.extract_strided_slice %98 {offsets = [0, 0], sizes = [1, 8], strides = [1, 1]} : vector<2x8xf32> to vector<1x8xf32>
    %100 = vector.extract_strided_slice %98 {offsets = [1, 0], sizes = [1, 8], strides = [1, 1]} : vector<2x8xf32> to vector<1x8xf32>
    %101 = arith.mulf %99, %99 : vector<1x8xf32>
    %102 = arith.subf %100, %101 : vector<1x8xf32>
    %cst_58 = arith.constant 0.000000e+00 : f32
    %103 = vector.broadcast %cst_58 : f32 to vector<1x8xf32>
    %104 = arith.maximumf %102, %103 : vector<1x8xf32>
    %cst_59 = arith.constant 9.99999974E-6 : f32
    %105 = vector.broadcast %cst_59 : f32 to vector<1x8xf32>
    %106 = arith.addf %104, %105 : vector<1x8xf32>
    %107 = math.rsqrt %106 : vector<1x8xf32>
    %108 = tpu.concatenate %99, %107 in 0 : vector<1x8xf32>, vector<1x8xf32> -> vector<2x8xf32>
    %c0_60 = arith.constant 0 : index
    %c0_61 = arith.constant 0 : index
    %109 = vector.load %arg11[%c0_60, %c0_61] : memref<8x512xf32, #tpu.memory_space<vmem>>, vector<8x512xf32>
    %cst_62 = arith.constant dense<0.000000e+00> : vector<2x512xf32>
    %110 = tpu.matmul %108, %109, %cst_62 {dimension_numbers = #tpu.dot_dimension_numbers<[1], [0], [0], [1], [0, 0, 1, 1], [], []>} : vector<2x8xf32>, vector<8x512xf32>, vector<2x512xf32> -> vector<2x512xf32>
    %111 = vector.extract_strided_slice %110 {offsets = [0, 0], sizes = [1, 512], strides = [1, 1]} : vector<2x512xf32> to vector<1x512xf32>
    %112 = vector.broadcast %111 : vector<1x512xf32> to vector<16x512xf32>
    %113 = arith.subf %88, %112 : vector<16x512xf32>
    %114 = vector.extract_strided_slice %110 {offsets = [1, 0], sizes = [1, 512], strides = [1, 1]} : vector<2x512xf32> to vector<1x512xf32>
    %115 = vector.broadcast %114 : vector<1x512xf32> to vector<16x512xf32>
    %116 = arith.mulf %113, %115 : vector<16x512xf32>
    %117 = vector.broadcast %89 : vector<1x512xf32> to vector<16x512xf32>
    %118 = arith.mulf %116, %117 : vector<16x512xf32>
    %119 = vector.broadcast %90 : vector<1x512xf32> to vector<16x512xf32>
    %120 = arith.addf %118, %119 : vector<16x512xf32>
    %cst_63 = arith.constant dense<0.000000e+00> : vector<512xf32>
    %121 = vector.multi_reduction <add>, %120, %cst_63 [0] : vector<16x512xf32> to vector<512xf32>
    %122 = vector.shape_cast %121 : vector<512xf32> to vector<1x512xf32>
    %c0_64 = arith.constant 0 : index
    %c0_65 = arith.constant 0 : index
    %123 = vector.load %arg12[%c0_64, %c0_65] : memref<512x32xf32, #tpu.memory_space<vmem>>, vector<512x32xf32>
    %cst_66 = arith.constant dense<0.000000e+00> : vector<1x32xf32>
    %124 = tpu.matmul %122, %123, %cst_66 {dimension_numbers = #tpu.dot_dimension_numbers<[1], [0], [0], [1], [0, 0, 1, 1], [], []>} : vector<1x512xf32>, vector<512x32xf32>, vector<1x32xf32> -> vector<1x32xf32>
    %cst_67 = arith.constant dense<0xFF800000> : vector<512xf32>
    %125 = vector.multi_reduction <maximumf>, %120, %cst_67 [0] : vector<16x512xf32> to vector<512xf32>
    %126 = vector.shape_cast %125 : vector<512xf32> to vector<1x512xf32>
    %127 = vector.extract_strided_slice %126 {offsets = [0, 0], sizes = [1, 32], strides = [1, 1]} : vector<1x512xf32> to vector<1x32xf32>
    %128 = vector.extract_strided_slice %126 {offsets = [0, 32], sizes = [1, 32], strides = [1, 1]} : vector<1x512xf32> to vector<1x32xf32>
    %129 = arith.maximumf %127, %128 : vector<1x32xf32>
    %130 = vector.extract_strided_slice %126 {offsets = [0, 64], sizes = [1, 32], strides = [1, 1]} : vector<1x512xf32> to vector<1x32xf32>
    %131 = arith.maximumf %129, %130 : vector<1x32xf32>
    %132 = vector.extract_strided_slice %126 {offsets = [0, 96], sizes = [1, 32], strides = [1, 1]} : vector<1x512xf32> to vector<1x32xf32>
    %133 = arith.maximumf %131, %132 : vector<1x32xf32>
    %134 = vector.extract_strided_slice %126 {offsets = [0, 128], sizes = [1, 32], strides = [1, 1]} : vector<1x512xf32> to vector<1x32xf32>
    %135 = arith.maximumf %133, %134 : vector<1x32xf32>
    %136 = vector.extract_strided_slice %126 {offsets = [0, 160], sizes = [1, 32], strides = [1, 1]} : vector<1x512xf32> to vector<1x32xf32>
    %137 = arith.maximumf %135, %136 : vector<1x32xf32>
    %138 = vector.extract_strided_slice %126 {offsets = [0, 192], sizes = [1, 32], strides = [1, 1]} : vector<1x512xf32> to vector<1x32xf32>
    %139 = arith.maximumf %137, %138 : vector<1x32xf32>
    %140 = vector.extract_strided_slice %126 {offsets = [0, 224], sizes = [1, 32], strides = [1, 1]} : vector<1x512xf32> to vector<1x32xf32>
    %141 = arith.maximumf %139, %140 : vector<1x32xf32>
    %142 = vector.extract_strided_slice %126 {offsets = [0, 256], sizes = [1, 32], strides = [1, 1]} : vector<1x512xf32> to vector<1x32xf32>
    %143 = arith.maximumf %141, %142 : vector<1x32xf32>
    %144 = vector.extract_strided_slice %126 {offsets = [0, 288], sizes = [1, 32], strides = [1, 1]} : vector<1x512xf32> to vector<1x32xf32>
    %145 = arith.maximumf %143, %144 : vector<1x32xf32>
    %146 = vector.extract_strided_slice %126 {offsets = [0, 320], sizes = [1, 32], strides = [1, 1]} : vector<1x512xf32> to vector<1x32xf32>
    %147 = arith.maximumf %145, %146 : vector<1x32xf32>
    %148 = vector.extract_strided_slice %126 {offsets = [0, 352], sizes = [1, 32], strides = [1, 1]} : vector<1x512xf32> to vector<1x32xf32>
    %149 = arith.maximumf %147, %148 : vector<1x32xf32>
    %150 = vector.extract_strided_slice %126 {offsets = [0, 384], sizes = [1, 32], strides = [1, 1]} : vector<1x512xf32> to vector<1x32xf32>
    %151 = arith.maximumf %149, %150 : vector<1x32xf32>
    %152 = vector.extract_strided_slice %126 {offsets = [0, 416], sizes = [1, 32], strides = [1, 1]} : vector<1x512xf32> to vector<1x32xf32>
    %153 = arith.maximumf %151, %152 : vector<1x32xf32>
    %154 = vector.extract_strided_slice %126 {offsets = [0, 448], sizes = [1, 32], strides = [1, 1]} : vector<1x512xf32> to vector<1x32xf32>
    %155 = arith.maximumf %153, %154 : vector<1x32xf32>
    %156 = vector.extract_strided_slice %126 {offsets = [0, 480], sizes = [1, 32], strides = [1, 1]} : vector<1x512xf32> to vector<1x32xf32>
    %157 = arith.maximumf %155, %156 : vector<1x32xf32>
    %158 = tpu.concatenate %124, %157 in 0 : vector<1x32xf32>, vector<1x32xf32> -> vector<2x32xf32>
    %c0_68 = arith.constant 0 : index
    %c0_69 = arith.constant 0 : index
    %159 = vector.load %arg16[%c0_68, %c0_69] : memref<32x4xf32, #tpu.memory_space<vmem>>, vector<32x4xf32>
    %cst_70 = arith.constant dense<0.000000e+00> : vector<2x4xf32>
    %160 = tpu.matmul %158, %159, %cst_70 {dimension_numbers = #tpu.dot_dimension_numbers<[1], [0], [0], [1], [0, 0, 1, 1], [], []>} : vector<2x32xf32>, vector<32x4xf32>, vector<2x4xf32> -> vector<2x4xf32>
    %c0_71 = arith.constant 0 : index
    %c0_72 = arith.constant 0 : index
    %161 = vector.load %arg17[%c0_71, %c0_72] : memref<1x4xf32, #tpu.memory_space<vmem>>, vector<1x4xf32>
    %162 = vector.broadcast %161 : vector<1x4xf32> to vector<2x4xf32>
    %163 = arith.addf %160, %162 : vector<2x4xf32>
    %cst_73 = arith.constant 0.000000e+00 : f32
    %164 = vector.broadcast %cst_73 : f32 to vector<2x4xf32>
    %165 = arith.maximumf %163, %164 : vector<2x4xf32>
    %c0_74 = arith.constant 0 : index
    %c0_75 = arith.constant 0 : index
    %166 = vector.load %arg18[%c0_74, %c0_75] : memref<4x32xf32, #tpu.memory_space<vmem>>, vector<4x32xf32>
    %cst_76 = arith.constant dense<0.000000e+00> : vector<2x32xf32>
    %167 = tpu.matmul %165, %166, %cst_76 {dimension_numbers = #tpu.dot_dimension_numbers<[1], [0], [0], [1], [0, 0, 1, 1], [], []>} : vector<2x4xf32>, vector<4x32xf32>, vector<2x32xf32> -> vector<2x32xf32>
    %c0_77 = arith.constant 0 : index
    %c0_78 = arith.constant 0 : index
    %168 = vector.load %arg19[%c0_77, %c0_78] : memref<1x32xf32, #tpu.memory_space<vmem>>, vector<1x32xf32>
    %169 = vector.broadcast %168 : vector<1x32xf32> to vector<2x32xf32>
    %170 = arith.addf %167, %169 : vector<2x32xf32>
    %171 = vector.extract_strided_slice %170 {offsets = [0, 0], sizes = [1, 32], strides = [1, 1]} : vector<2x32xf32> to vector<1x32xf32>
    %172 = vector.extract_strided_slice %170 {offsets = [1, 0], sizes = [1, 32], strides = [1, 1]} : vector<2x32xf32> to vector<1x32xf32>
    %173 = arith.addf %171, %172 : vector<1x32xf32>
    %174 = arith.negf %173 : vector<1x32xf32>
    %175 = math.exp %174 : vector<1x32xf32>
    %cst_79 = arith.constant 1.000000e+00 : f32
    %176 = vector.broadcast %cst_79 : f32 to vector<1x32xf32>
    %177 = arith.addf %176, %175 : vector<1x32xf32>
    %178 = arith.divf %176, %177 : vector<1x32xf32>
    %c0_80 = arith.constant 0 : index
    %c0_81 = arith.constant 0 : index
    %179 = vector.load %arg13[%c0_80, %c0_81] : memref<32x512xf32, #tpu.memory_space<vmem>>, vector<32x512xf32>
    %cst_82 = arith.constant dense<0.000000e+00> : vector<1x512xf32>
    %180 = tpu.matmul %178, %179, %cst_82 {dimension_numbers = #tpu.dot_dimension_numbers<[1], [0], [0], [1], [0, 0, 1, 1], [], []>} : vector<1x32xf32>, vector<32x512xf32>, vector<1x512xf32> -> vector<1x512xf32>
    %181 = vector.broadcast %180 : vector<1x512xf32> to vector<16x512xf32>
    %182 = arith.mulf %120, %181 : vector<16x512xf32>
    %c0_83 = arith.constant 0 : index
    %c0_84 = arith.constant 0 : index
    %183 = vector.load %arg15[%c0_83, %c0_84] : memref<512x16xf32, #tpu.memory_space<vmem>>, vector<512x16xf32>
    %cst_85 = arith.constant dense<0.000000e+00> : vector<16x16xf32>
    %184 = tpu.matmul %182, %183, %cst_85 {dimension_numbers = #tpu.dot_dimension_numbers<[1], [0], [0], [1], [0, 0, 1, 1], [], []>} : vector<16x512xf32>, vector<512x16xf32>, vector<16x16xf32> -> vector<16x16xf32>
    %185 = vector.extract_strided_slice %182 {offsets = [0, 0], sizes = [16, 32], strides = [1, 1]} : vector<16x512xf32> to vector<16x32xf32>
    %cst_86 = arith.constant dense<0xFF800000> : vector<16xf32>
    %186 = vector.multi_reduction <maximumf>, %185, %cst_86 [1] : vector<16x32xf32> to vector<16xf32>
    %187 = vector.shape_cast %186 : vector<16xf32> to vector<16x1xf32>
    %188 = vector.extract_strided_slice %182 {offsets = [0, 32], sizes = [16, 32], strides = [1, 1]} : vector<16x512xf32> to vector<16x32xf32>
    %cst_87 = arith.constant dense<0xFF800000> : vector<16xf32>
    %189 = vector.multi_reduction <maximumf>, %188, %cst_87 [1] : vector<16x32xf32> to vector<16xf32>
    %190 = vector.shape_cast %189 : vector<16xf32> to vector<16x1xf32>
    %191 = vector.extract_strided_slice %182 {offsets = [0, 64], sizes = [16, 32], strides = [1, 1]} : vector<16x512xf32> to vector<16x32xf32>
    %cst_88 = arith.constant dense<0xFF800000> : vector<16xf32>
    %192 = vector.multi_reduction <maximumf>, %191, %cst_88 [1] : vector<16x32xf32> to vector<16xf32>
    %193 = vector.shape_cast %192 : vector<16xf32> to vector<16x1xf32>
    %194 = vector.extract_strided_slice %182 {offsets = [0, 96], sizes = [16, 32], strides = [1, 1]} : vector<16x512xf32> to vector<16x32xf32>
    %cst_89 = arith.constant dense<0xFF800000> : vector<16xf32>
    %195 = vector.multi_reduction <maximumf>, %194, %cst_89 [1] : vector<16x32xf32> to vector<16xf32>
    %196 = vector.shape_cast %195 : vector<16xf32> to vector<16x1xf32>
    %197 = vector.extract_strided_slice %182 {offsets = [0, 128], sizes = [16, 32], strides = [1, 1]} : vector<16x512xf32> to vector<16x32xf32>
    %cst_90 = arith.constant dense<0xFF800000> : vector<16xf32>
    %198 = vector.multi_reduction <maximumf>, %197, %cst_90 [1] : vector<16x32xf32> to vector<16xf32>
    %199 = vector.shape_cast %198 : vector<16xf32> to vector<16x1xf32>
    %200 = vector.extract_strided_slice %182 {offsets = [0, 160], sizes = [16, 32], strides = [1, 1]} : vector<16x512xf32> to vector<16x32xf32>
    %cst_91 = arith.constant dense<0xFF800000> : vector<16xf32>
    %201 = vector.multi_reduction <maximumf>, %200, %cst_91 [1] : vector<16x32xf32> to vector<16xf32>
    %202 = vector.shape_cast %201 : vector<16xf32> to vector<16x1xf32>
    %203 = vector.extract_strided_slice %182 {offsets = [0, 192], sizes = [16, 32], strides = [1, 1]} : vector<16x512xf32> to vector<16x32xf32>
    %cst_92 = arith.constant dense<0xFF800000> : vector<16xf32>
    %204 = vector.multi_reduction <maximumf>, %203, %cst_92 [1] : vector<16x32xf32> to vector<16xf32>
    %205 = vector.shape_cast %204 : vector<16xf32> to vector<16x1xf32>
    %206 = vector.extract_strided_slice %182 {offsets = [0, 224], sizes = [16, 32], strides = [1, 1]} : vector<16x512xf32> to vector<16x32xf32>
    %cst_93 = arith.constant dense<0xFF800000> : vector<16xf32>
    %207 = vector.multi_reduction <maximumf>, %206, %cst_93 [1] : vector<16x32xf32> to vector<16xf32>
    %208 = vector.shape_cast %207 : vector<16xf32> to vector<16x1xf32>
    %209 = vector.extract_strided_slice %182 {offsets = [0, 256], sizes = [16, 32], strides = [1, 1]} : vector<16x512xf32> to vector<16x32xf32>
    %cst_94 = arith.constant dense<0xFF800000> : vector<16xf32>
    %210 = vector.multi_reduction <maximumf>, %209, %cst_94 [1] : vector<16x32xf32> to vector<16xf32>
    %211 = vector.shape_cast %210 : vector<16xf32> to vector<16x1xf32>
    %212 = vector.extract_strided_slice %182 {offsets = [0, 288], sizes = [16, 32], strides = [1, 1]} : vector<16x512xf32> to vector<16x32xf32>
    %cst_95 = arith.constant dense<0xFF800000> : vector<16xf32>
    %213 = vector.multi_reduction <maximumf>, %212, %cst_95 [1] : vector<16x32xf32> to vector<16xf32>
    %214 = vector.shape_cast %213 : vector<16xf32> to vector<16x1xf32>
    %215 = vector.extract_strided_slice %182 {offsets = [0, 320], sizes = [16, 32], strides = [1, 1]} : vector<16x512xf32> to vector<16x32xf32>
    %cst_96 = arith.constant dense<0xFF800000> : vector<16xf32>
    %216 = vector.multi_reduction <maximumf>, %215, %cst_96 [1] : vector<16x32xf32> to vector<16xf32>
    %217 = vector.shape_cast %216 : vector<16xf32> to vector<16x1xf32>
    %218 = vector.extract_strided_slice %182 {offsets = [0, 352], sizes = [16, 32], strides = [1, 1]} : vector<16x512xf32> to vector<16x32xf32>
    %cst_97 = arith.constant dense<0xFF800000> : vector<16xf32>
    %219 = vector.multi_reduction <maximumf>, %218, %cst_97 [1] : vector<16x32xf32> to vector<16xf32>
    %220 = vector.shape_cast %219 : vector<16xf32> to vector<16x1xf32>
    %221 = vector.extract_strided_slice %182 {offsets = [0, 384], sizes = [16, 32], strides = [1, 1]} : vector<16x512xf32> to vector<16x32xf32>
    %cst_98 = arith.constant dense<0xFF800000> : vector<16xf32>
    %222 = vector.multi_reduction <maximumf>, %221, %cst_98 [1] : vector<16x32xf32> to vector<16xf32>
    %223 = vector.shape_cast %222 : vector<16xf32> to vector<16x1xf32>
    %224 = vector.extract_strided_slice %182 {offsets = [0, 416], sizes = [16, 32], strides = [1, 1]} : vector<16x512xf32> to vector<16x32xf32>
    %cst_99 = arith.constant dense<0xFF800000> : vector<16xf32>
    %225 = vector.multi_reduction <maximumf>, %224, %cst_99 [1] : vector<16x32xf32> to vector<16xf32>
    %226 = vector.shape_cast %225 : vector<16xf32> to vector<16x1xf32>
    %227 = vector.extract_strided_slice %182 {offsets = [0, 448], sizes = [16, 32], strides = [1, 1]} : vector<16x512xf32> to vector<16x32xf32>
    %cst_100 = arith.constant dense<0xFF800000> : vector<16xf32>
    %228 = vector.multi_reduction <maximumf>, %227, %cst_100 [1] : vector<16x32xf32> to vector<16xf32>
    %229 = vector.shape_cast %228 : vector<16xf32> to vector<16x1xf32>
    %230 = vector.extract_strided_slice %182 {offsets = [0, 480], sizes = [16, 32], strides = [1, 1]} : vector<16x512xf32> to vector<16x32xf32>
    %cst_101 = arith.constant dense<0xFF800000> : vector<16xf32>
    %231 = vector.multi_reduction <maximumf>, %230, %cst_101 [1] : vector<16x32xf32> to vector<16xf32>
    %232 = vector.shape_cast %231 : vector<16xf32> to vector<16x1xf32>
    %233 = tpu.concatenate %187, %190, %193, %196, %199, %202, %205, %208, %211, %214, %217, %220, %223, %226, %229, %232 in 1 : vector<16x1xf32>, vector<16x1xf32>, vector<16x1xf32>, vector<16x1xf32>, vector<16x1xf32>, vector<16x1xf32>, vector<16x1xf32>, vector<16x1xf32>, vector<16x1xf32>, vector<16x1xf32>, vector<16x1xf32>, vector<16x1xf32>, vector<16x1xf32>, vector<16x1xf32>, vector<16x1xf32>, vector<16x1xf32> -> vector<16x16xf32>
    %234 = tpu.concatenate %184, %233 in 1 : vector<16x16xf32>, vector<16x16xf32> -> vector<16x32xf32>
    %c0_102 = arith.constant 0 : index
    %c0_103 = arith.constant 0 : index
    %235 = memref.load %arg29[%c0_102, %c0_103] : memref<1x1xf32, #tpu.memory_space<smem>>
    %236 = vector.broadcast %235 : f32 to vector<16x16xf32>
    %c0_104 = arith.constant 0 : index
    %c0_105 = arith.constant 0 : index
    %c0_106 = arith.constant 0 : index
    %237 = vector.load %arg28[%c0_104, %c0_105, %c0_106] : memref<7x32x16xf32, #tpu.memory_space<vmem>>, vector<1x32x16xf32>
    %238 = vector.shape_cast %237 : vector<1x32x16xf32> to vector<32x16xf32>
    %cst_107 = arith.constant dense<0.000000e+00> : vector<16x16xf32>
    %239 = tpu.matmul %234, %238, %cst_107 {dimension_numbers = #tpu.dot_dimension_numbers<[1], [0], [0], [1], [0, 0, 1, 1], [], []>} : vector<16x32xf32>, vector<32x16xf32>, vector<16x16xf32> -> vector<16x16xf32>
    %cst_108 = arith.constant 0.000000e+00 : f32
    %240 = vector.broadcast %cst_108 : f32 to vector<3x16xf32>
    %241 = vector.extract_strided_slice %239 {offsets = [0, 0], sizes = [13, 16], strides = [1, 1]} : vector<16x16xf32> to vector<13x16xf32>
    %242 = tpu.concatenate %240, %241 in 0 : vector<3x16xf32>, vector<13x16xf32> -> vector<16x16xf32>
    %243 = arith.addf %236, %242 : vector<16x16xf32>
    %c1_109 = arith.constant 1 : index
    %c0_110 = arith.constant 0 : index
    %c0_111 = arith.constant 0 : index
    %244 = vector.load %arg28[%c1_109, %c0_110, %c0_111] : memref<7x32x16xf32, #tpu.memory_space<vmem>>, vector<1x32x16xf32>
    %245 = vector.shape_cast %244 : vector<1x32x16xf32> to vector<32x16xf32>
    %cst_112 = arith.constant dense<0.000000e+00> : vector<16x16xf32>
    %246 = tpu.matmul %234, %245, %cst_112 {dimension_numbers = #tpu.dot_dimension_numbers<[1], [0], [0], [1], [0, 0, 1, 1], [], []>} : vector<16x32xf32>, vector<32x16xf32>, vector<16x16xf32> -> vector<16x16xf32>
    %cst_113 = arith.constant 0.000000e+00 : f32
    %247 = vector.broadcast %cst_113 : f32 to vector<2x16xf32>
    %248 = vector.extract_strided_slice %246 {offsets = [0, 0], sizes = [14, 16], strides = [1, 1]} : vector<16x16xf32> to vector<14x16xf32>
    %249 = tpu.concatenate %247, %248 in 0 : vector<2x16xf32>, vector<14x16xf32> -> vector<16x16xf32>
    %250 = arith.addf %243, %249 : vector<16x16xf32>
    %c2_114 = arith.constant 2 : index
    %c0_115 = arith.constant 0 : index
    %c0_116 = arith.constant 0 : index
    %251 = vector.load %arg28[%c2_114, %c0_115, %c0_116] : memref<7x32x16xf32, #tpu.memory_space<vmem>>, vector<1x32x16xf32>
    %252 = vector.shape_cast %251 : vector<1x32x16xf32> to vector<32x16xf32>
    %cst_117 = arith.constant dense<0.000000e+00> : vector<16x16xf32>
    %253 = tpu.matmul %234, %252, %cst_117 {dimension_numbers = #tpu.dot_dimension_numbers<[1], [0], [0], [1], [0, 0, 1, 1], [], []>} : vector<16x32xf32>, vector<32x16xf32>, vector<16x16xf32> -> vector<16x16xf32>
    %cst_118 = arith.constant 0.000000e+00 : f32
    %254 = vector.broadcast %cst_118 : f32 to vector<1x16xf32>
    %255 = vector.extract_strided_slice %253 {offsets = [0, 0], sizes = [15, 16], strides = [1, 1]} : vector<16x16xf32> to vector<15x16xf32>
    %256 = tpu.concatenate %254, %255 in 0 : vector<1x16xf32>, vector<15x16xf32> -> vector<16x16xf32>
    %257 = arith.addf %250, %256 : vector<16x16xf32>
    %c3 = arith.constant 3 : index
    %c0_119 = arith.constant 0 : index
    %c0_120 = arith.constant 0 : index
    %258 = vector.load %arg28[%c3, %c0_119, %c0_120] : memref<7x32x16xf32, #tpu.memory_space<vmem>>, vector<1x32x16xf32>
    %259 = vector.shape_cast %258 : vector<1x32x16xf32> to vector<32x16xf32>
    %cst_121 = arith.constant dense<0.000000e+00> : vector<16x16xf32>
    %260 = tpu.matmul %234, %259, %cst_121 {dimension_numbers = #tpu.dot_dimension_numbers<[1], [0], [0], [1], [0, 0, 1, 1], [], []>} : vector<16x32xf32>, vector<32x16xf32>, vector<16x16xf32> -> vector<16x16xf32>
    %261 = arith.addf %257, %260 : vector<16x16xf32>
    %c4 = arith.constant 4 : index
    %c0_122 = arith.constant 0 : index
    %c0_123 = arith.constant 0 : index
    %262 = vector.load %arg28[%c4, %c0_122, %c0_123] : memref<7x32x16xf32, #tpu.memory_space<vmem>>, vector<1x32x16xf32>
    %263 = vector.shape_cast %262 : vector<1x32x16xf32> to vector<32x16xf32>
    %cst_124 = arith.constant dense<0.000000e+00> : vector<16x16xf32>
    %264 = tpu.matmul %234, %263, %cst_124 {dimension_numbers = #tpu.dot_dimension_numbers<[1], [0], [0], [1], [0, 0, 1, 1], [], []>} : vector<16x32xf32>, vector<32x16xf32>, vector<16x16xf32> -> vector<16x16xf32>
    %cst_125 = arith.constant 0.000000e+00 : f32
    %265 = vector.broadcast %cst_125 : f32 to vector<1x16xf32>
    %266 = vector.extract_strided_slice %264 {offsets = [1, 0], sizes = [15, 16], strides = [1, 1]} : vector<16x16xf32> to vector<15x16xf32>
    %267 = tpu.concatenate %266, %265 in 0 : vector<15x16xf32>, vector<1x16xf32> -> vector<16x16xf32>
    %268 = arith.addf %261, %267 : vector<16x16xf32>
    %c5 = arith.constant 5 : index
    %c0_126 = arith.constant 0 : index
    %c0_127 = arith.constant 0 : index
    %269 = vector.load %arg28[%c5, %c0_126, %c0_127] : memref<7x32x16xf32, #tpu.memory_space<vmem>>, vector<1x32x16xf32>
    %270 = vector.shape_cast %269 : vector<1x32x16xf32> to vector<32x16xf32>
    %cst_128 = arith.constant dense<0.000000e+00> : vector<16x16xf32>
    %271 = tpu.matmul %234, %270, %cst_128 {dimension_numbers = #tpu.dot_dimension_numbers<[1], [0], [0], [1], [0, 0, 1, 1], [], []>} : vector<16x32xf32>, vector<32x16xf32>, vector<16x16xf32> -> vector<16x16xf32>
    %cst_129 = arith.constant 0.000000e+00 : f32
    %272 = vector.broadcast %cst_129 : f32 to vector<2x16xf32>
    %273 = vector.extract_strided_slice %271 {offsets = [2, 0], sizes = [14, 16], strides = [1, 1]} : vector<16x16xf32> to vector<14x16xf32>
    %274 = tpu.concatenate %273, %272 in 0 : vector<14x16xf32>, vector<2x16xf32> -> vector<16x16xf32>
    %275 = arith.addf %268, %274 : vector<16x16xf32>
    %c6 = arith.constant 6 : index
    %c0_130 = arith.constant 0 : index
    %c0_131 = arith.constant 0 : index
    %276 = vector.load %arg28[%c6, %c0_130, %c0_131] : memref<7x32x16xf32, #tpu.memory_space<vmem>>, vector<1x32x16xf32>
    %277 = vector.shape_cast %276 : vector<1x32x16xf32> to vector<32x16xf32>
    %cst_132 = arith.constant dense<0.000000e+00> : vector<16x16xf32>
    %278 = tpu.matmul %234, %277, %cst_132 {dimension_numbers = #tpu.dot_dimension_numbers<[1], [0], [0], [1], [0, 0, 1, 1], [], []>} : vector<16x32xf32>, vector<32x16xf32>, vector<16x16xf32> -> vector<16x16xf32>
    %cst_133 = arith.constant 0.000000e+00 : f32
    %279 = vector.broadcast %cst_133 : f32 to vector<3x16xf32>
    %280 = vector.extract_strided_slice %278 {offsets = [3, 0], sizes = [13, 16], strides = [1, 1]} : vector<16x16xf32> to vector<13x16xf32>
    %281 = tpu.concatenate %280, %279 in 0 : vector<13x16xf32>, vector<3x16xf32> -> vector<16x16xf32>
    %282 = arith.addf %275, %281 : vector<16x16xf32>
    %283 = arith.negf %282 : vector<16x16xf32>
    %284 = math.exp %283 : vector<16x16xf32>
    %cst_134 = arith.constant 1.000000e+00 : f32
    %285 = vector.broadcast %cst_134 : f32 to vector<16x16xf32>
    %286 = arith.addf %285, %284 : vector<16x16xf32>
    %287 = arith.divf %285, %286 : vector<16x16xf32>
    %c0_135 = arith.constant 0 : index
    %c0_136 = arith.constant 0 : index
    %288 = vector.load %arg14[%c0_135, %c0_136] : memref<16x512xf32, #tpu.memory_space<vmem>>, vector<16x512xf32>
    %cst_137 = arith.constant dense<0.000000e+00> : vector<16x512xf32>
    %289 = tpu.matmul %287, %288, %cst_137 {dimension_numbers = #tpu.dot_dimension_numbers<[1], [0], [0], [1], [0, 0, 1, 1], [], []>} : vector<16x16xf32>, vector<16x512xf32>, vector<16x512xf32> -> vector<16x512xf32>
    %290 = arith.mulf %182, %289 : vector<16x512xf32>
    %cst_138 = arith.constant dense<0.000000e+00> : vector<512xf32>
    %291 = vector.multi_reduction <add>, %290, %cst_138 [0] : vector<16x512xf32> to vector<512xf32>
    %292 = vector.shape_cast %291 : vector<512xf32> to vector<1x512xf32>
    %c0_139 = arith.constant 0 : index
    %c0_140 = arith.constant 0 : index
    %293 = vector.load %arg12[%c0_139, %c0_140] : memref<512x32xf32, #tpu.memory_space<vmem>>, vector<512x32xf32>
    %cst_141 = arith.constant dense<0.000000e+00> : vector<1x32xf32>
    %294 = tpu.matmul %292, %293, %cst_141 {dimension_numbers = #tpu.dot_dimension_numbers<[1], [0], [0], [1], [0, 0, 1, 1], [], []>} : vector<1x512xf32>, vector<512x32xf32>, vector<1x32xf32> -> vector<1x32xf32>
    %c0_142 = arith.constant 0 : index
    %c0_143 = arith.constant 0 : index
    %295 = vector.load %arg20[%c0_142, %c0_143] : memref<32x2xf32, #tpu.memory_space<vmem>>, vector<32x2xf32>
    %cst_144 = arith.constant dense<0.000000e+00> : vector<1x2xf32>
    %296 = tpu.matmul %294, %295, %cst_144 {dimension_numbers = #tpu.dot_dimension_numbers<[1], [0], [0], [1], [0, 0, 1, 1], [], []>} : vector<1x32xf32>, vector<32x2xf32>, vector<1x2xf32> -> vector<1x2xf32>
    %c0_145 = arith.constant 0 : index
    %c0_146 = arith.constant 0 : index
    %297 = vector.load %arg21[%c0_145, %c0_146] : memref<1x2xf32, #tpu.memory_space<vmem>>, vector<1x2xf32>
    %298 = arith.addf %296, %297 : vector<1x2xf32>
    %cst_147 = arith.constant 0.000000e+00 : f32
    %299 = vector.broadcast %cst_147 : f32 to vector<1x2xf32>
    %300 = arith.maximumf %298, %299 : vector<1x2xf32>
    %c0_148 = arith.constant 0 : index
    %c0_149 = arith.constant 0 : index
    %301 = vector.load %arg22[%c0_148, %c0_149] : memref<2x32xf32, #tpu.memory_space<vmem>>, vector<2x32xf32>
    %cst_150 = arith.constant dense<0.000000e+00> : vector<1x32xf32>
    %302 = tpu.matmul %300, %301, %cst_150 {dimension_numbers = #tpu.dot_dimension_numbers<[1], [0], [0], [1], [0, 0, 1, 1], [], []>} : vector<1x2xf32>, vector<2x32xf32>, vector<1x32xf32> -> vector<1x32xf32>
    %c0_151 = arith.constant 0 : index
    %c0_152 = arith.constant 0 : index
    %303 = vector.load %arg23[%c0_151, %c0_152] : memref<1x32xf32, #tpu.memory_space<vmem>>, vector<1x32xf32>
    %304 = arith.addf %302, %303 : vector<1x32xf32>
    %305 = arith.negf %304 : vector<1x32xf32>
    %306 = math.exp %305 : vector<1x32xf32>
    %cst_153 = arith.constant 1.000000e+00 : f32
    %307 = vector.broadcast %cst_153 : f32 to vector<1x32xf32>
    %308 = arith.addf %307, %306 : vector<1x32xf32>
    %309 = arith.divf %307, %308 : vector<1x32xf32>
    %c0_154 = arith.constant 0 : index
    %c0_155 = arith.constant 0 : index
    %310 = vector.load %arg13[%c0_154, %c0_155] : memref<32x512xf32, #tpu.memory_space<vmem>>, vector<32x512xf32>
    %cst_156 = arith.constant dense<0.000000e+00> : vector<1x512xf32>
    %311 = tpu.matmul %309, %310, %cst_156 {dimension_numbers = #tpu.dot_dimension_numbers<[1], [0], [0], [1], [0, 0, 1, 1], [], []>} : vector<1x32xf32>, vector<32x512xf32>, vector<1x512xf32> -> vector<1x512xf32>
    %312 = vector.broadcast %311 : vector<1x512xf32> to vector<16x512xf32>
    %313 = arith.mulf %290, %312 : vector<16x512xf32>
    %c0_157 = arith.constant 0 : index
    %c0_158 = arith.constant 0 : index
    %314 = vector.load %arg24[%c0_157, %c0_158] : memref<256x512xbf16, #tpu.memory_space<vmem>>, vector<256x512xbf16>
    %cst_159 = arith.constant dense<0.000000e+00> : vector<16x512xf32>
    %315 = tpu.matmul %2, %314, %cst_159 {dimension_numbers = #tpu.dot_dimension_numbers<[1], [0], [0], [1], [0, 0, 1, 1], [], []>} : vector<16x256xbf16>, vector<256x512xbf16>, vector<16x512xf32> -> vector<16x512xf32>
    %c0_160 = arith.constant 0 : index
    %c0_161 = arith.constant 0 : index
    %316 = vector.load %arg25[%c0_160, %c0_161] : memref<1x512xf32, #tpu.memory_space<vmem>>, vector<1x512xf32>
    %317 = vector.broadcast %316 : vector<1x512xf32> to vector<16x512xf32>
    %318 = arith.addf %315, %317 : vector<16x512xf32>
    %c0_162 = arith.constant 0 : index
    %c0_163 = arith.constant 0 : index
    %319 = vector.load %arg26[%c0_162, %c0_163] : memref<1x512xf32, #tpu.memory_space<vmem>>, vector<1x512xf32>
    %c0_164 = arith.constant 0 : index
    %c0_165 = arith.constant 0 : index
    %320 = vector.load %arg27[%c0_164, %c0_165] : memref<1x512xf32, #tpu.memory_space<vmem>>, vector<1x512xf32>
    %cst_166 = arith.constant dense<0.000000e+00> : vector<512xf32>
    %321 = vector.multi_reduction <add>, %318, %cst_166 [0] : vector<16x512xf32> to vector<512xf32>
    %322 = vector.shape_cast %321 : vector<512xf32> to vector<1x512xf32>
    %323 = arith.mulf %318, %318 : vector<16x512xf32>
    %cst_167 = arith.constant dense<0.000000e+00> : vector<512xf32>
    %324 = vector.multi_reduction <add>, %323, %cst_167 [0] : vector<16x512xf32> to vector<512xf32>
    %325 = vector.shape_cast %324 : vector<512xf32> to vector<1x512xf32>
    %326 = tpu.concatenate %322, %325 in 0 : vector<1x512xf32>, vector<1x512xf32> -> vector<2x512xf32>
    %c0_168 = arith.constant 0 : index
    %c0_169 = arith.constant 0 : index
    %327 = vector.load %arg10[%c0_168, %c0_169] : memref<512x8xf32, #tpu.memory_space<vmem>>, vector<512x8xf32>
    %cst_170 = arith.constant dense<0.000000e+00> : vector<2x8xf32>
    %328 = tpu.matmul %326, %327, %cst_170 {dimension_numbers = #tpu.dot_dimension_numbers<[1], [0], [0], [1], [0, 0, 1, 1], [], []>} : vector<2x512xf32>, vector<512x8xf32>, vector<2x8xf32> -> vector<2x8xf32>
    %329 = vector.extract_strided_slice %328 {offsets = [0, 0], sizes = [1, 8], strides = [1, 1]} : vector<2x8xf32> to vector<1x8xf32>
    %330 = vector.extract_strided_slice %328 {offsets = [1, 0], sizes = [1, 8], strides = [1, 1]} : vector<2x8xf32> to vector<1x8xf32>
    %331 = arith.mulf %329, %329 : vector<1x8xf32>
    %332 = arith.subf %330, %331 : vector<1x8xf32>
    %cst_171 = arith.constant 0.000000e+00 : f32
    %333 = vector.broadcast %cst_171 : f32 to vector<1x8xf32>
    %334 = arith.maximumf %332, %333 : vector<1x8xf32>
    %cst_172 = arith.constant 9.99999974E-6 : f32
    %335 = vector.broadcast %cst_172 : f32 to vector<1x8xf32>
    %336 = arith.addf %334, %335 : vector<1x8xf32>
    %337 = math.rsqrt %336 : vector<1x8xf32>
    %338 = tpu.concatenate %329, %337 in 0 : vector<1x8xf32>, vector<1x8xf32> -> vector<2x8xf32>
    %c0_173 = arith.constant 0 : index
    %c0_174 = arith.constant 0 : index
    %339 = vector.load %arg11[%c0_173, %c0_174] : memref<8x512xf32, #tpu.memory_space<vmem>>, vector<8x512xf32>
    %cst_175 = arith.constant dense<0.000000e+00> : vector<2x512xf32>
    %340 = tpu.matmul %338, %339, %cst_175 {dimension_numbers = #tpu.dot_dimension_numbers<[1], [0], [0], [1], [0, 0, 1, 1], [], []>} : vector<2x8xf32>, vector<8x512xf32>, vector<2x512xf32> -> vector<2x512xf32>
    %341 = vector.extract_strided_slice %340 {offsets = [0, 0], sizes = [1, 512], strides = [1, 1]} : vector<2x512xf32> to vector<1x512xf32>
    %342 = vector.broadcast %341 : vector<1x512xf32> to vector<16x512xf32>
    %343 = arith.subf %318, %342 : vector<16x512xf32>
    %344 = vector.extract_strided_slice %340 {offsets = [1, 0], sizes = [1, 512], strides = [1, 1]} : vector<2x512xf32> to vector<1x512xf32>
    %345 = vector.broadcast %344 : vector<1x512xf32> to vector<16x512xf32>
    %346 = arith.mulf %343, %345 : vector<16x512xf32>
    %347 = vector.broadcast %319 : vector<1x512xf32> to vector<16x512xf32>
    %348 = arith.mulf %346, %347 : vector<16x512xf32>
    %349 = vector.broadcast %320 : vector<1x512xf32> to vector<16x512xf32>
    %350 = arith.addf %348, %349 : vector<16x512xf32>
    %351 = arith.addf %313, %350 : vector<16x512xf32>
    %352 = arith.mulf %351, %351 : vector<16x512xf32>
    %353 = arith.mulf %351, %352 : vector<16x512xf32>
    %cst_176 = arith.constant 4.471500e-02 : f32
    %354 = vector.broadcast %cst_176 : f32 to vector<16x512xf32>
    %355 = arith.mulf %354, %353 : vector<16x512xf32>
    %356 = arith.addf %351, %355 : vector<16x512xf32>
    %cst_177 = arith.constant 0.797884583 : f32
    %357 = vector.broadcast %cst_177 : f32 to vector<16x512xf32>
    %358 = arith.mulf %357, %356 : vector<16x512xf32>
    %359 = math.tanh %358 : vector<16x512xf32>
    %cst_178 = arith.constant 1.000000e+00 : f32
    %360 = vector.broadcast %cst_178 : f32 to vector<16x512xf32>
    %361 = arith.addf %360, %359 : vector<16x512xf32>
    %cst_179 = arith.constant 5.000000e-01 : f32
    %362 = vector.broadcast %cst_179 : f32 to vector<16x512xf32>
    %363 = arith.mulf %362, %361 : vector<16x512xf32>
    %364 = arith.mulf %351, %363 : vector<16x512xf32>
    %c0_180 = arith.constant 0 : index
    %c0_181 = arith.constant 0 : index
    %c0_182 = arith.constant 0 : index
    %365 = vector.load %arg30[%c0_180, %c0_181, %c0_182] : memref<1x16x512xf32, #tpu.memory_space<vmem>>, vector<1x16x512xf32>
    %366 = vector.shape_cast %365 : vector<1x16x512xf32> to vector<16x512xf32>
    %367 = vector.shape_cast %364 : vector<16x512xf32> to vector<1x16x512xf32>
    tpu.vector_store %arg30[%c0_180, %c0_181, %c0_182], %367 {strides = array<i32>} : memref<1x16x512xf32, #tpu.memory_space<vmem>>, vector<1x16x512xf32>,
    return
  }
  func.func @transform_0(%arg0: i32) -> (i32, i32, i32) {
    %c0_i32 = arith.constant 0 : i32
    %c0_i32_0 = arith.constant 0 : i32
    %c0_i32_1 = arith.constant 0 : i32
    return %arg0, %c0_i32, %c0_i32_0 : i32, i32, i32
  }
  func.func @transform_1(%arg0: i32) -> (i32, i32, i32) {
    %c0_i32 = arith.constant 0 : i32
    %c0_i32_0 = arith.constant 0 : i32
    %c0_i32_1 = arith.constant 0 : i32
    %c0_i32_2 = arith.constant 0 : i32
    return %c0_i32, %c0_i32_0, %c0_i32_1 : i32, i32, i32
  }
  func.func @transform_2(%arg0: i32) -> (i32, i32) {
    %c0_i32 = arith.constant 0 : i32
    %c0_i32_0 = arith.constant 0 : i32
    %c0_i32_1 = arith.constant 0 : i32
    return %c0_i32, %c0_i32_0 : i32, i32
  }
  func.func @transform_3(%arg0: i32) -> (i32, i32) {
    %c0_i32 = arith.constant 0 : i32
    %c0_i32_0 = arith.constant 0 : i32
    %c0_i32_1 = arith.constant 0 : i32
    return %c0_i32, %c0_i32_0 : i32, i32
  }
  func.func @transform_4(%arg0: i32) -> (i32, i32) {
    %c0_i32 = arith.constant 0 : i32
    %c0_i32_0 = arith.constant 0 : i32
    %c0_i32_1 = arith.constant 0 : i32
    return %c0_i32, %c0_i32_0 : i32, i32
  }
  func.func @transform_5(%arg0: i32) -> (i32, i32, i32) {
    %c0_i32 = arith.constant 0 : i32
    %c0_i32_0 = arith.constant 0 : i32
    %c0_i32_1 = arith.constant 0 : i32
    %c0_i32_2 = arith.constant 0 : i32
    return %c0_i32, %c0_i32_0, %c0_i32_1 : i32, i32, i32
  }
  func.func @transform_6(%arg0: i32) -> (i32, i32) {
    %c0_i32 = arith.constant 0 : i32
    %c0_i32_0 = arith.constant 0 : i32
    %c0_i32_1 = arith.constant 0 : i32
    return %c0_i32, %c0_i32_0 : i32, i32
  }
  func.func @transform_7(%arg0: i32) -> (i32, i32) {
    %c0_i32 = arith.constant 0 : i32
    %c0_i32_0 = arith.constant 0 : i32
    %c0_i32_1 = arith.constant 0 : i32
    return %c0_i32, %c0_i32_0 : i32, i32
  }
  func.func @transform_8(%arg0: i32) -> (i32, i32) {
    %c0_i32 = arith.constant 0 : i32
    %c0_i32_0 = arith.constant 0 : i32
    %c0_i32_1 = arith.constant 0 : i32
    return %c0_i32, %c0_i32_0 : i32, i32
  }
  func.func @transform_9(%arg0: i32) -> (i32, i32) {
    %c0_i32 = arith.constant 0 : i32
    %c0_i32_0 = arith.constant 0 : i32
    %c0_i32_1 = arith.constant 0 : i32
    return %c0_i32, %c0_i32_0 : i32, i32
  }
  func.func @transform_10(%arg0: i32) -> (i32, i32) {
    %c0_i32 = arith.constant 0 : i32
    %c0_i32_0 = arith.constant 0 : i32
    %c0_i32_1 = arith.constant 0 : i32
    return %c0_i32, %c0_i32_0 : i32, i32
  }
  func.func @transform_11(%arg0: i32) -> (i32, i32) {
    %c0_i32 = arith.constant 0 : i32
    %c0_i32_0 = arith.constant 0 : i32
    %c0_i32_1 = arith.constant 0 : i32
    return %c0_i32, %c0_i32_0 : i32, i32
  }
  func.func @transform_12(%arg0: i32) -> (i32, i32) {
    %c0_i32 = arith.constant 0 : i32
    %c0_i32_0 = arith.constant 0 : i32
    %c0_i32_1 = arith.constant 0 : i32
    return %c0_i32, %c0_i32_0 : i32, i32
  }
  func.func @transform_13(%arg0: i32) -> (i32, i32) {
    %c0_i32 = arith.constant 0 : i32
    %c0_i32_0 = arith.constant 0 : i32
    %c0_i32_1 = arith.constant 0 : i32
    return %c0_i32, %c0_i32_0 : i32, i32
  }
  func.func @transform_14(%arg0: i32) -> (i32, i32) {
    %c0_i32 = arith.constant 0 : i32
    %c0_i32_0 = arith.constant 0 : i32
    %c0_i32_1 = arith.constant 0 : i32
    return %c0_i32, %c0_i32_0 : i32, i32
  }
  func.func @transform_15(%arg0: i32) -> (i32, i32) {
    %c0_i32 = arith.constant 0 : i32
    %c0_i32_0 = arith.constant 0 : i32
    %c0_i32_1 = arith.constant 0 : i32
    return %c0_i32, %c0_i32_0 : i32, i32
  }
  func.func @transform_16(%arg0: i32) -> (i32, i32) {
    %c0_i32 = arith.constant 0 : i32
    %c0_i32_0 = arith.constant 0 : i32
    %c0_i32_1 = arith.constant 0 : i32
    return %c0_i32, %c0_i32_0 : i32, i32
  }
  func.func @transform_17(%arg0: i32) -> (i32, i32) {
    %c0_i32 = arith.constant 0 : i32
    %c0_i32_0 = arith.constant 0 : i32
    %c0_i32_1 = arith.constant 0 : i32
    return %c0_i32, %c0_i32_0 : i32, i32
  }
  func.func @transform_18(%arg0: i32) -> (i32, i32) {
    %c0_i32 = arith.constant 0 : i32
    %c0_i32_0 = arith.constant 0 : i32
    %c0_i32_1 = arith.constant 0 : i32
    return %c0_i32, %c0_i32_0 : i32, i32
  }
  func.func @transform_19(%arg0: i32) -> (i32, i32) {
    %c0_i32 = arith.constant 0 : i32
    %c0_i32_0 = arith.constant 0 : i32
    %c0_i32_1 = arith.constant 0 : i32
    return %c0_i32, %c0_i32_0 : i32, i32
  }
  func.func @transform_20(%arg0: i32) -> (i32, i32) {
    %c0_i32 = arith.constant 0 : i32
    %c0_i32_0 = arith.constant 0 : i32
    %c0_i32_1 = arith.constant 0 : i32
    return %c0_i32, %c0_i32_0 : i32, i32
  }
  func.func @transform_21(%arg0: i32) -> (i32, i32) {
    %c0_i32 = arith.constant 0 : i32
    %c0_i32_0 = arith.constant 0 : i32
    %c0_i32_1 = arith.constant 0 : i32
    return %c0_i32, %c0_i32_0 : i32, i32
  }
  func.func @transform_22(%arg0: i32) -> (i32, i32) {
    %c0_i32 = arith.constant 0 : i32
    %c0_i32_0 = arith.constant 0 : i32
    %c0_i32_1 = arith.constant 0 : i32
    return %c0_i32, %c0_i32_0 : i32, i32
  }
  func.func @transform_23(%arg0: i32) -> (i32, i32) {
    %c0_i32 = arith.constant 0 : i32
    %c0_i32_0 = arith.constant 0 : i32
    %c0_i32_1 = arith.constant 0 : i32
    return %c0_i32, %c0_i32_0 : i32, i32
  }
  func.func @transform_24(%arg0: i32) -> (i32, i32) {
    %c0_i32 = arith.constant 0 : i32
    %c0_i32_0 = arith.constant 0 : i32
    %c0_i32_1 = arith.constant 0 : i32
    return %c0_i32, %c0_i32_0 : i32, i32
  }
  func.func @transform_25(%arg0: i32) -> (i32, i32) {
    %c0_i32 = arith.constant 0 : i32
    %c0_i32_0 = arith.constant 0 : i32
    %c0_i32_1 = arith.constant 0 : i32
    return %c0_i32, %c0_i32_0 : i32, i32
  }
  func.func @transform_26(%arg0: i32) -> (i32, i32) {
    %c0_i32 = arith.constant 0 : i32
    %c0_i32_0 = arith.constant 0 : i32
    %c0_i32_1 = arith.constant 0 : i32
    return %c0_i32, %c0_i32_0 : i32, i32
  }
  func.func @transform_27(%arg0: i32) -> (i32, i32, i32) {
    %c0_i32 = arith.constant 0 : i32
    %c0_i32_0 = arith.constant 0 : i32
    %c0_i32_1 = arith.constant 0 : i32
    %c0_i32_2 = arith.constant 0 : i32
    return %c0_i32, %c0_i32_0, %c0_i32_1 : i32, i32, i32
  }
  func.func @transform_28(%arg0: i32) -> (i32, i32) {
    %c0_i32 = arith.constant 0 : i32
    %c0_i32_0 = arith.constant 0 : i32
    %c0_i32_1 = arith.constant 0 : i32
    return %c0_i32, %c0_i32_0 : i32, i32
  }
  func.func @transform_29(%arg0: i32) -> (i32, i32, i32) {
    %c0_i32 = arith.constant 0 : i32
    %c0_i32_0 = arith.constant 0 : i32
    %c0_i32_1 = arith.constant 0 : i32
    return %arg0, %c0_i32, %c0_i32_0 : i32, i32, i32
  }
}

</mosaic_0001>

<bundles_post_ra>
// kernel: tpu_custom_call.1
= control target key start
LH: loop header
LB: loop body
LE: loop exit
PB: predicated region body
PF: predicated region fallthrough
CT: control target
= control target key end

     0   :  { %s14091_s6 = smov 1   ;;  %s14092_s10 = smov 2   ;;  %s16075_s0 = inlined_call_operand.smem [shape: u32[30], index: -1, kind: input, shape index: {}] }
   0x1   :  { %s14161_s5 = sld [smem:[%s16075_s0]]   ;;  %s14093_s14 = smov 3  }
   0x2   :  { %s14166_s9 = sld [smem:[%s16075_s0 + %s14091_s6]]   ;;  %s14094_s18 = smov 4  }
   0x3   :  { %s14171_s13 = sld [smem:[%s16075_s0 + %s14092_s10]]   ;;  %s14095_s22 = smov 5  }
   0x4   :  { %s14176_s17 = sld [smem:[%s16075_s0 + %s14093_s14]]   ;;  %s14096_s26 = smov 6  }
   0x5   :  { %s14181_s21 = sld [smem:[%s16075_s0 + %s14094_s18]]   ;;  %s14097_s30 = smov 7  }
   0x6   :  { %s14186_s25 = sld [smem:[%s16075_s0 + %s14095_s22]]   ;;  %s14098_s4 = smov 8  }
   0x7   :  { %16096 = sst [smem:[#allocation49_spill]] %s14161_s5  ;;  %s14099_s10 = smov 9  }
   0x8   :  { %16097 = sst [smem:[#allocation50_spill]] %s14166_s9  ;;  %s14100_s15 = smov 10  }
   0x9   :  { %16098 = sst [smem:[#allocation51_spill]] %s14171_s13  ;;  %s14101_s20 = smov 11  }
   0xa   :  { %16099 = sst [smem:[#allocation52_spill]] %s14176_s17  ;;  %s14103_s1 = smov 13  }
   0xb   :  { %s14191_s29 = sld [smem:[%s16075_s0 + %s14096_s26]]   ;;  %s14102_s26 = smov 12  }
   0xc   :  { %s14196_s3 = sld [smem:[%s16075_s0 + %s14097_s30]]   ;;  %s14104_s7 = smov 14  }
   0xd   :  { %s14201_s8 = sld [smem:[%s16075_s0 + %s14098_s4]]   ;;  %s14106_s22 = smov 16  }
   0xe   :  { %s14206_s14 = sld [smem:[%s16075_s0 + %s14099_s10]]   ;;  %s14107_s28 = smov 17  }
   0xf   :  { %s14211_s19 = sld [smem:[%s16075_s0 + %s14100_s15]]   ;;  %s14105_s15 = smov 15  }
  0x10   :  { %s14216_s24 = sld [smem:[%s16075_s0 + %s14101_s20]]  }
  0x11   :  { %s14221_s30 = sld [smem:[%s16075_s0 + %s14102_s26]]  }
  0x12   :  { %16100 = sst [smem:[#allocation53_spill]] %s14196_s3 }
  0x13   :  { %16101 = sst [smem:[#allocation54_spill]] %s14201_s8 }
  0x14   :  { %16102 = sst [smem:[#allocation55_spill]] %s14206_s14 }
  0x15   :  { %s14226_s6 = sld [smem:[%s16075_s0 + %s14103_s1]]   ;;  %s14119_s1 = smov 29  }
  0x16   :  { %16103 = sst [smem:[#allocation56_spill]] %s14216_s24 }
  0x17   :  { %s14231_s12 = sld [smem:[%s16075_s0 + %s14104_s7]]   ;;  %s14108_s7 = smov 18  }
  0x18   :  { %s14236_s20 = sld [smem:[%s16075_s0 + %s14105_s15]]   ;;  %s14109_s15 = smov 19  }
  0x19   :  { %s14241_s27 = sld [smem:[%s16075_s0 + %s14106_s22]]   ;;  %s14110_s22 = smov 20  }
  0x1a   :  { %s14246_s4 = sld [smem:[%s16075_s0 + %s14107_s28]]   ;;  %s14111_s28 = smov 21  }
  0x1b   :  { %16104 = sst [smem:[#allocation57_spill]] %s14226_s6 }
  0x1c   :  { %s14261_s24 = sld [smem:[%s16075_s0 + %s14110_s22]]   ;;  %s14114_s22 = smov 24  }
  0x1d   :  { %16105 = sst [smem:[#allocation58_spill]] %s14231_s12 }
  0x1e   :  { %16106 = sst [smem:[#allocation59_spill]] %s14236_s20 }
  0x1f   :  { %s14251_s12 = sld [smem:[%s16075_s0 + %s14108_s7]]   ;;  %s14112_s7 = smov 22  }
  0x20   :  { %16107 = sst [smem:[#allocation60_spill]] %s14246_s4 }
  0x21   :  { %s14256_s20 = sld [smem:[%s16075_s0 + %s14109_s15]]   ;;  %s14113_s15 = smov 23  }
  0x22   :  { %16110 = sst [smem:[#allocation63_spill]] %s14261_s24 }
  0x23   :  { %s14266_s14 = sld [smem:[%s16075_s0 + %s14111_s28]]   ;;  %s14115_s28 = smov 25  }
  0x24   :  { %s14271_s9 = sld [smem:[%s16075_s0 + %s14112_s7]]   ;;  %s14116_s7 = smov 26  }
  0x25   :  { %16108 = sst [smem:[#allocation61_spill]] %s14251_s12 }
  0x26   :  { %s14281_s5 = sld [smem:[%s16075_s0 + %s14114_s22]]   ;;  %s14118_s22 = smov 28  }
  0x27   :  { %16109 = sst [smem:[#allocation62_spill]] %s14256_s20 }
  0x28   :  { %s14276_s20 = sld [smem:[%s16075_s0 + %s14113_s15]]   ;;  %s14117_s15 = smov 27  }
  0x29   :  { %16111 = sst [smem:[#allocation64_spill]] %s14266_s14 }
  0x2a   :  { %16112 = sst [smem:[#allocation65_spill]] %s14271_s9 }
  0x2b   :  { %s14286_s24 = sld [smem:[%s16075_s0 + %s14115_s28]]  }
  0x2c   :  { %16113 = sst [smem:[#allocation66_spill]] %s14281_s5 }
  0x2d   :  { %s14291_s9 = sld [smem:[%s16075_s0 + %s14116_s7]]  }
  0x2e   :  { %s14296_s4 = sld [smem:[%s16075_s0 + %s14117_s15]]  }
  0x2f   :  { %s10438_s5 = sld [smem:[%s16075_s0 + %s14118_s22]]  }
  0x30   :  { %s14304_s6 = sld [smem:[%s16075_s0 + %s14119_s1]]  }
  0x33   :  { %16114 = sst [smem:[#allocation67_spill]] %s14291_s9 }
  0x34   :  { %16115 = sst [smem:[#allocation68_spill]] %s14296_s4 }
  0x35   :  { %64 = sst [smem:[#allocation2]] %s10438_s5 }
  0x36   :  { %16116 = sst [smem:[#allocation69_spill]] %s14304_s6 }
  0x37   :  { %65 = vsyncpa [#allocation4], 0 }
  0x38   :  { %67 = vsyncpa [#allocation4 + $0x1], 0 }
  0x39   :  { %68 = vsyncpa [#allocation7], 0 }
  0x3a   :  { %69 = vsyncpa [#allocation10], 0 }
  0x3b   :  { %70 = vsyncpa [#allocation13], 0 }
  0x3c   :  { %71 = vsyncpa [#allocation16], 0 }
  0x3d   :  { %72 = vsyncpa [#allocation19], 0 }
  0x3e   :  { %73 = vsyncpa [#allocation22], 0 }
  0x3f   :  { %74 = vsyncpa [#allocation25], 0 }
  0x40   :  { %75 = vsyncpa [#allocation28], 0 }
  0x41   :  { %76 = vsyncpa [#allocation31], 0 }
  0x42   :  { %77 = vsyncpa [#allocation34], 0 }
  0x43   :  { %78 = vsyncpa [#allocation5], 0 }
  0x44   :  { %80 = vsyncpa [#allocation5 + $0x1], 0  ;;  %s14306_s7 = smov 0   ;;  %s14308_s10 = smov 0  }
  0x45   :  { %s14310_s0 = smov 0   ;;  %s14312_s5 = smov 0  }
  0x46 LB: > { %s16117_s4 = sld [smem:[#allocation68_spill]]  ;;  %s14120_s11 = smov [#allocation6]   ;;  %s14077_s7 = sphi %s14306_s7, %s16177_s7   ;;  %s14089_s5 = sphi %s14312_s5, %s16180_s5   ;;  %s14085_s0 = sphi %s14310_s0, %s16179_s0   ;;  %s14081_s10 = sphi %s14308_s10, %s16178_s10  }
  0x47   : > { %s747_s15 = sshll.u32 %s14120_s11, 4  ;;  %s14327_s16 = sadd.s32 4294967295, %s14089_s5   ;;  %s748_s15 = int_to_ptr.vmem [resolvable:$true] %s747_s15 }
  0x48   : > { %p10442_p0 = scmp.ge.s32.totalorder %s14089_s5, 1  ;;  %p16084_p1 = scmp.eq.s32.totalorder %s14327_s16, 0 }
  0x49   : > { %p731_p2 = scmp.lt.s32.totalorder %s14089_s5, 3  ;;  %s14121_s22 = smov [#allocation9]  }
  0x4a   : > { %s769_s23 = sshll.u32 %s14121_s22, 4  ;;  %s14122_s26 = smov [#allocation12]   ;;  %s770_s23 = int_to_ptr.vmem [resolvable:$true] %s769_s23 }
  0x4b   : > { %p14332_p3 = pnand %p10442_p0, %p731_p2  ;;  %s793_s1 = sshll.u32 %s14122_s26, 4  ;;  %s14345_s1 = int_to_ptr.vmem [resolvable:$true] %s793_s1 }
  0x4c   : > { %s14123_s2 = smov [#allocation15]   ;;  %s13448_s22 = scalar_lea.vmem %s748_s15, 64 }
  0x4d   : > { %s16118_s18 = scalar_select %p14332_p3, 1, 0 }
  0x4e   : > { %p12004_p5 = pneg %p14332_p3  ;;  %s14347_s11 = sshll.u32 %s14123_s2, 4  ;;  %s816_s11 = int_to_ptr.vmem [resolvable:$true] %s14347_s11 }
  0x4f   : > { %p13449_p8 = scmp.ne.s32.totalorder %s748_s15, %s13448_s22  ;;  %p13456_p11 = scmp.lt.s32.totalorder %s748_s15, %s748_s15 }
  0x50   : > { %p14341_p6 = pnand %p12004_p5, %p16084_p1  ;;  %p13457_p12 = scmp.lt.s32.totalorder %s13448_s22, %s13448_s22 }
  0x52   : > { %p14351_p7 = pneg %p14341_p6  ;;  %p13458_p13 = por %p13457_p12, %p13456_p11 }
  0x54   : > { %p13451_p9 = pnand %p13449_p8, %p14351_p7 }
  0x56   : > { %p13452_p10 = pneg %p13451_p9 }
  0x58   : > { %p13459_p0 = pnand %p13458_p13, %p13452_p10 }
  0x5a   : > { %13462 = shalt.err (!%p13459_p0)
}
  0x5b   : > { %s16121_s13 = sld [smem:[#allocation51_spill]]  ;;  %s13474_s26 = scalar_lea.vmem %s770_s23, 64 }
  0x5c   : > { %p13475_p2 = scmp.ne.s32.totalorder %s770_s23, %s13474_s26  ;;  %p13482_p1 = scmp.lt.s32.totalorder %s770_s23, %s770_s23 }
  0x5d   : > { %p13483_p3 = scmp.lt.s32.totalorder %s13474_s26, %s13474_s26 }
  0x5e   : > { %p13477_p5 = pnand %p13475_p2, %p14351_p7 }
  0x5f   : > { %p13484_p8 = por %p13483_p3, %p13482_p1 }
  0x60   : > { %p13478_p4 = pneg %p13477_p5 }
  0x61   : > { %12007 = dma.hbm_to_vmem [thread:$0]  (!%p14341_p6), %s16121_s13, 64, %s748_s15, [#allocation7]  }
  0x62   : > { %p13485_p9 = pnand %p13484_p8, %p13478_p4 }
  0x64   : > { %13488 = shalt.err (!%p13485_p9)
}
  0x65   : > { %12013 = dma.hbm_to_vmem [thread:$0]  (!%p14341_p6), %s14181_s21, 64, %s770_s23, [#allocation10]  }
  0x66   : > { %s13500_s2 = scalar_lea.vmem %s14345_s1, 64  ;;  %p13508_p13 = scmp.lt.s32.totalorder %s14345_s1, %s14345_s1 }
  0x67   : > { %p13501_p10 = scmp.ne.s32.totalorder %s14345_s1, %s13500_s2  ;;  %p13509_p0 = scmp.lt.s32.totalorder %s13500_s2, %s13500_s2 }
  0x69   : > { %p13503_p11 = pnand %p13501_p10, %p14351_p7  ;;  %p13510_p2 = por %p13509_p0, %p13508_p13 }
  0x6b   : > { %p13504_p12 = pneg %p13503_p11 }
  0x6d   : > { %p13511_p1 = pnand %p13510_p2, %p13504_p12 }
  0x6f   : > { %13514 = shalt.err (!%p13511_p1)
}
  0x70   : > { %12019 = dma.hbm_to_vmem [thread:$0]  (!%p14341_p6), %s14191_s29, 64, %s14345_s1, [#allocation13]  }
  0x71   : > { %s14124_s15 = smov [#allocation18]   ;;  %s13526_s22 = scalar_lea.vmem %s816_s11, 64 }
  0x72   : > { %s842_s23 = sshll.u32 %s14124_s15, 4  ;;  %p13527_p3 = scmp.ne.s32.totalorder %s816_s11, %s13526_s22  ;;  %s843_s23 = int_to_ptr.vmem [resolvable:$true] %s842_s23 }
  0x73   : > { %p13534_p8 = scmp.lt.s32.totalorder %s816_s11, %s816_s11  ;;  %p13535_p9 = scmp.lt.s32.totalorder %s13526_s22, %s13526_s22 }
  0x74   : > { %p13529_p4 = pnand %p13527_p3, %p14351_p7 }
  0x75   : > { %p13536_p10 = por %p13535_p9, %p13534_p8 }
  0x76   : > { %p13530_p5 = pneg %p13529_p4 }
  0x78   : > { %p13537_p11 = pnand %p13536_p10, %p13530_p5 }
  0x7a   : > { %13540 = shalt.err (!%p13537_p11)
}
  0x7b   : > { %s16122_s8 = sld [smem:[#allocation54_spill]]  ;;  %s13552_s1 = scalar_lea.vmem %s843_s23, 2048 }
  0x7c   : > { %p13553_p12 = scmp.ne.s32.totalorder %s843_s23, %s13552_s1  ;;  %p13560_p2 = scmp.lt.s32.totalorder %s843_s23, %s843_s23 }
  0x7d   : > { %p13561_p1 = scmp.lt.s32.totalorder %s13552_s1, %s13552_s1 }
  0x7e   : > { %p13555_p13 = pnand %p13553_p12, %p14351_p7 }
  0x7f   : > { %p13562_p3 = por %p13561_p1, %p13560_p2 }
  0x80   : > { %p13556_p0 = pneg %p13555_p13 }
  0x81   : > { %12025 = dma.hbm_to_vmem [thread:$0]  (!%p14341_p6), %s16122_s8, 64, %s816_s11, [#allocation16]  }
  0x82   : > { %p13563_p4 = pnand %p13562_p3, %p13556_p0 }
  0x84   : > { %13566 = shalt.err (!%p13563_p4)
}
  0x85   : > { %s16086_s26 = smov 512   ;;  %s16087_s2 = smov 32  }
  0x86   : > { %12031 = dma.hbm_to_vmem [thread:$0]  (!%p14341_p6), %s14221_s30, 2048, %s843_s23, [#allocation19], %s16086_s26, %s16086_s26, %s16087_s2  }
  0x87   : > { %s14127_s11 = smov [#allocation21]   ;;  %s14128_s22 = smov [#allocation24]  }
  0x88   : > { %s875_s15 = sshll.u32 %s14127_s11, 4  ;;  %s897_s8 = sshll.u32 %s14128_s22, 4  ;;  %s876_s15 = int_to_ptr.vmem [resolvable:$true] %s875_s15  ;;  %s898_s8 = int_to_ptr.vmem [resolvable:$true] %s897_s8 }
  0x89   : > { %s13578_s13 = scalar_lea.vmem %s876_s15, 16  ;;  %s13585_s1 = scalar_lea.vmem %s876_s15, 32 }
  0x8a   : > { %p13579_p5 = scmp.ne.s32.totalorder %s876_s15, %s13578_s13  ;;  %p13586_p10 = scmp.lt.s32.totalorder %s876_s15, %s876_s15 }
  0x8b   : > { %p13587_p11 = scmp.lt.s32.totalorder %s13585_s1, %s13578_s13 }
  0x8c   : > { %p13581_p8 = pnand %p13579_p5, %p14351_p7 }
  0x8d   : > { %p13588_p12 = por %p13587_p11, %p13586_p10 }
  0x8e   : > { %p13582_p9 = pneg %p13581_p8 }
  0x90   : > { %p13589_p13 = pnand %p13588_p12, %p13582_p9 }
  0x92   : > { %13592 = shalt.err (!%p13589_p13)
}
  0x93   : > { %12037 = dma.hbm_to_vmem [thread:$0]  (!%p14341_p6), %s14241_s27, 16, %s876_s15, [#allocation22]  }
  0x94   : > { %s13604_s23 = scalar_lea.vmem %s898_s8, 16  ;;  %s13611_s11 = scalar_lea.vmem %s898_s8, 32 }
  0x95   : > { %p13605_p0 = scmp.ne.s32.totalorder %s898_s8, %s13604_s23  ;;  %p13612_p3 = scmp.lt.s32.totalorder %s898_s8, %s898_s8 }
  0x96   : > { %p13613_p4 = scmp.lt.s32.totalorder %s13611_s11, %s13604_s23 }
  0x97   : > { %p13607_p2 = pnand %p13605_p0, %p14351_p7 }
  0x98   : > { %p13614_p5 = por %p13613_p4, %p13612_p3 }
  0x99   : > { %p13608_p1 = pneg %p13607_p2 }
  0x9b   : > { %p13615_p8 = pnand %p13614_p5, %p13608_p1 }
  0x9d   : > { %13618 = shalt.err (!%p13615_p8)
}
  0x9e   : > { %s16123_s12 = sld [smem:[#allocation61_spill]]  ;;  %s14129_s13 = smov [#allocation27]  }
  0x9f   : > { %s922_s22 = sshll.u32 %s14129_s13, 4  ;;  %s923_s22 = int_to_ptr.vmem [resolvable:$true] %s922_s22 }
  0xa0   : > { %s13630_s15 = scalar_lea.vmem %s923_s22, 32  ;;  %p13638_p12 = scmp.lt.s32.totalorder %s923_s22, %s923_s22 }
  0xa1   : > { %p13631_p9 = scmp.ne.s32.totalorder %s923_s22, %s13630_s15  ;;  %p13639_p13 = scmp.lt.s32.totalorder %s13630_s15, %s13630_s15 }
  0xa3   : > { %p13633_p10 = pnand %p13631_p9, %p14351_p7  ;;  %p13640_p0 = por %p13639_p13, %p13638_p12 }
  0xa4   : > { %12043 = dma.hbm_to_vmem [thread:$0]  (!%p14341_p6), %s16123_s12, 16, %s898_s8, [#allocation25]  }
  0xa5   : > { %p13634_p11 = pneg %p13633_p10 }
  0xa7   : > { %p13641_p2 = pnand %p13640_p0, %p13634_p11 }
  0xa9   : > { %13644 = shalt.err (!%p13641_p2)
}
  0xaa   : > { %s16124_s14 = sld [smem:[#allocation64_spill]]  ;;  %s14130_s1 = smov [#allocation30]  }
  0xab   : > { %s943_s8 = sshll.u32 %s14130_s1, 4  ;;  %s14131_s23 = smov [#allocation33]   ;;  %s944_s8 = int_to_ptr.vmem [resolvable:$true] %s943_s8 }
  0xac   : > { %s968_s11 = sshll.u32 %s14131_s23, 4  ;;  %s13656_s13 = scalar_lea.vmem %s944_s8, 8192  ;;  %s969_s11 = int_to_ptr.vmem [resolvable:$true] %s968_s11 }
  0xad   : > { %p13657_p1 = scmp.ne.s32.totalorder %s944_s8, %s13656_s13  ;;  %p13664_p5 = scmp.lt.s32.totalorder %s944_s8, %s944_s8 }
  0xae   : > { %p13665_p8 = scmp.lt.s32.totalorder %s13656_s13, %s13656_s13 }
  0xaf   : > { %p13659_p3 = pnand %p13657_p1, %p14351_p7 }
  0xb0   : > { %12049 = dma.hbm_to_vmem [thread:$0]  (!%p14341_p6), %s16124_s14, 32, %s923_s22, [#allocation28]  }
  0xb1   : > { %p13660_p4 = pneg %p13659_p3  ;;  %p13666_p9 = por %p13665_p8, %p13664_p5 }
  0xb3   : > { %p13667_p10 = pnand %p13666_p9, %p13660_p4 }
  0xb5   : > { %13670 = shalt.err (!%p13667_p10)
}
  0xb6   : > { %s16088_s15 = smov 256   ;;  %s16089_s22 = smov 16  }
  0xb7   : > { %12055 = dma.hbm_to_vmem [thread:$0]  (!%p14341_p6), %s14276_s20, 8192, %s944_s8, [#allocation31], %s16088_s15, %s16088_s15, %s16089_s22  }
  0xb8   : > { %s13682_s1 = scalar_lea.vmem %s969_s11, 64  ;;  %p13690_p0 = scmp.lt.s32.totalorder %s969_s11, %s969_s11 }
  0xb9   : > { %p13683_p11 = scmp.ne.s32.totalorder %s969_s11, %s13682_s1  ;;  %p13691_p2 = scmp.lt.s32.totalorder %s13682_s1, %s13682_s1 }
  0xbb   : > { %p13685_p12 = pnand %p13683_p11, %p14351_p7  ;;  %p13692_p1 = por %p13691_p2, %p13690_p0 }
  0xbd   : > { %p13686_p13 = pneg %p13685_p12 }
  0xbf   : > { %p13693_p3 = pnand %p13692_p1, %p13686_p13 }
  0xc1   : > { %13696 = shalt.err (!%p13693_p3)
}
  0xc2   : > { %12061 = dma.hbm_to_vmem [thread:$0]  (!%p14341_p6), %s14286_s24, 64, %s969_s11, [#allocation34]  }
  0xc3   : > { %s14134_s23 = smov [#allocation8]   ;;  %s14135_s26 = smov [#allocation11]  }
  0xc4   : > { %s758_s13 = sshll.u32 %s14134_s23, 4  ;;  %s779_s2 = sshll.u32 %s14135_s26, 4  ;;  %s759_s13 = int_to_ptr.vmem [resolvable:$true] %s758_s13  ;;  %s780_s2 = int_to_ptr.vmem [resolvable:$true] %s779_s2 }
  0xc5   : > { %s13708_s8 = scalar_lea.vmem %s759_s13, 64  ;;  %p13716_p9 = scmp.lt.s32.totalorder %s759_s13, %s759_s13 }
  0xc6   : > { %p13709_p4 = scmp.ne.s32.totalorder %s759_s13, %s13708_s8  ;;  %p13717_p10 = scmp.lt.s32.totalorder %s13708_s8, %s13708_s8 }
  0xc8   : > { %p13711_p5 = pnand %p13709_p4, %p14351_p7  ;;  %p13718_p11 = por %p13717_p10, %p13716_p9 }
  0xca   : > { %p13712_p8 = pneg %p13711_p5 }
  0xcc   : > { %p13719_p12 = pnand %p13718_p11, %p13712_p8 }
  0xce   : > { %13722 = shalt.err (!%p13719_p12)
}
  0xcf   : > { %s16125_s17 = sld [smem:[#allocation52_spill]]  ;;  %s13734_s11 = scalar_lea.vmem %s780_s2, 49152 }
  0xd0   : > { %p13735_p13 = scmp.ne.s32.totalorder %s780_s2, %s13734_s11  ;;  %p13742_p1 = scmp.lt.s32.totalorder %s780_s2, %s780_s2 }
  0xd1   : > { %p13743_p3 = scmp.lt.s32.totalorder %s13734_s11, %s13734_s11 }
  0xd2   : > { %p13737_p0 = pnand %p13735_p13, %p14351_p7 }
  0xd3   : > { %p13744_p4 = por %p13743_p3, %p13742_p1 }
  0xd4   : > { %p13738_p2 = pneg %p13737_p0 }
  0xd5   : > { %12010 = dma.hbm_to_vmem [thread:$0]  (!%p14341_p6), %s16125_s17, 64, %s759_s13, [#allocation7]  }
  0xd6   : > { %p13745_p5 = pnand %p13744_p4, %p13738_p2 }
  0xd8   : > { %13748 = shalt.err (!%p13745_p5)
}
  0xd9   : > { %12016 = dma.hbm_to_vmem [thread:$0]  (!%p14341_p6), %s14186_s25, 49152, %s780_s2, [#allocation10], %s16088_s15, %s16088_s15, %s16089_s22  }
  0xda   : > { %s14136_s26 = smov [#allocation14]   ;;  %s14137_s23 = smov [#allocation17]  }
  0xdb   : > { %s804_s1 = sshll.u32 %s14136_s26, 4  ;;  %s829_s13 = sshll.u32 %s14137_s23, 4  ;;  %s805_s1 = int_to_ptr.vmem [resolvable:$true] %s804_s1  ;;  %s830_s13 = int_to_ptr.vmem [resolvable:$true] %s829_s13 }
  0xdc   : > { %s13760_s8 = scalar_lea.vmem %s805_s1, 64  ;;  %p13768_p11 = scmp.lt.s32.totalorder %s805_s1, %s805_s1 }
  0xdd   : > { %p13761_p8 = scmp.ne.s32.totalorder %s805_s1, %s13760_s8  ;;  %p13769_p12 = scmp.lt.s32.totalorder %s13760_s8, %s13760_s8 }
  0xdf   : > { %p13763_p9 = pnand %p13761_p8, %p14351_p7  ;;  %p13770_p13 = por %p13769_p12, %p13768_p11 }
  0xe1   : > { %p13764_p10 = pneg %p13763_p9 }
  0xe3   : > { %p13771_p0 = pnand %p13770_p13, %p13764_p10 }
  0xe5   : > { %13774 = shalt.err (!%p13771_p0)
}
  0xe6   : > { %s16126_s3 = sld [smem:[#allocation53_spill]]  ;;  %s13786_s2 = scalar_lea.vmem %s830_s13, 512 }
  0xe7   : > { %p13787_p2 = scmp.ne.s32.totalorder %s830_s13, %s13786_s2  ;;  %p13794_p4 = scmp.lt.s32.totalorder %s830_s13, %s830_s13 }
  0xe8   : > { %p13795_p5 = scmp.lt.s32.totalorder %s13786_s2, %s13786_s2 }
  0xe9   : > { %p13789_p1 = pnand %p13787_p2, %p14351_p7 }
  0xea   : > { %p13796_p8 = por %p13795_p5, %p13794_p4 }
  0xeb   : > { %p13790_p3 = pneg %p13789_p1 }
  0xec   : > { %12022 = dma.hbm_to_vmem [thread:$0]  (!%p14341_p6), %s16126_s3, 64, %s805_s1, [#allocation13]  }
  0xed   : > { %p13797_p9 = pnand %p13796_p8, %p13790_p3 }
  0xef   : > { %13800 = shalt.err (!%p13797_p9)
}
  0xf0   : > { %12028 = dma.hbm_to_vmem [thread:$0]  (!%p14341_p6), %s14211_s19, 512, %s830_s13, [#allocation16]  }
  0xf1   : > { %s14138_s11 = smov [#allocation20]   ;;  %s14139_s23 = smov [#allocation23]  }
  0xf2   : > { %s855_s26 = sshll.u32 %s14138_s11, 4  ;;  %s886_s8 = sshll.u32 %s14139_s23, 4  ;;  %s856_s26 = int_to_ptr.vmem [resolvable:$true] %s855_s26  ;;  %s887_s8 = int_to_ptr.vmem [resolvable:$true] %s886_s8 }
  0xf3   : > { %s13812_s1 = scalar_lea.vmem %s856_s26, 1024  ;;  %p13820_p13 = scmp.lt.s32.totalorder %s856_s26, %s856_s26 }
  0xf4   : > { %p13813_p10 = scmp.ne.s32.totalorder %s856_s26, %s13812_s1  ;;  %p13821_p0 = scmp.lt.s32.totalorder %s13812_s1, %s13812_s1 }
  0xf6   : > { %p13815_p11 = pnand %p13813_p10, %p14351_p7  ;;  %p13822_p2 = por %p13821_p0, %p13820_p13 }
  0xf8   : > { %p13816_p12 = pneg %p13815_p11 }
  0xfa   : > { %p13823_p1 = pnand %p13822_p2, %p13816_p12 }
  0xfc   : > { %13826 = shalt.err (!%p13823_p1)
}
  0xfd   : > { %s16127_s2 = smov 32   ;;  %s16128_s13 = smov 512  }
  0xfe   : > { %s16129_s11 = sld [smem:[#allocation57_spill]]  ;;  %s13838_s23 = scalar_lea.vmem %s887_s8, 64 }
  0xff   : > { %p13839_p3 = scmp.ne.s32.totalorder %s887_s8, %s13838_s23  ;;  %p13846_p8 = scmp.lt.s32.totalorder %s887_s8, %s887_s8 }
 0x100   : > { %p13847_p9 = scmp.lt.s32.totalorder %s13838_s23, %s13838_s23 }
 0x101   : > { %p13841_p4 = pnand %p13839_p3, %p14351_p7 }
 0x102   : > { %p13848_p10 = por %p13847_p9, %p13846_p8 }
 0x103   : > { %p13842_p5 = pneg %p13841_p4 }
 0x104   : > { %12034 = dma.hbm_to_vmem [thread:$0]  (!%p14341_p6), %s16129_s11, 1024, %s856_s26, [#allocation19], %s16128_s13, %s16128_s13, %s16127_s2  }
 0x105   : > { %p13849_p11 = pnand %p13848_p10, %p13842_p5 }
 0x107   : > { %13852 = shalt.err (!%p13849_p11)
}
 0x108   : > { %s16130_s1 = sld [smem:[#allocation60_spill]]  ;;  %s14140_s15 = smov [#allocation26]  }
 0x109   : > { %s911_s22 = sshll.u32 %s14140_s15, 4  ;;  %s14141_s3 = smov [#allocation29]   ;;  %s912_s22 = int_to_ptr.vmem [resolvable:$true] %s911_s22 }
 0x10a   : > { %s933_s12 = sshll.u32 %s14141_s3, 4  ;;  %s13864_s26 = scalar_lea.vmem %s912_s22, 16  ;;  %s934_s12 = int_to_ptr.vmem [resolvable:$true] %s933_s12 }
 0x10b   : > { %p13865_p12 = scmp.ne.s32.totalorder %s912_s22, %s13864_s26  ;;  %s13871_s2 = scalar_lea.vmem %s912_s22, 32 }
 0x10c   : > { %p13872_p2 = scmp.lt.s32.totalorder %s912_s22, %s912_s22  ;;  %p13873_p1 = scmp.lt.s32.totalorder %s13871_s2, %s13864_s26 }
 0x10d   : > { %p13867_p13 = pnand %p13865_p12, %p14351_p7 }
 0x10e   : > { %12040 = dma.hbm_to_vmem [thread:$0]  (!%p14341_p6), %s16130_s1, 64, %s887_s8, [#allocation22]  }
 0x10f   : > { %p13868_p0 = pneg %p13867_p13  ;;  %p13874_p3 = por %p13873_p1, %p13872_p2 }
 0x111   : > { %p13875_p4 = pnand %p13874_p3, %p13868_p0 }
 0x113   : > { %13878 = shalt.err (!%p13875_p4)
}
 0x114   : > { %s16131_s8 = sld [smem:[#allocation63_spill]]  ;;  %s13890_s15 = scalar_lea.vmem %s934_s12, 16 }
 0x115   : > { %p13891_p5 = scmp.ne.s32.totalorder %s934_s12, %s13890_s15  ;;  %s13897_s3 = scalar_lea.vmem %s934_s12, 32 }
 0x116   : > { %p13898_p10 = scmp.lt.s32.totalorder %s934_s12, %s934_s12  ;;  %p13899_p11 = scmp.lt.s32.totalorder %s13897_s3, %s13890_s15 }
 0x117   : > { %p13893_p8 = pnand %p13891_p5, %p14351_p7 }
 0x118   : > { %p13900_p12 = por %p13899_p11, %p13898_p10 }
 0x119   : > { %p13894_p9 = pneg %p13893_p8 }
 0x11a   : > { %12046 = dma.hbm_to_vmem [thread:$0]  (!%p14341_p6), %s16131_s8, 16, %s912_s22, [#allocation25]  }
 0x11b   : > { %p13901_p13 = pnand %p13900_p12, %p13894_p9 }
 0x11d   : > { %13904 = shalt.err (!%p13901_p13)
}
 0x11e   : > { %s16132_s13 = sld [smem:[#allocation65_spill]]  ;;  %s14142_s11 = smov [#allocation32]  }
 0x11f   : > { %s957_s23 = sshll.u32 %s14142_s11, 4  ;;  %s14143_s1 = smov [#allocation35]   ;;  %s958_s23 = int_to_ptr.vmem [resolvable:$true] %s957_s23 }
 0x120   : > { %s979_s22 = sshll.u32 %s14143_s1, 4  ;;  %s13916_s26 = scalar_lea.vmem %s958_s23, 64  ;;  %s980_s22 = int_to_ptr.vmem [resolvable:$true] %s979_s22 }
 0x121   : > { %p13917_p0 = scmp.ne.s32.totalorder %s958_s23, %s13916_s26  ;;  %p13924_p3 = scmp.lt.s32.totalorder %s958_s23, %s958_s23 }
 0x122   : > { %p13925_p4 = scmp.lt.s32.totalorder %s13916_s26, %s13916_s26 }
 0x123   : > { %p13919_p2 = pnand %p13917_p0, %p14351_p7 }
 0x124   : > { %12052 = dma.hbm_to_vmem [thread:$0]  (!%p14341_p6), %s16132_s13, 16, %s934_s12, [#allocation28]  }
 0x125   : > { %p13920_p1 = pneg %p13919_p2  ;;  %p13926_p5 = por %p13925_p4, %p13924_p3 }
 0x127   : > { %p13927_p8 = pnand %p13926_p5, %p13920_p1 }
 0x129   : > { %13930 = shalt.err (!%p13927_p8)
}
 0x12a   : > { %s16133_s2 = sld [smem:[#allocation66_spill]]  ;;  %s13942_s12 = scalar_lea.vmem %s980_s22, 64 }
 0x12b   : > { %p13943_p9 = scmp.ne.s32.totalorder %s980_s22, %s13942_s12  ;;  %p13950_p12 = scmp.lt.s32.totalorder %s980_s22, %s980_s22 }
 0x12c   : > { %p13951_p13 = scmp.lt.s32.totalorder %s13942_s12, %s13942_s12 }
 0x12d   : > { %p13945_p10 = pnand %p13943_p9, %p14351_p7 }
 0x12e   : > { %p13952_p0 = por %p13951_p13, %p13950_p12 }
 0x12f   : > { %p13946_p11 = pneg %p13945_p10 }
 0x130   : > { %12058 = dma.hbm_to_vmem [thread:$0]  (!%p14341_p6), %s16133_s2, 64, %s958_s23, [#allocation31]  }
 0x131   : > { %p13953_p2 = pnand %p13952_p0, %p13946_p11 }
 0x133   : > { %13956 = shalt.err (!%p13953_p2)
}
 0x134   : > { %s16134_s9 = sld [smem:[#allocation67_spill]]  ;;  %s10441_s6 = sadd.s32 4294967294, %s14089_s5  }
 0x135   : > { %s14475_s8 = sadd.s32 1, %s14089_s5   ;;  %s93_s15 = sadd.s32 1, %s14085_s0 }
 0x136   : > { %s90_s28 = ssub.s32 %s14089_s5, %s14475_s8  ;;  %s16135_s3 = sld [smem:[#allocation49_spill]] }
 0x137   : > { %p91_p7 = scmp.eq.s32.totalorder %s90_s28, 0  ;;  %p100_p1 = scmp.ne.s32.totalorder %s14085_s0, %s14081_s10 }
 0x138   : > { %p101_p3 = scmp.eq.s32.totalorder %s14089_s5, 0  ;;  %p106_p4 = scmp.ne.s32.totalorder %s14081_s10, %s14077_s7 }
 0x139   : > { %s14486_s13 = scalar_select %p91_p7, %s14085_s0, %s93_s15  }
 0x13a   : > { %12064 = dma.hbm_to_vmem [thread:$0]  (!%p14341_p6), %s16134_s9, 64, %s980_s22, [#allocation34]  }
 0x13b   : > { %p14488_p5 = por %p101_p3, %p100_p1  ;;  %p16137_p8 = scmp.eq.s32.totalorder %s14327_s16, 0 }
 0x13c   : > { %p718_p9 = scmp.eq.s32.totalorder %s14327_s16, 1  ;;  %p724_p10 = scmp.eq.s32.totalorder %s10441_s6, 1 }
 0x13d   : > { %p14494_p6 = por %p16137_p8, %p106_p4  ;;  %p12093_p11 = scmp.lt.s32.totalorder %s14089_s5, 2 }
 0x13e   : > { %s996_s1 = sand.u32 1, %s14085_s0   ;;  %p14501_p12 = por %p718_p9, %p100_p1 }
 0x13f   : > { %s16138_s23 = scalar_select %p14494_p6, 1, 0 }
 0x140   : > { %s16139_s22 = scalar_select %p14501_p12, 1, 0 }
 0x141   : > { %p14505_p13 = por %p724_p10, %p106_p4  ;;  %s10464_s2 = sshll.u32 %s996_s1, 5 }
 0x142   : > { %s11327_s12 = sshll.u32 %s14089_s5, 9  ;;  %s1000_s6 = scalar_lea.vmem [#allocation3], %s10464_s2 }
 0x143   : > { %s16140_s26 = scalar_select %p14505_p13, 1, 0 }
 0x144   : > { %s14511_s28 = scalar_lea.hbm %s16135_s3, %s11327_s12  ;;  %s1007_s15 = sshll.u32 %s1000_s6, 4  ;;  %s14513_s15 = int_to_ptr.vmem [resolvable:$true] %s1007_s15 }
 0x145   : > { %p14517_p0 = pnand %p12093_p11, %p14488_p5  ;;  %s14521_s14 = scalar_lea.sflag [#allocation4], %s996_s1 }
 0x146   : > { %s13957_s17 = scalar_lea.hbm %s14511_s28, 512  ;;  %s13962_s12 = scalar_lea.hbm %s16135_s3, 1024 }
 0x147   : > { %p13958_p2 = scmp.ne.s32.totalorder %s14511_s28, %s13957_s17  ;;  %p13959_p7 = pneg %p14517_p0 }
 0x148   : > { %p13963_p4 = scmp.lt.s32.totalorder %s14511_s28, %s16135_s3  ;;  %p13964_p8 = scmp.lt.s32.totalorder %s13962_s12, %s13957_s17 }
 0x149   : > { %p13960_p1 = pnand %p13959_p7, %p13958_p2 }
 0x14a   : > { %p13965_p9 = por %p13964_p8, %p13963_p4 }
 0x14b   : > { %p13961_p3 = pneg %p13960_p1 }
 0x14d   : > { %p13966_p10 = pnand %p13965_p9, %p13961_p3 }
 0x14f   : > { %13969 = shalt.err (!%p13966_p10)
}
 0x150   : > { %s13970_s11 = scalar_lea.vmem %s14513_s15, 512  ;;  %s14144_s1 = smov [#allocation3]  }
 0x151   : > { %p13971_p5 = scmp.ne.s32.totalorder %s14513_s15, %s13970_s11  ;;  %s13975_s2 = sshll.u32 %s14144_s1, 4  ;;  %s13976_s2 = int_to_ptr.vmem [resolvable:$false] %s13975_s2 }
 0x152   : > { %s13977_s6 = scalar_lea.vmem %s13976_s2, 1024  ;;  %p13978_p12 = scmp.lt.s32.totalorder %s14513_s15, %s13976_s2 }
 0x153   : > { %p13973_p11 = pnand %p13971_p5, %p13959_p7  ;;  %p13979_p2 = scmp.lt.s32.totalorder %s13977_s6, %s13970_s11 }
 0x155   : > { %p13974_p13 = pneg %p13973_p11  ;;  %p13980_p1 = por %p13979_p2, %p13978_p12 }
 0x157   : > { %p13981_p6 = pnand %p13980_p1, %p13974_p13 }
 0x159   : > { %13984 = shalt.err (!%p13981_p6)
}
 0x15a   : > { %s16142_s17 = smov 16   ;;  %s16143_s12 = smov 256  }
 0x15b   : > { %12068 = dma.hbm_to_vmem [thread:$0]  (!%p14517_p0), %s14511_s28, 512, %s14513_s15, %s14521_s14, %s16143_s12, %s16143_s12, %s16142_s17  }
 0x15c   : > { %p16144_p7 = scmp.ne.s32.totalorder %s16118_s18, 0 }
 0x15d   : > { %s14544_s1 = sand.u32 (!%p16144_p7), 1, %s14081_s10   ;;  %p16145_p6 = scmp.ne.s32.totalorder (!%p16144_p7), %s16138_s23, 0 }
 0x15e   : > { %1019 = sbr.rel (%p16144_p7) target bundleno = 5282 (0x14a2), region = 136  ;;  %s10468_s11 = sshll.u32 (!%p16144_p7), %s14544_s1, 5 }
 0x15f   : > { %s1022_s2 = scalar_lea.sflag (!%p16144_p7), [#allocation4], %s14544_s1  ;;  %s14548_s6 = scalar_lea.vmem (!%p16144_p7), [#allocation3], %s10468_s11 }
 0x163   : > { %14028 = dma.done.wait (%p16145_p6), %s1022_s2, 512  }
 0x164   : > { %14030 = vsyncadd (%p16145_p6), %s1022_s2, 4294966784  ;;  %p16146_p12 = scmp.eq.s32.totalorder %s14327_s16, 0 }
 0x166   : > { %14032 = dma.done.wait (%p16146_p12), [#allocation7], 128   ;;  %p16147_p13 = pmov %p16146_p12 }
 0x167   : > { %p16148_p0 = pmov %p16146_p12 }
 0x168   : > { %14034 = vsyncadd (%p16147_p13), [#allocation7], 4294967168 }
 0x169   : > { %14036 = dma.done.wait (%p16148_p0), [#allocation10], 49216   ;;  %p16149_p3 = pmov %p16148_p0 }
 0x16a   : > { %p16150_p4 = pmov %p16148_p0 }
 0x16b   : > { %14038 = vsyncadd (%p16149_p3), [#allocation10], 4294918080 }
 0x16c   : > { %14040 = dma.done.wait (%p16150_p4), [#allocation13], 128   ;;  %p16151_p8 = pmov %p16148_p0 }
 0x16d   : > { %p16152_p9 = pmov %p16148_p0 }
 0x16e   : > { %14042 = vsyncadd (%p16151_p8), [#allocation13], 4294967168 }
 0x16f   : > { %14044 = dma.done.wait (%p16152_p9), [#allocation16], 576   ;;  %p16153_p10 = pmov %p16148_p0 }
 0x170   : > { %p16154_p5 = pmov %p16148_p0 }
 0x171   : > { %14046 = vsyncadd (%p16153_p10), [#allocation16], 4294966720 }
 0x172   : > { %14048 = dma.done.wait (%p16154_p5), [#allocation19], 3072   ;;  %p16155_p11 = pmov %p16148_p0 }
 0x173   : > { %p16156_p2 = pmov %p16148_p0 }
 0x174   : > { %14050 = vsyncadd (%p16155_p11), [#allocation19], 4294964224 }
 0x175   : > { %14052 = dma.done.wait (%p16156_p2), [#allocation22], 80   ;;  %p16157_p1 = pmov %p16148_p0 }
 0x176   : > { %p16158_p7 = pmov %p16148_p0 }
 0x177   : > { %14054 = vsyncadd (%p16157_p1), [#allocation22], 4294967216 }
 0x178   : > { %14056 = dma.done.wait (%p16158_p7), [#allocation25], 32   ;;  %p16159_p6 = pmov %p16148_p0 }
 0x179   : > { %p16160_p12 = pmov %p16148_p0 }
 0x17a   : > { %14058 = vsyncadd (%p16159_p6), [#allocation25], 4294967264 }
 0x17b   : > { %14060 = dma.done.wait (%p16160_p12), [#allocation28], 48   ;;  %p16161_p13 = pmov %p16148_p0 }
 0x17d   : > { %14062 = vsyncadd (%p16161_p13), [#allocation28], 4294967248 }
 0x17e   : > { %14064 = dma.done.wait (%p16148_p0), [#allocation31], 8256   ;;  %p16162_p3 = pmov %p16148_p0 }
 0x17f   : > { %p16163_p4 = pmov %p16148_p0 }
 0x180   : > { %14066 = vsyncadd (%p16162_p3), [#allocation31], 4294959040 }
 0x181   : > { %14068 = dma.done.wait (%p16163_p4), [#allocation34], 128   ;;  %p16164_p8 = pmov %p16148_p0 }
 0x182   : > { %s16165_s9 = sld [smem:[#allocation50_spill]]  ;;  %v1181_v46 = vld [vmem:[%s14548_s6 + $0x8] sm:$0xff]  ;;  %v1183_v49 = vld [vmem:[%s14548_s6 + $0x18] sm:$0xff]  ;;  %vm1730_vm0 = vcmask 1040384   ;;  %vm2640_vm1 = vcmask 1046528   ;;  %vm2989_vm2 = vcmask 64512  }
 0x183   : > { %14070 = vsyncadd (%p16164_p8), [#allocation34], 4294967168  ;;  %v14645_v51 = vpack.c.bf16 %v1183_v49, %v1181_v46  ;;  %s16166_s14 = sld [smem:[#allocation55_spill]]  ;;  %s16092_s23 = smov 32   ;;  %vm14149_vm3 = vmmov 0   ;;  %vm7041_vm4 = vcmask 261120  }
 0x184   : > { %s16167_s18 = sld [smem:[#allocation56_spill]]  ;;  %s14147_s28 = smov 96   ;;  %vm7128_vm5 = vcmask 1043456   ;;  %vm7124_vm6 = vcmask 31744   ;;  %vm7617_vm7 = vcmask 523520   ;;  %vm7624_vm8 = vcmask 785920  }
 0x185   : > { %1668 = vmatprep.mubr.bf16.mxu0 %v14645_v51  ;;  %1711 = vmatprep.mubr.bf16.mxu1 %v14645_v51  ;;  %s14148_s15 = smov 64   ;;  %s16168_s17 = sld [smem:[#allocation59_spill]]  ;;  %vm7631_vm9 = vcmask 1048320   ;;  %vm7710_vm10 = vcmask 7168   ;;  %vm7713_vm11 = vcmask 15360   ;;  %vm7716_vm12 = vcmask 23552  }
 0x186   : > { %s16169_s12 = sld [smem:[#allocation58_spill]]  ;;  %vm7721_vm13 = vcmask 39936   ;;  %vm7724_vm14 = vcmask 48128   ;;  %vm7727_vm15 = vcmask 56320   ;;  %s14150_s11 = smov 16  }
 0x187   : > { %s7764_s2 = sld [smem:[#allocation2]]  ;;  %p16172_p10 = scmp.ne.s32.totalorder %s16139_s22, 0 }
 0x188   : > { %v12207_v0 = vld [vmem:[%s16165_s9 + $0xe4] ss:$16 sps:$4 sm:$0xff]   ;;  %v12209_v1 = vld [vmem:[%s16165_s9 + $0xec] ss:$16 sps:$4 sm:$0xff]   ;;  %v12211_v2 = vld [vmem:[%s16165_s9 + $0xe0] ss:$16 sps:$4 sm:$0xff]  }
 0x189   : > { %1636 = vmatprep.subr.bf16.mxu0 %v12207_v0  ;;  %v12212_v3 = vld [vmem:[%s16165_s9 + $0xe8] ss:$16 sps:$4 sm:$0xff]   ;;  %1679 = vmatprep.subr.bf16.mxu1 %v12209_v1  ;;  %v12213_v4 = vld [vmem:[%s16165_s9 + $0xc4] ss:$16 sps:$4 sm:$0xff]   ;;  %v12215_v5 = vld [vmem:[%s16165_s9 + $0xcc] ss:$16 sps:$4 sm:$0xff]  }
 0x18a   : > { %1637 = vmatpush1.bf16.msra.mxu0 %v12211_v2  ;;  %1680 = vmatpush1.bf16.msra.mxu1 %v12212_v3  ;;  %v12217_v6 = vld [vmem:[%s16165_s9 + $0xc0] ss:$16 sps:$4 sm:$0xff]   ;;  %v12218_v7 = vld [vmem:[%s16165_s9 + $0xc8] ss:$16 sps:$4 sm:$0xff]   ;;  %v12219_v8 = vld [vmem:[%s16165_s9 + $0xa4] ss:$16 sps:$4 sm:$0xff]  }
 0x18b   : > { %1638 = vmatprep.subr.bf16.mxu0 %v12213_v4  ;;  %1681 = vmatprep.subr.bf16.mxu1 %v12215_v5  ;;  %v12221_v9 = vld [vmem:[%s16165_s9 + $0xac] ss:$16 sps:$4 sm:$0xff]   ;;  %v12223_v10 = vld [vmem:[%s16165_s9 + $0xa0] ss:$16 sps:$4 sm:$0xff]   ;;  %v12224_v11 = vld [vmem:[%s16165_s9 + $0xa8] ss:$16 sps:$4 sm:$0xff]  }
 0x18c   : > { %v12225_v12 = vld [vmem:[%s16165_s9 + $0x84] ss:$16 sps:$4 sm:$0xff]   ;;  %v12227_v13 = vld [vmem:[%s16165_s9 + $0x8c] ss:$16 sps:$4 sm:$0xff]   ;;  %v12229_v14 = vld [vmem:[%s16165_s9 + $0x80] ss:$16 sps:$4 sm:$0xff]  }
 0x18d   : > { %v12230_v15 = vld [vmem:[%s16165_s9 + $0x88] ss:$16 sps:$4 sm:$0xff]   ;;  %v12231_v16 = vld [vmem:[%s16165_s9 + $0x64] ss:$16 sps:$4 sm:$0xff]   ;;  %v12233_v17 = vld [vmem:[%s16165_s9 + $0x6c] ss:$16 sps:$4 sm:$0xff]  }
 0x18e   : > { %1639 = vmatpush1.bf16.msra.mxu0 %v12217_v6  ;;  %1682 = vmatpush1.bf16.msra.mxu1 %v12218_v7  ;;  %v12235_v18 = vld [vmem:[%s16165_s9 + $0x60] ss:$16 sps:$4 sm:$0xff]   ;;  %v12236_v19 = vld [vmem:[%s16165_s9 + $0x68] ss:$16 sps:$4 sm:$0xff]   ;;  %v12237_v20 = vld [vmem:[%s16165_s9 + $0x44] ss:$16 sps:$4 sm:$0xff]  }
 0x18f   : > { %1640 = vmatprep.subr.bf16.mxu0 %v12219_v8  ;;  %1683 = vmatprep.subr.bf16.mxu1 %v12221_v9  ;;  %v12239_v21 = vld [vmem:[%s16165_s9 + $0x4c] ss:$16 sps:$4 sm:$0xff]   ;;  %v12241_v22 = vld [vmem:[%s16165_s9 + $0x40] ss:$16 sps:$4 sm:$0xff]   ;;  %v12242_v23 = vld [vmem:[%s16165_s9 + $0x48] ss:$16 sps:$4 sm:$0xff]  }
 0x190   : > { %v12243_v24 = vld [vmem:[%s16165_s9 + $0x24] ss:$16 sps:$4 sm:$0xff]   ;;  %v12245_v25 = vld [vmem:[%s16165_s9 + $0x2c] ss:$16 sps:$4 sm:$0xff]   ;;  %v12247_v26 = vld [vmem:[%s16165_s9 + $0x20] ss:$16 sps:$4 sm:$0xff]  }
 0x191   : > { %v12248_v27 = vld [vmem:[%s16165_s9 + $0x28] ss:$16 sps:$4 sm:$0xff]   ;;  %v12249_v28 = vld [vmem:[%s16165_s9 + $0x4] ss:$16 sps:$4 sm:$0xff]   ;;  %v12251_v29 = vld [vmem:[%s16165_s9 + $0xc] ss:$16 sps:$4 sm:$0xff]  }
 0x192   : > { %1641 = vmatpush1.bf16.msra.mxu0 %v12223_v10  ;;  %1684 = vmatpush1.bf16.msra.mxu1 %v12224_v11  ;;  %v12253_v30 = vld [vmem:[%s16165_s9] ss:$16 sps:$4 sm:$0xff]   ;;  %v12254_v31 = vld [vmem:[%s16165_s9 + $0x8] ss:$16 sps:$4 sm:$0xff]   ;;  %v12255_v32 = vld [vmem:[%s16165_s9 + $0x1e4] ss:$16 sps:$4 sm:$0xff]  }
 0x193   : > { %1642 = vmatprep.subr.bf16.mxu0 %v12225_v12  ;;  %1685 = vmatprep.subr.bf16.mxu1 %v12227_v13  ;;  %v12257_v33 = vld [vmem:[%s16165_s9 + $0x1ec] ss:$16 sps:$4 sm:$0xff]   ;;  %v12259_v34 = vld [vmem:[%s16165_s9 + $0x1e0] ss:$16 sps:$4 sm:$0xff]   ;;  %v12260_v35 = vld [vmem:[%s16165_s9 + $0x1e8] ss:$16 sps:$4 sm:$0xff]  }
 0x194   : > { %v12261_v36 = vld [vmem:[%s16165_s9 + $0x1c4] ss:$16 sps:$4 sm:$0xff]   ;;  %v12263_v37 = vld [vmem:[%s16165_s9 + $0x1cc] ss:$16 sps:$4 sm:$0xff]   ;;  %v12265_v38 = vld [vmem:[%s16165_s9 + $0x1c0] ss:$16 sps:$4 sm:$0xff]  }
 0x195   : > { %v12266_v39 = vld [vmem:[%s16165_s9 + $0x1c8] ss:$16 sps:$4 sm:$0xff]   ;;  %v12267_v40 = vld [vmem:[%s16165_s9 + $0x1a4] ss:$16 sps:$4 sm:$0xff]   ;;  %v12269_v41 = vld [vmem:[%s16165_s9 + $0x1ac] ss:$16 sps:$4 sm:$0xff]  }
 0x196   : > { %1643 = vmatpush1.bf16.msra.mxu0 %v12229_v14  ;;  %1686 = vmatpush1.bf16.msra.mxu1 %v12230_v15  ;;  %v12271_v42 = vld [vmem:[%s16165_s9 + $0x1a0] ss:$16 sps:$4 sm:$0xff]   ;;  %v12272_v43 = vld [vmem:[%s16165_s9 + $0x1a8] ss:$16 sps:$4 sm:$0xff]   ;;  %v12273_v44 = vld [vmem:[%s16165_s9 + $0x184] ss:$16 sps:$4 sm:$0xff]  }
 0x197   : > { %1644 = vmatprep.subr.bf16.mxu0 %v12231_v16  ;;  %1687 = vmatprep.subr.bf16.mxu1 %v12233_v17  ;;  %v12275_v45 = vld [vmem:[%s16165_s9 + $0x18c] ss:$16 sps:$4 sm:$0xff]   ;;  %v12277_v47 = vld [vmem:[%s16165_s9 + $0x180] ss:$16 sps:$4 sm:$0xff]   ;;  %v12278_v48 = vld [vmem:[%s16165_s9 + $0x188] ss:$16 sps:$4 sm:$0xff]  }
 0x198   : > { %v12279_v50 = vld [vmem:[%s16165_s9 + $0x164] ss:$16 sps:$4 sm:$0xff]   ;;  %v12281_v52 = vld [vmem:[%s16165_s9 + $0x16c] ss:$16 sps:$4 sm:$0xff]   ;;  %v12283_v53 = vld [vmem:[%s16165_s9 + $0x160] ss:$16 sps:$4 sm:$0xff]  }
 0x199   : > { %v12284_v54 = vld [vmem:[%s16165_s9 + $0x168] ss:$16 sps:$4 sm:$0xff]   ;;  %v12285_v55 = vld [vmem:[%s16165_s9 + $0x144] ss:$16 sps:$4 sm:$0xff]   ;;  %v12287_v56 = vld [vmem:[%s16165_s9 + $0x14c] ss:$16 sps:$4 sm:$0xff]  }
 0x19a   : > { %1645 = vmatpush1.bf16.msra.mxu0 %v12235_v18  ;;  %1688 = vmatpush1.bf16.msra.mxu1 %v12236_v19  ;;  %v12289_v57 = vld [vmem:[%s16165_s9 + $0x140] ss:$16 sps:$4 sm:$0xff]   ;;  %v12290_v58 = vld [vmem:[%s16165_s9 + $0x148] ss:$16 sps:$4 sm:$0xff]   ;;  %v12291_v59 = vld [vmem:[%s16165_s9 + $0x124] ss:$16 sps:$4 sm:$0xff]  }
 0x19b   : > { %1646 = vmatprep.subr.bf16.mxu0 %v12237_v20  ;;  %1689 = vmatprep.subr.bf16.mxu1 %v12239_v21  ;;  %v12293_v60 = vld [vmem:[%s16165_s9 + $0x12c] ss:$16 sps:$4 sm:$0xff]   ;;  %v12295_v61 = vld [vmem:[%s16165_s9 + $0x120] ss:$16 sps:$4 sm:$0xff]   ;;  %v12296_v62 = vld [vmem:[%s16165_s9 + $0x128] ss:$16 sps:$4 sm:$0xff]  }
 0x19c   : > { %v12297_v63 = vld [vmem:[%s16165_s9 + $0x104] ss:$16 sps:$4 sm:$0xff]   ;;  %v12299_v0 = vld [vmem:[%s16165_s9 + $0x10c] ss:$16 sps:$4 sm:$0xff]   ;;  %v12301_v1 = vld [vmem:[%s16165_s9 + $0x100] ss:$16 sps:$4 sm:$0xff]  }
 0x19d   : > { %v12302_v2 = vld [vmem:[%s16165_s9 + $0x108] ss:$16 sps:$4 sm:$0xff]   ;;  %v1180_v3 = vld [vmem:[%s14548_s6] sm:$0xff]  ;;  %v1182_v4 = vld [vmem:[%s14548_s6 + $0x10] sm:$0xff]  ;;  %s16170_s6 = sld [smem:[#allocation62_spill]] }
 0x19e   : > { %1647 = vmatpush1.bf16.msra.mxu0 %v12241_v22  ;;  %1690 = vmatpush1.bf16.msra.mxu1 %v12242_v23  ;;  %v12305_v5 = vld [vmem:[%s16165_s9 + $0x2e4] ss:$16 sps:$4 sm:$0xff]   ;;  %v12308_v6 = vld [vmem:[%s16165_s9 + $0x2ec] ss:$16 sps:$4 sm:$0xff]   ;;  %v14668_v7 = vpack.c.bf16 %v1182_v4, %v1180_v3  ;;  %v12303_v8 = vld [vmem:[%s16165_s9 + $0x2e0] ss:$16 sps:$4 sm:$0xff]  }
 0x19f   : > { %1648 = vmatprep.subr.bf16.mxu0 %v12243_v24  ;;  %1691 = vmatprep.subr.bf16.mxu1 %v12245_v25  ;;  %v12306_v9 = vld [vmem:[%s16165_s9 + $0x2e8] ss:$16 sps:$4 sm:$0xff]   ;;  %v12311_v10 = vld [vmem:[%s16165_s9 + $0x2c4] ss:$16 sps:$4 sm:$0xff]   ;;  %v12314_v11 = vld [vmem:[%s16165_s9 + $0x2cc] ss:$16 sps:$4 sm:$0xff]  }
 0x1a0   : > { %v12309_v12 = vld [vmem:[%s16165_s9 + $0x2c0] ss:$16 sps:$4 sm:$0xff]   ;;  %v12312_v13 = vld [vmem:[%s16165_s9 + $0x2c8] ss:$16 sps:$4 sm:$0xff]   ;;  %v12317_v14 = vld [vmem:[%s16165_s9 + $0x2a4] ss:$16 sps:$4 sm:$0xff]  }
 0x1a1   : > { %v12320_v15 = vld [vmem:[%s16165_s9 + $0x2ac] ss:$16 sps:$4 sm:$0xff]   ;;  %v12315_v16 = vld [vmem:[%s16165_s9 + $0x2a0] ss:$16 sps:$4 sm:$0xff]   ;;  %v12318_v17 = vld [vmem:[%s16165_s9 + $0x2a8] ss:$16 sps:$4 sm:$0xff]  }
 0x1a2   : > { %1649 = vmatpush1.bf16.msra.mxu0 %v12247_v26  ;;  %1692 = vmatpush1.bf16.msra.mxu1 %v12248_v27  ;;  %v12323_v18 = vld [vmem:[%s16165_s9 + $0x284] ss:$16 sps:$4 sm:$0xff]   ;;  %v12326_v19 = vld [vmem:[%s16165_s9 + $0x28c] ss:$16 sps:$4 sm:$0xff]   ;;  %v12321_v20 = vld [vmem:[%s16165_s9 + $0x280] ss:$16 sps:$4 sm:$0xff]  }
 0x1a3   : > { %1650 = vmatprep.subr.bf16.mxu0 %v12249_v28  ;;  %1693 = vmatprep.subr.bf16.mxu1 %v12251_v29  ;;  %v12324_v21 = vld [vmem:[%s16165_s9 + $0x288] ss:$16 sps:$4 sm:$0xff]   ;;  %v12329_v22 = vld [vmem:[%s16165_s9 + $0x264] ss:$16 sps:$4 sm:$0xff]   ;;  %v12332_v23 = vld [vmem:[%s16165_s9 + $0x26c] ss:$16 sps:$4 sm:$0xff]  }
 0x1a4   : > { %v12327_v24 = vld [vmem:[%s16165_s9 + $0x260] ss:$16 sps:$4 sm:$0xff]   ;;  %v12330_v25 = vld [vmem:[%s16165_s9 + $0x268] ss:$16 sps:$4 sm:$0xff]   ;;  %v12335_v26 = vld [vmem:[%s16165_s9 + $0x244] ss:$16 sps:$4 sm:$0xff]  }
 0x1a5   : > { %v12338_v27 = vld [vmem:[%s16165_s9 + $0x24c] ss:$16 sps:$4 sm:$0xff]   ;;  %v12333_v28 = vld [vmem:[%s16165_s9 + $0x240] ss:$16 sps:$4 sm:$0xff]   ;;  %v12336_v29 = vld [vmem:[%s16165_s9 + $0x248] ss:$16 sps:$4 sm:$0xff]  }
 0x1a6   : > { %1651 = vmatpush1.bf16.msra.mxu0 %v12253_v30  ;;  %1694 = vmatpush1.bf16.msra.mxu1 %v12254_v31  ;;  %v12341_v30 = vld [vmem:[%s16165_s9 + $0x224] ss:$16 sps:$4 sm:$0xff]   ;;  %v12344_v31 = vld [vmem:[%s16165_s9 + $0x22c] ss:$16 sps:$4 sm:$0xff]   ;;  %v12366_v49 = vld [vmem:[%s16165_s9 + $0x3a8] ss:$16 sps:$4 sm:$0xff]  }
 0x1a7   : > { %1652 = vmatprep.subr.bf16.mxu0 %v12255_v32  ;;  %1695 = vmatprep.subr.bf16.mxu1 %v12257_v33  ;;  %v12339_v32 = vld [vmem:[%s16165_s9 + $0x220] ss:$16 sps:$4 sm:$0xff]   ;;  %v12342_v33 = vld [vmem:[%s16165_s9 + $0x228] ss:$16 sps:$4 sm:$0xff]   ;;  %v12365_v46 = vld [vmem:[%s16165_s9 + $0x3a4] ss:$16 sps:$4 sm:$0xff]  }
 0x1a8   : > { %v12395_v3 = vld [vmem:[%s16165_s9 + $0x304] ss:$16 sps:$4 sm:$0xff]   ;;  %v12398_v4 = vld [vmem:[%s16165_s9 + $0x30c] ss:$16 sps:$4 sm:$0xff]  }
 0x1aa   : > { %1653 = vmatpush2.bf16.msra.mxu0 %v12259_v34  ;;  %1696 = vmatpush2.bf16.msra.mxu1 %v12260_v35  ;;  %v12347_v34 = vld [vmem:[%s16165_s9 + $0x204] ss:$16 sps:$4 sm:$0xff]   ;;  %v12350_v35 = vld [vmem:[%s16165_s9 + $0x20c] ss:$16 sps:$4 sm:$0xff]  }
 0x1ab   : > { %1654 = vmatprep.subr.bf16.mxu0 %v12261_v36  ;;  %1697 = vmatprep.subr.bf16.mxu1 %v12263_v37  ;;  %v12345_v36 = vld [vmem:[%s16165_s9 + $0x200] ss:$16 sps:$4 sm:$0xff]   ;;  %v12348_v37 = vld [vmem:[%s16165_s9 + $0x208] ss:$16 sps:$4 sm:$0xff]  }
 0x1ae   : > { %1655 = vmatpush2.bf16.msra.mxu0 %v12265_v38  ;;  %1698 = vmatpush2.bf16.msra.mxu1 %v12266_v39  ;;  %v12353_v38 = vld [vmem:[%s16165_s9 + $0x3e4] ss:$16 sps:$4 sm:$0xff]   ;;  %v12356_v39 = vld [vmem:[%s16165_s9 + $0x3ec] ss:$16 sps:$4 sm:$0xff]  }
 0x1af   : > { %1656 = vmatprep.subr.bf16.mxu0 %v12267_v40  ;;  %1699 = vmatprep.subr.bf16.mxu1 %v12269_v41  ;;  %v12351_v40 = vld [vmem:[%s16165_s9 + $0x3e0] ss:$16 sps:$4 sm:$0xff]   ;;  %v12354_v41 = vld [vmem:[%s16165_s9 + $0x3e8] ss:$16 sps:$4 sm:$0xff]  }
 0x1b2   : > { %1657 = vmatpush2.bf16.msra.mxu0 %v12271_v42  ;;  %1700 = vmatpush2.bf16.msra.mxu1 %v12272_v43  ;;  %v12359_v42 = vld [vmem:[%s16165_s9 + $0x3c4] ss:$16 sps:$4 sm:$0xff]   ;;  %v12362_v43 = vld [vmem:[%s16165_s9 + $0x3cc] ss:$16 sps:$4 sm:$0xff]  }
 0x1b3   : > { %1658 = vmatprep.subr.bf16.mxu0 %v12273_v44  ;;  %1701 = vmatprep.subr.bf16.mxu1 %v12275_v45  ;;  %v12357_v44 = vld [vmem:[%s16165_s9 + $0x3c0] ss:$16 sps:$4 sm:$0xff]   ;;  %v12360_v45 = vld [vmem:[%s16165_s9 + $0x3c8] ss:$16 sps:$4 sm:$0xff]  }
 0x1b6   : > { %1659 = vmatpush2.bf16.msra.mxu0 %v12277_v47  ;;  %1702 = vmatpush2.bf16.msra.mxu1 %v12278_v48  ;;  %v12368_v47 = vld [vmem:[%s16165_s9 + $0x3ac] ss:$16 sps:$4 sm:$0xff]   ;;  %v12363_v48 = vld [vmem:[%s16165_s9 + $0x3a0] ss:$16 sps:$4 sm:$0xff]  }
 0x1b7   : > { %1660 = vmatprep.subr.bf16.mxu0 %v12279_v50  ;;  %1703 = vmatprep.subr.bf16.mxu1 %v12281_v52  ;;  %v12371_v50 = vld [vmem:[%s16165_s9 + $0x384] ss:$16 sps:$4 sm:$0xff]   ;;  %v12374_v52 = vld [vmem:[%s16165_s9 + $0x38c] ss:$16 sps:$4 sm:$0xff]  }
 0x1ba   : > { %1661 = vmatpush2.bf16.msra.mxu0 %v12283_v53  ;;  %1704 = vmatpush2.bf16.msra.mxu1 %v12284_v54  ;;  %v12369_v53 = vld [vmem:[%s16165_s9 + $0x380] ss:$16 sps:$4 sm:$0xff]   ;;  %v12372_v54 = vld [vmem:[%s16165_s9 + $0x388] ss:$16 sps:$4 sm:$0xff]  }
 0x1bb   : > { %1662 = vmatprep.subr.bf16.mxu0 %v12285_v55  ;;  %1705 = vmatprep.subr.bf16.mxu1 %v12287_v56  ;;  %v12377_v55 = vld [vmem:[%s16165_s9 + $0x364] ss:$16 sps:$4 sm:$0xff]   ;;  %v12380_v56 = vld [vmem:[%s16165_s9 + $0x36c] ss:$16 sps:$4 sm:$0xff]  }
 0x1be   : > { %1663 = vmatpush2.bf16.msra.mxu0 %v12289_v57  ;;  %1706 = vmatpush2.bf16.msra.mxu1 %v12290_v58  ;;  %v12375_v57 = vld [vmem:[%s16165_s9 + $0x360] ss:$16 sps:$4 sm:$0xff]   ;;  %v12378_v58 = vld [vmem:[%s16165_s9 + $0x368] ss:$16 sps:$4 sm:$0xff]  }
 0x1bf   : > { %1664 = vmatprep.subr.bf16.mxu0 %v12291_v59  ;;  %1707 = vmatprep.subr.bf16.mxu1 %v12293_v60  ;;  %v12383_v59 = vld [vmem:[%s16165_s9 + $0x344] ss:$16 sps:$4 sm:$0xff]   ;;  %v12386_v60 = vld [vmem:[%s16165_s9 + $0x34c] ss:$16 sps:$4 sm:$0xff]  }
 0x1c2   : > { %1665 = vmatpush2.bf16.msra.mxu0 %v12295_v61  ;;  %1708 = vmatpush2.bf16.msra.mxu1 %v12296_v62  ;;  %v12381_v61 = vld [vmem:[%s16165_s9 + $0x340] ss:$16 sps:$4 sm:$0xff]   ;;  %v12384_v62 = vld [vmem:[%s16165_s9 + $0x348] ss:$16 sps:$4 sm:$0xff]  }
 0x1c3   : > { %1666 = vmatprep.subr.bf16.mxu0 %v12297_v63  ;;  %1709 = vmatprep.subr.bf16.mxu1 %v12299_v0  ;;  %v12389_v63 = vld [vmem:[%s16165_s9 + $0x324] ss:$16 sps:$4 sm:$0xff]   ;;  %v12392_v0 = vld [vmem:[%s16165_s9 + $0x32c] ss:$16 sps:$4 sm:$0xff]  }
 0x1c6   : > { %1667 = vmatpush2.bf16.msra.mxu0 %v12301_v1  ;;  %1710 = vmatpush2.bf16.msra.mxu1 %v12302_v2  ;;  %v12387_v1 = vld [vmem:[%s16165_s9 + $0x320] ss:$16 sps:$4 sm:$0xff]   ;;  %v12390_v2 = vld [vmem:[%s16165_s9 + $0x328] ss:$16 sps:$4 sm:$0xff]  }
 0x1c7   : > { %2075 = vmatprep.subr.bf16.mxu0 %v12305_v5  ;;  %2118 = vmatprep.subr.bf16.mxu1 %v12308_v6  ;;  %v12393_v5 = vld [vmem:[%s16165_s9 + $0x300] ss:$16 sps:$4 sm:$0xff]   ;;  %v12396_v6 = vld [vmem:[%s16165_s9 + $0x308] ss:$16 sps:$4 sm:$0xff]  }
 0x1c9   : > { %1669 = vmatmul.mubr.bf16.vlgmr.msra.gmra.mxu0 %v14668_v7  ;;  %1712 = vmatmul.mubr.bf16.vlgmr.msra.gmra.mxu1 %v14668_v7 }
 0x1ca   : > { %2076 = vmatpush1.bf16.msra.mxu0 %v12303_v8  ;;  %2119 = vmatpush1.bf16.msra.mxu1 %v12306_v9  ;;  %v12401_v8 = vld [vmem:[%s16165_s9 + $0x4e4] ss:$16 sps:$4 sm:$0xff]   ;;  %v12404_v9 = vld [vmem:[%s16165_s9 + $0x4ec] ss:$16 sps:$4 sm:$0xff]  }
 0x1cb   : > { %2077 = vmatprep.subr.bf16.mxu0 %v12311_v10  ;;  %2120 = vmatprep.subr.bf16.mxu1 %v12314_v11  ;;  %v12399_v10 = vld [vmem:[%s16165_s9 + $0x4e0] ss:$16 sps:$4 sm:$0xff]   ;;  %v12402_v11 = vld [vmem:[%s16165_s9 + $0x4e8] ss:$16 sps:$4 sm:$0xff]  }
 0x1cc   : > { %2107 = vmatprep.mubr.bf16.mxu0 %v14645_v51  ;;  %2150 = vmatprep.mubr.bf16.mxu1 %v14645_v51 }
 0x1ce   : > { %2078 = vmatpush1.bf16.msra.mxu0 %v12309_v12  ;;  %2121 = vmatpush1.bf16.msra.mxu1 %v12312_v13  ;;  %v12407_v12 = vld [vmem:[%s16165_s9 + $0x4c4] ss:$16 sps:$4 sm:$0xff]   ;;  %v12410_v13 = vld [vmem:[%s16165_s9 + $0x4cc] ss:$16 sps:$4 sm:$0xff]  }
 0x1cf   : > { %2079 = vmatprep.subr.bf16.mxu0 %v12317_v14  ;;  %2122 = vmatprep.subr.bf16.mxu1 %v12320_v15  ;;  %v12405_v14 = vld [vmem:[%s16165_s9 + $0x4c0] ss:$16 sps:$4 sm:$0xff]   ;;  %v12408_v15 = vld [vmem:[%s16165_s9 + $0x4c8] ss:$16 sps:$4 sm:$0xff]  }
 0x1d2   : > { %2080 = vmatpush1.bf16.msra.mxu0 %v12315_v16  ;;  %2123 = vmatpush1.bf16.msra.mxu1 %v12318_v17  ;;  %v12413_v16 = vld [vmem:[%s16165_s9 + $0x4a4] ss:$16 sps:$4 sm:$0xff]   ;;  %v12416_v17 = vld [vmem:[%s16165_s9 + $0x4ac] ss:$16 sps:$4 sm:$0xff]  }
 0x1d3   : > { %2081 = vmatprep.subr.bf16.mxu0 %v12323_v18  ;;  %2124 = vmatprep.subr.bf16.mxu1 %v12326_v19  ;;  %v12411_v18 = vld [vmem:[%s16165_s9 + $0x4a0] ss:$16 sps:$4 sm:$0xff]   ;;  %v12414_v19 = vld [vmem:[%s16165_s9 + $0x4a8] ss:$16 sps:$4 sm:$0xff]  }
 0x1d6   : > { %2082 = vmatpush1.bf16.msra.mxu0 %v12321_v20  ;;  %2125 = vmatpush1.bf16.msra.mxu1 %v12324_v21  ;;  %v12419_v20 = vld [vmem:[%s16165_s9 + $0x484] ss:$16 sps:$4 sm:$0xff]   ;;  %v12422_v21 = vld [vmem:[%s16165_s9 + $0x48c] ss:$16 sps:$4 sm:$0xff]  }
 0x1d7   : > { %2083 = vmatprep.subr.bf16.mxu0 %v12329_v22  ;;  %2126 = vmatprep.subr.bf16.mxu1 %v12332_v23  ;;  %v12417_v22 = vld [vmem:[%s16165_s9 + $0x480] ss:$16 sps:$4 sm:$0xff]   ;;  %v12420_v23 = vld [vmem:[%s16165_s9 + $0x488] ss:$16 sps:$4 sm:$0xff]  }
 0x1da   : > { %2084 = vmatpush1.bf16.msra.mxu0 %v12327_v24  ;;  %2127 = vmatpush1.bf16.msra.mxu1 %v12330_v25  ;;  %v12425_v24 = vld [vmem:[%s16165_s9 + $0x464] ss:$16 sps:$4 sm:$0xff]   ;;  %v12428_v25 = vld [vmem:[%s16165_s9 + $0x46c] ss:$16 sps:$4 sm:$0xff]  }
 0x1db   : > { %2085 = vmatprep.subr.bf16.mxu0 %v12335_v26  ;;  %2128 = vmatprep.subr.bf16.mxu1 %v12338_v27  ;;  %v12423_v26 = vld [vmem:[%s16165_s9 + $0x460] ss:$16 sps:$4 sm:$0xff]   ;;  %v12426_v27 = vld [vmem:[%s16165_s9 + $0x468] ss:$16 sps:$4 sm:$0xff]  }
 0x1de   : > { %2086 = vmatpush1.bf16.msra.mxu0 %v12333_v28  ;;  %2129 = vmatpush1.bf16.msra.mxu1 %v12336_v29  ;;  %v12431_v28 = vld [vmem:[%s16165_s9 + $0x444] ss:$16 sps:$4 sm:$0xff]   ;;  %v12434_v29 = vld [vmem:[%s16165_s9 + $0x44c] ss:$16 sps:$4 sm:$0xff]  }
 0x1df   : > { %2087 = vmatprep.subr.bf16.mxu0 %v12341_v30  ;;  %2130 = vmatprep.subr.bf16.mxu1 %v12344_v31  ;;  %v12429_v30 = vld [vmem:[%s16165_s9 + $0x440] ss:$16 sps:$4 sm:$0xff]   ;;  %v12432_v31 = vld [vmem:[%s16165_s9 + $0x448] ss:$16 sps:$4 sm:$0xff]  }
 0x1e2   : > { %2088 = vmatpush1.bf16.msra.mxu0 %v12339_v32  ;;  %2131 = vmatpush1.bf16.msra.mxu1 %v12342_v33  ;;  %v12437_v32 = vld [vmem:[%s16165_s9 + $0x424] ss:$16 sps:$4 sm:$0xff]   ;;  %v12440_v33 = vld [vmem:[%s16165_s9 + $0x42c] ss:$16 sps:$4 sm:$0xff]  }
 0x1e3   : > { %2089 = vmatprep.subr.bf16.mxu0 %v12347_v34  ;;  %2132 = vmatprep.subr.bf16.mxu1 %v12350_v35  ;;  %v12435_v34 = vld [vmem:[%s16165_s9 + $0x420] ss:$16 sps:$4 sm:$0xff]   ;;  %v12438_v35 = vld [vmem:[%s16165_s9 + $0x428] ss:$16 sps:$4 sm:$0xff]  }
 0x1e6   : > { %2090 = vmatpush1.bf16.msra.mxu0 %v12345_v36  ;;  %2133 = vmatpush1.bf16.msra.mxu1 %v12348_v37  ;;  %v12443_v36 = vld [vmem:[%s16165_s9 + $0x404] ss:$16 sps:$4 sm:$0xff]   ;;  %v12446_v37 = vld [vmem:[%s16165_s9 + $0x40c] ss:$16 sps:$4 sm:$0xff]  }
 0x1e7   : > { %2091 = vmatprep.subr.bf16.mxu0 %v12353_v38  ;;  %2134 = vmatprep.subr.bf16.mxu1 %v12356_v39  ;;  %v12441_v38 = vld [vmem:[%s16165_s9 + $0x400] ss:$16 sps:$4 sm:$0xff]   ;;  %v12444_v39 = vld [vmem:[%s16165_s9 + $0x408] ss:$16 sps:$4 sm:$0xff]  }
 0x1ea   : > { %2092 = vmatpush2.bf16.msra.mxu0 %v12351_v40  ;;  %2135 = vmatpush2.bf16.msra.mxu1 %v12354_v41  ;;  %v12449_v40 = vld [vmem:[%s16165_s9 + $0x5e4] ss:$16 sps:$4 sm:$0xff]   ;;  %v12452_v41 = vld [vmem:[%s16165_s9 + $0x5ec] ss:$16 sps:$4 sm:$0xff]  }
 0x1eb   : > { %2093 = vmatprep.subr.bf16.mxu0 %v12359_v42  ;;  %2136 = vmatprep.subr.bf16.mxu1 %v12362_v43  ;;  %v12447_v42 = vld [vmem:[%s16165_s9 + $0x5e0] ss:$16 sps:$4 sm:$0xff]   ;;  %v12450_v43 = vld [vmem:[%s16165_s9 + $0x5e8] ss:$16 sps:$4 sm:$0xff]  }
 0x1ee   : > { %2094 = vmatpush2.bf16.msra.mxu0 %v12357_v44  ;;  %2137 = vmatpush2.bf16.msra.mxu1 %v12360_v45  ;;  %v12455_v44 = vld [vmem:[%s16165_s9 + $0x5c4] ss:$16 sps:$4 sm:$0xff]   ;;  %v12458_v45 = vld [vmem:[%s16165_s9 + $0x5cc] ss:$16 sps:$4 sm:$0xff]  }
 0x1ef   : > { %2095 = vmatprep.subr.bf16.mxu0 %v12365_v46  ;;  %2138 = vmatprep.subr.bf16.mxu1 %v12368_v47  ;;  %v12453_v46 = vld [vmem:[%s16165_s9 + $0x5c0] ss:$16 sps:$4 sm:$0xff]   ;;  %v12456_v47 = vld [vmem:[%s16165_s9 + $0x5c8] ss:$16 sps:$4 sm:$0xff]  }
 0x1f2   : > { %2096 = vmatpush2.bf16.msra.mxu0 %v12363_v48  ;;  %2139 = vmatpush2.bf16.msra.mxu1 %v12366_v49  ;;  %v12461_v48 = vld [vmem:[%s16165_s9 + $0x5a4] ss:$16 sps:$4 sm:$0xff]   ;;  %v12464_v49 = vld [vmem:[%s16165_s9 + $0x5ac] ss:$16 sps:$4 sm:$0xff]  }
 0x1f3   : > { %2097 = vmatprep.subr.bf16.mxu0 %v12371_v50  ;;  %2140 = vmatprep.subr.bf16.mxu1 %v12374_v52  ;;  %v12459_v50 = vld [vmem:[%s16165_s9 + $0x5a0] ss:$16 sps:$4 sm:$0xff]   ;;  %v12462_v52 = vld [vmem:[%s16165_s9 + $0x5a8] ss:$16 sps:$4 sm:$0xff]  }
 0x1f6   : > { %2098 = vmatpush2.bf16.msra.mxu0 %v12369_v53  ;;  %2141 = vmatpush2.bf16.msra.mxu1 %v12372_v54  ;;  %v12467_v53 = vld [vmem:[%s16165_s9 + $0x584] ss:$16 sps:$4 sm:$0xff]   ;;  %v12470_v54 = vld [vmem:[%s16165_s9 + $0x58c] ss:$16 sps:$4 sm:$0xff]  }
 0x1f7   : > { %2099 = vmatprep.subr.bf16.mxu0 %v12377_v55  ;;  %2142 = vmatprep.subr.bf16.mxu1 %v12380_v56  ;;  %v12465_v55 = vld [vmem:[%s16165_s9 + $0x580] ss:$16 sps:$4 sm:$0xff]   ;;  %v12468_v56 = vld [vmem:[%s16165_s9 + $0x588] ss:$16 sps:$4 sm:$0xff]  }
 0x1fa   : > { %2100 = vmatpush2.bf16.msra.mxu0 %v12375_v57  ;;  %2143 = vmatpush2.bf16.msra.mxu1 %v12378_v58  ;;  %v12473_v57 = vld [vmem:[%s16165_s9 + $0x564] ss:$16 sps:$4 sm:$0xff]   ;;  %v12476_v58 = vld [vmem:[%s16165_s9 + $0x56c] ss:$16 sps:$4 sm:$0xff]  }
 0x1fb   : > { %2101 = vmatprep.subr.bf16.mxu0 %v12383_v59  ;;  %2144 = vmatprep.subr.bf16.mxu1 %v12386_v60  ;;  %v12471_v59 = vld [vmem:[%s16165_s9 + $0x560] ss:$16 sps:$4 sm:$0xff]   ;;  %v12474_v60 = vld [vmem:[%s16165_s9 + $0x568] ss:$16 sps:$4 sm:$0xff]  }
 0x1fe   : > { %2102 = vmatpush2.bf16.msra.mxu0 %v12381_v61  ;;  %2145 = vmatpush2.bf16.msra.mxu1 %v12384_v62  ;;  %v12479_v61 = vld [vmem:[%s16165_s9 + $0x544] ss:$16 sps:$4 sm:$0xff]   ;;  %v12482_v62 = vld [vmem:[%s16165_s9 + $0x54c] ss:$16 sps:$4 sm:$0xff]  }
 0x1ff   : > { %2103 = vmatprep.subr.bf16.mxu0 %v12389_v63  ;;  %2146 = vmatprep.subr.bf16.mxu1 %v12392_v0  ;;  %v12477_v63 = vld [vmem:[%s16165_s9 + $0x540] ss:$16 sps:$4 sm:$0xff]   ;;  %v12480_v0 = vld [vmem:[%s16165_s9 + $0x548] ss:$16 sps:$4 sm:$0xff]  }
 0x202   : > { %2104 = vmatpush2.bf16.msra.mxu0 %v12387_v1  ;;  %2147 = vmatpush2.bf16.msra.mxu1 %v12390_v2  ;;  %v12485_v1 = vld [vmem:[%s16165_s9 + $0x524] ss:$16 sps:$4 sm:$0xff]   ;;  %v12488_v2 = vld [vmem:[%s16165_s9 + $0x52c] ss:$16 sps:$4 sm:$0xff]  }
 0x203   : > { %2105 = vmatprep.subr.bf16.mxu0 %v12395_v3  ;;  %2148 = vmatprep.subr.bf16.mxu1 %v12398_v4  ;;  %v12483_v3 = vld [vmem:[%s16165_s9 + $0x520] ss:$16 sps:$4 sm:$0xff]   ;;  %v12486_v4 = vld [vmem:[%s16165_s9 + $0x528] ss:$16 sps:$4 sm:$0xff]  }
 0x206   : > { %2106 = vmatpush2.bf16.msra.mxu0 %v12393_v5  ;;  %2149 = vmatpush2.bf16.msra.mxu1 %v12396_v6  ;;  %v12491_v5 = vld [vmem:[%s16165_s9 + $0x504] ss:$16 sps:$4 sm:$0xff]   ;;  %v12494_v6 = vld [vmem:[%s16165_s9 + $0x50c] ss:$16 sps:$4 sm:$0xff]  }
 0x207   : > { %2546 = vmatprep.subr.bf16.mxu0 %v12401_v8  ;;  %2589 = vmatprep.subr.bf16.mxu1 %v12404_v9  ;;  %v12489_v8 = vld [vmem:[%s16165_s9 + $0x500] ss:$16 sps:$4 sm:$0xff]   ;;  %v12492_v9 = vld [vmem:[%s16165_s9 + $0x508] ss:$16 sps:$4 sm:$0xff]  }
 0x209   : > { %2108 = vmatmul.mubr.bf16.vlgmr.msra.gmra.mxu0 %v14668_v7  ;;  %2151 = vmatmul.mubr.bf16.vlgmr.msra.gmra.mxu1 %v14668_v7 }
 0x20a   : > { %2547 = vmatpush1.bf16.msra.mxu0 %v12399_v10  ;;  %2590 = vmatpush1.bf16.msra.mxu1 %v12402_v11  ;;  %v2803_v10 = vld [vmem:[%s16166_s14 + $0xf8] sm:$0xff] }
 0x20b   : > { %2548 = vmatprep.subr.bf16.mxu0 %v12407_v12  ;;  %2591 = vmatprep.subr.bf16.mxu1 %v12410_v13  ;;  %v2835_v11 = vld [vmem:[%s16166_s14 + $0x1f8] sm:$0xff] }
 0x20c   : > { %2578 = vmatprep.mubr.bf16.mxu0 %v14645_v51  ;;  %2621 = vmatprep.mubr.bf16.mxu1 %v14645_v51  ;;  %v2787_v12 = vld [vmem:[%s16166_s14 + $0x78] sm:$0xff] }
 0x20d   : > { %v2819_v13 = vld [vmem:[%s16166_s14 + $0x178] sm:$0xff] }
 0x20e   : > { %2549 = vmatpush1.bf16.msra.mxu0 %v12405_v14  ;;  %2592 = vmatpush1.bf16.msra.mxu1 %v12408_v15  ;;  %v2802_v14 = vld [vmem:[%s16166_s14 + $0xf0] sm:$0xff] }
 0x20f   : > { %2550 = vmatprep.subr.bf16.mxu0 %v12413_v16  ;;  %2593 = vmatprep.subr.bf16.mxu1 %v12416_v17  ;;  %v2834_v15 = vld [vmem:[%s16166_s14 + $0x1f0] sm:$0xff] }
 0x210   : > { %v2786_v16 = vld [vmem:[%s16166_s14 + $0x70] sm:$0xff] }
 0x211   : > { %v2818_v17 = vld [vmem:[%s16166_s14 + $0x170] sm:$0xff] }
 0x212   : > { %2551 = vmatpush1.bf16.msra.mxu0 %v12411_v18  ;;  %2594 = vmatpush1.bf16.msra.mxu1 %v12414_v19  ;;  %v2801_v18 = vld [vmem:[%s16166_s14 + $0xe8] sm:$0xff] }
 0x213   : > { %2552 = vmatprep.subr.bf16.mxu0 %v12419_v20  ;;  %2595 = vmatprep.subr.bf16.mxu1 %v12422_v21  ;;  %v2833_v19 = vld [vmem:[%s16166_s14 + $0x1e8] sm:$0xff] }
 0x214   : > { %v2785_v20 = vld [vmem:[%s16166_s14 + $0x68] sm:$0xff] }
 0x215   : > { %v2817_v21 = vld [vmem:[%s16166_s14 + $0x168] sm:$0xff] }
 0x216   : > { %2553 = vmatpush1.bf16.msra.mxu0 %v12417_v22  ;;  %2596 = vmatpush1.bf16.msra.mxu1 %v12420_v23  ;;  %v2800_v22 = vld [vmem:[%s16166_s14 + $0xe0] sm:$0xff] }
 0x217   : > { %2554 = vmatprep.subr.bf16.mxu0 %v12425_v24  ;;  %2597 = vmatprep.subr.bf16.mxu1 %v12428_v25  ;;  %v2832_v23 = vld [vmem:[%s16166_s14 + $0x1e0] sm:$0xff] }
 0x218   : > { %v2784_v24 = vld [vmem:[%s16166_s14 + $0x60] sm:$0xff] }
 0x219   : > { %v2816_v25 = vld [vmem:[%s16166_s14 + $0x160] sm:$0xff] }
 0x21a   : > { %2555 = vmatpush1.bf16.msra.mxu0 %v12423_v26  ;;  %2598 = vmatpush1.bf16.msra.mxu1 %v12426_v27  ;;  %v2799_v26 = vld [vmem:[%s16166_s14 + $0xd8] sm:$0xff] }
 0x21b   : > { %2556 = vmatprep.subr.bf16.mxu0 %v12431_v28  ;;  %2599 = vmatprep.subr.bf16.mxu1 %v12434_v29  ;;  %v2831_v27 = vld [vmem:[%s16166_s14 + $0x1d8] sm:$0xff] }
 0x21c   : > { %v2783_v28 = vld [vmem:[%s16166_s14 + $0x58] sm:$0xff] }
 0x21d   : > { %v2815_v29 = vld [vmem:[%s16166_s14 + $0x158] sm:$0xff] }
 0x21e   : > { %2557 = vmatpush1.bf16.msra.mxu0 %v12429_v30  ;;  %2600 = vmatpush1.bf16.msra.mxu1 %v12432_v31  ;;  %v2798_v30 = vld [vmem:[%s16166_s14 + $0xd0] sm:$0xff] }
 0x21f   : > { %2558 = vmatprep.subr.bf16.mxu0 %v12437_v32  ;;  %2601 = vmatprep.subr.bf16.mxu1 %v12440_v33  ;;  %v2830_v31 = vld [vmem:[%s16166_s14 + $0x1d0] sm:$0xff] }
 0x220   : > { %v2782_v32 = vld [vmem:[%s16166_s14 + $0x50] sm:$0xff] }
 0x221   : > { %v2814_v33 = vld [vmem:[%s16166_s14 + $0x150] sm:$0xff] }
 0x222   : > { %2559 = vmatpush1.bf16.msra.mxu0 %v12435_v34  ;;  %2602 = vmatpush1.bf16.msra.mxu1 %v12438_v35  ;;  %v2797_v34 = vld [vmem:[%s16166_s14 + $0xc8] sm:$0xff] }
 0x223   : > { %2560 = vmatprep.subr.bf16.mxu0 %v12443_v36  ;;  %2603 = vmatprep.subr.bf16.mxu1 %v12446_v37  ;;  %v2829_v35 = vld [vmem:[%s16166_s14 + $0x1c8] sm:$0xff] }
 0x224   : > { %v2781_v36 = vld [vmem:[%s16166_s14 + $0x48] sm:$0xff] }
 0x225   : > { %v2813_v37 = vld [vmem:[%s16166_s14 + $0x148] sm:$0xff] }
 0x226   : > { %2561 = vmatpush1.bf16.msra.mxu0 %v12441_v38  ;;  %2604 = vmatpush1.bf16.msra.mxu1 %v12444_v39  ;;  %v2796_v38 = vld [vmem:[%s16166_s14 + $0xc0] sm:$0xff] }
 0x227   : > { %2562 = vmatprep.subr.bf16.mxu0 %v12449_v40  ;;  %2605 = vmatprep.subr.bf16.mxu1 %v12452_v41  ;;  %v2828_v39 = vld [vmem:[%s16166_s14 + $0x1c0] sm:$0xff] }
 0x228   : > { %v2780_v40 = vld [vmem:[%s16166_s14 + $0x40] sm:$0xff] }
 0x229   : > { %v2812_v41 = vld [vmem:[%s16166_s14 + $0x140] sm:$0xff] }
 0x22a   : > { %2563 = vmatpush2.bf16.msra.mxu0 %v12447_v42  ;;  %2606 = vmatpush2.bf16.msra.mxu1 %v12450_v43  ;;  %v2795_v42 = vld [vmem:[%s16166_s14 + $0xb8] sm:$0xff] }
 0x22b   : > { %2564 = vmatprep.subr.bf16.mxu0 %v12455_v44  ;;  %2607 = vmatprep.subr.bf16.mxu1 %v12458_v45  ;;  %v2827_v43 = vld [vmem:[%s16166_s14 + $0x1b8] sm:$0xff] }
 0x22c   : > { %v2779_v44 = vld [vmem:[%s16166_s14 + $0x38] sm:$0xff] }
 0x22d   : > { %v2811_v45 = vld [vmem:[%s16166_s14 + $0x138] sm:$0xff] }
 0x22e   : > { %2565 = vmatpush2.bf16.msra.mxu0 %v12453_v46  ;;  %2608 = vmatpush2.bf16.msra.mxu1 %v12456_v47  ;;  %v2794_v46 = vld [vmem:[%s16166_s14 + $0xb0] sm:$0xff] }
 0x22f   : > { %2566 = vmatprep.subr.bf16.mxu0 %v12461_v48  ;;  %2609 = vmatprep.subr.bf16.mxu1 %v12464_v49  ;;  %v2826_v47 = vld [vmem:[%s16166_s14 + $0x1b0] sm:$0xff] }
 0x230   : > { %v2778_v48 = vld [vmem:[%s16166_s14 + $0x30] sm:$0xff] }
 0x231   : > { %v2810_v49 = vld [vmem:[%s16166_s14 + $0x130] sm:$0xff] }
 0x232   : > { %2567 = vmatpush2.bf16.msra.mxu0 %v12459_v50  ;;  %2610 = vmatpush2.bf16.msra.mxu1 %v12462_v52  ;;  %v2793_v50 = vld [vmem:[%s16166_s14 + $0xa8] sm:$0xff] }
 0x233   : > { %2568 = vmatprep.subr.bf16.mxu0 %v12467_v53  ;;  %2611 = vmatprep.subr.bf16.mxu1 %v12470_v54  ;;  %v2825_v52 = vld [vmem:[%s16166_s14 + $0x1a8] sm:$0xff] }
 0x234   : > { %v2777_v53 = vld [vmem:[%s16166_s14 + $0x28] sm:$0xff] }
 0x235   : > { %v2809_v54 = vld [vmem:[%s16166_s14 + $0x128] sm:$0xff] }
 0x236   : > { %2569 = vmatpush2.bf16.msra.mxu0 %v12465_v55  ;;  %2612 = vmatpush2.bf16.msra.mxu1 %v12468_v56  ;;  %v2792_v55 = vld [vmem:[%s16166_s14 + $0xa0] sm:$0xff] }
 0x237   : > { %2570 = vmatprep.subr.bf16.mxu0 %v12473_v57  ;;  %2613 = vmatprep.subr.bf16.mxu1 %v12476_v58  ;;  %v2824_v56 = vld [vmem:[%s16166_s14 + $0x1a0] sm:$0xff] }
 0x238   : > { %v2776_v57 = vld [vmem:[%s16166_s14 + $0x20] sm:$0xff] }
 0x239   : > { %v2808_v58 = vld [vmem:[%s16166_s14 + $0x120] sm:$0xff] }
 0x23a   : > { %2571 = vmatpush2.bf16.msra.mxu0 %v12471_v59  ;;  %2614 = vmatpush2.bf16.msra.mxu1 %v12474_v60  ;;  %v2791_v59 = vld [vmem:[%s16166_s14 + $0x98] sm:$0xff] }
 0x23b   : > { %2572 = vmatprep.subr.bf16.mxu0 %v12479_v61  ;;  %2615 = vmatprep.subr.bf16.mxu1 %v12482_v62  ;;  %v2823_v60 = vld [vmem:[%s16166_s14 + $0x198] sm:$0xff] }
 0x23c   : > { %v2775_v61 = vld [vmem:[%s16166_s14 + $0x18] sm:$0xff] }
 0x23d   : > { %v2807_v62 = vld [vmem:[%s16166_s14 + $0x118] sm:$0xff] }
 0x23e   : > { %2573 = vmatpush2.bf16.msra.mxu0 %v12477_v63  ;;  %2616 = vmatpush2.bf16.msra.mxu1 %v12480_v0  ;;  %v2790_v63 = vld [vmem:[%s16166_s14 + $0x90] sm:$0xff] }
 0x23f   : > { %2574 = vmatprep.subr.bf16.mxu0 %v12485_v1  ;;  %2617 = vmatprep.subr.bf16.mxu1 %v12488_v2  ;;  %v2822_v0 = vld [vmem:[%s16166_s14 + $0x190] sm:$0xff] }
 0x240   : > { %v2774_v1 = vld [vmem:[%s16166_s14 + $0x10] sm:$0xff] }
 0x241   : > { %v2806_v2 = vld [vmem:[%s16166_s14 + $0x110] sm:$0xff] }
 0x242   : > { %2575 = vmatpush2.bf16.msra.mxu0 %v12483_v3  ;;  %2618 = vmatpush2.bf16.msra.mxu1 %v12486_v4  ;;  %v2789_v3 = vld [vmem:[%s16166_s14 + $0x88] sm:$0xff] }
 0x243   : > { %2576 = vmatprep.subr.bf16.mxu0 %v12491_v5  ;;  %2619 = vmatprep.subr.bf16.mxu1 %v12494_v6  ;;  %v2821_v4 = vld [vmem:[%s16166_s14 + $0x188] sm:$0xff] }
 0x244   : > { %v2773_v5 = vld [vmem:[%s16166_s14 + $0x8] sm:$0xff] }
 0x245   : > { %v2805_v6 = vld [vmem:[%s16166_s14 + $0x108] sm:$0xff] }
 0x246   : > { %2577 = vmatpush2.bf16.msra.mxu0 %v12489_v8  ;;  %2620 = vmatpush2.bf16.msra.mxu1 %v12492_v9  ;;  %v2788_v8 = vld [vmem:[%s16166_s14 + $0x80] sm:$0xff] }
 0x247   : > { %11329 = vmatprep.subr.mxu0 %v2803_v10  ;;  %11364 = vmatprep.subr.mxu1 %v2835_v11  ;;  %v2820_v9 = vld [vmem:[%s16166_s14 + $0x180] sm:$0xff] }
 0x248   : > { %v2772_v10 = vld [vmem:[%s16166_s14] sm:$0xff] }
 0x249   : > { %2579 = vmatmul.mubr.bf16.vlgmr.msra.gmra.mxu0 %v14668_v7  ;;  %2622 = vmatmul.mubr.bf16.vlgmr.msra.gmra.mxu1 %v14668_v7  ;;  %v2804_v11 = vld [vmem:[%s16166_s14 + $0x100] sm:$0xff] }
 0x24a   : > { %11330 = vmatpush3.msra.mxu0 %v2787_v12  ;;  %11365 = vmatpush3.msra.mxu1 %v2819_v13 }
 0x24b   : > { %11331 = vmatprep.subr.mxu0 %v2802_v14  ;;  %11366 = vmatprep.subr.mxu1 %v2834_v15 }
 0x24c   : > { %11332 = vmatpush3.msra.mxu0 %v2786_v16  ;;  %11367 = vmatpush3.msra.mxu1 %v2818_v17 }
 0x24d   : > { %11333 = vmatprep.subr.mxu0 %v2801_v18  ;;  %11368 = vmatprep.subr.mxu1 %v2833_v19 }
 0x24e   : > { %11334 = vmatpush3.msra.mxu0 %v2785_v20  ;;  %11369 = vmatpush3.msra.mxu1 %v2817_v21 }
 0x24f   : > { %11335 = vmatprep.subr.mxu0 %v2800_v22  ;;  %11370 = vmatprep.subr.mxu1 %v2832_v23 }
 0x250   : > { %11336 = vmatpush3.msra.mxu0 %v2784_v24  ;;  %11371 = vmatpush3.msra.mxu1 %v2816_v25  ;;  %v2674_v24 = vlaneseq }
 0x251   : > { %11337 = vmatprep.subr.mxu0 %v2799_v26  ;;  %11372 = vmatprep.subr.mxu1 %v2831_v27 }
 0x252   : > { %11338 = vmatpush3.msra.mxu0 %v2783_v28  ;;  %11373 = vmatpush3.msra.mxu1 %v2815_v29  ;;  %v2675_v27 = vshrl.u32 %v2674_v24, 7 }
 0x253   : > { %11339 = vmatprep.subr.mxu0 %v2798_v30  ;;  %11374 = vmatprep.subr.mxu1 %v2830_v31 }
 0x254   : > { %11340 = vmatpush3.msra.mxu0 %v2782_v32  ;;  %11375 = vmatpush3.msra.mxu1 %v2814_v33 }
 0x255   : > { %11341 = vmatprep.subr.mxu0 %v2797_v34  ;;  %11376 = vmatprep.subr.mxu1 %v2829_v35 }
 0x256   : > { %11342 = vmatpush3.msra.mxu0 %v2781_v36  ;;  %11377 = vmatpush3.msra.mxu1 %v2813_v37  ;;  %v14870_v36 = vsub.s32 0, %v2675_v27  ;;  %v14872_v37 = vsub.s32 2, %v2675_v27 }
 0x257   : > { %11343 = vmatprep.subr.mxu0 %v2796_v38  ;;  %11378 = vmatprep.subr.mxu1 %v2828_v39 }
 0x258   : > { %11344 = vmatpush3.msra.mxu0 %v2780_v40  ;;  %11379 = vmatpush3.msra.mxu1 %v2812_v41  ;;  %v1186_v40 = vld [vmem:[#allocation6] sm:$0xf]  ;;  %v14874_v41 = vsub.s32 1, %v2675_v27 }
 0x259   : > { %11345 = vmatprep.subr.mxu0 %v2795_v42  ;;  %11380 = vmatprep.subr.mxu1 %v2827_v43  ;;  %v14876_v42 = vsub.s32 3, %v2675_v27 }
 0x25a   : > { %11346 = vmatpush3.msra.mxu0 %v2779_v44  ;;  %11381 = vmatpush3.msra.mxu1 %v2811_v45 }
 0x25b   : > { %11347 = vmatprep.subr.mxu0 %v2794_v46  ;;  %11382 = vmatprep.subr.mxu1 %v2826_v47 }
 0x25c   : > { %11348 = vmatpush3.msra.mxu0 %v2778_v48  ;;  %11383 = vmatpush3.msra.mxu1 %v2810_v49 }
 0x25d   : > { %11349 = vmatprep.subr.mxu0 %v2793_v50  ;;  %11384 = vmatprep.subr.mxu1 %v2825_v52 }
 0x25e   : > { %11350 = vmatpush3.msra.mxu0 %v2777_v53  ;;  %11385 = vmatpush3.msra.mxu1 %v2809_v54  ;;  %v2677_v54 = vrot.slane %v1186_v40, %v14870_v36 }
 0x25f   : > { %11351 = vmatprep.subr.mxu0 %v2792_v55  ;;  %11386 = vmatprep.subr.mxu1 %v2824_v56  ;;  %v2685_v55 = vrot.slane %v1186_v40, %v14872_v37 }
 0x260   : > { %11352 = vmatpush3.msra.mxu0 %v2776_v57  ;;  %11387 = vmatpush3.msra.mxu1 %v2808_v58  ;;  %v2681_v58 = vrot.slane %v1186_v40, %v14874_v41 }
 0x261   : > { %11353 = vmatprep.subr.mxu0 %v2791_v59  ;;  %11388 = vmatprep.subr.mxu1 %v2823_v60  ;;  %v2689_v59 = vrot.slane %v1186_v40, %v14876_v42 }
 0x262   : > { %11354 = vmatpush3.msra.mxu0 %v2775_v61  ;;  %11389 = vmatpush3.msra.mxu1 %v2807_v62 }
 0x263   : > { %11355 = vmatprep.subr.mxu0 %v2790_v63  ;;  %11390 = vmatprep.subr.mxu1 %v2822_v0 }
 0x264   : > { %11356 = vmatpush3.msra.mxu0 %v2774_v1  ;;  %11391 = vmatpush3.msra.mxu1 %v2806_v2 }
 0x265   : > { %11357 = vmatprep.subr.mxu0 %v2789_v3  ;;  %11392 = vmatprep.subr.mxu1 %v2821_v4 }
 0x266   : > { %11358 = vmatpush3.msra.mxu0 %v2773_v5  ;;  %11393 = vmatpush3.msra.mxu1 %v2805_v6 }
 0x267   : > { %11359 = vmatprep.subr.mxu0 %v2788_v8  ;;  %11394 = vmatprep.subr.mxu1 %v2820_v9 }
 0x268   : > { %11360 = vmatpush3.msra.mxu0 %v2772_v10  ;;  %11395 = vmatpush3.msra.mxu1 %v2804_v11 }
 0x289   : > { %v1670_v12 = vpop.f32.mrf.mxu0  ;;  %v1713_v13 = vpop.f32.mrf.mxu1 }
 0x28a   : > { %v1731_v28 = vrot.slane %v1670_v12, 7  ;;  %v1733_v29 = vrot.slane %v1713_v13, 7 }
 0x28b   : > { %v1672_v14 = vpop.f32.mrf.mxu0  ;;  %v1715_v15 = vpop.f32.mrf.mxu1 }
 0x28c   : > { %v1732_v30 = vrot.slane %v1672_v14, 7  ;;  %v1734_v31 = vrot.slane %v1715_v15, 7  ;;  %v1751_v43 = vsel %vm1730_vm0, 0.0, %v1731_v28  ;;  %v1753_v46 = vsel %vm1730_vm0, 0.0, %v1733_v29 }
 0x28d   : > { %v1674_v16 = vpop.f32.mrf.mxu0  ;;  %v1717_v17 = vpop.f32.mrf.mxu1 }
 0x28e   : > { %v1735_v32 = vrot.slane %v1674_v16, 7  ;;  %v1739_v33 = vrot.slane %v1717_v17, 7  ;;  %v1752_v47 = vsel %vm1730_vm0, 0.0, %v1732_v30  ;;  %v1754_v48 = vsel %vm1730_vm0, 0.0, %v1734_v31 }
 0x28f   : > { %v1676_v18 = vpop.f32.mrf.mxu0  ;;  %v1719_v19 = vpop.f32.mrf.mxu1 }
 0x290   : > { %v1737_v38 = vrot.slane %v1676_v18, 7  ;;  %v1741_v39 = vrot.slane %v1719_v19, 7  ;;  %v1736_v49 = vsel %vm1730_vm0, %v1731_v28, %v1735_v32  ;;  %v1740_v50 = vsel %vm1730_vm0, %v1733_v29, %v1739_v33 }
 0x292   : > { %v1738_v56 = vsel %vm1730_vm0, %v1732_v30, %v1737_v38  ;;  %v1742_v57 = vsel %vm1730_vm0, %v1734_v31, %v1741_v39 }
 0x2c9   : > { %v2109_v20 = vpop.f32.mrf.mxu0  ;;  %v2152_v21 = vpop.f32.mrf.mxu1 }
 0x2ca   : > { %v2110_v60 = vadd.f32 %v2109_v20, %v1751_v43  ;;  %v2153_v61 = vadd.f32 %v2152_v21, %v1753_v46 }
 0x2cb   : > { %v2111_v22 = vpop.f32.mrf.mxu0  ;;  %v2154_v23 = vpop.f32.mrf.mxu1 }
 0x2cc   : > { %v2112_v62 = vadd.f32 %v2111_v22, %v1752_v47  ;;  %v2155_v63 = vadd.f32 %v2154_v23, %v1754_v48 }
 0x2cd   : > { %v2113_v25 = vpop.f32.mrf.mxu0  ;;  %v2156_v26 = vpop.f32.mrf.mxu1 }
 0x2ce   : > { %v2114_v6 = vadd.f32 %v2113_v25, %v1736_v49  ;;  %v2157_v8 = vadd.f32 %v2156_v26, %v1740_v50 }
 0x2cf   : > { %v2115_v34 = vpop.f32.mrf.mxu0  ;;  %v2158_v35 = vpop.f32.mrf.mxu1 }
 0x2d0   : > { %v2116_v9 = vadd.f32 %v2115_v34, %v1738_v56  ;;  %v2159_v10 = vadd.f32 %v2158_v35, %v1742_v57 }
 0x309   : > { %v2580_v44 = vpop.f32.mrf.mxu0  ;;  %v2623_v45 = vpop.f32.mrf.mxu1 }
 0x30a   : > { %v2641_v2 = vrot.slane %v2580_v44, 1  ;;  %v2647_v3 = vrot.slane %v2623_v45, 1 }
 0x30b   : > { %v2582_v52 = vpop.f32.mrf.mxu0  ;;  %v2625_v53 = vpop.f32.mrf.mxu1 }
 0x30c   : > { %v2644_v21 = vrot.slane %v2582_v52, 1  ;;  %v2650_v22 = vrot.slane %v2625_v53, 1 }
 0x30d   : > { %v2584_v0 = vpop.f32.mrf.mxu0  ;;  %v2627_v1 = vpop.f32.mrf.mxu1 }
 0x30e   : > { %v2642_v4 = vrot.slane %v2584_v0, 1  ;;  %v2648_v5 = vrot.slane %v2627_v1, 1 }
 0x30f   : > { %v2586_v11 = vpop.f32.mrf.mxu0  ;;  %v2629_v12 = vpop.f32.mrf.mxu1 }
 0x310   : > { %v2643_v13 = vsel %vm2640_vm1, %v2641_v2, %v2642_v4  ;;  %v2661_v14 = vsel %vm2640_vm1, %v2642_v4, 0.0  ;;  %v2649_v15 = vsel %vm2640_vm1, %v2647_v3, %v2648_v5  ;;  %v2663_v16 = vsel %vm2640_vm1, %v2648_v5, 0.0 }
 0x311   : > { %v2665_v17 = vadd.f32 %v2643_v13, %v2110_v60  ;;  %v2669_v18 = vadd.f32 %v2661_v14, %v2114_v6  ;;  %v2667_v19 = vadd.f32 %v2649_v15, %v2153_v61  ;;  %v2671_v20 = vadd.f32 %v2663_v16, %v2157_v8 }
 0x312   : > { %v2645_v23 = vrot.slane %v2586_v11, 1  ;;  %v2651_v24 = vrot.slane %v2629_v12, 1 }
 0x313   : > { %v14894_v25 = vadd.f32 %v2677_v54, %v2665_v17  ;;  %v14896_v26 = vadd.f32 %v2677_v54, %v2669_v18  ;;  %v14898_v27 = vadd.f32 %v2685_v55, %v2667_v19  ;;  %v14900_v28 = vadd.f32 %v2685_v55, %v2671_v20 }
 0x314   : > { %v2646_v29 = vsel %vm2640_vm1, %v2644_v21, %v2645_v23  ;;  %v2662_v30 = vsel %vm2640_vm1, %v2645_v23, 0.0  ;;  %v2652_v31 = vsel %vm2640_vm1, %v2650_v22, %v2651_v24  ;;  %v2664_v32 = vsel %vm2640_vm1, %v2651_v24, 0.0 }
 0x315   : > { %v2704_v33 = vadd.f32 %v14896_v26, %v14894_v25  ;;  %v2732_v34 = vmul.f32 %v14894_v25, %v14894_v25  ;;  %v2736_v35 = vmul.f32 %v14896_v26, %v14896_v26  ;;  %v2718_v38 = vadd.f32 %v14900_v28, %v14898_v27 }
 0x316   : > { %v2734_v39 = vmul.f32 %v14898_v27, %v14898_v27  ;;  %v2738_v40 = vmul.f32 %v14900_v28, %v14900_v28  ;;  %v2666_v43 = vadd.f32 %v2646_v29, %v2112_v62  ;;  %v2670_v44 = vadd.f32 %v2662_v30, %v2116_v9 }
 0x317   : > { %v2705_v45 = vrot.slane %v2704_v33, 4  ;;  %v2740_v46 = vadd.f32 %v2736_v35, %v2732_v34  ;;  %v2719_v47 = vrot.slane %v2718_v38, 4  ;;  %v2668_v48 = vadd.f32 %v2652_v31, %v2155_v63 }
 0x318   : > { %v14918_v49 = vadd.f32 %v2681_v58, %v2666_v43  ;;  %v14920_v50 = vadd.f32 %v2681_v58, %v2670_v44  ;;  %v2672_v52 = vadd.f32 %v2664_v32, %v2159_v10  ;;  %v2754_v53 = vadd.f32 %v2738_v40, %v2734_v39 }
 0x319   : > { %v14922_v54 = vadd.f32 %v2689_v59, %v2668_v48  ;;  %v2706_v55 = vadd.f32 %v2705_v45, %v2704_v33  ;;  %v2741_v56 = vrot.slane %v2740_v46, 4  ;;  %v2720_v0 = vadd.f32 %v2719_v47, %v2718_v38 }
 0x31a   : > { %v2711_v57 = vadd.f32 %v14920_v50, %v14918_v49  ;;  %v2733_v60 = vmul.f32 %v14918_v49, %v14918_v49  ;;  %v2737_v61 = vmul.f32 %v14920_v50, %v14920_v50  ;;  %v14930_v62 = vadd.f32 %v2689_v59, %v2672_v52 }
 0x31b   : > { %v2735_v58 = vmul.f32 %v14922_v54, %v14922_v54  ;;  %v2742_v63 = vadd.f32 %v2741_v56, %v2740_v46  ;;  %v2707_v5 = vrot.slane %v2706_v55, 2  ;;  %v2755_v8 = vrot.slane %v2754_v53, 4 }
 0x31c   : > { %v2712_v1 = vrot.slane %v2711_v57, 4  ;;  %v2747_v2 = vadd.f32 %v2737_v61, %v2733_v60  ;;  %v2725_v3 = vadd.f32 %v14930_v62, %v14922_v54  ;;  %v2739_v4 = vmul.f32 %v14930_v62, %v14930_v62 }
 0x31d   : > { %v2743_v6 = vrot.slane %v2742_v63, 2  ;;  %v2721_v13 = vrot.slane %v2720_v0, 2  ;;  %v2756_v14 = vadd.f32 %v2755_v8, %v2754_v53  ;;  %v2708_v19 = vadd.f32 %v2707_v5, %v2706_v55  ;;  %v12500_v8 = vld [vmem:[#allocation11 + $0x2e4] ss:$16 sps:$4 sm:$0xff]  }
 0x31e   : > { %v2726_v9 = vrot.slane %v2725_v3, 4  ;;  %v2761_v10 = vadd.f32 %v2739_v4, %v2735_v58  ;;  %v2713_v59 = vadd.f32 %v2712_v1, %v2711_v57  ;;  %v2748_v11 = vrot.slane %v2747_v2, 4  ;;  %v2986_v1 = vld [vmem:[#allocation17 + $0x8] sm:$0xff]  ;;  %v2987_v4 = vld [vmem:[#allocation17 + $0x10] sm:$0xff] }
 0x31f   : > { %v2744_v12 = vadd.f32 %v2743_v6, %v2742_v63  ;;  %v2757_v20 = vrot.slane %v2756_v14, 2  ;;  %v2722_v30 = vadd.f32 %v2721_v13, %v2720_v0  ;;  %v2709_v38 = vrot.slane %v2708_v19, 1  ;;  %3023 = vmatprep.subr.mxu0 %v2986_v1  ;;  %v12497_v6 = vld [vmem:[#allocation11 + $0xe4] ss:$16 sps:$4 sm:$0xff]   ;;  %v12540_v1 = vld [vmem:[#allocation11 + $0x200] ss:$16 sps:$4 sm:$0xff]  }
 0x320   : > { %v2714_v15 = vrot.slane %v2713_v59, 2  ;;  %v2749_v16 = vadd.f32 %v2748_v11, %v2747_v2  ;;  %v2727_v17 = vadd.f32 %v2726_v9, %v2725_v3  ;;  %v2762_v18 = vrot.slane %v2761_v10, 4  ;;  %v2988_v2 = vld [vmem:[#allocation17 + $0x18] sm:$0xff]  ;;  %v2985_v3 = vld [vmem:[#allocation17] sm:$0xff] }
 0x321   : > { %v2745_v29 = vrot.slane %v2744_v12, 1  ;;  %v2758_v31 = vadd.f32 %v2757_v20, %v2756_v14  ;;  %v2723_v46 = vrot.slane %v2722_v30, 1  ;;  %v2710_v53 = vadd.f32 %v2709_v38, %v2708_v19  ;;  %3094 = vmatprep.subr.mxu1 %v2988_v2  ;;  %v12495_v20 = vld [vmem:[#allocation11 + $0xe0] ss:$16 sps:$4 sm:$0xff]   ;;  %v12515_v38 = vld [vmem:[#allocation11 + $0x84] ss:$16 sps:$4 sm:$0xff]  }
 0x322   : > { %v2715_v21 = vadd.f32 %v2714_v15, %v2713_v59  ;;  %v2750_v22 = vrot.slane %v2749_v16, 2  ;;  %v2728_v23 = vrot.slane %v2727_v17, 2  ;;  %v2763_v24 = vadd.f32 %v2762_v18, %v2761_v10  ;;  %v12545_v2 = vld [vmem:[#allocation11 + $0x1e4] ss:$16 sps:$4 sm:$0xff]  }
 0x323   : > { %v2759_v39 = vrot.slane %v2758_v31, 1  ;;  %v2746_v45 = vadd.f32 %v2745_v29, %v2744_v12  ;;  %v2724_v58 = vadd.f32 %v2723_v46, %v2722_v30  ;;  %v14145_v5 = vmov 0.0   ;;  %v12501_v30 = vld [vmem:[#allocation11 + $0xc0] ss:$16 sps:$4 sm:$0xff]  }
 0x324   : > { %v2716_v32 = vrot.slane %v2715_v21, 1  ;;  %v2751_v33 = vadd.f32 %v2750_v22, %v2749_v16  ;;  %v2729_v34 = vadd.f32 %v2728_v23, %v2727_v17  ;;  %v2764_v35 = vrot.slane %v2763_v24, 2  ;;  %v12503_v23 = vld [vmem:[#allocation11 + $0xc4] ss:$16 sps:$4 sm:$0xff]   ;;  %v12519_v46 = vld [vmem:[#allocation11 + $0x60] ss:$16 sps:$4 sm:$0xff]  }
 0x325   : > { %v2760_v55 = vadd.f32 %v2759_v39, %v2758_v31  ;;  %v2768_v61 = vsel %vm1730_vm0, %v2710_v53, %v2746_v45  ;;  %v12504_v31 = vld [vmem:[#allocation11 + $0x2c0] ss:$16 sps:$4 sm:$0xff]   ;;  %v12518_v39 = vld [vmem:[#allocation11 + $0x284] ss:$16 sps:$4 sm:$0xff]  }
 0x326   : > { %v2752_v40 = vrot.slane %v2751_v33, 1  ;;  %v2730_v43 = vrot.slane %v2729_v34, 1  ;;  %v2765_v44 = vadd.f32 %v2764_v35, %v2763_v24  ;;  %v2717_v47 = vadd.f32 %v2716_v32, %v2715_v21  ;;  %v12498_v21 = vld [vmem:[#allocation11 + $0x2e0] ss:$16 sps:$4 sm:$0xff]   ;;  %v12506_v24 = vld [vmem:[#allocation11 + $0x2c4] ss:$16 sps:$4 sm:$0xff]  }
 0x327   : > { %v2770_v0 = vsel %vm1730_vm0, %v2724_v58, %v2760_v55  ;;  %v12509_v32 = vld [vmem:[#allocation11 + $0xa4] ss:$16 sps:$4 sm:$0xff]   ;;  %v12510_v35 = vld [vmem:[#allocation11 + $0x2a0] ss:$16 sps:$4 sm:$0xff]  }
 0x328   : > { %v2753_v48 = vadd.f32 %v2752_v40, %v2751_v33  ;;  %v2766_v52 = vrot.slane %v2765_v44, 1  ;;  %v2731_v57 = vadd.f32 %v2730_v43, %v2729_v34  ;;  %v12512_v33 = vld [vmem:[#allocation11 + $0x2a4] ss:$16 sps:$4 sm:$0xff]   ;;  %v12507_v34 = vld [vmem:[#allocation11 + $0xa0] ss:$16 sps:$4 sm:$0xff]  }
 0x329   : > { %v12513_v40 = vld [vmem:[#allocation11 + $0x80] ss:$16 sps:$4 sm:$0xff]   ;;  %v12524_v45 = vld [vmem:[#allocation11 + $0x264] ss:$16 sps:$4 sm:$0xff]  }
 0x32a   : > { %v2769_v56 = vsel %vm1730_vm0, %v2717_v47, %v2753_v48  ;;  %v2767_v60 = vadd.f32 %v2766_v52, %v2765_v44  ;;  %v12516_v43 = vld [vmem:[#allocation11 + $0x280] ss:$16 sps:$4 sm:$0xff]   ;;  %v12521_v44 = vld [vmem:[#allocation11 + $0x64] ss:$16 sps:$4 sm:$0xff]  }
 0x32b   : > { %2900 = vmatprep.mubr.f32.mxu0 %v2769_v56  ;;  %v12522_v47 = vld [vmem:[#allocation11 + $0x260] ss:$16 sps:$4 sm:$0xff]   ;;  %v12527_v48 = vld [vmem:[#allocation11 + $0x44] ss:$16 sps:$4 sm:$0xff]  }
 0x32c   : > { %v2771_v63 = vsel %vm1730_vm0, %v2731_v57, %v2767_v60  ;;  %2901 = vmatmul.mubr.f32.vlgmr.msra.gmra.mxu0 %v2768_v61  ;;  %v12530_v52 = vld [vmem:[#allocation11 + $0x244] ss:$16 sps:$4 sm:$0xff]   ;;  %v12525_v53 = vld [vmem:[#allocation11 + $0x40] ss:$16 sps:$4 sm:$0xff]  }
 0x32d   : > { %2970 = vmatprep.mubr.f32.mxu1 %v2771_v63  ;;  %3024 = vmatpush1.msra.mxu0 %v2985_v3  ;;  %v12528_v55 = vld [vmem:[#allocation11 + $0x240] ss:$16 sps:$4 sm:$0xff]   ;;  %v12533_v56 = vld [vmem:[#allocation11 + $0x24] ss:$16 sps:$4 sm:$0xff]  }
 0x32e   : > { %2971 = vmatmul.mubr.f32.vlgmr.msra.gmra.mxu1 %v2770_v0  ;;  %3057 = vmatprep.mubr.f32.mxu0 %v14145_v5  ;;  %v12536_v57 = vld [vmem:[#allocation11 + $0x224] ss:$16 sps:$4 sm:$0xff]   ;;  %v12531_v60 = vld [vmem:[#allocation11 + $0x20] ss:$16 sps:$4 sm:$0xff]  }
 0x32f   : > { %3095 = vmatpush1.msra.mxu1 %v2987_v4  ;;  %3128 = vmatprep.mubr.f32.mxu1 %v14145_v5  ;;  %v12534_v61 = vld [vmem:[#allocation11 + $0x220] ss:$16 sps:$4 sm:$0xff]   ;;  %v12539_v58 = vld [vmem:[#allocation11 + $0x4] ss:$16 sps:$4 sm:$0xff]  }
 0x330   : > { %4215 = vmatprep.subr.bf16.mxu0 %v12497_v6  ;;  %4258 = vmatprep.subr.bf16.mxu1 %v12500_v8  ;;  %v12542_v63 = vld [vmem:[#allocation11 + $0x204] ss:$16 sps:$4 sm:$0xff]   ;;  %v12537_v0 = vld [vmem:[#allocation11] ss:$16 sps:$4 sm:$0xff]  }
 0x331   : > { %v12548_v3 = vld [vmem:[#allocation11 + $0x3e4] ss:$16 sps:$4 sm:$0xff]   ;;  %v12543_v4 = vld [vmem:[#allocation11 + $0x1e0] ss:$16 sps:$4 sm:$0xff]  }
 0x332   : > { %v12546_v6 = vld [vmem:[#allocation11 + $0x3e0] ss:$16 sps:$4 sm:$0xff]   ;;  %v12551_v8 = vld [vmem:[#allocation11 + $0x1c4] ss:$16 sps:$4 sm:$0xff]  }
 0x3ec   : > { %v11361_v9 = vpop.f32.mrf.mxu0 }
 0x3ee   : > { %v11396_v10 = vpop.f32.mrf.mxu1  ;;  %v11362_v59 = vpop.f32.mrf.mxu0 }
 0x3ef   : > { %v11363_v11 = vadd.f32 %v11362_v59, %v11361_v9  ;;  %v12554_v9 = vld [vmem:[#allocation11 + $0x3c4] ss:$16 sps:$4 sm:$0xff]   ;;  %v12552_v59 = vld [vmem:[#allocation11 + $0x3c0] ss:$16 sps:$4 sm:$0xff]  }
 0x3f0   : > { %v11397_v12 = vpop.f32.mrf.mxu1 }
 0x3f1   : > { %v11398_v13 = vadd.f32 %v11397_v12, %v11396_v10  ;;  %v12549_v10 = vld [vmem:[#allocation11 + $0x1c0] ss:$16 sps:$4 sm:$0xff]   ;;  %v12560_v12 = vld [vmem:[#allocation11 + $0x3a4] ss:$16 sps:$4 sm:$0xff]  }
 0x3f3   : > { %v2973_v14 = vadd.f32 %v11398_v13, %v11363_v11  ;;  %v12557_v11 = vld [vmem:[#allocation11 + $0x1a4] ss:$16 sps:$4 sm:$0xff]   ;;  %v12555_v13 = vld [vmem:[#allocation11 + $0x1a0] ss:$16 sps:$4 sm:$0xff]  }
 0x3f5   : > { %v2976_v15 = vmul.f32 %v2973_v14, %v2973_v14 }
 0x3f7   : > { %v2978_v16 = vrot.slane %v2976_v15, 7  ;;  %v12563_v15 = vld [vmem:[#allocation11 + $0x184] ss:$16 sps:$4 sm:$0xff]  }
 0x3f9   : > { %v2980_v17 = vsub.f32 %v2973_v14, %v2978_v16  ;;  %v12566_v16 = vld [vmem:[#allocation11 + $0x384] ss:$16 sps:$4 sm:$0xff]  }
 0x3fb   : > { %v2981_v18 = vmax.f32 %v2980_v17, 0.0  ;;  %v12561_v17 = vld [vmem:[#allocation11 + $0x180] ss:$16 sps:$4 sm:$0xff]  }
 0x3fd   : > { %v2982_v19 = vadd.f32 1e-05, %v2981_v18  ;;  %v12564_v18 = vld [vmem:[#allocation11 + $0x380] ss:$16 sps:$4 sm:$0xff]  }
 0x3ff   : > { %13167 = vrsqrt.f32 %v2982_v19  ;;  %v12569_v19 = vld [vmem:[#allocation11 + $0x164] ss:$16 sps:$4 sm:$0xff]  }
 0x40c   : > { %v13168_v22 = vpop.eup %13167 }
 0x40d   : > { %v2984_v29 = vsel %vm1730_vm0, %v2973_v14, %v13168_v22  ;;  %v12558_v14 = vld [vmem:[#allocation11 + $0x3a0] ss:$16 sps:$4 sm:$0xff]  }
 0x40e   : > { %10810 = vmatmul.mubr.msk.f32.vlgmr.msra.gmra.mxu0 %vm2989_vm2, %v2984_v29  ;;  %10811 = vmatmul.mubr.msk.f32.vlgmr.msra.gmra.mxu1 %vm2989_vm2, %v2984_v29  ;;  %v12570_v22 = vld [vmem:[#allocation11 + $0x360] ss:$16 sps:$4 sm:$0xff]  }
 0x40f   : > { %4216 = vmatpush1.bf16.msra.mxu0 %v12495_v20  ;;  %4259 = vmatpush1.bf16.msra.mxu1 %v12498_v21  ;;  %v12572_v20 = vld [vmem:[#allocation11 + $0x364] ss:$16 sps:$4 sm:$0xff]   ;;  %v12567_v21 = vld [vmem:[#allocation11 + $0x160] ss:$16 sps:$4 sm:$0xff]  }
 0x410   : > { %4217 = vmatprep.subr.bf16.mxu0 %v12503_v23  ;;  %4260 = vmatprep.subr.bf16.mxu1 %v12506_v24  ;;  %v12575_v23 = vld [vmem:[#allocation11 + $0x144] ss:$16 sps:$4 sm:$0xff]   ;;  %v12573_v29 = vld [vmem:[#allocation11 + $0x140] ss:$16 sps:$4 sm:$0xff]  }
 0x411   : > { %v12578_v24 = vld [vmem:[#allocation11 + $0x344] ss:$16 sps:$4 sm:$0xff]  }
 0x413   : > { %4218 = vmatpush1.bf16.msra.mxu0 %v12501_v30  ;;  %4261 = vmatpush1.bf16.msra.mxu1 %v12504_v31  ;;  %v12576_v30 = vld [vmem:[#allocation11 + $0x340] ss:$16 sps:$4 sm:$0xff]   ;;  %v12581_v31 = vld [vmem:[#allocation11 + $0x124] ss:$16 sps:$4 sm:$0xff]  }
 0x414   : > { %4219 = vmatprep.subr.bf16.mxu0 %v12509_v32  ;;  %4262 = vmatprep.subr.bf16.mxu1 %v12512_v33  ;;  %v12584_v32 = vld [vmem:[#allocation11 + $0x324] ss:$16 sps:$4 sm:$0xff]   ;;  %v12579_v33 = vld [vmem:[#allocation11 + $0x120] ss:$16 sps:$4 sm:$0xff]  }
 0x417   : > { %4220 = vmatpush1.bf16.msra.mxu0 %v12507_v34  ;;  %4263 = vmatpush1.bf16.msra.mxu1 %v12510_v35  ;;  %v12582_v34 = vld [vmem:[#allocation11 + $0x320] ss:$16 sps:$4 sm:$0xff]   ;;  %v12587_v35 = vld [vmem:[#allocation11 + $0x104] ss:$16 sps:$4 sm:$0xff]  }
 0x418   : > { %4221 = vmatprep.subr.bf16.mxu0 %v12515_v38  ;;  %4264 = vmatprep.subr.bf16.mxu1 %v12518_v39  ;;  %v12590_v38 = vld [vmem:[#allocation11 + $0x304] ss:$16 sps:$4 sm:$0xff]   ;;  %v12585_v39 = vld [vmem:[#allocation11 + $0x100] ss:$16 sps:$4 sm:$0xff]  }
 0x41b   : > { %4222 = vmatpush1.bf16.msra.mxu0 %v12513_v40  ;;  %4265 = vmatpush1.bf16.msra.mxu1 %v12516_v43  ;;  %v12588_v40 = vld [vmem:[#allocation11 + $0x300] ss:$16 sps:$4 sm:$0xff]   ;;  %v12593_v43 = vld [vmem:[#allocation11 + $0xec] ss:$16 sps:$4 sm:$0xff]  }
 0x41c   : > { %4223 = vmatprep.subr.bf16.mxu0 %v12521_v44  ;;  %4266 = vmatprep.subr.bf16.mxu1 %v12524_v45  ;;  %v12596_v44 = vld [vmem:[#allocation11 + $0x2ec] ss:$16 sps:$4 sm:$0xff]   ;;  %v2702_v45 = vld [vmem:[#allocation8] sm:$0xf] }
 0x41f   : > { %4224 = vmatpush1.bf16.msra.mxu0 %v12519_v46  ;;  %4267 = vmatpush1.bf16.msra.mxu1 %v12522_v47  ;;  %v2703_v46 = vld [vmem:[#allocation9] sm:$0xf] }
 0x420   : > { %4225 = vmatprep.subr.bf16.mxu0 %v12527_v48  ;;  %4268 = vmatprep.subr.bf16.mxu1 %v12530_v52  ;;  %v3187_v48 = vrot.slane %v2702_v45, %v14870_v36  ;;  %v3216_v52 = vrot.slane %v2703_v46, %v14870_v36 }
 0x423   : > { %4226 = vmatpush1.bf16.msra.mxu0 %v12525_v53  ;;  %4269 = vmatpush1.bf16.msra.mxu1 %v12528_v55  ;;  %v3195_v55 = vrot.slane %v2702_v45, %v14872_v37 }
 0x424   : > { %4227 = vmatprep.subr.bf16.mxu0 %v12533_v56  ;;  %4270 = vmatprep.subr.bf16.mxu1 %v12536_v57  ;;  %v3224_v56 = vrot.slane %v2703_v46, %v14872_v37 }
 0x427   : > { %4228 = vmatpush1.bf16.msra.mxu0 %v12531_v60  ;;  %4271 = vmatpush1.bf16.msra.mxu1 %v12534_v61  ;;  %v3191_v61 = vrot.slane %v2702_v45, %v14874_v41 }
 0x428   : > { %4229 = vmatprep.subr.bf16.mxu0 %v12539_v58  ;;  %4272 = vmatprep.subr.bf16.mxu1 %v12542_v63  ;;  %v3199_v58 = vrot.slane %v2702_v45, %v14876_v42 }
 0x42b   : > { %4230 = vmatpush1.bf16.msra.mxu0 %v12537_v0  ;;  %4273 = vmatpush1.bf16.msra.mxu1 %v12540_v1 }
 0x42c   : > { %4231 = vmatprep.subr.bf16.mxu0 %v12545_v2  ;;  %4274 = vmatprep.subr.bf16.mxu1 %v12548_v3  ;;  %v3220_v2 = vrot.slane %v2703_v46, %v14874_v41 }
 0x42f   : > { %4232 = vmatpush2.bf16.msra.mxu0 %v12543_v4  ;;  %4275 = vmatpush2.bf16.msra.mxu1 %v12546_v6  ;;  %v3228_v4 = vrot.slane %v2703_v46, %v14876_v42 }
 0x430   : > { %4233 = vmatprep.subr.bf16.mxu0 %v12551_v8  ;;  %4276 = vmatprep.subr.bf16.mxu1 %v12554_v9 }
 0x433   : > { %4234 = vmatpush2.bf16.msra.mxu0 %v12549_v10  ;;  %4277 = vmatpush2.bf16.msra.mxu1 %v12552_v59 }
 0x434   : > { %4235 = vmatprep.subr.bf16.mxu0 %v12557_v11  ;;  %4278 = vmatprep.subr.bf16.mxu1 %v12560_v12 }
 0x437   : > { %4236 = vmatpush2.bf16.msra.mxu0 %v12555_v13  ;;  %4279 = vmatpush2.bf16.msra.mxu1 %v12558_v14 }
 0x438   : > { %4237 = vmatprep.subr.bf16.mxu0 %v12563_v15  ;;  %4280 = vmatprep.subr.bf16.mxu1 %v12566_v16 }
 0x43b   : > { %4238 = vmatpush2.bf16.msra.mxu0 %v12561_v17  ;;  %4281 = vmatpush2.bf16.msra.mxu1 %v12564_v18 }
 0x43c   : > { %4239 = vmatprep.subr.bf16.mxu0 %v12569_v19  ;;  %4282 = vmatprep.subr.bf16.mxu1 %v12572_v20 }
 0x43f   : > { %4240 = vmatpush2.bf16.msra.mxu0 %v12567_v21  ;;  %4283 = vmatpush2.bf16.msra.mxu1 %v12570_v22 }
 0x440   : > { %4241 = vmatprep.subr.bf16.mxu0 %v12575_v23  ;;  %4284 = vmatprep.subr.bf16.mxu1 %v12578_v24 }
 0x443   : > { %4242 = vmatpush2.bf16.msra.mxu0 %v12573_v29  ;;  %4285 = vmatpush2.bf16.msra.mxu1 %v12576_v30 }
 0x444   : > { %4243 = vmatprep.subr.bf16.mxu0 %v12581_v31  ;;  %4286 = vmatprep.subr.bf16.mxu1 %v12584_v32 }
 0x447   : > { %4244 = vmatpush2.bf16.msra.mxu0 %v12579_v33  ;;  %4287 = vmatpush2.bf16.msra.mxu1 %v12582_v34 }
 0x448   : > { %4245 = vmatprep.subr.bf16.mxu0 %v12587_v35  ;;  %4288 = vmatprep.subr.bf16.mxu1 %v12590_v38 }
 0x44b   : > { %4246 = vmatpush2.bf16.msra.mxu0 %v12585_v39  ;;  %4289 = vmatpush2.bf16.msra.mxu1 %v12588_v40 }
 0x44c   : > { %4301 = vmatprep.subr.bf16.mxu0 %v12593_v43  ;;  %4344 = vmatprep.subr.bf16.mxu1 %v12596_v44 }
 0x4ce   : > { %v3059_v47 = vpop.f32.mrf.mxu0  ;;  %v3130_v53 = vpop.f32.mrf.mxu1 }
 0x4cf   : > { %v3138_v57 = vrot.slane %v3059_v47, %v14870_v36  ;;  %v3146_v60 = vrot.slane %v3130_v53, %v14870_v36  ;;  %v3162_v63 = vrot.slane %v3059_v47, %v14874_v41  ;;  %v3170_v0 = vrot.slane %v3130_v53, %v14874_v41 }
 0x4d0   : > { %v3061_v1 = vpop.f32.mrf.mxu0  ;;  %v3132_v3 = vpop.f32.mrf.mxu1 }
 0x4d1   : > { %v3151_v6 = vsub.f32 %v14894_v25, %v3138_v57  ;;  %v3155_v8 = vsub.f32 %v14896_v26, %v3138_v57  ;;  %v3153_v9 = vsub.f32 %v14898_v27, %v3146_v60  ;;  %v3157_v10 = vsub.f32 %v14900_v28, %v3146_v60 }
 0x4d2   : > { %v3142_v59 = vrot.slane %v3061_v1, %v14870_v36  ;;  %v3166_v11 = vrot.slane %v3061_v1, %v14874_v41  ;;  %v3150_v12 = vrot.slane %v3132_v3, %v14870_v36  ;;  %v3174_v13 = vrot.slane %v3132_v3, %v14874_v41 }
 0x4d3   : > { %v3175_v14 = vmul.f32 %v3162_v63, %v3151_v6  ;;  %v3179_v15 = vmul.f32 %v3162_v63, %v3155_v8  ;;  %v3177_v16 = vmul.f32 %v3170_v0, %v3153_v9  ;;  %v3181_v17 = vmul.f32 %v3170_v0, %v3157_v10 }
 0x4d4   : > { %v3152_v25 = vsub.f32 %v14918_v49, %v3142_v59  ;;  %v3156_v26 = vsub.f32 %v14920_v50, %v3142_v59  ;;  %v3154_v27 = vsub.f32 %v14922_v54, %v3150_v12  ;;  %v3158_v28 = vsub.f32 %v14930_v62, %v3150_v12 }
 0x4d5   : > { %v3204_v18 = vmul.f32 %v3187_v48, %v3175_v14  ;;  %v3208_v19 = vmul.f32 %v3187_v48, %v3179_v15  ;;  %v3206_v20 = vmul.f32 %v3195_v55, %v3177_v16  ;;  %v3210_v21 = vmul.f32 %v3195_v55, %v3181_v17 }
 0x4d6   : > { %v3176_v22 = vmul.f32 %v3166_v11, %v3152_v25  ;;  %v3180_v23 = vmul.f32 %v3166_v11, %v3156_v26  ;;  %v3178_v24 = vmul.f32 %v3174_v13, %v3154_v27  ;;  %v3182_v29 = vmul.f32 %v3174_v13, %v3158_v28 }
 0x4d7   : > { %v14971_v30 = vadd.f32 %v3216_v52, %v3204_v18  ;;  %v14973_v31 = vadd.f32 %v3216_v52, %v3208_v19  ;;  %v14975_v32 = vadd.f32 %v3224_v56, %v3206_v20  ;;  %v14977_v49 = vadd.f32 %v3224_v56, %v3210_v21 }
 0x4d8   : > { %v3205_v50 = vmul.f32 %v3191_v61, %v3176_v22  ;;  %v3209_v54 = vmul.f32 %v3191_v61, %v3180_v23  ;;  %v3207_v33 = vmul.f32 %v3199_v58, %v3178_v24  ;;  %v3211_v62 = vmul.f32 %v3199_v58, %v3182_v29 }
 0x4d9   : > { %v3241_v34 = vmul.f32 %v14971_v30, %v14971_v30  ;;  %v3245_v35 = vmul.f32 %v14973_v31, %v14973_v31  ;;  %v3243_v38 = vmul.f32 %v14975_v32, %v14975_v32  ;;  %v3247_v39 = vmul.f32 %v14977_v49, %v14977_v49 }
 0x4da   : > { %v14987_v40 = vadd.f32 %v3220_v2, %v3205_v50  ;;  %v14989_v43 = vadd.f32 %v3220_v2, %v3209_v54  ;;  %v14991_v44 = vadd.f32 %v3228_v4, %v3207_v33  ;;  %v14993_v45 = vadd.f32 %v3228_v4, %v3211_v62 }
 0x4db   : > { %v3249_v46 = vmul.f32 %v3241_v34, %v14971_v30  ;;  %v3253_v47 = vmul.f32 %v3245_v35, %v14973_v31  ;;  %v3251_v48 = vmul.f32 %v3243_v38, %v14975_v32  ;;  %v3255_v52 = vmul.f32 %v3247_v39, %v14977_v49 }
 0x4dc   : > { %v3242_v53 = vmul.f32 %v14987_v40, %v14987_v40  ;;  %v3246_v55 = vmul.f32 %v14989_v43, %v14989_v43  ;;  %v3244_v56 = vmul.f32 %v14991_v44, %v14991_v44  ;;  %v3248_v57 = vmul.f32 %v14993_v45, %v14993_v45 }
 0x4dd   : > { %v3257_v60 = vmul.f32 0.044715, %v3249_v46  ;;  %v3261_v61 = vmul.f32 0.044715, %v3253_v47  ;;  %v3259_v58 = vmul.f32 0.044715, %v3251_v48 }
 0x4de   : > { %v3263_v63 = vmul.f32 0.044715, %v3255_v52  ;;  %v3250_v0 = vmul.f32 %v3242_v53, %v14987_v40  ;;  %v3254_v1 = vmul.f32 %v3246_v55, %v14989_v43  ;;  %v3252_v2 = vmul.f32 %v3244_v56, %v14991_v44 }
 0x4df   : > { %v3265_v3 = vadd.f32 %v3257_v60, %v14971_v30  ;;  %v3269_v4 = vadd.f32 %v3261_v61, %v14973_v31  ;;  %v3267_v6 = vadd.f32 %v3259_v58, %v14975_v32  ;;  %v3256_v8 = vmul.f32 %v3248_v57, %v14993_v45 }
 0x4e0   : > { %v3271_v9 = vadd.f32 %v3263_v63, %v14977_v49  ;;  %v3258_v10 = vmul.f32 0.044715, %v3250_v0  ;;  %v3262_v59 = vmul.f32 0.044715, %v3254_v1  ;;  %v3260_v11 = vmul.f32 0.044715, %v3252_v2 }
 0x4e1   : > { %v3273_v12 = vmul.f32 0.7978846, %v3265_v3  ;;  %v3277_v13 = vmul.f32 0.7978846, %v3269_v4  ;;  %v3275_v14 = vmul.f32 0.7978846, %v3267_v6 }
 0x4e2   : > { %v3279_v15 = vmul.f32 0.7978846, %v3271_v9  ;;  %v3266_v16 = vadd.f32 %v3258_v10, %v14987_v40  ;;  %v3270_v17 = vadd.f32 %v3262_v59, %v14989_v43  ;;  %v3264_v25 = vmul.f32 0.044715, %v3256_v8  ;;  %v12591_v10 = vld [vmem:[#allocation11 + $0xe8] ss:$16 sps:$4 sm:$0xff]  }
 0x4e3   : > { %13169 = vtanh.f32 %v3273_v12  ;;  %v3268_v26 = vadd.f32 %v3260_v11, %v14991_v44  ;;  %v12600_v59 = vld [vmem:[#allocation11 + $0x2c8] ss:$16 sps:$4 sm:$0xff]   ;;  %v12608_v11 = vld [vmem:[#allocation11 + $0x2ac] ss:$16 sps:$4 sm:$0xff]  }
 0x4e4   : > { %13171 = vtanh.f32 %v3277_v13  ;;  %v3274_v27 = vmul.f32 0.7978846, %v3266_v16  ;;  %v3278_v28 = vmul.f32 0.7978846, %v3270_v17  ;;  %v3272_v18 = vadd.f32 %v3264_v25, %v14993_v45  ;;  %v12603_v12 = vld [vmem:[#allocation11 + $0xa8] ss:$16 sps:$4 sm:$0xff]  }
 0x4e5   : > { %13173 = vtanh.f32 %v3275_v14  ;;  %v3276_v19 = vmul.f32 0.7978846, %v3268_v26  ;;  %v12611_v13 = vld [vmem:[#allocation11 + $0x8c] ss:$16 sps:$4 sm:$0xff]   ;;  %v12606_v14 = vld [vmem:[#allocation11 + $0x2a8] ss:$16 sps:$4 sm:$0xff]  }
 0x4e6   : > { %13175 = vtanh.f32 %v3279_v15  ;;  %v3280_v20 = vmul.f32 0.7978846, %v3272_v18  ;;  %v12614_v15 = vld [vmem:[#allocation11 + $0x28c] ss:$16 sps:$4 sm:$0xff]   ;;  %v12609_v16 = vld [vmem:[#allocation11 + $0x88] ss:$16 sps:$4 sm:$0xff]  }
 0x4e7   : > { %13177 = vtanh.f32 %v3274_v27  ;;  %v12617_v17 = vld [vmem:[#allocation11 + $0x6c] ss:$16 sps:$4 sm:$0xff]   ;;  %v12612_v25 = vld [vmem:[#allocation11 + $0x288] ss:$16 sps:$4 sm:$0xff]  }
 0x4e8   : > { %13179 = vtanh.f32 %v3278_v28  ;;  %v12620_v26 = vld [vmem:[#allocation11 + $0x26c] ss:$16 sps:$4 sm:$0xff]   ;;  %v12615_v27 = vld [vmem:[#allocation11 + $0x68] ss:$16 sps:$4 sm:$0xff]  }
 0x4e9   : > { %13181 = vtanh.f32 %v3276_v19  ;;  %v12623_v28 = vld [vmem:[#allocation11 + $0x4c] ss:$16 sps:$4 sm:$0xff]   ;;  %v12618_v18 = vld [vmem:[#allocation11 + $0x268] ss:$16 sps:$4 sm:$0xff]  }
 0x4ea   : > { %13183 = vtanh.f32 %v3280_v20  ;;  %v12626_v19 = vld [vmem:[#allocation11 + $0x24c] ss:$16 sps:$4 sm:$0xff]   ;;  %v12621_v20 = vld [vmem:[#allocation11 + $0x48] ss:$16 sps:$4 sm:$0xff]  }
 0x4f0   : > { %v13170_v21 = vpop.eup %13169 }
 0x4f1   : > { %v13172_v22 = vpop.eup %13171  ;;  %v3289_v23 = vadd.f32 1.0, %v13170_v21  ;;  %v12629_v21 = vld [vmem:[#allocation11 + $0x2c] ss:$16 sps:$4 sm:$0xff]  }
 0x4f2   : > { %v13174_v24 = vpop.eup %13173  ;;  %v3293_v29 = vadd.f32 1.0, %v13172_v22  ;;  %v12624_v22 = vld [vmem:[#allocation11 + $0x248] ss:$16 sps:$4 sm:$0xff]  }
 0x4f3   : > { %v13176_v50 = vpop.eup %13175  ;;  %v3291_v54 = vadd.f32 1.0, %v13174_v24  ;;  %v3297_v35 = vmul.f32 0.5, %v3289_v23  ;;  %v12632_v23 = vld [vmem:[#allocation11 + $0x22c] ss:$16 sps:$4 sm:$0xff]   ;;  %v12627_v24 = vld [vmem:[#allocation11 + $0x28] ss:$16 sps:$4 sm:$0xff]  }
 0x4f4   : > { %v13178_v33 = vpop.eup %13177  ;;  %v3295_v62 = vadd.f32 1.0, %v13176_v50  ;;  %v3301_v38 = vmul.f32 0.5, %v3293_v29  ;;  %v12635_v29 = vld [vmem:[#allocation11 + $0xc] ss:$16 sps:$4 sm:$0xff]   ;;  %v12630_v50 = vld [vmem:[#allocation11 + $0x228] ss:$16 sps:$4 sm:$0xff]  }
 0x4f5   : > { %v13180_v34 = vpop.eup %13179  ;;  %v3290_v39 = vadd.f32 1.0, %v13178_v33  ;;  %v3299_v52 = vmul.f32 0.5, %v3291_v54  ;;  %v3305_v61 = vmul.f32 %v3297_v35, %v14971_v30  ;;  %v12638_v54 = vld [vmem:[#allocation11 + $0x20c] ss:$16 sps:$4 sm:$0xff]   ;;  %v12633_v33 = vld [vmem:[#allocation11 + $0x8] ss:$16 sps:$4 sm:$0xff]  }
 0x4f6   : > { %v13182_v46 = vpop.eup %13181  ;;  %v3294_v47 = vadd.f32 1.0, %v13180_v34  ;;  %v3303_v53 = vmul.f32 0.5, %v3295_v62  ;;  %v3309_v58 = vmul.f32 %v3301_v38, %v14973_v31  ;;  %v12641_v62 = vld [vmem:[#allocation11 + $0x1ec] ss:$16 sps:$4 sm:$0xff]   ;;  %v12636_v34 = vld [vmem:[#allocation11 + $0x208] ss:$16 sps:$4 sm:$0xff]  }
 0x4f7   : > { %v13184_v48 = vpop.eup %13183  ;;  %v3298_v55 = vmul.f32 0.5, %v3290_v39  ;;  %v3292_v56 = vadd.f32 1.0, %v13182_v46  ;;  %v3307_v3 = vmul.f32 %v3299_v52, %v14975_v32  ;;  %v12599_v32 = vld [vmem:[#allocation11 + $0xcc] ss:$16 sps:$4 sm:$0xff]   ;;  %v12639_v38 = vld [vmem:[#allocation11 + $0x1e8] ss:$16 sps:$4 sm:$0xff]  }
 0x4f8   : > { %v3302_v57 = vmul.f32 0.5, %v3294_v47  ;;  %v3296_v60 = vadd.f32 1.0, %v13184_v48  ;;  %v3311_v4 = vmul.f32 %v3303_v53, %v14977_v49  ;;  %v15029_v30 = vpack.c.bf16 %v3309_v58, %v3305_v61  ;;  %v12602_v49 = vld [vmem:[#allocation11 + $0x2cc] ss:$16 sps:$4 sm:$0xff]   ;;  %v12642_v46 = vld [vmem:[#allocation11 + $0x3e8] ss:$16 sps:$4 sm:$0xff]  }
 0x4f9   : > { %v3306_v63 = vmul.f32 %v3298_v55, %v14987_v40  ;;  %v3300_v0 = vmul.f32 0.5, %v3292_v56  ;;  %v12594_v40 = vld [vmem:[#allocation11 + $0x2e8] ss:$16 sps:$4 sm:$0xff]   ;;  %v12644_v35 = vld [vmem:[#allocation11 + $0x3ec] ss:$16 sps:$4 sm:$0xff]  }
 0x4fa   : > { %v3310_v1 = vmul.f32 %v3302_v57, %v14989_v43  ;;  %v3304_v2 = vmul.f32 0.5, %v3296_v60  ;;  %v15035_v43 = vpack.c.bf16 %v3311_v4, %v3307_v3  ;;  %v12647_v39 = vld [vmem:[#allocation11 + $0x1cc] ss:$16 sps:$4 sm:$0xff]   ;;  %v12645_v48 = vld [vmem:[#allocation11 + $0x1c8] ss:$16 sps:$4 sm:$0xff]  }
 0x4fb   : > { %v3308_v6 = vmul.f32 %v3300_v0, %v14991_v44  ;;  %v12597_v44 = vld [vmem:[#allocation11 + $0xc8] ss:$16 sps:$4 sm:$0xff]   ;;  %v12650_v47 = vld [vmem:[#allocation11 + $0x3cc] ss:$16 sps:$4 sm:$0xff]  }
 0x4fc   : > { %v3312_v8 = vmul.f32 %v3304_v2, %v14993_v45  ;;  %v15027_v9 = vpack.c.bf16 %v3310_v1, %v3306_v63  ;;  %v12605_v45 = vld [vmem:[#allocation11 + $0xac] ss:$16 sps:$4 sm:$0xff]   ;;  %v12648_v53 = vld [vmem:[#allocation11 + $0x3c8] ss:$16 sps:$4 sm:$0xff]  }
 0x4fd   : > { %v12653_v52 = vld [vmem:[#allocation11 + $0x1ac] ss:$16 sps:$4 sm:$0xff]   ;;  %v12651_v56 = vld [vmem:[#allocation11 + $0x1a8] ss:$16 sps:$4 sm:$0xff]  }
 0x4fe   : > { %4247 = vmatprep.mubr.bf16.mxu0 %v15027_v9  ;;  %v15032_v31 = vpack.c.bf16 %v3312_v8, %v3308_v6  ;;  %v12656_v55 = vld [vmem:[#allocation11 + $0x3ac] ss:$16 sps:$4 sm:$0xff]   ;;  %v12654_v60 = vld [vmem:[#allocation11 + $0x3a8] ss:$16 sps:$4 sm:$0xff]  }
 0x4ff   : > { %4248 = vmatmul.mubr.bf16.vlgmr.msra.gmra.mxu0 %v15029_v30  ;;  %v12659_v57 = vld [vmem:[#allocation11 + $0x18c] ss:$16 sps:$4 sm:$0xff]   ;;  %v12657_v58 = vld [vmem:[#allocation11 + $0x188] ss:$16 sps:$4 sm:$0xff]  }
 0x500   : > { %4290 = vmatprep.mubr.bf16.mxu1 %v15032_v31  ;;  %4302 = vmatpush1.bf16.msra.mxu0 %v12591_v10  ;;  %v12662_v61 = vld [vmem:[#allocation11 + $0x38c] ss:$16 sps:$4 sm:$0xff]   ;;  %v12660_v0 = vld [vmem:[#allocation11 + $0x388] ss:$16 sps:$4 sm:$0xff]  }
 0x501   : > { %4291 = vmatmul.mubr.bf16.vlgmr.msra.gmra.mxu1 %v15035_v43  ;;  %4333 = vmatprep.mubr.bf16.mxu0 %v15027_v9  ;;  %v12665_v63 = vld [vmem:[#allocation11 + $0x16c] ss:$16 sps:$4 sm:$0xff]   ;;  %v12663_v2 = vld [vmem:[#allocation11 + $0x168] ss:$16 sps:$4 sm:$0xff]  }
 0x502   : > { %4345 = vmatpush1.bf16.msra.mxu1 %v12594_v40  ;;  %4376 = vmatprep.mubr.bf16.mxu1 %v15032_v31  ;;  %v12668_v1 = vld [vmem:[#allocation11 + $0x36c] ss:$16 sps:$4 sm:$0xff]   ;;  %v12666_v4 = vld [vmem:[#allocation11 + $0x368] ss:$16 sps:$4 sm:$0xff]  }
 0x503   : > { %4303 = vmatprep.subr.bf16.mxu0 %v12599_v32  ;;  %4346 = vmatprep.subr.bf16.mxu1 %v12602_v49  ;;  %v12671_v3 = vld [vmem:[#allocation11 + $0x14c] ss:$16 sps:$4 sm:$0xff]   ;;  %v12669_v8 = vld [vmem:[#allocation11 + $0x148] ss:$16 sps:$4 sm:$0xff]  }
 0x504   : > { %4304 = vmatpush1.bf16.msra.mxu0 %v12597_v44  ;;  %v12674_v6 = vld [vmem:[#allocation11 + $0x34c] ss:$16 sps:$4 sm:$0xff]   ;;  %v12672_v40 = vld [vmem:[#allocation11 + $0x348] ss:$16 sps:$4 sm:$0xff]  }
 0x505   : > { %4305 = vmatprep.subr.bf16.mxu0 %v12605_v45  ;;  %v12677_v10 = vld [vmem:[#allocation11 + $0x12c] ss:$16 sps:$4 sm:$0xff]   ;;  %v12675_v49 = vld [vmem:[#allocation11 + $0x128] ss:$16 sps:$4 sm:$0xff]  }
 0x506   : > { %4347 = vmatpush1.bf16.msra.mxu1 %v12600_v59  ;;  %v12680_v32 = vld [vmem:[#allocation11 + $0x32c] ss:$16 sps:$4 sm:$0xff]   ;;  %v12678_v45 = vld [vmem:[#allocation11 + $0x328] ss:$16 sps:$4 sm:$0xff]  }
 0x507   : > { %4348 = vmatprep.subr.bf16.mxu1 %v12608_v11  ;;  %v12683_v44 = vld [vmem:[#allocation11 + $0x10c] ss:$16 sps:$4 sm:$0xff]   ;;  %v12681_v11 = vld [vmem:[#allocation11 + $0x108] ss:$16 sps:$4 sm:$0xff]  }
 0x508   : > { %4306 = vmatpush1.bf16.msra.mxu0 %v12603_v12  ;;  %v12686_v59 = vld [vmem:[#allocation11 + $0x30c] ss:$16 sps:$4 sm:$0xff]   ;;  %v12689_v12 = vld [vmem:[#allocation11 + $0x4e4] ss:$16 sps:$4 sm:$0xff]  }
 0x509   : > { %4307 = vmatprep.subr.bf16.mxu0 %v12611_v13  ;;  %v12684_v13 = vld [vmem:[#allocation11 + $0x308] ss:$16 sps:$4 sm:$0xff]  }
 0x50a   : > { %4349 = vmatpush1.bf16.msra.mxu1 %v12606_v14  ;;  %v12692_v14 = vld [vmem:[#allocation11 + $0x6e4] ss:$16 sps:$4 sm:$0xff]  }
 0x50b   : > { %4350 = vmatprep.subr.bf16.mxu1 %v12614_v15  ;;  %v12687_v15 = vld [vmem:[#allocation11 + $0x4e0] ss:$16 sps:$4 sm:$0xff]  }
 0x50c   : > { %4308 = vmatpush1.bf16.msra.mxu0 %v12609_v16  ;;  %v12695_v16 = vld [vmem:[#allocation11 + $0x4c4] ss:$16 sps:$4 sm:$0xff]  }
 0x50d   : > { %4309 = vmatprep.subr.bf16.mxu0 %v12617_v17  ;;  %v12690_v17 = vld [vmem:[#allocation11 + $0x6e0] ss:$16 sps:$4 sm:$0xff]  }
 0x50e   : > { %4351 = vmatpush1.bf16.msra.mxu1 %v12612_v25  ;;  %v12698_v25 = vld [vmem:[#allocation11 + $0x6c4] ss:$16 sps:$4 sm:$0xff]  }
 0x50f   : > { %4352 = vmatprep.subr.bf16.mxu1 %v12620_v26  ;;  %v12693_v26 = vld [vmem:[#allocation11 + $0x4c0] ss:$16 sps:$4 sm:$0xff]  }
 0x510   : > { %4310 = vmatpush1.bf16.msra.mxu0 %v12615_v27  ;;  %v12701_v27 = vld [vmem:[#allocation11 + $0x4a4] ss:$16 sps:$4 sm:$0xff]  }
 0x511   : > { %4311 = vmatprep.subr.bf16.mxu0 %v12623_v28  ;;  %v12696_v28 = vld [vmem:[#allocation11 + $0x6c0] ss:$16 sps:$4 sm:$0xff]  }
 0x512   : > { %4353 = vmatpush1.bf16.msra.mxu1 %v12618_v18  ;;  %v12704_v18 = vld [vmem:[#allocation11 + $0x6a4] ss:$16 sps:$4 sm:$0xff]  }
 0x513   : > { %4354 = vmatprep.subr.bf16.mxu1 %v12626_v19  ;;  %v12699_v19 = vld [vmem:[#allocation11 + $0x4a0] ss:$16 sps:$4 sm:$0xff]  }
 0x514   : > { %4312 = vmatpush1.bf16.msra.mxu0 %v12621_v20  ;;  %v12707_v20 = vld [vmem:[#allocation11 + $0x484] ss:$16 sps:$4 sm:$0xff]  }
 0x515   : > { %4313 = vmatprep.subr.bf16.mxu0 %v12629_v21  ;;  %v12702_v21 = vld [vmem:[#allocation11 + $0x6a0] ss:$16 sps:$4 sm:$0xff]  }
 0x516   : > { %4355 = vmatpush1.bf16.msra.mxu1 %v12624_v22  ;;  %v12710_v22 = vld [vmem:[#allocation11 + $0x684] ss:$16 sps:$4 sm:$0xff]  }
 0x517   : > { %4356 = vmatprep.subr.bf16.mxu1 %v12632_v23  ;;  %v12705_v23 = vld [vmem:[#allocation11 + $0x480] ss:$16 sps:$4 sm:$0xff]  }
 0x518   : > { %4314 = vmatpush1.bf16.msra.mxu0 %v12627_v24  ;;  %v12713_v24 = vld [vmem:[#allocation11 + $0x464] ss:$16 sps:$4 sm:$0xff]  }
 0x519   : > { %4315 = vmatprep.subr.bf16.mxu0 %v12635_v29  ;;  %v12708_v29 = vld [vmem:[#allocation11 + $0x680] ss:$16 sps:$4 sm:$0xff]  }
 0x51a   : > { %4357 = vmatpush1.bf16.msra.mxu1 %v12630_v50  ;;  %v12716_v50 = vld [vmem:[#allocation11 + $0x664] ss:$16 sps:$4 sm:$0xff]  }
 0x51b   : > { %4358 = vmatprep.subr.bf16.mxu1 %v12638_v54  ;;  %v12711_v54 = vld [vmem:[#allocation11 + $0x460] ss:$16 sps:$4 sm:$0xff]  }
 0x51c   : > { %4316 = vmatpush1.bf16.msra.mxu0 %v12633_v33  ;;  %v12719_v33 = vld [vmem:[#allocation11 + $0x444] ss:$16 sps:$4 sm:$0xff]  }
 0x51d   : > { %4317 = vmatprep.subr.bf16.mxu0 %v12641_v62  ;;  %v12714_v62 = vld [vmem:[#allocation11 + $0x660] ss:$16 sps:$4 sm:$0xff]  }
 0x51e   : > { %4359 = vmatpush1.bf16.msra.mxu1 %v12636_v34  ;;  %v12722_v34 = vld [vmem:[#allocation11 + $0x644] ss:$16 sps:$4 sm:$0xff]  }
 0x51f   : > { %4360 = vmatprep.subr.bf16.mxu1 %v12644_v35  ;;  %v12717_v35 = vld [vmem:[#allocation11 + $0x440] ss:$16 sps:$4 sm:$0xff]  }
 0x520   : > { %4318 = vmatpush2.bf16.msra.mxu0 %v12639_v38  ;;  %v12725_v38 = vld [vmem:[#allocation11 + $0x424] ss:$16 sps:$4 sm:$0xff]  }
 0x521   : > { %4319 = vmatprep.subr.bf16.mxu0 %v12647_v39  ;;  %v12720_v39 = vld [vmem:[#allocation11 + $0x640] ss:$16 sps:$4 sm:$0xff]  }
 0x522   : > { %4361 = vmatpush2.bf16.msra.mxu1 %v12642_v46  ;;  %v12728_v46 = vld [vmem:[#allocation11 + $0x624] ss:$16 sps:$4 sm:$0xff]  }
 0x523   : > { %4362 = vmatprep.subr.bf16.mxu1 %v12650_v47  ;;  %v12723_v47 = vld [vmem:[#allocation11 + $0x420] ss:$16 sps:$4 sm:$0xff]  }
 0x524   : > { %4320 = vmatpush2.bf16.msra.mxu0 %v12645_v48  ;;  %v12731_v48 = vld [vmem:[#allocation11 + $0x404] ss:$16 sps:$4 sm:$0xff]  }
 0x525   : > { %4321 = vmatprep.subr.bf16.mxu0 %v12653_v52  ;;  %v12726_v52 = vld [vmem:[#allocation11 + $0x620] ss:$16 sps:$4 sm:$0xff]  }
 0x526   : > { %4363 = vmatpush2.bf16.msra.mxu1 %v12648_v53  ;;  %v12734_v53 = vld [vmem:[#allocation11 + $0x604] ss:$16 sps:$4 sm:$0xff]  }
 0x527   : > { %4364 = vmatprep.subr.bf16.mxu1 %v12656_v55  ;;  %v12729_v55 = vld [vmem:[#allocation11 + $0x400] ss:$16 sps:$4 sm:$0xff]  }
 0x528   : > { %4322 = vmatpush2.bf16.msra.mxu0 %v12651_v56  ;;  %v12737_v56 = vld [vmem:[#allocation11 + $0x5e4] ss:$16 sps:$4 sm:$0xff]  }
 0x529   : > { %4323 = vmatprep.subr.bf16.mxu0 %v12659_v57  ;;  %v12732_v57 = vld [vmem:[#allocation11 + $0x600] ss:$16 sps:$4 sm:$0xff]  }
 0x52a   : > { %4365 = vmatpush2.bf16.msra.mxu1 %v12654_v60  ;;  %v12740_v60 = vld [vmem:[#allocation11 + $0x7e4] ss:$16 sps:$4 sm:$0xff]  }
 0x52b   : > { %4366 = vmatprep.subr.bf16.mxu1 %v12662_v61  ;;  %v12735_v61 = vld [vmem:[#allocation11 + $0x5e0] ss:$16 sps:$4 sm:$0xff]  }
 0x52c   : > { %4324 = vmatpush2.bf16.msra.mxu0 %v12657_v58  ;;  %v12743_v58 = vld [vmem:[#allocation11 + $0x5c4] ss:$16 sps:$4 sm:$0xff]  }
 0x52d   : > { %4325 = vmatprep.subr.bf16.mxu0 %v12665_v63  ;;  %v12738_v63 = vld [vmem:[#allocation11 + $0x7e0] ss:$16 sps:$4 sm:$0xff]  }
 0x52e   : > { %4367 = vmatpush2.bf16.msra.mxu1 %v12660_v0  ;;  %v12746_v0 = vld [vmem:[#allocation11 + $0x7c4] ss:$16 sps:$4 sm:$0xff]  }
 0x52f   : > { %4368 = vmatprep.subr.bf16.mxu1 %v12668_v1  ;;  %v12741_v1 = vld [vmem:[#allocation11 + $0x5c0] ss:$16 sps:$4 sm:$0xff]  }
 0x530   : > { %4326 = vmatpush2.bf16.msra.mxu0 %v12663_v2  ;;  %v12749_v2 = vld [vmem:[#allocation11 + $0x5a4] ss:$16 sps:$4 sm:$0xff]  }
 0x531   : > { %4327 = vmatprep.subr.bf16.mxu0 %v12671_v3  ;;  %v12744_v3 = vld [vmem:[#allocation11 + $0x7c0] ss:$16 sps:$4 sm:$0xff]  }
 0x532   : > { %4369 = vmatpush2.bf16.msra.mxu1 %v12666_v4  ;;  %v12752_v4 = vld [vmem:[#allocation11 + $0x7a4] ss:$16 sps:$4 sm:$0xff]  }
 0x533   : > { %4370 = vmatprep.subr.bf16.mxu1 %v12674_v6  ;;  %v12747_v6 = vld [vmem:[#allocation11 + $0x5a0] ss:$16 sps:$4 sm:$0xff]  }
 0x534   : > { %4328 = vmatpush2.bf16.msra.mxu0 %v12669_v8  ;;  %v12755_v8 = vld [vmem:[#allocation11 + $0x584] ss:$16 sps:$4 sm:$0xff]  }
 0x535   : > { %4329 = vmatprep.subr.bf16.mxu0 %v12677_v10  ;;  %v12750_v10 = vld [vmem:[#allocation11 + $0x7a0] ss:$16 sps:$4 sm:$0xff]  }
 0x536   : > { %4371 = vmatpush2.bf16.msra.mxu1 %v12672_v40  ;;  %v12758_v40 = vld [vmem:[#allocation11 + $0x784] ss:$16 sps:$4 sm:$0xff]  }
 0x537   : > { %4372 = vmatprep.subr.bf16.mxu1 %v12680_v32  ;;  %v12753_v32 = vld [vmem:[#allocation11 + $0x580] ss:$16 sps:$4 sm:$0xff]  }
 0x538   : > { %4330 = vmatpush2.bf16.msra.mxu0 %v12675_v49  ;;  %v12761_v49 = vld [vmem:[#allocation11 + $0x564] ss:$16 sps:$4 sm:$0xff]  }
 0x539   : > { %4331 = vmatprep.subr.bf16.mxu0 %v12683_v44  ;;  %v12756_v44 = vld [vmem:[#allocation11 + $0x780] ss:$16 sps:$4 sm:$0xff]  }
 0x53a   : > { %4373 = vmatpush2.bf16.msra.mxu1 %v12678_v45  ;;  %v12764_v45 = vld [vmem:[#allocation11 + $0x764] ss:$16 sps:$4 sm:$0xff]  }
 0x53b   : > { %4374 = vmatprep.subr.bf16.mxu1 %v12686_v59  ;;  %v12759_v59 = vld [vmem:[#allocation11 + $0x560] ss:$16 sps:$4 sm:$0xff]  }
 0x53c   : > { %4332 = vmatpush2.bf16.msra.mxu0 %v12681_v11  ;;  %v12767_v11 = vld [vmem:[#allocation11 + $0x544] ss:$16 sps:$4 sm:$0xff]  }
 0x53d   : > { %5059 = vmatprep.subr.bf16.mxu0 %v12689_v12  ;;  %v12762_v12 = vld [vmem:[#allocation11 + $0x760] ss:$16 sps:$4 sm:$0xff]  }
 0x53e   : > { %4375 = vmatpush2.bf16.msra.mxu1 %v12684_v13  ;;  %v12770_v13 = vld [vmem:[#allocation11 + $0x744] ss:$16 sps:$4 sm:$0xff]  }
 0x53f   : > { %4334 = vmatmul.mubr.bf16.vlgmr.msra.gmra.mxu0 %v15029_v30  ;;  %5102 = vmatprep.subr.bf16.mxu1 %v12692_v14  ;;  %v12765_v14 = vld [vmem:[#allocation11 + $0x540] ss:$16 sps:$4 sm:$0xff]  }
 0x540   : > { %5060 = vmatpush1.bf16.msra.mxu0 %v12687_v15  ;;  %5091 = vmatprep.mubr.bf16.mxu0 %v15027_v9  ;;  %v12773_v15 = vld [vmem:[#allocation11 + $0x524] ss:$16 sps:$4 sm:$0xff]  }
 0x541   : > { %4377 = vmatmul.mubr.bf16.vlgmr.msra.gmra.mxu1 %v15035_v43  ;;  %5061 = vmatprep.subr.bf16.mxu0 %v12695_v16  ;;  %v12768_v16 = vld [vmem:[#allocation11 + $0x740] ss:$16 sps:$4 sm:$0xff]  }
 0x542   : > { %5103 = vmatpush1.bf16.msra.mxu1 %v12690_v17  ;;  %5134 = vmatprep.mubr.bf16.mxu1 %v15032_v31  ;;  %v12776_v17 = vld [vmem:[#allocation11 + $0x724] ss:$16 sps:$4 sm:$0xff]  }
 0x543   : > { %5104 = vmatprep.subr.bf16.mxu1 %v12698_v25  ;;  %v12771_v25 = vld [vmem:[#allocation11 + $0x520] ss:$16 sps:$4 sm:$0xff]  }
 0x544   : > { %5062 = vmatpush1.bf16.msra.mxu0 %v12693_v26  ;;  %v12779_v26 = vld [vmem:[#allocation11 + $0x504] ss:$16 sps:$4 sm:$0xff]  }
 0x545   : > { %5063 = vmatprep.subr.bf16.mxu0 %v12701_v27  ;;  %v12774_v27 = vld [vmem:[#allocation11 + $0x720] ss:$16 sps:$4 sm:$0xff]  }
 0x546   : > { %5105 = vmatpush1.bf16.msra.mxu1 %v12696_v28  ;;  %v12782_v28 = vld [vmem:[#allocation11 + $0x704] ss:$16 sps:$4 sm:$0xff]  }
 0x547   : > { %5106 = vmatprep.subr.bf16.mxu1 %v12704_v18  ;;  %v12777_v18 = vld [vmem:[#allocation11 + $0x500] ss:$16 sps:$4 sm:$0xff]  }
 0x548   : > { %5064 = vmatpush1.bf16.msra.mxu0 %v12699_v19  ;;  %v12785_v19 = vld [vmem:[#allocation11 + $0x4ec] ss:$16 sps:$4 sm:$0xff]  }
 0x549   : > { %5065 = vmatprep.subr.bf16.mxu0 %v12707_v20  ;;  %v12780_v20 = vld [vmem:[#allocation11 + $0x700] ss:$16 sps:$4 sm:$0xff]  }
 0x54a   : > { %5107 = vmatpush1.bf16.msra.mxu1 %v12702_v21  ;;  %v12788_v21 = vld [vmem:[#allocation11 + $0x6ec] ss:$16 sps:$4 sm:$0xff]  }
 0x54b   : > { %5108 = vmatprep.subr.bf16.mxu1 %v12710_v22  ;;  %v12783_v22 = vld [vmem:[#allocation11 + $0x4e8] ss:$16 sps:$4 sm:$0xff]  }
 0x54c   : > { %5066 = vmatpush1.bf16.msra.mxu0 %v12705_v23  ;;  %v12791_v23 = vld [vmem:[#allocation11 + $0x4cc] ss:$16 sps:$4 sm:$0xff]  }
 0x54d   : > { %5067 = vmatprep.subr.bf16.mxu0 %v12713_v24  ;;  %v12786_v24 = vld [vmem:[#allocation11 + $0x6e8] ss:$16 sps:$4 sm:$0xff]  }
 0x54e   : > { %5109 = vmatpush1.bf16.msra.mxu1 %v12708_v29  ;;  %v12794_v29 = vld [vmem:[#allocation11 + $0x6cc] ss:$16 sps:$4 sm:$0xff]  }
 0x54f   : > { %5110 = vmatprep.subr.bf16.mxu1 %v12716_v50  ;;  %v12789_v50 = vld [vmem:[#allocation11 + $0x4c8] ss:$16 sps:$4 sm:$0xff]  }
 0x550   : > { %5068 = vmatpush1.bf16.msra.mxu0 %v12711_v54  ;;  %v12797_v54 = vld [vmem:[#allocation11 + $0x4ac] ss:$16 sps:$4 sm:$0xff]  }
 0x551   : > { %5069 = vmatprep.subr.bf16.mxu0 %v12719_v33  ;;  %v12792_v33 = vld [vmem:[#allocation11 + $0x6c8] ss:$16 sps:$4 sm:$0xff]  }
 0x552   : > { %5111 = vmatpush1.bf16.msra.mxu1 %v12714_v62  ;;  %v12800_v62 = vld [vmem:[#allocation11 + $0x6ac] ss:$16 sps:$4 sm:$0xff]  }
 0x553   : > { %5112 = vmatprep.subr.bf16.mxu1 %v12722_v34  ;;  %v12795_v34 = vld [vmem:[#allocation11 + $0x4a8] ss:$16 sps:$4 sm:$0xff]  }
 0x554   : > { %5070 = vmatpush1.bf16.msra.mxu0 %v12717_v35  ;;  %v12803_v35 = vld [vmem:[#allocation11 + $0x48c] ss:$16 sps:$4 sm:$0xff]  }
 0x555   : > { %5071 = vmatprep.subr.bf16.mxu0 %v12725_v38  ;;  %v12798_v38 = vld [vmem:[#allocation11 + $0x6a8] ss:$16 sps:$4 sm:$0xff]  }
 0x556   : > { %5113 = vmatpush1.bf16.msra.mxu1 %v12720_v39  ;;  %v12806_v39 = vld [vmem:[#allocation11 + $0x68c] ss:$16 sps:$4 sm:$0xff]  }
 0x557   : > { %5114 = vmatprep.subr.bf16.mxu1 %v12728_v46  ;;  %v12801_v46 = vld [vmem:[#allocation11 + $0x488] ss:$16 sps:$4 sm:$0xff]  }
 0x558   : > { %5072 = vmatpush1.bf16.msra.mxu0 %v12723_v47  ;;  %v12809_v47 = vld [vmem:[#allocation11 + $0x46c] ss:$16 sps:$4 sm:$0xff]  }
 0x559   : > { %5073 = vmatprep.subr.bf16.mxu0 %v12731_v48  ;;  %v12804_v48 = vld [vmem:[#allocation11 + $0x688] ss:$16 sps:$4 sm:$0xff]  }
 0x55a   : > { %5115 = vmatpush1.bf16.msra.mxu1 %v12726_v52  ;;  %v12812_v52 = vld [vmem:[#allocation11 + $0x66c] ss:$16 sps:$4 sm:$0xff]  }
 0x55b   : > { %5116 = vmatprep.subr.bf16.mxu1 %v12734_v53  ;;  %v12807_v53 = vld [vmem:[#allocation11 + $0x468] ss:$16 sps:$4 sm:$0xff]  }
 0x55c   : > { %5074 = vmatpush1.bf16.msra.mxu0 %v12729_v55  ;;  %v12815_v55 = vld [vmem:[#allocation11 + $0x44c] ss:$16 sps:$4 sm:$0xff]  }
 0x55d   : > { %5075 = vmatprep.subr.bf16.mxu0 %v12737_v56  ;;  %v12810_v56 = vld [vmem:[#allocation11 + $0x668] ss:$16 sps:$4 sm:$0xff]  }
 0x55e   : > { %5117 = vmatpush1.bf16.msra.mxu1 %v12732_v57  ;;  %v12818_v57 = vld [vmem:[#allocation11 + $0x64c] ss:$16 sps:$4 sm:$0xff]  }
 0x55f   : > { %5118 = vmatprep.subr.bf16.mxu1 %v12740_v60  ;;  %v12813_v60 = vld [vmem:[#allocation11 + $0x448] ss:$16 sps:$4 sm:$0xff]  }
 0x560   : > { %5076 = vmatpush2.bf16.msra.mxu0 %v12735_v61  ;;  %v12821_v61 = vld [vmem:[#allocation11 + $0x42c] ss:$16 sps:$4 sm:$0xff]  }
 0x561   : > { %5077 = vmatprep.subr.bf16.mxu0 %v12743_v58  ;;  %v12816_v58 = vld [vmem:[#allocation11 + $0x648] ss:$16 sps:$4 sm:$0xff]  }
 0x562   : > { %5119 = vmatpush2.bf16.msra.mxu1 %v12738_v63  ;;  %v12824_v63 = vld [vmem:[#allocation11 + $0x62c] ss:$16 sps:$4 sm:$0xff]  }
 0x563   : > { %5120 = vmatprep.subr.bf16.mxu1 %v12746_v0  ;;  %v12819_v0 = vld [vmem:[#allocation11 + $0x428] ss:$16 sps:$4 sm:$0xff]  }
 0x564   : > { %5078 = vmatpush2.bf16.msra.mxu0 %v12741_v1  ;;  %v12827_v1 = vld [vmem:[#allocation11 + $0x40c] ss:$16 sps:$4 sm:$0xff]  }
 0x565   : > { %5079 = vmatprep.subr.bf16.mxu0 %v12749_v2  ;;  %v12822_v2 = vld [vmem:[#allocation11 + $0x628] ss:$16 sps:$4 sm:$0xff]  }
 0x566   : > { %5121 = vmatpush2.bf16.msra.mxu1 %v12744_v3  ;;  %v12830_v3 = vld [vmem:[#allocation11 + $0x60c] ss:$16 sps:$4 sm:$0xff]  }
 0x567   : > { %5122 = vmatprep.subr.bf16.mxu1 %v12752_v4  ;;  %v12825_v4 = vld [vmem:[#allocation11 + $0x408] ss:$16 sps:$4 sm:$0xff]  }
 0x568   : > { %5080 = vmatpush2.bf16.msra.mxu0 %v12747_v6  ;;  %v12833_v6 = vld [vmem:[#allocation11 + $0x5ec] ss:$16 sps:$4 sm:$0xff]  }
 0x569   : > { %5081 = vmatprep.subr.bf16.mxu0 %v12755_v8  ;;  %v12828_v8 = vld [vmem:[#allocation11 + $0x608] ss:$16 sps:$4 sm:$0xff]  }
 0x56a   : > { %5123 = vmatpush2.bf16.msra.mxu1 %v12750_v10  ;;  %v12836_v10 = vld [vmem:[#allocation11 + $0x7ec] ss:$16 sps:$4 sm:$0xff]  }
 0x56b   : > { %5124 = vmatprep.subr.bf16.mxu1 %v12758_v40  ;;  %v12831_v40 = vld [vmem:[#allocation11 + $0x5e8] ss:$16 sps:$4 sm:$0xff]  }
 0x56c   : > { %5082 = vmatpush2.bf16.msra.mxu0 %v12753_v32  ;;  %v12839_v32 = vld [vmem:[#allocation11 + $0x5cc] ss:$16 sps:$4 sm:$0xff]  }
 0x56d   : > { %5083 = vmatprep.subr.bf16.mxu0 %v12761_v49  ;;  %v12834_v49 = vld [vmem:[#allocation11 + $0x7e8] ss:$16 sps:$4 sm:$0xff]  }
 0x56e   : > { %5125 = vmatpush2.bf16.msra.mxu1 %v12756_v44  ;;  %v12842_v44 = vld [vmem:[#allocation11 + $0x7cc] ss:$16 sps:$4 sm:$0xff]  }
 0x56f   : > { %5126 = vmatprep.subr.bf16.mxu1 %v12764_v45  ;;  %v12837_v45 = vld [vmem:[#allocation11 + $0x5c8] ss:$16 sps:$4 sm:$0xff]  }
 0x570   : > { %5084 = vmatpush2.bf16.msra.mxu0 %v12759_v59  ;;  %v12845_v59 = vld [vmem:[#allocation11 + $0x5ac] ss:$16 sps:$4 sm:$0xff]  }
 0x571   : > { %5085 = vmatprep.subr.bf16.mxu0 %v12767_v11  ;;  %v12840_v11 = vld [vmem:[#allocation11 + $0x7c8] ss:$16 sps:$4 sm:$0xff]  }
 0x572   : > { %5127 = vmatpush2.bf16.msra.mxu1 %v12762_v12  ;;  %v12848_v12 = vld [vmem:[#allocation11 + $0x7ac] ss:$16 sps:$4 sm:$0xff]  }
 0x573   : > { %5128 = vmatprep.subr.bf16.mxu1 %v12770_v13  ;;  %v12843_v13 = vld [vmem:[#allocation11 + $0x5a8] ss:$16 sps:$4 sm:$0xff]  }
 0x574   : > { %5086 = vmatpush2.bf16.msra.mxu0 %v12765_v14  ;;  %v12851_v14 = vld [vmem:[#allocation11 + $0x58c] ss:$16 sps:$4 sm:$0xff]  }
 0x575   : > { %5087 = vmatprep.subr.bf16.mxu0 %v12773_v15  ;;  %v12846_v15 = vld [vmem:[#allocation11 + $0x7a8] ss:$16 sps:$4 sm:$0xff]  }
 0x576   : > { %5129 = vmatpush2.bf16.msra.mxu1 %v12768_v16  ;;  %v12854_v16 = vld [vmem:[#allocation11 + $0x78c] ss:$16 sps:$4 sm:$0xff]  }
 0x577   : > { %5130 = vmatprep.subr.bf16.mxu1 %v12776_v17  ;;  %v12849_v17 = vld [vmem:[#allocation11 + $0x588] ss:$16 sps:$4 sm:$0xff]  }
 0x578   : > { %5088 = vmatpush2.bf16.msra.mxu0 %v12771_v25  ;;  %v12857_v25 = vld [vmem:[#allocation11 + $0x56c] ss:$16 sps:$4 sm:$0xff]  }
 0x579   : > { %5089 = vmatprep.subr.bf16.mxu0 %v12779_v26  ;;  %v12852_v26 = vld [vmem:[#allocation11 + $0x788] ss:$16 sps:$4 sm:$0xff]  }
 0x57a   : > { %5131 = vmatpush2.bf16.msra.mxu1 %v12774_v27  ;;  %v12860_v27 = vld [vmem:[#allocation11 + $0x76c] ss:$16 sps:$4 sm:$0xff]  }
 0x57b   : > { %5132 = vmatprep.subr.bf16.mxu1 %v12782_v28  ;;  %v12855_v28 = vld [vmem:[#allocation11 + $0x568] ss:$16 sps:$4 sm:$0xff]  }
 0x57c   : > { %5090 = vmatpush2.bf16.msra.mxu0 %v12777_v18  ;;  %v12863_v18 = vld [vmem:[#allocation11 + $0x54c] ss:$16 sps:$4 sm:$0xff]  }
 0x57d   : > { %5145 = vmatprep.subr.bf16.mxu0 %v12785_v19  ;;  %v12858_v19 = vld [vmem:[#allocation11 + $0x768] ss:$16 sps:$4 sm:$0xff]  }
 0x57e   : > { %5133 = vmatpush2.bf16.msra.mxu1 %v12780_v20  ;;  %v12866_v20 = vld [vmem:[#allocation11 + $0x74c] ss:$16 sps:$4 sm:$0xff]  }
 0x57f   : > { %5092 = vmatmul.mubr.bf16.vlgmr.msra.gmra.mxu0 %v15029_v30  ;;  %5188 = vmatprep.subr.bf16.mxu1 %v12788_v21  ;;  %v12861_v21 = vld [vmem:[#allocation11 + $0x548] ss:$16 sps:$4 sm:$0xff]  }
 0x580   : > { %5146 = vmatpush1.bf16.msra.mxu0 %v12783_v22  ;;  %5177 = vmatprep.mubr.bf16.mxu0 %v15027_v9  ;;  %v12869_v22 = vld [vmem:[#allocation11 + $0x52c] ss:$16 sps:$4 sm:$0xff]  }
 0x581   : > { %5135 = vmatmul.mubr.bf16.vlgmr.msra.gmra.mxu1 %v15035_v43  ;;  %5147 = vmatprep.subr.bf16.mxu0 %v12791_v23  ;;  %v12864_v23 = vld [vmem:[#allocation11 + $0x748] ss:$16 sps:$4 sm:$0xff]  }
 0x582   : > { %5189 = vmatpush1.bf16.msra.mxu1 %v12786_v24  ;;  %5220 = vmatprep.mubr.bf16.mxu1 %v15032_v31  ;;  %v12872_v24 = vld [vmem:[#allocation11 + $0x72c] ss:$16 sps:$4 sm:$0xff]  }
 0x583   : > { %5190 = vmatprep.subr.bf16.mxu1 %v12794_v29  ;;  %v12867_v29 = vld [vmem:[#allocation11 + $0x528] ss:$16 sps:$4 sm:$0xff]  }
 0x584   : > { %5148 = vmatpush1.bf16.msra.mxu0 %v12789_v50  ;;  %v12875_v50 = vld [vmem:[#allocation11 + $0x50c] ss:$16 sps:$4 sm:$0xff]  }
 0x585   : > { %5149 = vmatprep.subr.bf16.mxu0 %v12797_v54  ;;  %v12870_v54 = vld [vmem:[#allocation11 + $0x728] ss:$16 sps:$4 sm:$0xff]  }
 0x586   : > { %5191 = vmatpush1.bf16.msra.mxu1 %v12792_v33  ;;  %v12878_v33 = vld [vmem:[#allocation11 + $0x70c] ss:$16 sps:$4 sm:$0xff]  }
 0x587   : > { %5192 = vmatprep.subr.bf16.mxu1 %v12800_v62  ;;  %v12873_v62 = vld [vmem:[#allocation11 + $0x508] ss:$16 sps:$4 sm:$0xff]  }
 0x588   : > { %5150 = vmatpush1.bf16.msra.mxu0 %v12795_v34  ;;  %v12881_v34 = vld [vmem:[#allocation11 + $0x8e4] ss:$16 sps:$4 sm:$0xff]  }
 0x589   : > { %5151 = vmatprep.subr.bf16.mxu0 %v12803_v35  ;;  %v12876_v35 = vld [vmem:[#allocation11 + $0x708] ss:$16 sps:$4 sm:$0xff]  }
 0x58a   : > { %5193 = vmatpush1.bf16.msra.mxu1 %v12798_v38  ;;  %v12884_v38 = vld [vmem:[#allocation11 + $0xae4] ss:$16 sps:$4 sm:$0xff]  }
 0x58b   : > { %5194 = vmatprep.subr.bf16.mxu1 %v12806_v39  ;;  %v12879_v39 = vld [vmem:[#allocation11 + $0x8e0] ss:$16 sps:$4 sm:$0xff]  }
 0x58c   : > { %5152 = vmatpush1.bf16.msra.mxu0 %v12801_v46  ;;  %v12887_v46 = vld [vmem:[#allocation11 + $0x8c4] ss:$16 sps:$4 sm:$0xff]  }
 0x58d   : > { %5153 = vmatprep.subr.bf16.mxu0 %v12809_v47  ;;  %v12882_v47 = vld [vmem:[#allocation11 + $0xae0] ss:$16 sps:$4 sm:$0xff]  }
 0x58e   : > { %5195 = vmatpush1.bf16.msra.mxu1 %v12804_v48  ;;  %v12890_v48 = vld [vmem:[#allocation11 + $0xac4] ss:$16 sps:$4 sm:$0xff]  }
 0x58f   : > { %5196 = vmatprep.subr.bf16.mxu1 %v12812_v52  ;;  %v12885_v52 = vld [vmem:[#allocation11 + $0x8c0] ss:$16 sps:$4 sm:$0xff]  }
 0x590   : > { %5154 = vmatpush1.bf16.msra.mxu0 %v12807_v53  ;;  %v12893_v53 = vld [vmem:[#allocation11 + $0x8a4] ss:$16 sps:$4 sm:$0xff]  }
 0x591   : > { %5155 = vmatprep.subr.bf16.mxu0 %v12815_v55  ;;  %v12888_v55 = vld [vmem:[#allocation11 + $0xac0] ss:$16 sps:$4 sm:$0xff]  }
 0x592   : > { %5197 = vmatpush1.bf16.msra.mxu1 %v12810_v56  ;;  %v12896_v56 = vld [vmem:[#allocation11 + $0xaa4] ss:$16 sps:$4 sm:$0xff]  }
 0x593   : > { %5198 = vmatprep.subr.bf16.mxu1 %v12818_v57  ;;  %v12891_v57 = vld [vmem:[#allocation11 + $0x8a0] ss:$16 sps:$4 sm:$0xff]  }
 0x594   : > { %5156 = vmatpush1.bf16.msra.mxu0 %v12813_v60  ;;  %v12899_v60 = vld [vmem:[#allocation11 + $0x884] ss:$16 sps:$4 sm:$0xff]  }
 0x595   : > { %5157 = vmatprep.subr.bf16.mxu0 %v12821_v61  ;;  %v12894_v61 = vld [vmem:[#allocation11 + $0xaa0] ss:$16 sps:$4 sm:$0xff]  }
 0x596   : > { %5199 = vmatpush1.bf16.msra.mxu1 %v12816_v58  ;;  %v12902_v58 = vld [vmem:[#allocation11 + $0xa84] ss:$16 sps:$4 sm:$0xff]  }
 0x597   : > { %5200 = vmatprep.subr.bf16.mxu1 %v12824_v63  ;;  %v12897_v63 = vld [vmem:[#allocation11 + $0x880] ss:$16 sps:$4 sm:$0xff]  }
 0x598   : > { %5158 = vmatpush1.bf16.msra.mxu0 %v12819_v0  ;;  %v12905_v0 = vld [vmem:[#allocation11 + $0x864] ss:$16 sps:$4 sm:$0xff]  }
 0x599   : > { %5159 = vmatprep.subr.bf16.mxu0 %v12827_v1  ;;  %v12900_v1 = vld [vmem:[#allocation11 + $0xa80] ss:$16 sps:$4 sm:$0xff]  }
 0x59a   : > { %5201 = vmatpush1.bf16.msra.mxu1 %v12822_v2  ;;  %v12908_v2 = vld [vmem:[#allocation11 + $0xa64] ss:$16 sps:$4 sm:$0xff]  }
 0x59b   : > { %5202 = vmatprep.subr.bf16.mxu1 %v12830_v3  ;;  %v12903_v3 = vld [vmem:[#allocation11 + $0x860] ss:$16 sps:$4 sm:$0xff]  }
 0x59c   : > { %5160 = vmatpush1.bf16.msra.mxu0 %v12825_v4  ;;  %v12911_v4 = vld [vmem:[#allocation11 + $0x844] ss:$16 sps:$4 sm:$0xff]  }
 0x59d   : > { %5161 = vmatprep.subr.bf16.mxu0 %v12833_v6  ;;  %v12906_v6 = vld [vmem:[#allocation11 + $0xa60] ss:$16 sps:$4 sm:$0xff]  }
 0x59e   : > { %5203 = vmatpush1.bf16.msra.mxu1 %v12828_v8  ;;  %v12914_v8 = vld [vmem:[#allocation11 + $0xa44] ss:$16 sps:$4 sm:$0xff]  }
 0x59f   : > { %5204 = vmatprep.subr.bf16.mxu1 %v12836_v10  ;;  %v12909_v10 = vld [vmem:[#allocation11 + $0x840] ss:$16 sps:$4 sm:$0xff]  }
 0x5a0   : > { %5162 = vmatpush2.bf16.msra.mxu0 %v12831_v40  ;;  %v12917_v40 = vld [vmem:[#allocation11 + $0x824] ss:$16 sps:$4 sm:$0xff]  }
 0x5a1   : > { %5163 = vmatprep.subr.bf16.mxu0 %v12839_v32  ;;  %v12912_v32 = vld [vmem:[#allocation11 + $0xa40] ss:$16 sps:$4 sm:$0xff]  }
 0x5a2   : > { %5205 = vmatpush2.bf16.msra.mxu1 %v12834_v49  ;;  %v12920_v49 = vld [vmem:[#allocation11 + $0xa24] ss:$16 sps:$4 sm:$0xff]  }
 0x5a3   : > { %5206 = vmatprep.subr.bf16.mxu1 %v12842_v44  ;;  %v12915_v44 = vld [vmem:[#allocation11 + $0x820] ss:$16 sps:$4 sm:$0xff]  }
 0x5a4   : > { %5164 = vmatpush2.bf16.msra.mxu0 %v12837_v45  ;;  %v12923_v45 = vld [vmem:[#allocation11 + $0x804] ss:$16 sps:$4 sm:$0xff]  }
 0x5a5   : > { %5165 = vmatprep.subr.bf16.mxu0 %v12845_v59  ;;  %v12918_v59 = vld [vmem:[#allocation11 + $0xa20] ss:$16 sps:$4 sm:$0xff]  }
 0x5a6   : > { %5207 = vmatpush2.bf16.msra.mxu1 %v12840_v11  ;;  %v12926_v11 = vld [vmem:[#allocation11 + $0xa04] ss:$16 sps:$4 sm:$0xff]  }
 0x5a7   : > { %5208 = vmatprep.subr.bf16.mxu1 %v12848_v12  ;;  %v12921_v12 = vld [vmem:[#allocation11 + $0x800] ss:$16 sps:$4 sm:$0xff]  }
 0x5a8   : > { %5166 = vmatpush2.bf16.msra.mxu0 %v12843_v13  ;;  %v12929_v13 = vld [vmem:[#allocation11 + $0x9e4] ss:$16 sps:$4 sm:$0xff]  }
 0x5a9   : > { %5167 = vmatprep.subr.bf16.mxu0 %v12851_v14  ;;  %v12924_v14 = vld [vmem:[#allocation11 + $0xa00] ss:$16 sps:$4 sm:$0xff]  }
 0x5aa   : > { %5209 = vmatpush2.bf16.msra.mxu1 %v12846_v15  ;;  %v12932_v15 = vld [vmem:[#allocation11 + $0xbe4] ss:$16 sps:$4 sm:$0xff]  }
 0x5ab   : > { %5210 = vmatprep.subr.bf16.mxu1 %v12854_v16  ;;  %v12927_v16 = vld [vmem:[#allocation11 + $0x9e0] ss:$16 sps:$4 sm:$0xff]  }
 0x5ac   : > { %5168 = vmatpush2.bf16.msra.mxu0 %v12849_v17  ;;  %v12935_v17 = vld [vmem:[#allocation11 + $0x9c4] ss:$16 sps:$4 sm:$0xff]  }
 0x5ad   : > { %5169 = vmatprep.subr.bf16.mxu0 %v12857_v25  ;;  %v12930_v25 = vld [vmem:[#allocation11 + $0xbe0] ss:$16 sps:$4 sm:$0xff]  }
 0x5ae   : > { %5211 = vmatpush2.bf16.msra.mxu1 %v12852_v26  ;;  %v12938_v26 = vld [vmem:[#allocation11 + $0xbc4] ss:$16 sps:$4 sm:$0xff]  }
 0x5af   : > { %5212 = vmatprep.subr.bf16.mxu1 %v12860_v27  ;;  %v12933_v27 = vld [vmem:[#allocation11 + $0x9c0] ss:$16 sps:$4 sm:$0xff]  }
 0x5b0   : > { %5170 = vmatpush2.bf16.msra.mxu0 %v12855_v28  ;;  %v12941_v28 = vld [vmem:[#allocation11 + $0x9a4] ss:$16 sps:$4 sm:$0xff]  }
 0x5b1   : > { %5171 = vmatprep.subr.bf16.mxu0 %v12863_v18  ;;  %v12936_v18 = vld [vmem:[#allocation11 + $0xbc0] ss:$16 sps:$4 sm:$0xff]  }
 0x5b2   : > { %5213 = vmatpush2.bf16.msra.mxu1 %v12858_v19  ;;  %v12944_v19 = vld [vmem:[#allocation11 + $0xba4] ss:$16 sps:$4 sm:$0xff]  }
 0x5b3   : > { %5214 = vmatprep.subr.bf16.mxu1 %v12866_v20  ;;  %v12939_v20 = vld [vmem:[#allocation11 + $0x9a0] ss:$16 sps:$4 sm:$0xff]  }
 0x5b4   : > { %5172 = vmatpush2.bf16.msra.mxu0 %v12861_v21  ;;  %v12947_v21 = vld [vmem:[#allocation11 + $0x984] ss:$16 sps:$4 sm:$0xff]  }
 0x5b5   : > { %5173 = vmatprep.subr.bf16.mxu0 %v12869_v22  ;;  %v12942_v22 = vld [vmem:[#allocation11 + $0xba0] ss:$16 sps:$4 sm:$0xff]  }
 0x5b6   : > { %5215 = vmatpush2.bf16.msra.mxu1 %v12864_v23  ;;  %v12950_v23 = vld [vmem:[#allocation11 + $0xb84] ss:$16 sps:$4 sm:$0xff]  }
 0x5b7   : > { %5216 = vmatprep.subr.bf16.mxu1 %v12872_v24  ;;  %v12945_v24 = vld [vmem:[#allocation11 + $0x980] ss:$16 sps:$4 sm:$0xff]  }
 0x5b8   : > { %5174 = vmatpush2.bf16.msra.mxu0 %v12867_v29  ;;  %v12953_v29 = vld [vmem:[#allocation11 + $0x964] ss:$16 sps:$4 sm:$0xff]  }
 0x5b9   : > { %5175 = vmatprep.subr.bf16.mxu0 %v12875_v50  ;;  %v12948_v50 = vld [vmem:[#allocation11 + $0xb80] ss:$16 sps:$4 sm:$0xff]  }
 0x5ba   : > { %5217 = vmatpush2.bf16.msra.mxu1 %v12870_v54  ;;  %v12956_v54 = vld [vmem:[#allocation11 + $0xb64] ss:$16 sps:$4 sm:$0xff]  }
 0x5bb   : > { %5218 = vmatprep.subr.bf16.mxu1 %v12878_v33  ;;  %v12951_v33 = vld [vmem:[#allocation11 + $0x960] ss:$16 sps:$4 sm:$0xff]  }
 0x5bc   : > { %5176 = vmatpush2.bf16.msra.mxu0 %v12873_v62  ;;  %v12959_v62 = vld [vmem:[#allocation11 + $0x944] ss:$16 sps:$4 sm:$0xff]  }
 0x5bd   : > { %6000 = vmatprep.subr.bf16.mxu0 %v12881_v34  ;;  %v12954_v34 = vld [vmem:[#allocation11 + $0xb60] ss:$16 sps:$4 sm:$0xff]  }
 0x5be   : > { %5219 = vmatpush2.bf16.msra.mxu1 %v12876_v35  ;;  %v12962_v35 = vld [vmem:[#allocation11 + $0xb44] ss:$16 sps:$4 sm:$0xff]  }
 0x5bf   : > { %5178 = vmatmul.mubr.bf16.vlgmr.msra.gmra.mxu0 %v15029_v30  ;;  %6043 = vmatprep.subr.bf16.mxu1 %v12884_v38  ;;  %v12957_v38 = vld [vmem:[#allocation11 + $0x940] ss:$16 sps:$4 sm:$0xff]  }
 0x5c0   : > { %6001 = vmatpush1.bf16.msra.mxu0 %v12879_v39  ;;  %6032 = vmatprep.mubr.bf16.mxu0 %v15027_v9  ;;  %v15053_v39 = vpop.f32.mrf.mxu0 }
 0x5c1   : > { %5221 = vmatmul.mubr.bf16.vlgmr.msra.gmra.mxu1 %v15035_v43  ;;  %6002 = vmatprep.subr.bf16.mxu0 %v12887_v46  ;;  %v12965_v46 = vld [vmem:[#allocation11 + $0x924] ss:$16 sps:$4 sm:$0xff]  }
 0x5c2   : > { %6044 = vmatpush1.bf16.msra.mxu1 %v12882_v47  ;;  %6075 = vmatprep.mubr.bf16.mxu1 %v15032_v31  ;;  %v12960_v47 = vld [vmem:[#allocation11 + $0xb40] ss:$16 sps:$4 sm:$0xff]  }
 0x5c3   : > { %6045 = vmatprep.subr.bf16.mxu1 %v12890_v48  ;;  %v15055_v48 = vpop.f32.mrf.mxu1 }
 0x5c4   : > { %6003 = vmatpush1.bf16.msra.mxu0 %v12885_v52  ;;  %v12968_v52 = vld [vmem:[#allocation11 + $0xb24] ss:$16 sps:$4 sm:$0xff]  }
 0x5c5   : > { %6004 = vmatprep.subr.bf16.mxu0 %v12893_v53  ;;  %v12963_v53 = vld [vmem:[#allocation11 + $0x920] ss:$16 sps:$4 sm:$0xff]  }
 0x5c6   : > { %6046 = vmatpush1.bf16.msra.mxu1 %v12888_v55  ;;  %v15057_v55 = vpop.f32.mrf.mxu0 }
 0x5c7   : > { %6047 = vmatprep.subr.bf16.mxu1 %v12896_v56  ;;  %v12971_v56 = vld [vmem:[#allocation11 + $0x904] ss:$16 sps:$4 sm:$0xff]  }
 0x5c8   : > { %6005 = vmatpush1.bf16.msra.mxu0 %v12891_v57  ;;  %v12966_v57 = vld [vmem:[#allocation11 + $0xb20] ss:$16 sps:$4 sm:$0xff]  }
 0x5c9   : > { %6006 = vmatprep.subr.bf16.mxu0 %v12899_v60  ;;  %v15059_v60 = vpop.f32.mrf.mxu1 }
 0x5ca   : > { %6048 = vmatpush1.bf16.msra.mxu1 %v12894_v61  ;;  %v12974_v61 = vld [vmem:[#allocation11 + $0xb04] ss:$16 sps:$4 sm:$0xff]  }
 0x5cb   : > { %6049 = vmatprep.subr.bf16.mxu1 %v12902_v58  ;;  %v12969_v58 = vld [vmem:[#allocation11 + $0x900] ss:$16 sps:$4 sm:$0xff]  }
 0x5cc   : > { %6007 = vmatpush1.bf16.msra.mxu0 %v12897_v63  ;;  %v15061_v63 = vpop.f32.mrf.mxu0 }
 0x5cd   : > { %6008 = vmatprep.subr.bf16.mxu0 %v12905_v0  ;;  %v12977_v0 = vld [vmem:[#allocation11 + $0x8ec] ss:$16 sps:$4 sm:$0xff]  }
 0x5ce   : > { %6050 = vmatpush1.bf16.msra.mxu1 %v12900_v1  ;;  %v12972_v1 = vld [vmem:[#allocation11 + $0xb00] ss:$16 sps:$4 sm:$0xff]  }
 0x5cf   : > { %6051 = vmatprep.subr.bf16.mxu1 %v12908_v2  ;;  %v15063_v2 = vpop.f32.mrf.mxu1 }
 0x5d0   : > { %6009 = vmatpush1.bf16.msra.mxu0 %v12903_v3  ;;  %v12980_v3 = vld [vmem:[#allocation11 + $0xaec] ss:$16 sps:$4 sm:$0xff]  }
 0x5d1   : > { %6010 = vmatprep.subr.bf16.mxu0 %v12911_v4  ;;  %v12975_v4 = vld [vmem:[#allocation11 + $0x8e8] ss:$16 sps:$4 sm:$0xff]  }
 0x5d2   : > { %6052 = vmatpush1.bf16.msra.mxu1 %v12906_v6  ;;  %v15065_v6 = vpop.f32.mrf.mxu0 }
 0x5d3   : > { %6053 = vmatprep.subr.bf16.mxu1 %v12914_v8  ;;  %v12983_v8 = vld [vmem:[#allocation11 + $0x8cc] ss:$16 sps:$4 sm:$0xff]  }
 0x5d4   : > { %6011 = vmatpush1.bf16.msra.mxu0 %v12909_v10  ;;  %v12978_v10 = vld [vmem:[#allocation11 + $0xae8] ss:$16 sps:$4 sm:$0xff]  }
 0x5d5   : > { %6012 = vmatprep.subr.bf16.mxu0 %v12917_v40  ;;  %v15067_v40 = vpop.f32.mrf.mxu1 }
 0x5d6   : > { %6054 = vmatpush1.bf16.msra.mxu1 %v12912_v32 }
 0x5d7   : > { %6055 = vmatprep.subr.bf16.mxu1 %v12920_v49  ;;  %v12986_v49 = vld [vmem:[#allocation11 + $0xacc] ss:$16 sps:$4 sm:$0xff]  }
 0x5d8   : > { %6013 = vmatpush1.bf16.msra.mxu0 %v12915_v44  ;;  %v12981_v44 = vld [vmem:[#allocation11 + $0x8c8] ss:$16 sps:$4 sm:$0xff]  }
 0x5d9   : > { %6014 = vmatprep.subr.bf16.mxu0 %v12923_v45 }
 0x5da   : > { %6056 = vmatpush1.bf16.msra.mxu1 %v12918_v59 }
 0x5db   : > { %6057 = vmatprep.subr.bf16.mxu1 %v12926_v11  ;;  %v12989_v11 = vld [vmem:[#allocation11 + $0x8ac] ss:$16 sps:$4 sm:$0xff]  }
 0x5dc   : > { %6015 = vmatpush1.bf16.msra.mxu0 %v12921_v12 }
 0x5dd   : > { %6016 = vmatprep.subr.bf16.mxu0 %v12929_v13  ;;  %v12984_v13 = vld [vmem:[#allocation11 + $0xac8] ss:$16 sps:$4 sm:$0xff]  }
 0x5de   : > { %6058 = vmatpush1.bf16.msra.mxu1 %v12924_v14 }
 0x5df   : > { %6059 = vmatprep.subr.bf16.mxu1 %v12932_v15 }
 0x5e0   : > { %6017 = vmatpush2.bf16.msra.mxu0 %v12927_v16  ;;  %v12992_v16 = vld [vmem:[#allocation11 + $0xaac] ss:$16 sps:$4 sm:$0xff]  }
 0x5e1   : > { %6018 = vmatprep.subr.bf16.mxu0 %v12935_v17 }
 0x5e2   : > { %6060 = vmatpush2.bf16.msra.mxu1 %v12930_v25 }
 0x5e3   : > { %6061 = vmatprep.subr.bf16.mxu1 %v12938_v26 }
 0x5e4   : > { %6019 = vmatpush2.bf16.msra.mxu0 %v12933_v27  ;;  %v12995_v27 = vld [vmem:[#allocation11 + $0x88c] ss:$16 sps:$4 sm:$0xff]  }
 0x5e5   : > { %6020 = vmatprep.subr.bf16.mxu0 %v12941_v28 }
 0x5e6   : > { %6062 = vmatpush2.bf16.msra.mxu1 %v12936_v18  ;;  %v12990_v18 = vld [vmem:[#allocation11 + $0xaa8] ss:$16 sps:$4 sm:$0xff]  }
 0x5e7   : > { %6063 = vmatprep.subr.bf16.mxu1 %v12944_v19 }
 0x5e8   : > { %6021 = vmatpush2.bf16.msra.mxu0 %v12939_v20  ;;  %v12998_v20 = vld [vmem:[#allocation11 + $0xa8c] ss:$16 sps:$4 sm:$0xff]  }
 0x5e9   : > { %6022 = vmatprep.subr.bf16.mxu0 %v12947_v21 }
 0x5ea   : > { %6064 = vmatpush2.bf16.msra.mxu1 %v12942_v22 }
 0x5eb   : > { %6065 = vmatprep.subr.bf16.mxu1 %v12950_v23  ;;  %v12993_v23 = vld [vmem:[#allocation11 + $0x888] ss:$16 sps:$4 sm:$0xff]  }
 0x5ec   : > { %6023 = vmatpush2.bf16.msra.mxu0 %v12945_v24  ;;  %v13001_v24 = vld [vmem:[#allocation11 + $0x86c] ss:$16 sps:$4 sm:$0xff]  }
 0x5ed   : > { %6024 = vmatprep.subr.bf16.mxu0 %v12953_v29 }
 0x5ee   : > { %6066 = vmatpush2.bf16.msra.mxu1 %v12948_v50 }
 0x5ef   : > { %6067 = vmatprep.subr.bf16.mxu1 %v12956_v54  ;;  %v12996_v54 = vld [vmem:[#allocation11 + $0xa88] ss:$16 sps:$4 sm:$0xff]  }
 0x5f0   : > { %6025 = vmatpush2.bf16.msra.mxu0 %v12951_v33 }
 0x5f1   : > { %6026 = vmatprep.subr.bf16.mxu0 %v12959_v62  ;;  %v13004_v62 = vld [vmem:[#allocation11 + $0xa6c] ss:$16 sps:$4 sm:$0xff]  }
 0x5f2   : > { %6068 = vmatpush2.bf16.msra.mxu1 %v12954_v34  ;;  %v12999_v34 = vld [vmem:[#allocation11 + $0x868] ss:$16 sps:$4 sm:$0xff]  }
 0x5f3   : > { %6069 = vmatprep.subr.bf16.mxu1 %v12962_v35 }
 0x5f4   : > { %6027 = vmatpush2.bf16.msra.mxu0 %v12957_v38  ;;  %v13007_v38 = vld [vmem:[#allocation11 + $0x84c] ss:$16 sps:$4 sm:$0xff]  }
 0x5f5   : > { %6028 = vmatprep.subr.bf16.mxu0 %v12965_v46  ;;  %v13002_v46 = vld [vmem:[#allocation11 + $0xa68] ss:$16 sps:$4 sm:$0xff]  }
 0x5f6   : > { %6070 = vmatpush2.bf16.msra.mxu1 %v12960_v47  ;;  %v13010_v47 = vld [vmem:[#allocation11 + $0xa4c] ss:$16 sps:$4 sm:$0xff]  }
 0x5f7   : > { %6071 = vmatprep.subr.bf16.mxu1 %v12968_v52  ;;  %v13005_v52 = vld [vmem:[#allocation11 + $0x848] ss:$16 sps:$4 sm:$0xff]  }
 0x5f8   : > { %6029 = vmatpush2.bf16.msra.mxu0 %v12963_v53  ;;  %v13013_v53 = vld [vmem:[#allocation11 + $0x82c] ss:$16 sps:$4 sm:$0xff]  }
 0x5f9   : > { %6030 = vmatprep.subr.bf16.mxu0 %v12971_v56  ;;  %v13008_v56 = vld [vmem:[#allocation11 + $0xa48] ss:$16 sps:$4 sm:$0xff]  }
 0x5fa   : > { %6072 = vmatpush2.bf16.msra.mxu1 %v12966_v57  ;;  %v13016_v57 = vld [vmem:[#allocation11 + $0xa2c] ss:$16 sps:$4 sm:$0xff]  }
 0x5fb   : > { %6073 = vmatprep.subr.bf16.mxu1 %v12974_v61  ;;  %v13011_v61 = vld [vmem:[#allocation11 + $0x828] ss:$16 sps:$4 sm:$0xff]  }
 0x5fc   : > { %6031 = vmatpush2.bf16.msra.mxu0 %v12969_v58  ;;  %v13019_v58 = vld [vmem:[#allocation11 + $0x80c] ss:$16 sps:$4 sm:$0xff]  }
 0x5fd   : > { %6086 = vmatprep.subr.bf16.mxu0 %v12977_v0  ;;  %v13014_v0 = vld [vmem:[#allocation11 + $0xa28] ss:$16 sps:$4 sm:$0xff]  }
 0x5fe   : > { %6074 = vmatpush2.bf16.msra.mxu1 %v12972_v1  ;;  %v13022_v1 = vld [vmem:[#allocation11 + $0xa0c] ss:$16 sps:$4 sm:$0xff]  }
 0x5ff   : > { %v4335_v32 = vpop.f32.mrf.mxu0  ;;  %6033 = vmatmul.mubr.bf16.vlgmr.msra.gmra.mxu0 %v15029_v30  ;;  %6129 = vmatprep.subr.bf16.mxu1 %v12980_v3  ;;  %v13017_v3 = vld [vmem:[#allocation11 + $0x808] ss:$16 sps:$4 sm:$0xff]  }
 0x600   : > { %6087 = vmatpush1.bf16.msra.mxu0 %v12975_v4  ;;  %6118 = vmatprep.mubr.bf16.mxu0 %v15027_v9  ;;  %v12987_v9 = vld [vmem:[#allocation11 + $0x8a8] ss:$16 sps:$4 sm:$0xff]   ;;  %v13025_v4 = vld [vmem:[#allocation11 + $0x9ec] ss:$16 sps:$4 sm:$0xff]  }
 0x601   : > { %v4378_v45 = vpop.f32.mrf.mxu1  ;;  %6076 = vmatmul.mubr.bf16.vlgmr.msra.gmra.mxu1 %v15035_v43  ;;  %v4337_v59 = vpop.f32.mrf.mxu0  ;;  %6088 = vmatprep.subr.bf16.mxu0 %v12983_v8  ;;  %v13020_v8 = vld [vmem:[#allocation11 + $0xa08] ss:$16 sps:$4 sm:$0xff]  }
 0x602   : > { %v15072_v12 = vadd.f32 %v4378_v45, %v4335_v32  ;;  %6130 = vmatpush1.bf16.msra.mxu1 %v12978_v10  ;;  %6161 = vmatprep.mubr.bf16.mxu1 %v15032_v31  ;;  %v13028_v10 = vld [vmem:[#allocation11 + $0xbec] ss:$16 sps:$4 sm:$0xff]   ;;  %v13023_v32 = vld [vmem:[#allocation11 + $0x9e8] ss:$16 sps:$4 sm:$0xff]  }
 0x603   : > { %v4380_v14 = vpop.f32.mrf.mxu1  ;;  %v4339_v15 = vpop.f32.mrf.mxu0  ;;  %6131 = vmatprep.subr.bf16.mxu1 %v12986_v49  ;;  %v13031_v49 = vld [vmem:[#allocation11 + $0x9cc] ss:$16 sps:$4 sm:$0xff]  }
 0x604   : > { %v15075_v17 = vadd.f32 %v4380_v14, %v4337_v59  ;;  %6089 = vmatpush1.bf16.msra.mxu0 %v12981_v44  ;;  %v4397_v31 = vrot.slane %v15072_v12, 7  ;;  %v13026_v44 = vld [vmem:[#allocation11 + $0xbe8] ss:$16 sps:$4 sm:$0xff]   ;;  %v13034_v45 = vld [vmem:[#allocation11 + $0xbcc] ss:$16 sps:$4 sm:$0xff]  }
 0x605   : > { %v4382_v25 = vpop.f32.mrf.mxu1  ;;  %v4341_v26 = vpop.f32.mrf.mxu0  ;;  %6090 = vmatprep.subr.bf16.mxu0 %v12989_v11  ;;  %v13029_v59 = vld [vmem:[#allocation11 + $0x9c8] ss:$16 sps:$4 sm:$0xff]   ;;  %v13037_v11 = vld [vmem:[#allocation11 + $0x9ac] ss:$16 sps:$4 sm:$0xff]  }
 0x606   : > { %v4383_v28 = vadd.f32 %v4382_v25, %v4339_v15  ;;  %6132 = vmatpush1.bf16.msra.mxu1 %v12984_v13  ;;  %v4398_v29 = vrot.slane %v15075_v17, 7  ;;  %v13032_v13 = vld [vmem:[#allocation11 + $0xbc8] ss:$16 sps:$4 sm:$0xff]   ;;  %v13040_v14 = vld [vmem:[#allocation11 + $0xbac] ss:$16 sps:$4 sm:$0xff]  }
 0x607   : > { %v4384_v19 = vpop.f32.mrf.mxu1  ;;  %6133 = vmatprep.subr.bf16.mxu1 %v12992_v16  ;;  %v13035_v15 = vld [vmem:[#allocation11 + $0x9a8] ss:$16 sps:$4 sm:$0xff]   ;;  %v13043_v16 = vld [vmem:[#allocation11 + $0x98c] ss:$16 sps:$4 sm:$0xff]  }
 0x608   : > { %v4403_v21 = vrot.slane %v4383_v28, 7  ;;  %v4385_v22 = vadd.f32 %v4384_v19, %v4341_v26  ;;  %6091 = vmatpush1.bf16.msra.mxu0 %v12987_v9  ;;  %v13038_v9 = vld [vmem:[#allocation11 + $0xba8] ss:$16 sps:$4 sm:$0xff]   ;;  %v13046_v25 = vld [vmem:[#allocation11 + $0xb8c] ss:$16 sps:$4 sm:$0xff]  }
 0x609   : > { %6092 = vmatprep.subr.bf16.mxu0 %v12995_v27  ;;  %v13041_v26 = vld [vmem:[#allocation11 + $0x988] ss:$16 sps:$4 sm:$0xff]   ;;  %v13049_v27 = vld [vmem:[#allocation11 + $0x96c] ss:$16 sps:$4 sm:$0xff]  }
 0x60a   : > { %v4405_v50 = vrot.slane %v4385_v22, 7  ;;  %6134 = vmatpush1.bf16.msra.mxu1 %v12990_v18  ;;  %v15082_v33 = vsel %vm1730_vm0, %v4397_v31, %v4403_v21  ;;  %v13044_v28 = vld [vmem:[#allocation11 + $0xb88] ss:$16 sps:$4 sm:$0xff]   ;;  %v13052_v18 = vld [vmem:[#allocation11 + $0xb6c] ss:$16 sps:$4 sm:$0xff]  }
 0x60b   : > { %6135 = vmatprep.subr.bf16.mxu1 %v12998_v20  ;;  %v13047_v19 = vld [vmem:[#allocation11 + $0x968] ss:$16 sps:$4 sm:$0xff]   ;;  %v13055_v20 = vld [vmem:[#allocation11 + $0x94c] ss:$16 sps:$4 sm:$0xff]  }
 0x60c   : > { %6093 = vmatpush1.bf16.msra.mxu0 %v12993_v23  ;;  %v15087_v35 = vsel %vm1730_vm0, %v4398_v29, %v4405_v50  ;;  %v13050_v21 = vld [vmem:[#allocation11 + $0xb68] ss:$16 sps:$4 sm:$0xff]   ;;  %v13058_v22 = vld [vmem:[#allocation11 + $0xb4c] ss:$16 sps:$4 sm:$0xff]  }
 0x60d   : > { %6094 = vmatprep.subr.bf16.mxu0 %v13001_v24  ;;  %v13053_v23 = vld [vmem:[#allocation11 + $0x948] ss:$16 sps:$4 sm:$0xff]   ;;  %v13061_v24 = vld [vmem:[#allocation11 + $0x92c] ss:$16 sps:$4 sm:$0xff]  }
 0x60e   : > { %6136 = vmatpush1.bf16.msra.mxu1 %v12996_v54  ;;  %v13056_v50 = vld [vmem:[#allocation11 + $0xb48] ss:$16 sps:$4 sm:$0xff]   ;;  %v13064_v54 = vld [vmem:[#allocation11 + $0xb2c] ss:$16 sps:$4 sm:$0xff]  }
 0x60f   : > { %6137 = vmatprep.subr.bf16.mxu1 %v13004_v62  ;;  %v13059_v62 = vld [vmem:[#allocation11 + $0x928] ss:$16 sps:$4 sm:$0xff]  }
 0x610   : > { %6095 = vmatpush1.bf16.msra.mxu0 %v12999_v34  ;;  %v13067_v34 = vld [vmem:[#allocation11 + $0x90c] ss:$16 sps:$4 sm:$0xff]  }
 0x611   : > { %6096 = vmatprep.subr.bf16.mxu0 %v13007_v38  ;;  %v13062_v38 = vld [vmem:[#allocation11 + $0xb28] ss:$16 sps:$4 sm:$0xff]  }
 0x612   : > { %6138 = vmatpush1.bf16.msra.mxu1 %v13002_v46  ;;  %v13070_v46 = vld [vmem:[#allocation11 + $0xb0c] ss:$16 sps:$4 sm:$0xff]  }
 0x613   : > { %6139 = vmatprep.subr.bf16.mxu1 %v13010_v47  ;;  %v13065_v47 = vld [vmem:[#allocation11 + $0x908] ss:$16 sps:$4 sm:$0xff]  }
 0x614   : > { %6097 = vmatpush1.bf16.msra.mxu0 %v13005_v52  ;;  %v13068_v52 = vld [vmem:[#allocation11 + $0xb08] ss:$16 sps:$4 sm:$0xff]  }
 0x615   : > { %6098 = vmatprep.subr.bf16.mxu0 %v13013_v53  ;;  %v13221_v53 = vld [vmem:[%s16166_s14 + $0xf8] sm:$0xff] }
 0x616   : > { %6140 = vmatpush1.bf16.msra.mxu1 %v13008_v56  ;;  %v13222_v56 = vld [vmem:[%s16166_s14 + $0x1f8] sm:$0xff] }
 0x617   : > { %6141 = vmatprep.subr.bf16.mxu1 %v13016_v57  ;;  %v13223_v57 = vld [vmem:[%s16166_s14 + $0x78] sm:$0xff] }
 0x618   : > { %6099 = vmatpush1.bf16.msra.mxu0 %v13011_v61  ;;  %v13224_v61 = vld [vmem:[%s16166_s14 + $0xf0] sm:$0xff] }
 0x619   : > { %6100 = vmatprep.subr.bf16.mxu0 %v13019_v58  ;;  %v13225_v58 = vld [vmem:[%s16166_s14 + $0x70] sm:$0xff] }
 0x61a   : > { %6142 = vmatpush1.bf16.msra.mxu1 %v13014_v0  ;;  %v13226_v0 = vld [vmem:[%s16166_s14 + $0x178] sm:$0xff] }
 0x61b   : > { %6143 = vmatprep.subr.bf16.mxu1 %v13022_v1  ;;  %v13227_v1 = vld [vmem:[%s16166_s14 + $0xe8] sm:$0xff] }
 0x61c   : > { %6101 = vmatpush1.bf16.msra.mxu0 %v13017_v3  ;;  %v13229_v3 = vld [vmem:[%s16166_s14 + $0x68] sm:$0xff] }
 0x61d   : > { %6102 = vmatprep.subr.bf16.mxu0 %v13025_v4  ;;  %v13230_v4 = vld [vmem:[%s16166_s14 + $0x170] sm:$0xff] }
 0x61e   : > { %6144 = vmatpush1.bf16.msra.mxu1 %v13020_v8  ;;  %v13232_v8 = vld [vmem:[%s16166_s14 + $0x1e8] sm:$0xff] }
 0x61f   : > { %6145 = vmatprep.subr.bf16.mxu1 %v13028_v10  ;;  %v13233_v10 = vld [vmem:[%s16166_s14 + $0x60] sm:$0xff] }
 0x620   : > { %6103 = vmatpush2.bf16.msra.mxu0 %v13023_v32  ;;  %v13234_v32 = vld [vmem:[%s16166_s14 + $0x168] sm:$0xff] }
 0x621   : > { %6104 = vmatprep.subr.bf16.mxu0 %v13031_v49  ;;  %v13235_v49 = vld [vmem:[%s16166_s14 + $0xd8] sm:$0xff] }
 0x622   : > { %6146 = vmatpush2.bf16.msra.mxu1 %v13026_v44  ;;  %v13236_v44 = vld [vmem:[%s16166_s14 + $0x1e0] sm:$0xff] }
 0x623   : > { %6147 = vmatprep.subr.bf16.mxu1 %v13034_v45  ;;  %v13237_v45 = vld [vmem:[%s16166_s14 + $0x58] sm:$0xff] }
 0x624   : > { %6105 = vmatpush2.bf16.msra.mxu0 %v13029_v59  ;;  %v13238_v59 = vld [vmem:[%s16166_s14 + $0x160] sm:$0xff] }
 0x625   : > { %6106 = vmatprep.subr.bf16.mxu0 %v13037_v11  ;;  %v13239_v11 = vld [vmem:[%s16166_s14 + $0xd0] sm:$0xff] }
 0x626   : > { %6148 = vmatpush2.bf16.msra.mxu1 %v13032_v13  ;;  %v13240_v13 = vld [vmem:[%s16166_s14 + $0x1d8] sm:$0xff] }
 0x627   : > { %6149 = vmatprep.subr.bf16.mxu1 %v13040_v14  ;;  %v13241_v14 = vld [vmem:[%s16166_s14 + $0x50] sm:$0xff] }
 0x628   : > { %6107 = vmatpush2.bf16.msra.mxu0 %v13035_v15  ;;  %v13242_v15 = vld [vmem:[%s16166_s14 + $0x158] sm:$0xff] }
 0x629   : > { %6108 = vmatprep.subr.bf16.mxu0 %v13043_v16  ;;  %v13243_v16 = vld [vmem:[%s16166_s14 + $0xc8] sm:$0xff] }
 0x62a   : > { %6150 = vmatpush2.bf16.msra.mxu1 %v13038_v9  ;;  %v13244_v9 = vld [vmem:[%s16166_s14 + $0x1d0] sm:$0xff] }
 0x62b   : > { %6151 = vmatprep.subr.bf16.mxu1 %v13046_v25  ;;  %v13245_v25 = vld [vmem:[%s16166_s14 + $0x48] sm:$0xff] }
 0x62c   : > { %6109 = vmatpush2.bf16.msra.mxu0 %v13041_v26  ;;  %v13246_v26 = vld [vmem:[%s16166_s14 + $0x150] sm:$0xff] }
 0x62d   : > { %6110 = vmatprep.subr.bf16.mxu0 %v13049_v27  ;;  %v13247_v27 = vld [vmem:[%s16166_s14 + $0xc0] sm:$0xff] }
 0x62e   : > { %6152 = vmatpush2.bf16.msra.mxu1 %v13044_v28  ;;  %v13248_v28 = vld [vmem:[%s16166_s14 + $0x1c8] sm:$0xff] }
 0x62f   : > { %6153 = vmatprep.subr.bf16.mxu1 %v13052_v18  ;;  %v13249_v18 = vld [vmem:[%s16166_s14 + $0x40] sm:$0xff] }
 0x630   : > { %6111 = vmatpush2.bf16.msra.mxu0 %v13047_v19  ;;  %v13250_v19 = vld [vmem:[%s16166_s14 + $0x148] sm:$0xff] }
 0x631   : > { %6112 = vmatprep.subr.bf16.mxu0 %v13055_v20  ;;  %v13251_v20 = vld [vmem:[%s16166_s14 + $0xb8] sm:$0xff] }
 0x632   : > { %6154 = vmatpush2.bf16.msra.mxu1 %v13050_v21  ;;  %v13252_v21 = vld [vmem:[%s16166_s14 + $0x1c0] sm:$0xff] }
 0x633   : > { %6155 = vmatprep.subr.bf16.mxu1 %v13058_v22  ;;  %v13253_v22 = vld [vmem:[%s16166_s14 + $0x38] sm:$0xff] }
 0x634   : > { %6113 = vmatpush2.bf16.msra.mxu0 %v13053_v23  ;;  %v13254_v23 = vld [vmem:[%s16166_s14 + $0x140] sm:$0xff] }
 0x635   : > { %6114 = vmatprep.subr.bf16.mxu0 %v13061_v24  ;;  %v13255_v24 = vld [vmem:[%s16166_s14 + $0xb0] sm:$0xff] }
 0x636   : > { %6156 = vmatpush2.bf16.msra.mxu1 %v13056_v50  ;;  %v13256_v50 = vld [vmem:[%s16166_s14 + $0x1b8] sm:$0xff] }
 0x637   : > { %6157 = vmatprep.subr.bf16.mxu1 %v13064_v54  ;;  %v13257_v54 = vld [vmem:[%s16166_s14 + $0x30] sm:$0xff] }
 0x638   : > { %6115 = vmatpush2.bf16.msra.mxu0 %v13059_v62  ;;  %v13258_v62 = vld [vmem:[%s16166_s14 + $0x138] sm:$0xff] }
 0x639   : > { %6116 = vmatprep.subr.bf16.mxu0 %v13067_v34  ;;  %v13259_v34 = vld [vmem:[%s16166_s14 + $0xa8] sm:$0xff] }
 0x63a   : > { %6158 = vmatpush2.bf16.msra.mxu1 %v13062_v38  ;;  %v13260_v38 = vld [vmem:[%s16166_s14 + $0x1b0] sm:$0xff] }
 0x63b   : > { %6159 = vmatprep.subr.bf16.mxu1 %v13070_v46  ;;  %v13261_v46 = vld [vmem:[%s16166_s14 + $0x28] sm:$0xff] }
 0x63c   : > { %6117 = vmatpush2.bf16.msra.mxu0 %v13065_v47  ;;  %v13262_v47 = vld [vmem:[%s16166_s14 + $0x130] sm:$0xff] }
 0x63d   : > { %11399 = vmatprep.subr.mxu0 %v13221_v53  ;;  %v13264_v53 = vld [vmem:[%s16166_s14 + $0x1a8] sm:$0xff] }
 0x63e   : > { %6160 = vmatpush2.bf16.msra.mxu1 %v13068_v52  ;;  %v13263_v52 = vld [vmem:[%s16166_s14 + $0xa0] sm:$0xff] }
 0x63f   : > { %6119 = vmatmul.mubr.bf16.vlgmr.msra.gmra.mxu0 %v15029_v30  ;;  %11434 = vmatprep.subr.mxu1 %v13222_v56  ;;  %v13228_v30 = vld [vmem:[%s16166_s14 + $0x1f0] sm:$0xff]  ;;  %v13265_v56 = vld [vmem:[%s16166_s14 + $0x20] sm:$0xff] }
 0x640   : > { %11400 = vmatpush3.msra.mxu0 %v13223_v57  ;;  %v13266_v57 = vld [vmem:[%s16166_s14 + $0x128] sm:$0xff] }
 0x641   : > { %6162 = vmatmul.mubr.bf16.vlgmr.msra.gmra.mxu1 %v15035_v43  ;;  %11401 = vmatprep.subr.mxu0 %v13224_v61  ;;  %v13231_v43 = vld [vmem:[%s16166_s14 + $0xe0] sm:$0xff]  ;;  %v13267_v61 = vld [vmem:[%s16166_s14 + $0x98] sm:$0xff] }
 0x642   : > { %11402 = vmatpush3.msra.mxu0 %v13225_v58  ;;  %11435 = vmatpush3.msra.mxu1 %v13226_v0  ;;  %v13268_v58 = vld [vmem:[%s16166_s14 + $0x1a0] sm:$0xff]  ;;  %v13269_v0 = vld [vmem:[%s16166_s14 + $0x18] sm:$0xff] }
 0x643   : > { %11403 = vmatprep.subr.mxu0 %v13227_v1  ;;  %11436 = vmatprep.subr.mxu1 %v13228_v30  ;;  %v13270_v1 = vld [vmem:[%s16166_s14 + $0x120] sm:$0xff]  ;;  %v13271_v30 = vld [vmem:[%s16166_s14 + $0x90] sm:$0xff] }
 0x644   : > { %11404 = vmatpush3.msra.mxu0 %v13229_v3  ;;  %11437 = vmatpush3.msra.mxu1 %v13230_v4  ;;  %v13272_v3 = vld [vmem:[%s16166_s14 + $0x198] sm:$0xff]  ;;  %v13273_v4 = vld [vmem:[%s16166_s14 + $0x10] sm:$0xff] }
 0x645   : > { %11405 = vmatprep.subr.mxu0 %v13231_v43  ;;  %11438 = vmatprep.subr.mxu1 %v13232_v8  ;;  %v13274_v43 = vld [vmem:[%s16166_s14 + $0x118] sm:$0xff]  ;;  %v13275_v8 = vld [vmem:[%s16166_s14 + $0x88] sm:$0xff] }
 0x646   : > { %11406 = vmatpush3.msra.mxu0 %v13233_v10  ;;  %11439 = vmatpush3.msra.mxu1 %v13234_v32  ;;  %v13276_v10 = vld [vmem:[%s16166_s14 + $0x190] sm:$0xff]  ;;  %v13277_v32 = vld [vmem:[%s16166_s14 + $0x8] sm:$0xff] }
 0x647   : > { %11407 = vmatprep.subr.mxu0 %v13235_v49  ;;  %11440 = vmatprep.subr.mxu1 %v13236_v44  ;;  %v13278_v49 = vld [vmem:[%s16166_s14 + $0x110] sm:$0xff]  ;;  %v13279_v44 = vld [vmem:[%s16166_s14 + $0x80] sm:$0xff] }
 0x648   : > { %11408 = vmatpush3.msra.mxu0 %v13237_v45  ;;  %11441 = vmatpush3.msra.mxu1 %v13238_v59  ;;  %v13280_v45 = vld [vmem:[%s16166_s14 + $0x188] sm:$0xff]  ;;  %v13281_v59 = vld [vmem:[%s16166_s14] sm:$0xff] }
 0x649   : > { %11409 = vmatprep.subr.mxu0 %v13239_v11  ;;  %11442 = vmatprep.subr.mxu1 %v13240_v13  ;;  %v13282_v11 = vld [vmem:[%s16166_s14 + $0x108] sm:$0xff]  ;;  %v13283_v13 = vld [vmem:[%s16166_s14 + $0x180] sm:$0xff] }
 0x64a   : > { %11410 = vmatpush3.msra.mxu0 %v13241_v14  ;;  %11443 = vmatpush3.msra.mxu1 %v13242_v15  ;;  %v13284_v14 = vld [vmem:[#allocation17 + $0x8] sm:$0xff] }
 0x64b   : > { %11411 = vmatprep.subr.mxu0 %v13243_v16  ;;  %11444 = vmatprep.subr.mxu1 %v13244_v9  ;;  %v13285_v15 = vld [vmem:[%s16166_s14 + $0x100] sm:$0xff]  ;;  %v13286_v16 = vld [vmem:[#allocation17 + $0x18] sm:$0xff]  ;;  %v5093_v9 = vpop.f32.mrf.mxu0 }
 0x64c   : > { %11412 = vmatpush3.msra.mxu0 %v13245_v25  ;;  %11445 = vmatpush3.msra.mxu1 %v13246_v26  ;;  %v5136_v25 = vpop.f32.mrf.mxu1 }
 0x64d   : > { %11413 = vmatprep.subr.mxu0 %v13247_v27  ;;  %11446 = vmatprep.subr.mxu1 %v13248_v28  ;;  %v5095_v26 = vpop.f32.mrf.mxu0 }
 0x64e   : > { %11414 = vmatpush3.msra.mxu0 %v13249_v18  ;;  %11447 = vmatpush3.msra.mxu1 %v13250_v19  ;;  %v5138_v27 = vpop.f32.mrf.mxu1 }
 0x64f   : > { %11415 = vmatprep.subr.mxu0 %v13251_v20  ;;  %11448 = vmatprep.subr.mxu1 %v13252_v21  ;;  %v5097_v28 = vpop.f32.mrf.mxu0  ;;  %v4417_v21 = vsel %vm1730_vm0, 0.0, %v4397_v31 }
 0x650   : > { %11416 = vmatpush3.msra.mxu0 %v13253_v22  ;;  %11449 = vmatpush3.msra.mxu1 %v13254_v23  ;;  %v5140_v18 = vpop.f32.mrf.mxu1 }
 0x651   : > { %11417 = vmatprep.subr.mxu0 %v13255_v24  ;;  %11450 = vmatprep.subr.mxu1 %v13256_v50  ;;  %v5099_v19 = vpop.f32.mrf.mxu0  ;;  %v4418_v50 = vsel %vm1730_vm0, 0.0, %v4398_v29  ;;  %v4293_v29 = vadd.f32 %v15055_v48, %v15053_v39 }
 0x652   : > { %11418 = vmatpush3.msra.mxu0 %v13257_v54  ;;  %11451 = vmatpush3.msra.mxu1 %v13258_v62  ;;  %v5142_v20 = vpop.f32.mrf.mxu1 }
 0x653   : > { %11419 = vmatprep.subr.mxu0 %v13259_v34  ;;  %11452 = vmatprep.subr.mxu1 %v13260_v38 }
 0x654   : > { %11420 = vmatpush3.msra.mxu0 %v13261_v46  ;;  %11453 = vmatpush3.msra.mxu1 %v13262_v47 }
 0x655   : > { %11421 = vmatprep.subr.mxu0 %v13263_v52  ;;  %11454 = vmatprep.subr.mxu1 %v13264_v53 }
 0x656   : > { %11422 = vmatpush3.msra.mxu0 %v13265_v56  ;;  %11455 = vmatpush3.msra.mxu1 %v13266_v57 }
 0x657   : > { %11423 = vmatprep.subr.mxu0 %v13267_v61  ;;  %11456 = vmatprep.subr.mxu1 %v13268_v58  ;;  %v4295_v61 = vadd.f32 %v15059_v60, %v15057_v55  ;;  %v4297_v58 = vadd.f32 %v15063_v2, %v15061_v63 }
 0x658   : > { %11424 = vmatpush3.msra.mxu0 %v13269_v0  ;;  %11457 = vmatpush3.msra.mxu1 %v13270_v1  ;;  %v4395_v1 = vrot.slane %v4293_v29, 7 }
 0x659   : > { %11425 = vmatprep.subr.mxu0 %v13271_v30  ;;  %11458 = vmatprep.subr.mxu1 %v13272_v3  ;;  %v4396_v30 = vrot.slane %v4295_v61, 7  ;;  %v4399_v3 = vrot.slane %v4297_v58, 7 }
 0x65a   : > { %11426 = vmatpush3.msra.mxu0 %v13273_v4  ;;  %11459 = vmatpush3.msra.mxu1 %v13274_v43  ;;  %v4415_v39 = vsel %vm1730_vm0, 0.0, %v4395_v1 }
 0x65b   : > { %11427 = vmatprep.subr.mxu0 %v13275_v8  ;;  %11460 = vmatprep.subr.mxu1 %v13276_v10  ;;  %v4416_v48 = vsel %vm1730_vm0, 0.0, %v4396_v30  ;;  %v4400_v55 = vsel %vm1730_vm0, %v4395_v1, %v4399_v3  ;;  %v5094_v63 = vadd.f32 %v5093_v9, %v4415_v39 }
 0x65c   : > { %11428 = vmatpush3.msra.mxu0 %v13277_v32  ;;  %11461 = vmatpush3.msra.mxu1 %v13278_v49  ;;  %v5096_v2 = vadd.f32 %v5095_v26, %v4416_v48  ;;  %v5098_v32 = vadd.f32 %v5097_v28, %v4400_v55 }
 0x65d   : > { %11429 = vmatprep.subr.mxu0 %v13279_v44  ;;  %11462 = vmatprep.subr.mxu1 %v13280_v45  ;;  %v15183_v45 = vld [vmem:[#allocation12] sm:$0xf] }
 0x65e   : > { %11430 = vmatpush3.msra.mxu0 %v13281_v59  ;;  %11463 = vmatpush3.msra.mxu1 %v13282_v11  ;;  %v6216_v9 = vrot.slane %v15183_v45, %v14870_v36 }
 0x65f   : > { %11464 = vmatprep.subr.mxu1 %v13283_v13  ;;  %6493 = vmatprep.subr.mxu0 %v13284_v14 }
 0x660   : > { %11465 = vmatpush3.msra.mxu1 %v13285_v15 }
 0x661   : > { %6564 = vmatprep.subr.mxu1 %v13286_v16 }
 0x67f   : > { %v5179_v22 = vpop.f32.mrf.mxu0 }
 0x680   : > { %v5180_v23 = vadd.f32 %v5179_v22, %v4417_v21  ;;  %v5137_v21 = vadd.f32 %v5136_v25, %v5094_v63  ;;  %v5139_v22 = vadd.f32 %v5138_v27, %v5096_v2 }
 0x681   : > { %v5222_v24 = vpop.f32.mrf.mxu1  ;;  %v5181_v54 = vpop.f32.mrf.mxu0 }
 0x682   : > { %v15161_v62 = vadd.f32 %v5222_v24, %v5180_v23  ;;  %v5182_v34 = vadd.f32 %v5181_v54, %v4418_v50  ;;  %v5141_v23 = vadd.f32 %v5140_v18, %v5098_v32 }
 0x683   : > { %v5224_v38 = vpop.f32.mrf.mxu1  ;;  %v5183_v46 = vpop.f32.mrf.mxu0 }
 0x684   : > { %v15163_v47 = vadd.f32 %v5224_v38, %v5182_v34  ;;  %v5184_v52 = vadd.f32 %v5183_v46, %v15082_v33  ;;  %v4299_v33 = vadd.f32 %v15067_v40, %v15065_v6 }
 0x685   : > { %v5226_v12 = vpop.f32.mrf.mxu1  ;;  %v5185_v53 = vpop.f32.mrf.mxu0 }
 0x686   : > { %v15166_v31 = vadd.f32 %v5226_v12, %v5184_v52  ;;  %v5186_v56 = vadd.f32 %v5185_v53, %v15087_v35  ;;  %v4401_v43 = vrot.slane %v4299_v33, 7 }
 0x687   : > { %v5228_v57 = vpop.f32.mrf.mxu1 }
 0x688   : > { %v15169_v17 = vadd.f32 %v5228_v57, %v5186_v56  ;;  %v4402_v49 = vsel %vm1730_vm0, %v4396_v30, %v4401_v43 }
 0x689   : > { %v5100_v11 = vadd.f32 %v5099_v19, %v4402_v49  ;;  %v6220_v19 = vrot.slane %v15183_v45, %v14874_v41 }
 0x68b   : > { %v5143_v54 = vadd.f32 %v5142_v20, %v5100_v11 }
 0x6bf   : > { %v6034_v0 = vpop.f32.mrf.mxu0 }
 0x6c1   : > { %v6077_v35 = vpop.f32.mrf.mxu1  ;;  %v6036_v4 = vpop.f32.mrf.mxu0 }
 0x6c2   : > { %v6078_v60 = vadd.f32 %v6077_v35, %v6034_v0 }
 0x6c3   : > { %v6079_v8 = vpop.f32.mrf.mxu1  ;;  %v6038_v10 = vpop.f32.mrf.mxu0 }
 0x6c4   : > { %v6080_v44 = vadd.f32 %v6079_v8, %v6036_v4  ;;  %v6180_v14 = vrot.slane %v6078_v60, 1 }
 0x6c5   : > { %v6081_v6 = vpop.f32.mrf.mxu1  ;;  %v6040_v40 = vpop.f32.mrf.mxu0 }
 0x6c6   : > { %v6082_v59 = vadd.f32 %v6081_v6, %v6038_v10  ;;  %v6183_v26 = vrot.slane %v6080_v44, 1 }
 0x6c7   : > { %v6083_v13 = vpop.f32.mrf.mxu1 }
 0x6c8   : > { %v6181_v15 = vrot.slane %v6082_v59, 1  ;;  %v6084_v16 = vadd.f32 %v6083_v13, %v6040_v40 }
 0x6ca   : > { %v6182_v28 = vsel %vm2640_vm1, %v6180_v14, %v6181_v15  ;;  %v6200_v24 = vsel %vm2640_vm1, %v6181_v15, 0.0  ;;  %v6184_v50 = vrot.slane %v6084_v16, 1 }
 0x6cb   : > { %v6204_v34 = vadd.f32 %v6182_v28, %v5137_v21  ;;  %v6208_v38 = vadd.f32 %v6200_v24, %v5141_v23  ;;  %v13287_v23 = vld [vmem:[#allocation17] sm:$0xff] }
 0x6cc   : > { %v6185_v46 = vsel %vm2640_vm1, %v6183_v26, %v6184_v50  ;;  %v6201_v25 = vsel %vm2640_vm1, %v6184_v50, 0.0 }
 0x6cd   : > { %v15193_v27 = vadd.f32 %v6216_v9, %v6204_v34  ;;  %v15195_v18 = vadd.f32 %v6216_v9, %v6208_v38  ;;  %v6205_v52 = vadd.f32 %v6185_v46, %v5139_v22  ;;  %v6209_v12 = vadd.f32 %v6201_v25, %v5143_v54 }
 0x6cf   : > { %v6243_v53 = vadd.f32 %v15195_v18, %v15193_v27  ;;  %v6271_v20 = vmul.f32 %v15193_v27, %v15193_v27  ;;  %v6275_v56 = vmul.f32 %v15195_v18, %v15195_v18  ;;  %v15203_v57 = vadd.f32 %v6220_v19, %v6205_v52 }
 0x6d0   : > { %v15205_v29 = vadd.f32 %v6220_v19, %v6209_v12 }
 0x6d1   : > { %v6244_v61 = vrot.slane %v6243_v53, 4  ;;  %v6279_v58 = vadd.f32 %v6275_v56, %v6271_v20  ;;  %v6272_v33 = vmul.f32 %v15203_v57, %v15203_v57  ;;  %v6224_v20 = vrot.slane %v15183_v45, %v14872_v37 }
 0x6d2   : > { %v6250_v0 = vadd.f32 %v15205_v29, %v15203_v57  ;;  %v6276_v1 = vmul.f32 %v15205_v29, %v15205_v29 }
 0x6d3   : > { %v6245_v30 = vadd.f32 %v6244_v61, %v6243_v53  ;;  %v6280_v3 = vrot.slane %v6279_v58, 4 }
 0x6d4   : > { %v6251_v35 = vrot.slane %v6250_v0, 4  ;;  %v6286_v4 = vadd.f32 %v6276_v1, %v6272_v33 }
 0x6d5   : > { %v6246_v43 = vrot.slane %v6245_v30, 2  ;;  %v6281_v8 = vadd.f32 %v6280_v3, %v6279_v58 }
 0x6d6   : > { %v6252_v10 = vadd.f32 %v6251_v35, %v6250_v0  ;;  %v6287_v39 = vrot.slane %v6286_v4, 4 }
 0x6d7   : > { %v6282_v48 = vrot.slane %v6281_v8, 2  ;;  %v6247_v63 = vadd.f32 %v6246_v43, %v6245_v30  ;;  %v6228_v30 = vrot.slane %v15183_v45, %v14876_v42 }
 0x6d8   : > { %v6253_v55 = vrot.slane %v6252_v10, 2  ;;  %v6288_v60 = vadd.f32 %v6287_v39, %v6286_v4 }
 0x6d9   : > { %v6283_v2 = vadd.f32 %v6282_v48, %v6281_v8  ;;  %v6248_v59 = vrot.slane %v6247_v63, 1 }
 0x6da   : > { %v6254_v32 = vadd.f32 %v6253_v55, %v6252_v10  ;;  %v6289_v6 = vrot.slane %v6288_v60, 2 }
 0x6db   : > { %v6284_v40 = vrot.slane %v6283_v2, 1  ;;  %v6249_v16 = vadd.f32 %v6248_v59, %v6247_v63 }
 0x6dc   : > { %v6255_v49 = vrot.slane %v6254_v32, 1  ;;  %v6290_v44 = vadd.f32 %v6289_v6, %v6288_v60 }
 0x6dd   : > { %v6285_v13 = vadd.f32 %v6284_v40, %v6283_v2 }
 0x6de   : > { %v6291_v11 = vrot.slane %v6290_v44, 1  ;;  %v6256_v14 = vadd.f32 %v6255_v49, %v6254_v32 }
 0x6df   : > { %v6307_v22 = vsel %vm1730_vm0, %v6249_v16, %v6285_v13 }
 0x6e0   : > { %v6292_v15 = vadd.f32 %v6291_v11, %v6290_v44 }
 0x6e2   : > { %v6308_v21 = vsel %vm1730_vm0, %v6256_v14, %v6292_v15 }
 0x6e3   : > { %6375 = vmatprep.mubr.f32.mxu0 %v6308_v21 }
 0x6e4   : > { %6376 = vmatmul.mubr.f32.vlgmr.msra.gmra.mxu0 %v6307_v22 }
 0x6e5   : > { %6494 = vmatpush1.msra.mxu0 %v13287_v23  ;;  %6527 = vmatprep.mubr.f32.mxu0 %v14145_v5 }
 0x6ff   : > { %v6120_v9 = vpop.f32.mrf.mxu0 }
 0x701   : > { %v6163_v26 = vpop.f32.mrf.mxu1  ;;  %v6122_v28 = vpop.f32.mrf.mxu0 }
 0x702   : > { %v6164_v54 = vadd.f32 %v6163_v26, %v6120_v9 }
 0x703   : > { %v6165_v24 = vpop.f32.mrf.mxu1  ;;  %v6124_v50 = vpop.f32.mrf.mxu0 }
 0x704   : > { %v6166_v19 = vadd.f32 %v6165_v24, %v6122_v28  ;;  %v6186_v52 = vrot.slane %v6164_v54, 1 }
 0x705   : > { %v6167_v34 = vpop.f32.mrf.mxu1  ;;  %v6126_v38 = vpop.f32.mrf.mxu0 }
 0x706   : > { %v6168_v46 = vadd.f32 %v6167_v34, %v6124_v50  ;;  %v6189_v56 = vrot.slane %v6166_v19, 1 }
 0x707   : > { %v6169_v25 = vpop.f32.mrf.mxu1 }
 0x708   : > { %v6187_v12 = vrot.slane %v6168_v46, 1  ;;  %v6170_v53 = vadd.f32 %v6169_v25, %v6126_v38 }
 0x70a   : > { %v6188_v61 = vsel %vm2640_vm1, %v6186_v52, %v6187_v12  ;;  %v6202_v58 = vsel %vm2640_vm1, %v6187_v12, 0.0  ;;  %v6190_v33 = vrot.slane %v6170_v53, 1  ;;  %v13288_v52 = vld [vmem:[#allocation17 + $0x10] sm:$0xff]  ;;  %v6770_v12 = vld [vmem:[%s16167_s18 + $0xf8] sm:$0xff] }
 0x70b   : > { %v6206_v0 = vadd.f32 %v6188_v61, %v15161_v62  ;;  %v6210_v1 = vadd.f32 %v6202_v58, %v15166_v31  ;;  %v6802_v53 = vld [vmem:[%s16167_s18 + $0x1f8] sm:$0xff]  ;;  %11469 = vmatprep.subr.mxu0 %v6770_v12 }
 0x70c   : > { %v6191_v3 = vsel %vm2640_vm1, %v6189_v56, %v6190_v33  ;;  %v6203_v35 = vsel %vm2640_vm1, %v6190_v33, 0.0  ;;  %v6778_v12 = vld [vmem:[%s16167_s18 + $0x138] sm:$0xff] }
 0x70d   : > { %v15226_v4 = vadd.f32 %v6224_v20, %v6206_v0  ;;  %v15228_v43 = vadd.f32 %v6224_v20, %v6210_v1  ;;  %v6207_v8 = vadd.f32 %v6191_v3, %v15163_v47  ;;  %v6211_v10 = vadd.f32 %v6203_v35, %v15169_v17 }
 0x70f   : > { %v6257_v62 = vadd.f32 %v15228_v43, %v15226_v4  ;;  %v6273_v31 = vmul.f32 %v15226_v4, %v15226_v4  ;;  %v6277_v45 = vmul.f32 %v15228_v43, %v15228_v43  ;;  %v15238_v39 = vadd.f32 %v6228_v30, %v6207_v8 }
 0x710   : > { %v15240_v48 = vadd.f32 %v6228_v30, %v6211_v10 }
 0x711   : > { %v6258_v55 = vrot.slane %v6257_v62, 4  ;;  %v6293_v60 = vadd.f32 %v6277_v45, %v6273_v31  ;;  %v6274_v47 = vmul.f32 %v15238_v39, %v15238_v39  ;;  %v6754_v31 = vld [vmem:[%s16167_s18 + $0x78] sm:$0xff] }
 0x712   : > { %v6264_v17 = vadd.f32 %v15240_v48, %v15238_v39  ;;  %v6278_v63 = vmul.f32 %v15240_v48, %v15240_v48  ;;  %v6786_v45 = vld [vmem:[%s16167_s18 + $0x178] sm:$0xff] }
 0x713   : > { %v6259_v2 = vadd.f32 %v6258_v55, %v6257_v62  ;;  %v6294_v32 = vrot.slane %v6293_v60, 4 }
 0x714   : > { %v6265_v6 = vrot.slane %v6264_v17, 4  ;;  %v6300_v40 = vadd.f32 %v6278_v63, %v6274_v47  ;;  %v6801_v47 = vld [vmem:[%s16167_s18 + $0x1f0] sm:$0xff] }
 0x715   : > { %v6260_v49 = vrot.slane %v6259_v2, 2  ;;  %v6295_v44 = vadd.f32 %v6294_v32, %v6293_v60  ;;  %v6769_v60 = vld [vmem:[%s16167_s18 + $0xf0] sm:$0xff]  ;;  %v6800_v32 = vld [vmem:[%s16167_s18 + $0x1e8] sm:$0xff] }
 0x716   : > { %v6266_v59 = vadd.f32 %v6265_v6, %v6264_v17  ;;  %v6301_v11 = vrot.slane %v6300_v40, 4  ;;  %v6753_v17 = vld [vmem:[%s16167_s18 + $0x70] sm:$0xff]  ;;  %v6752_v6 = vld [vmem:[%s16167_s18 + $0x68] sm:$0xff] }
 0x717   : > { %v6296_v13 = vrot.slane %v6295_v44, 2  ;;  %v6261_v16 = vadd.f32 %v6260_v49, %v6259_v2  ;;  %v6785_v63 = vld [vmem:[%s16167_s18 + $0x170] sm:$0xff]  ;;  %v6768_v2 = vld [vmem:[%s16167_s18 + $0xe8] sm:$0xff]  ;;  %v6767_v49 = vld [vmem:[%s16167_s18 + $0xe0] sm:$0xff] }
 0x718   : > { %v6267_v14 = vrot.slane %v6266_v59, 2  ;;  %v6302_v15 = vadd.f32 %v6301_v11, %v6300_v40  ;;  %v6784_v40 = vld [vmem:[%s16167_s18 + $0x168] sm:$0xff]  ;;  %v6783_v11 = vld [vmem:[%s16167_s18 + $0x160] sm:$0xff] }
 0x719   : > { %v6297_v21 = vadd.f32 %v6296_v13, %v6295_v44  ;;  %v6262_v24 = vrot.slane %v6261_v16, 1  ;;  %v6799_v44 = vld [vmem:[%s16167_s18 + $0x1e0] sm:$0xff]  ;;  %v6766_v13 = vld [vmem:[%s16167_s18 + $0xd8] sm:$0xff] }
 0x71a   : > { %v6268_v22 = vadd.f32 %v6267_v14, %v6266_v59  ;;  %v6303_v23 = vrot.slane %v6302_v15, 2  ;;  %v6751_v59 = vld [vmem:[%s16167_s18 + $0x60] sm:$0xff]  ;;  %v6798_v14 = vld [vmem:[%s16167_s18 + $0x1d8] sm:$0xff] }
 0x71b   : > { %v6298_v9 = vrot.slane %v6297_v21, 1  ;;  %v6263_v19 = vadd.f32 %v6262_v24, %v6261_v16  ;;  %v6782_v16 = vld [vmem:[%s16167_s18 + $0x158] sm:$0xff]  ;;  %v6748_v24 = vld [vmem:[%s16167_s18 + $0x48] sm:$0xff] }
 0x71c   : > { %v6269_v26 = vrot.slane %v6268_v22, 1  ;;  %v6304_v28 = vadd.f32 %v6303_v23, %v6302_v15  ;;  %v6750_v15 = vld [vmem:[%s16167_s18 + $0x58] sm:$0xff]  ;;  %v6749_v23 = vld [vmem:[%s16167_s18 + $0x50] sm:$0xff] }
 0x71d   : > { %v6299_v54 = vadd.f32 %v6298_v9, %v6297_v21  ;;  %v6765_v21 = vld [vmem:[%s16167_s18 + $0xd0] sm:$0xff] }
 0x71e   : > { %v6305_v50 = vrot.slane %v6304_v28, 1  ;;  %v6270_v34 = vadd.f32 %v6269_v26, %v6268_v22  ;;  %v6797_v22 = vld [vmem:[%s16167_s18 + $0x1d0] sm:$0xff]  ;;  %v6764_v26 = vld [vmem:[%s16167_s18 + $0xc8] sm:$0xff] }
 0x71f   : > { %v6309_v25 = vsel %vm1730_vm0, %v6263_v19, %v6299_v54  ;;  %v6781_v9 = vld [vmem:[%s16167_s18 + $0x150] sm:$0xff]  ;;  %v6763_v54 = vld [vmem:[%s16167_s18 + $0xc0] sm:$0xff] }
 0x720   : > { %v6306_v38 = vadd.f32 %v6305_v50, %v6304_v28  ;;  %v6796_v28 = vld [vmem:[%s16167_s18 + $0x1c8] sm:$0xff]  ;;  %v6779_v19 = vld [vmem:[%s16167_s18 + $0x140] sm:$0xff] }
 0x721   : > { %v6780_v50 = vld [vmem:[%s16167_s18 + $0x148] sm:$0xff] }
 0x722   : > { %v6310_v46 = vsel %vm1730_vm0, %v6270_v34, %v6306_v38  ;;  %v6795_v34 = vld [vmem:[%s16167_s18 + $0x1c0] sm:$0xff] }
 0x723   : > { %6445 = vmatprep.mubr.f32.mxu1 %v6310_v46  ;;  %v6747_v38 = vld [vmem:[%s16167_s18 + $0x40] sm:$0xff]  ;;  %v6762_v46 = vld [vmem:[%s16167_s18 + $0xb8] sm:$0xff] }
 0x724   : > { %6446 = vmatmul.mubr.f32.vlgmr.msra.gmra.mxu1 %v6309_v25  ;;  %v6794_v25 = vld [vmem:[%s16167_s18 + $0x1b8] sm:$0xff] }
 0x725   : > { %6565 = vmatpush1.msra.mxu1 %v13288_v52  ;;  %6598 = vmatprep.mubr.f32.mxu1 %v14145_v5  ;;  %v6746_v52 = vld [vmem:[%s16167_s18 + $0x38] sm:$0xff] }
 0x726   : > { %11504 = vmatprep.subr.mxu1 %v6802_v53  ;;  %v6761_v53 = vld [vmem:[%s16167_s18 + $0xb0] sm:$0xff] }
 0x7a4   : > { %v11431_v20 = vpop.f32.mrf.mxu0 }
 0x7a6   : > { %v11432_v56 = vpop.f32.mrf.mxu0 }
 0x7a7   : > { %v11433_v33 = vadd.f32 %v11432_v56, %v11431_v20  ;;  %v6793_v20 = vld [vmem:[%s16167_s18 + $0x1b0] sm:$0xff] }
 0x7a8   : > { %v6745_v56 = vld [vmem:[%s16167_s18 + $0x30] sm:$0xff] }
 0x7e4   : > { %v11466_v61 = vpop.f32.mrf.mxu1 }
 0x7e6   : > { %v11467_v58 = vpop.f32.mrf.mxu1 }
 0x7e7   : > { %v11468_v0 = vadd.f32 %v11467_v58, %v11466_v61  ;;  %v6777_v61 = vld [vmem:[%s16167_s18 + $0x130] sm:$0xff]  ;;  %v6760_v58 = vld [vmem:[%s16167_s18 + $0xa8] sm:$0xff] }
 0x7e9   : > { %v6448_v1 = vadd.f32 %v11468_v0, %v11433_v33  ;;  %v6792_v33 = vld [vmem:[%s16167_s18 + $0x1a8] sm:$0xff] }
 0x7ea   : > { %v6744_v0 = vld [vmem:[%s16167_s18 + $0x28] sm:$0xff] }
 0x7eb   : > { %v6451_v30 = vmul.f32 %v6448_v1, %v6448_v1 }
 0x7ed   : > { %v6453_v3 = vrot.slane %v6451_v30, 7  ;;  %v6759_v30 = vld [vmem:[%s16167_s18 + $0xa0] sm:$0xff] }
 0x7ef   : > { %v6455_v35 = vsub.f32 %v6448_v1, %v6453_v3  ;;  %v6791_v3 = vld [vmem:[%s16167_s18 + $0x1a0] sm:$0xff] }
 0x7f1   : > { %v6456_v8 = vmax.f32 %v6455_v35, 0.0  ;;  %v6743_v35 = vld [vmem:[%s16167_s18 + $0x20] sm:$0xff] }
 0x7f3   : > { %v6457_v10 = vadd.f32 1e-05, %v6456_v8  ;;  %v6775_v8 = vld [vmem:[%s16167_s18 + $0x120] sm:$0xff] }
 0x7f5   : > { %13185 = vrsqrt.f32 %v6457_v10  ;;  %v6758_v10 = vld [vmem:[%s16167_s18 + $0x98] sm:$0xff] }
 0x802   : > { %v13186_v62 = vpop.eup %13185 }
 0x803   : > { %v6459_v55 = vsel %vm1730_vm0, %v6448_v1, %v13186_v62  ;;  %v6776_v1 = vld [vmem:[%s16167_s18 + $0x128] sm:$0xff]  ;;  %v6790_v62 = vld [vmem:[%s16167_s18 + $0x198] sm:$0xff] }
 0x804   : > { %11196 = vmatmul.mubr.msk.f32.vlgmr.msra.gmra.mxu0 %vm2989_vm2, %v6459_v55  ;;  %11197 = vmatmul.mubr.msk.f32.vlgmr.msra.gmra.mxu1 %vm2989_vm2, %v6459_v55  ;;  %v6757_v55 = vld [vmem:[%s16167_s18 + $0x90] sm:$0xff] }
 0x805   : > { %11470 = vmatpush3.msra.mxu0 %v6754_v31  ;;  %11505 = vmatpush3.msra.mxu1 %v6786_v45  ;;  %v6742_v31 = vld [vmem:[%s16167_s18 + $0x18] sm:$0xff] }
 0x806   : > { %11471 = vmatprep.subr.mxu0 %v6769_v60  ;;  %11506 = vmatprep.subr.mxu1 %v6801_v47  ;;  %v6774_v45 = vld [vmem:[%s16167_s18 + $0x118] sm:$0xff]  ;;  %v6789_v60 = vld [vmem:[%s16167_s18 + $0x190] sm:$0xff] }
 0x807   : > { %11472 = vmatpush3.msra.mxu0 %v6753_v17  ;;  %11507 = vmatpush3.msra.mxu1 %v6785_v63  ;;  %v6741_v47 = vld [vmem:[%s16167_s18 + $0x10] sm:$0xff]  ;;  %v6756_v63 = vld [vmem:[%s16167_s18 + $0x88] sm:$0xff] }
 0x808   : > { %11473 = vmatprep.subr.mxu0 %v6768_v2  ;;  %11508 = vmatprep.subr.mxu1 %v6800_v32  ;;  %v6773_v17 = vld [vmem:[%s16167_s18 + $0x110] sm:$0xff]  ;;  %v6788_v2 = vld [vmem:[%s16167_s18 + $0x188] sm:$0xff] }
 0x809   : > { %11474 = vmatpush3.msra.mxu0 %v6752_v6  ;;  %11509 = vmatpush3.msra.mxu1 %v6784_v40  ;;  %v6740_v32 = vld [vmem:[%s16167_s18 + $0x8] sm:$0xff]  ;;  %v6755_v40 = vld [vmem:[%s16167_s18 + $0x80] sm:$0xff] }
 0x80a   : > { %11475 = vmatprep.subr.mxu0 %v6767_v49  ;;  %11510 = vmatprep.subr.mxu1 %v6799_v44  ;;  %v6772_v6 = vld [vmem:[%s16167_s18 + $0x108] sm:$0xff]  ;;  %v6787_v49 = vld [vmem:[%s16167_s18 + $0x180] sm:$0xff] }
 0x80b   : > { %11476 = vmatpush3.msra.mxu0 %v6751_v59  ;;  %11511 = vmatpush3.msra.mxu1 %v6783_v11  ;;  %v6739_v44 = vld [vmem:[%s16167_s18] sm:$0xff]  ;;  %v6241_v11 = vld [vmem:[#allocation14] sm:$0xf] }
 0x80c   : > { %11477 = vmatprep.subr.mxu0 %v6766_v13  ;;  %11512 = vmatprep.subr.mxu1 %v6798_v14  ;;  %v6771_v59 = vld [vmem:[%s16167_s18 + $0x100] sm:$0xff]  ;;  %v6242_v13 = vld [vmem:[#allocation15] sm:$0xf] }
 0x80d   : > { %11478 = vmatpush3.msra.mxu0 %v6750_v15  ;;  %11513 = vmatpush3.msra.mxu1 %v6782_v16  ;;  %v6657_v15 = vrot.slane %v6241_v11, %v14870_v36  ;;  %v6686_v16 = vrot.slane %v6242_v13, %v14870_v36 }
 0x80e   : > { %11479 = vmatprep.subr.mxu0 %v6765_v21  ;;  %11514 = vmatprep.subr.mxu1 %v6797_v22  ;;  %v6665_v22 = vrot.slane %v6241_v11, %v14872_v37 }
 0x80f   : > { %11480 = vmatpush3.msra.mxu0 %v6749_v23  ;;  %11515 = vmatpush3.msra.mxu1 %v6781_v9  ;;  %v6694_v23 = vrot.slane %v6242_v13, %v14872_v37 }
 0x810   : > { %11481 = vmatprep.subr.mxu0 %v6764_v26  ;;  %11516 = vmatprep.subr.mxu1 %v6796_v28  ;;  %v6661_v28 = vrot.slane %v6241_v11, %v14874_v41 }
 0x811   : > { %11482 = vmatpush3.msra.mxu0 %v6748_v24  ;;  %11517 = vmatpush3.msra.mxu1 %v6780_v50  ;;  %v6669_v24 = vrot.slane %v6241_v11, %v14876_v42 }
 0x812   : > { %11483 = vmatprep.subr.mxu0 %v6763_v54  ;;  %11518 = vmatprep.subr.mxu1 %v6795_v34 }
 0x813   : > { %11484 = vmatpush3.msra.mxu0 %v6747_v38  ;;  %11519 = vmatpush3.msra.mxu1 %v6779_v19  ;;  %v6690_v38 = vrot.slane %v6242_v13, %v14874_v41 }
 0x814   : > { %11485 = vmatprep.subr.mxu0 %v6762_v46  ;;  %11520 = vmatprep.subr.mxu1 %v6794_v25  ;;  %v6698_v46 = vrot.slane %v6242_v13, %v14876_v42 }
 0x815   : > { %11486 = vmatpush3.msra.mxu0 %v6746_v52  ;;  %11521 = vmatpush3.msra.mxu1 %v6778_v12 }
 0x816   : > { %11487 = vmatprep.subr.mxu0 %v6761_v53  ;;  %11522 = vmatprep.subr.mxu1 %v6793_v20 }
 0x817   : > { %11488 = vmatpush3.msra.mxu0 %v6745_v56  ;;  %11523 = vmatpush3.msra.mxu1 %v6777_v61 }
 0x818   : > { %11489 = vmatprep.subr.mxu0 %v6760_v58  ;;  %11524 = vmatprep.subr.mxu1 %v6792_v33 }
 0x819   : > { %11490 = vmatpush3.msra.mxu0 %v6744_v0  ;;  %11525 = vmatpush3.msra.mxu1 %v6776_v1 }
 0x81a   : > { %11491 = vmatprep.subr.mxu0 %v6759_v30  ;;  %11526 = vmatprep.subr.mxu1 %v6791_v3 }
 0x81b   : > { %11492 = vmatpush3.msra.mxu0 %v6743_v35  ;;  %11527 = vmatpush3.msra.mxu1 %v6775_v8 }
 0x81c   : > { %11493 = vmatprep.subr.mxu0 %v6758_v10  ;;  %11528 = vmatprep.subr.mxu1 %v6790_v62 }
 0x81d   : > { %11494 = vmatpush3.msra.mxu0 %v6742_v31  ;;  %11529 = vmatpush3.msra.mxu1 %v6774_v45 }
 0x81e   : > { %11495 = vmatprep.subr.mxu0 %v6757_v55  ;;  %11530 = vmatprep.subr.mxu1 %v6789_v60 }
 0x81f   : > { %11496 = vmatpush3.msra.mxu0 %v6741_v47  ;;  %11531 = vmatpush3.msra.mxu1 %v6773_v17 }
 0x820   : > { %11497 = vmatprep.subr.mxu0 %v6756_v63  ;;  %11532 = vmatprep.subr.mxu1 %v6788_v2 }
 0x821   : > { %11498 = vmatpush3.msra.mxu0 %v6740_v32  ;;  %11533 = vmatpush3.msra.mxu1 %v6772_v6 }
 0x822   : > { %11499 = vmatprep.subr.mxu0 %v6755_v40  ;;  %11534 = vmatprep.subr.mxu1 %v6787_v49 }
 0x823   : > { %11500 = vmatpush3.msra.mxu0 %v6739_v44  ;;  %11535 = vmatpush3.msra.mxu1 %v6771_v59 }
 0x824   : > { %11811 = vmatprep.subr.mxu0 %v14145_v5  ;;  %11822 = vmatprep.subr.mxu1 %v14145_v5 }
 0x8c4   : > { %v6529_v14 = vpop.f32.mrf.mxu0  ;;  %v6600_v21 = vpop.f32.mrf.mxu1 }
 0x8c5   : > { %v6608_v9 = vrot.slane %v6529_v14, %v14870_v36  ;;  %v6616_v26 = vrot.slane %v6600_v21, %v14870_v36  ;;  %v6632_v50 = vrot.slane %v6529_v14, %v14874_v41  ;;  %v6640_v54 = vrot.slane %v6600_v21, %v14874_v41 }
 0x8c6   : > { %v6531_v34 = vpop.f32.mrf.mxu0  ;;  %v6602_v19 = vpop.f32.mrf.mxu1 }
 0x8c7   : > { %v6621_v25 = vsub.f32 %v15193_v27, %v6608_v9  ;;  %v6625_v52 = vsub.f32 %v15195_v18, %v6608_v9  ;;  %v6623_v12 = vsub.f32 %v15226_v4, %v6616_v26  ;;  %v6627_v53 = vsub.f32 %v15228_v43, %v6616_v26 }
 0x8c8   : > { %v6612_v20 = vrot.slane %v6531_v34, %v14870_v36  ;;  %v6636_v56 = vrot.slane %v6531_v34, %v14874_v41  ;;  %v6620_v61 = vrot.slane %v6602_v19, %v14870_v36  ;;  %v6644_v58 = vrot.slane %v6602_v19, %v14874_v41 }
 0x8c9   : > { %v6645_v33 = vmul.f32 %v6632_v50, %v6621_v25  ;;  %v6649_v0 = vmul.f32 %v6632_v50, %v6625_v52  ;;  %v6647_v1 = vmul.f32 %v6640_v54, %v6623_v12  ;;  %v6651_v30 = vmul.f32 %v6640_v54, %v6627_v53 }
 0x8ca   : > { %v6622_v27 = vsub.f32 %v15203_v57, %v6612_v20  ;;  %v6626_v18 = vsub.f32 %v15205_v29, %v6612_v20  ;;  %v6624_v4 = vsub.f32 %v15238_v39, %v6620_v61  ;;  %v6628_v43 = vsub.f32 %v15240_v48, %v6620_v61 }
 0x8cb   : > { %v6674_v3 = vmul.f32 %v6657_v15, %v6645_v33  ;;  %v6678_v35 = vmul.f32 %v6657_v15, %v6649_v0  ;;  %v6676_v8 = vmul.f32 %v6665_v22, %v6647_v1  ;;  %v6680_v10 = vmul.f32 %v6665_v22, %v6651_v30 }
 0x8cc   : > { %v6646_v62 = vmul.f32 %v6636_v56, %v6622_v27  ;;  %v6650_v31 = vmul.f32 %v6636_v56, %v6626_v18  ;;  %v6648_v45 = vmul.f32 %v6644_v58, %v6624_v4  ;;  %v6652_v55 = vmul.f32 %v6644_v58, %v6628_v43 }
 0x8cd   : > { %v15344_v60 = vadd.f32 %v6686_v16, %v6674_v3  ;;  %v15346_v47 = vadd.f32 %v6686_v16, %v6678_v35  ;;  %v15348_v17 = vadd.f32 %v6694_v23, %v6676_v8  ;;  %v15350_v57 = vadd.f32 %v6694_v23, %v6680_v10 }
 0x8ce   : > { %v6675_v29 = vmul.f32 %v6661_v28, %v6646_v62  ;;  %v6679_v39 = vmul.f32 %v6661_v28, %v6650_v31  ;;  %v6677_v63 = vmul.f32 %v6669_v24, %v6648_v45  ;;  %v6681_v48 = vmul.f32 %v6669_v24, %v6652_v55 }
 0x8cf   : > { %v6711_v2 = vadd.f32 %v15346_v47, %v15344_v60  ;;  %v6943_v32 = vmax.f32 %v15344_v60, %v15346_v47  ;;  %v6725_v6 = vadd.f32 %v15350_v57, %v15348_v17  ;;  %v6957_v40 = vmax.f32 %v15348_v17, %v15350_v57 }
 0x8d0   : > { %v15360_v49 = vadd.f32 %v6690_v38, %v6675_v29  ;;  %v15362_v44 = vadd.f32 %v6690_v38, %v6679_v39  ;;  %v15364_v59 = vadd.f32 %v6698_v46, %v6677_v63  ;;  %v15366_v11 = vadd.f32 %v6698_v46, %v6681_v48 }
 0x8d1   : > { %v6944_v13 = vrot.slane %v6943_v32, 4  ;;  %v6712_v14 = vrot.slane %v6711_v2, 4  ;;  %v6726_v15 = vrot.slane %v6725_v6, 4  ;;  %v6958_v28 = vrot.slane %v6957_v40, 4 }
 0x8d2   : > { %v6950_v16 = vmax.f32 %v15360_v49, %v15362_v44  ;;  %v6718_v21 = vadd.f32 %v15362_v44, %v15360_v49  ;;  %v6732_v22 = vadd.f32 %v15366_v11, %v15364_v59  ;;  %v6964_v24 = vmax.f32 %v15364_v59, %v15366_v11 }
 0x8d3   : > { %v6945_v23 = vmax.f32 %v6943_v32, %v6944_v13  ;;  %v6713_v9 = vadd.f32 %v6712_v14, %v6711_v2  ;;  %v6727_v26 = vadd.f32 %v6726_v15, %v6725_v6  ;;  %v6959_v61 = vmax.f32 %v6957_v40, %v6958_v28 }
 0x8d4   : > { %v6719_v50 = vrot.slane %v6718_v21, 4  ;;  %v6733_v54 = vrot.slane %v6732_v22, 4  ;;  %v6951_v34 = vrot.slane %v6950_v16, 4  ;;  %v6965_v1 = vrot.slane %v6964_v24, 4 }
 0x8d5   : > { %v6946_v38 = vrot.slane %v6945_v23, 2  ;;  %v6714_v19 = vrot.slane %v6713_v9, 2  ;;  %v6728_v46 = vrot.slane %v6727_v26, 2  ;;  %v6960_v8 = vrot.slane %v6959_v61, 2 }
 0x8d6   : > { %v6720_v25 = vadd.f32 %v6719_v50, %v6718_v21  ;;  %v6734_v52 = vadd.f32 %v6733_v54, %v6732_v22  ;;  %v6952_v12 = vmax.f32 %v6950_v16, %v6951_v34  ;;  %v6966_v45 = vmax.f32 %v6964_v24, %v6965_v1  ;;  %v7033_v16 = vld [vmem:[%s16168_s17 + $0x18] sm:$0xff]  ;;  %v7032_v21 = vld [vmem:[%s16168_s17 + $0x10] sm:$0xff]  ;;  %v7031_v22 = vld [vmem:[%s16168_s17 + $0x8] sm:$0xff] }
 0x8d7   : > { %v6947_v53 = vmax.f32 %v6945_v23, %v6946_v38  ;;  %v6715_v20 = vadd.f32 %v6714_v19, %v6713_v9  ;;  %v6729_v56 = vadd.f32 %v6728_v46, %v6727_v26  ;;  %v6961_v2 = vmax.f32 %v6959_v61, %v6960_v8  ;;  %v7030_v23 = vld [vmem:[%s16168_s17] sm:$0xff] }
 0x8d8   : > { %v6721_v58 = vrot.slane %v6720_v25, 2  ;;  %v6735_v33 = vrot.slane %v6734_v52, 2  ;;  %v6953_v0 = vrot.slane %v6952_v12, 2  ;;  %v6967_v32 = vrot.slane %v6966_v45, 2 }
 0x8d9   : > { %v6948_v30 = vrot.slane %v6947_v53, 1  ;;  %v6716_v3 = vrot.slane %v6715_v20, 1  ;;  %v6730_v35 = vrot.slane %v6729_v56, 1  ;;  %v6962_v6 = vrot.slane %v6961_v2, 1 }
 0x8da   : > { %v6722_v27 = vadd.f32 %v6721_v58, %v6720_v25  ;;  %v6736_v18 = vadd.f32 %v6735_v33, %v6734_v52  ;;  %v6954_v4 = vmax.f32 %v6952_v12, %v6953_v0  ;;  %v6968_v40 = vmax.f32 %v6966_v45, %v6967_v32 }
 0x8db   : > { %v6949_v43 = vmax.f32 %v6947_v53, %v6948_v30  ;;  %v6717_v39 = vadd.f32 %v6716_v3, %v6715_v20  ;;  %v6731_v63 = vadd.f32 %v6730_v35, %v6729_v56  ;;  %v6963_v13 = vmax.f32 %v6961_v2, %v6962_v6 }
 0x8dc   : > { %v6723_v10 = vrot.slane %v6722_v27, 1  ;;  %v6737_v62 = vrot.slane %v6736_v18, 1  ;;  %v6955_v31 = vrot.slane %v6954_v4, 1  ;;  %v6969_v14 = vrot.slane %v6968_v40, 1 }
 0x8dd   : > { %6980 = vrot.lane.b32.xlu1 %v6949_v43, %s16092_s23  ;;  %6972 = vrot.lane.b32.xlu0 %v6949_v43, %s14147_s28 }
 0x8de   : > { %v6724_v55 = vadd.f32 %v6723_v10, %v6722_v27  ;;  %v6738_v29 = vadd.f32 %v6737_v62, %v6736_v18  ;;  %v6956_v48 = vmax.f32 %v6954_v4, %v6955_v31  ;;  %v6970_v15 = vmax.f32 %v6968_v40, %v6969_v14  ;;  %v7227_v14 = vld [vmem:[#allocation18 + $0x78] sm:$0xff] }
 0x8e0   : > { %6867 = vmatprep.mubr.f32.mxu0 %v6724_v55  ;;  %6937 = vmatprep.mubr.f32.mxu1 %v6738_v29 }
 0x8e1   : > { %6868 = vmatmul.mubr.f32.vlgmr.msra.gmra.mxu0 %v6717_v39  ;;  %6938 = vmatmul.mubr.f32.vlgmr.msra.gmra.mxu1 %v6731_v63  ;;  %v7116_v63 = vld [vmem:[#allocation23] sm:$0xf] }
 0x8e2   : > { %6976 = vrot.lane.b32.xlu0 %v6949_v43, %s14148_s15  ;;  %6986 = vrot.lane.b32.xlu1 %v6956_v48, %s14147_s28 }
 0x8e3   : > { %11812 = vmatpush3.msra.mxu0 %v7033_v16  ;;  %11819 = vmatprep.mubr.msk.f32.mxu0 %vm14149_vm3, %v14145_v5  ;;  %v7226_v16 = vld [vmem:[#allocation18 + $0x70] sm:$0xff] }
 0x8e4   : > { %11813 = vmatprep.subr.mxu0 %v14145_v5  ;;  %11824 = vmatprep.mubr.msk.f32.mxu1 %vm14149_vm3, %v14145_v5 }
 0x8e5   : > { %11814 = vmatpush3.msra.mxu0 %v7032_v21  ;;  %11823 = vmatpush3.msk.msra.mxu1 %vm7128_vm5, %v7116_v63  ;;  %v7221_v21 = vld [vmem:[#allocation18 + $0x48] sm:$0xff]  ;;  %v7456_v63 = vld [vmem:[%s16169_s12 + $0x1d8] sm:$0xff]  ;;  %vm7732_vm5 = vcmask 72704  }
 0x8e6   : > { %6990 = vrot.lane.b32.xlu0 %v6956_v48, %s14148_s15  ;;  %6994 = vrot.lane.b32.xlu1 %v6956_v48, %s16092_s23 }
 0x8e7   : > { %11815 = vmatprep.subr.mxu0 %v14145_v5 }
 0x8e8   : > { %11816 = vmatpush3.msra.mxu0 %v7031_v22  ;;  %v7223_v22 = vld [vmem:[#allocation18 + $0x58] sm:$0xff] }
 0x8e9   : > { %11817 = vmatprep.subr.mxu0 %v14145_v5 }
 0x8ea   : > { %7000 = vrot.lane.b32.xlu0 %v6963_v13, %s14147_s28  ;;  %7004 = vrot.lane.b32.xlu1 %v6963_v13, %s14148_s15 }
 0x8eb   : > { %11818 = vmatpush3.msra.mxu0 %v7030_v23  ;;  %v7220_v23 = vld [vmem:[#allocation18 + $0x40] sm:$0xff] }
 0x8ec   : > { %7326 = vmatprep.subr.mxu0 %v7227_v14  ;;  %v7422_v14 = vld [vmem:[%s16169_s12 + $0xc8] sm:$0xff] }
 0x8ee   : > { %7008 = vrot.lane.b32.xlu0 %v6963_v13, %s16092_s23  ;;  %7014 = vrot.lane.b32.xlu1 %v6970_v15, %s14147_s28  ;;  %s10489_s28 = sshll.u32 %s14544_s1, 6 }
 0x8f2   : > { %7018 = vrot.lane.b32.xlu0 %v6970_v15, %s14148_s15  ;;  %7022 = vrot.lane.b32.xlu1 %v6970_v15, %s16092_s23  ;;  %s1179_s15 = scalar_lea.vmem [#allocation36], %s10489_s28 }
 0x8f3   : > { %s10149_s23 = sshll.u32 %s1179_s15, 4  ;;  %s16035_s23 = int_to_ptr.vmem [resolvable:$true] %s10149_s23 }
 0x8f4   : > { %s13985_s3 = scalar_lea.vmem %s16035_s23, 1024 }
 0x8f5   : > { %p13986_p9 = scmp.ne.s32.totalorder %s16035_s23, %s13985_s3 }
 0x8f7   : > { %p13987_p5 = pnand %p13986_p9, %p16172_p10 }
 0x8f9   : > { %p13988_p11 = pneg %p13987_p5 }
 0x94f   : > { %v6973_v9 = vpop.permute.xlu0 %6972  ;;  %v6981_v50 = vpop.permute.xlu1 %6980 }
 0x950   : > { %v6975_v28 = vmax.f32 %v6949_v43, %v6973_v9  ;;  %v7222_v9 = vld [vmem:[#allocation18 + $0x50] sm:$0xff] }
 0x954   : > { %v6977_v26 = vpop.permute.xlu0 %6976  ;;  %v6987_v38 = vpop.permute.xlu1 %6986 }
 0x955   : > { %v6979_v24 = vmax.f32 %v6975_v28, %v6977_v26  ;;  %v7217_v26 = vld [vmem:[#allocation18 + $0x28] sm:$0xff]  ;;  %v7219_v28 = vld [vmem:[#allocation18 + $0x38] sm:$0xff] }
 0x957   : > { %v6983_v54 = vmax.f32 %v6979_v24, %v6981_v50  ;;  %v7216_v24 = vld [vmem:[#allocation18 + $0x20] sm:$0xff]  ;;  %v7218_v50 = vld [vmem:[#allocation18 + $0x30] sm:$0xff] }
 0x958   : > { %v6991_v46 = vpop.permute.xlu0 %6990  ;;  %v6995_v52 = vpop.permute.xlu1 %6994 }
 0x959   : > { %v6984_v34 = vmax.f32 %v6983_v54, %v6956_v48  ;;  %v11198_v48 = vld [vmem:[#allocation21] ss:$0 sm:$0xff]  ;;  %v7213_v54 = vld [vmem:[#allocation18 + $0x8] sm:$0xff] }
 0x95b   : > { %v6989_v19 = vmax.f32 %v6984_v34, %v6987_v38  ;;  %v7215_v34 = vld [vmem:[#allocation18 + $0x18] sm:$0xff]  ;;  %v7212_v38 = vld [vmem:[#allocation18] sm:$0xff] }
 0x95c   : > { %v7001_v20 = vpop.permute.xlu0 %7000  ;;  %v7005_v61 = vpop.permute.xlu1 %7004 }
 0x95d   : > { %v6993_v25 = vmax.f32 %v6989_v19, %v6991_v46  ;;  %v7214_v19 = vld [vmem:[#allocation18 + $0x10] sm:$0xff]  ;;  %v7428_v46 = vld [vmem:[%s16169_s12 + $0xf8] sm:$0xff] }
 0x95f   : > { %v6997_v12 = vmax.f32 %v6993_v25, %v6995_v52  ;;  %v7460_v25 = vld [vmem:[%s16169_s12 + $0x1f8] sm:$0xff] }
 0x960   : > { %v7009_v33 = vpop.permute.xlu0 %7008  ;;  %v7015_v30 = vpop.permute.xlu1 %7014  ;;  %v11200_v52 = vld [vmem:[#allocation24] ss:$0 sm:$0xff] }
 0x961   : > { %v6998_v53 = vmax.f32 %v6997_v12, %v6963_v13  ;;  %v7225_v13 = vld [vmem:[#allocation18 + $0x68] sm:$0xff] }
 0x962   : > { %7255 = vmatprep.subr.mxu1 %v7225_v13  ;;  %v7439_v13 = vld [vmem:[%s16169_s12 + $0x150] sm:$0xff] }
 0x963   : > { %v7003_v56 = vmax.f32 %v6998_v53, %v7001_v20 }
 0x964   : > { %v7019_v18 = vpop.permute.xlu0 %7018  ;;  %v7023_v43 = vpop.permute.xlu1 %7022 }
 0x965   : > { %v7007_v58 = vmax.f32 %v7003_v56, %v7005_v61 }
 0x967   : > { %v7011_v0 = vmax.f32 %v7007_v58, %v7009_v33 }
 0x969   : > { %v7012_v1 = vmax.f32 %v7011_v0, %v6970_v15  ;;  %v7224_v15 = vld [vmem:[#allocation18 + $0x60] sm:$0xff] }
 0x96b   : > { %v7017_v27 = vmax.f32 %v7012_v1, %v7015_v30  ;;  %v7412_v1 = vld [vmem:[%s16169_s12 + $0x78] sm:$0xff] }
 0x96c   : > { %v7444_v30 = vld [vmem:[%s16169_s12 + $0x178] sm:$0xff] }
 0x96d   : > { %v7021_v4 = vmax.f32 %v7017_v27, %v7019_v18  ;;  %v7427_v18 = vld [vmem:[%s16169_s12 + $0xf0] sm:$0xff] }
 0x96f   : > { %v7025_v8 = vmax.f32 %v7021_v4, %v7023_v43  ;;  %v7459_v4 = vld [vmem:[%s16169_s12 + $0x1f0] sm:$0xff] }
 0x970   : > { %v7411_v43 = vld [vmem:[%s16169_s12 + $0x70] sm:$0xff] }
 0x971   : > { %v7027_v55 = vrot.slane %v7025_v8, 7  ;;  %v7458_v8 = vld [vmem:[%s16169_s12 + $0x1e8] sm:$0xff] }
 0x9a1   : > { %v11501_v3 = vpop.f32.mrf.mxu0  ;;  %v11536_v35 = vpop.f32.mrf.mxu1 }
 0x9a3   : > { %v11502_v10 = vpop.f32.mrf.mxu0  ;;  %v11537_v62 = vpop.f32.mrf.mxu1 }
 0x9a4   : > { %v11503_v31 = vadd.f32 %v11502_v10, %v11501_v3  ;;  %v11538_v45 = vadd.f32 %v11537_v62, %v11536_v35  ;;  %v7443_v3 = vld [vmem:[%s16169_s12 + $0x170] sm:$0xff]  ;;  %v7426_v35 = vld [vmem:[%s16169_s12 + $0xe8] sm:$0xff] }
 0x9a5   : > { %v7410_v10 = vld [vmem:[%s16169_s12 + $0x68] sm:$0xff] }
 0x9a6   : > { %v6940_v29 = vadd.f32 %v11538_v45, %v11503_v31  ;;  %v7442_v62 = vld [vmem:[%s16169_s12 + $0x168] sm:$0xff]  ;;  %v7425_v31 = vld [vmem:[%s16169_s12 + $0xe0] sm:$0xff] }
 0x9a7   : > { %v7457_v45 = vld [vmem:[%s16169_s12 + $0x1e0] sm:$0xff] }
 0x9a8   : > { %v7029_v39 = vsel %vm1730_vm0, %v6940_v29, %v7027_v55  ;;  %v7409_v55 = vld [vmem:[%s16169_s12 + $0x60] sm:$0xff] }
 0x9a9   : > { %11820 = vmatmul.mubr.msk.f32.vlgmr.msra.gmra.mxu0 %vm7041_vm4, %v7029_v39  ;;  %v7441_v29 = vld [vmem:[%s16169_s12 + $0x160] sm:$0xff]  ;;  %v7424_v39 = vld [vmem:[%s16169_s12 + $0xd8] sm:$0xff] }
 0x9aa   : > { %7366 = vmatprep.mubr.f32.mxu0 %v14145_v5  ;;  %7327 = vmatpush1.msra.mxu0 %v7226_v16  ;;  %v7406_v16 = vld [vmem:[%s16169_s12 + $0x48] sm:$0xff] }
 0x9ab   : > { %7328 = vmatprep.subr.mxu0 %v7223_v22  ;;  %v7421_v22 = vld [vmem:[%s16169_s12 + $0xc0] sm:$0xff] }
 0x9ac   : > { %7329 = vmatpush1.msra.mxu0 %v7222_v9  ;;  %v7405_v9 = vld [vmem:[%s16169_s12 + $0x40] sm:$0xff] }
 0x9ad   : > { %7330 = vmatprep.subr.mxu0 %v7219_v28  ;;  %v7420_v28 = vld [vmem:[%s16169_s12 + $0xb8] sm:$0xff] }
 0x9ae   : > { %7331 = vmatpush1.msra.mxu0 %v7218_v50  ;;  %v7404_v50 = vld [vmem:[%s16169_s12 + $0x38] sm:$0xff] }
 0x9af   : > { %7332 = vmatprep.subr.mxu0 %v7215_v34  ;;  %v7419_v34 = vld [vmem:[%s16169_s12 + $0xb0] sm:$0xff] }
 0x9b0   : > { %7333 = vmatpush1.msra.mxu0 %v7214_v19  ;;  %v7403_v19 = vld [vmem:[%s16169_s12 + $0x30] sm:$0xff] }
 0x9b1   : > { %11584 = vmatprep.subr.mxu0 %v7460_v25  ;;  %v7418_v25 = vld [vmem:[%s16169_s12 + $0xa8] sm:$0xff] }
 0xa69   : > { %v7111_v2 = vpop.f32.mrf.mxu0 }
 0xa6a   : > { %v7112_v32 = vadd.f32 %v11198_v48, %v7111_v2  ;;  %v7408_v48 = vld [vmem:[%s16169_s12 + $0x58] sm:$0xff] }
 0xa6b   : > { %v11821_v6 = vpop.f32.mrf.mxu0  ;;  %v7440_v2 = vld [vmem:[%s16169_s12 + $0x158] sm:$0xff] }
 0xa6c   : > { %v7115_v40 = vmax.f32 %v7112_v32, 0.0  ;;  %v7423_v32 = vld [vmem:[%s16169_s12 + $0xd0] sm:$0xff] }
 0xa6d   : > { %v7455_v6 = vld [vmem:[%s16169_s12 + $0x1d0] sm:$0xff] }
 0xa6e   : > { %11825 = vmatmul.mubr.msk.f32.vlgmr.msra.gmra.mxu1 %vm7124_vm6, %v7115_v40  ;;  %v7407_v40 = vld [vmem:[%s16169_s12 + $0x50] sm:$0xff] }
 0xa6f   : > { %7295 = vmatprep.mubr.f32.mxu1 %v14145_v5  ;;  %7256 = vmatpush1.msra.mxu1 %v7224_v15  ;;  %v7454_v15 = vld [vmem:[%s16169_s12 + $0x1c8] sm:$0xff] }
 0xa70   : > { %7257 = vmatprep.subr.mxu1 %v7221_v21  ;;  %v7438_v21 = vld [vmem:[%s16169_s12 + $0x148] sm:$0xff] }
 0xa71   : > { %7258 = vmatpush1.msra.mxu1 %v7220_v23  ;;  %v7453_v23 = vld [vmem:[%s16169_s12 + $0x1c0] sm:$0xff] }
 0xa72   : > { %7259 = vmatprep.subr.mxu1 %v7217_v26  ;;  %v7437_v26 = vld [vmem:[%s16169_s12 + $0x140] sm:$0xff] }
 0xa73   : > { %7260 = vmatpush1.msra.mxu1 %v7216_v24  ;;  %v7452_v24 = vld [vmem:[%s16169_s12 + $0x1b8] sm:$0xff] }
 0xa74   : > { %7261 = vmatprep.subr.mxu1 %v7213_v54  ;;  %v7436_v54 = vld [vmem:[%s16169_s12 + $0x138] sm:$0xff] }
 0xa75   : > { %7262 = vmatpush1.msra.mxu1 %v7212_v38  ;;  %v7451_v38 = vld [vmem:[%s16169_s12 + $0x1b0] sm:$0xff] }
 0xa76   : > { %11546 = vmatprep.subr.mxu1 %v7428_v46  ;;  %v7435_v46 = vld [vmem:[%s16169_s12 + $0x130] sm:$0xff] }
 0xb2e   : > { %v7198_v12 = vpop.f32.mrf.mxu1 }
 0xb2f   : > { %v7199_v53 = vadd.f32 %v11200_v52, %v7198_v12  ;;  %v7450_v52 = vld [vmem:[%s16169_s12 + $0x1a8] sm:$0xff] }
 0xb30   : > { %v11826_v20 = vpop.f32.mrf.mxu1  ;;  %v7402_v12 = vld [vmem:[%s16169_s12 + $0x28] sm:$0xff] }
 0xb31   : > { %v7203_v56 = vrot.slane %v7199_v53, 1  ;;  %v7417_v20 = vld [vmem:[%s16169_s12 + $0xa0] sm:$0xff] }
 0xb33   : > { %v7205_v61 = vadd.f32 %v7203_v56, %v7199_v53  ;;  %v7434_v53 = vld [vmem:[%s16169_s12 + $0x128] sm:$0xff]  ;;  %v7449_v56 = vld [vmem:[%s16169_s12 + $0x1a0] sm:$0xff] }
 0xb35   : > { %v11203_v58 = vmul.f32 -1.442695, %v7205_v61  ;;  %v7401_v61 = vld [vmem:[%s16169_s12 + $0x20] sm:$0xff] }
 0xb37   : > { %13187 = vpow2.f32 %v11203_v58  ;;  %v7433_v58 = vld [vmem:[%s16169_s12 + $0x120] sm:$0xff] }
 0xb44   : > { %v13188_v33 = vpop.eup %13187 }
 0xb45   : > { %v7209_v0 = vadd.f32 1.0, %v13188_v33  ;;  %v7416_v33 = vld [vmem:[%s16169_s12 + $0x98] sm:$0xff] }
 0xb47   : > { %13189 = vrcp.f32 %v7209_v0  ;;  %v7448_v0 = vld [vmem:[%s16169_s12 + $0x198] sm:$0xff] }
 0xb54   : > { %v13190_v27 = vpop.eup %13189 }
 0xb55   : > { %11204 = vmatmul.mubr.msk.f32.vlgmr.msra.gmra.mxu1 %vm7041_vm4, %v13190_v27  ;;  %11205 = vmatmul.mubr.msk.f32.vlgmr.msra.gmra.mxu0 %vm7041_vm4, %v13190_v27  ;;  %v7415_v27 = vld [vmem:[%s16169_s12 + $0x90] sm:$0xff] }
 0xb56   : > { %11547 = vmatpush3.msra.mxu1 %v7412_v1  ;;  %11585 = vmatpush3.msra.mxu0 %v7444_v30  ;;  %v7400_v1 = vld [vmem:[%s16169_s12 + $0x18] sm:$0xff] }
 0xb57   : > { %11548 = vmatprep.subr.mxu1 %v7427_v18  ;;  %11586 = vmatprep.subr.mxu0 %v7459_v4  ;;  %v7432_v30 = vld [vmem:[%s16169_s12 + $0x118] sm:$0xff]  ;;  %v7447_v18 = vld [vmem:[%s16169_s12 + $0x190] sm:$0xff] }
 0xb58   : > { %11549 = vmatpush3.msra.mxu1 %v7411_v43  ;;  %11587 = vmatpush3.msra.mxu0 %v7443_v3  ;;  %v7399_v4 = vld [vmem:[%s16169_s12 + $0x10] sm:$0xff]  ;;  %v7414_v3 = vld [vmem:[%s16169_s12 + $0x88] sm:$0xff] }
 0xb59   : > { %11550 = vmatprep.subr.mxu1 %v7426_v35  ;;  %11588 = vmatprep.subr.mxu0 %v7458_v8  ;;  %v7431_v43 = vld [vmem:[%s16169_s12 + $0x110] sm:$0xff]  ;;  %v7446_v35 = vld [vmem:[%s16169_s12 + $0x188] sm:$0xff] }
 0xb5a   : > { %11551 = vmatpush3.msra.mxu1 %v7410_v10  ;;  %11589 = vmatpush3.msra.mxu0 %v7442_v62  ;;  %v7398_v8 = vld [vmem:[%s16169_s12 + $0x8] sm:$0xff]  ;;  %v7413_v62 = vld [vmem:[%s16169_s12 + $0x80] sm:$0xff] }
 0xb5b   : > { %11552 = vmatprep.subr.mxu1 %v7425_v31  ;;  %11590 = vmatprep.subr.mxu0 %v7457_v45  ;;  %v7430_v10 = vld [vmem:[%s16169_s12 + $0x108] sm:$0xff]  ;;  %v7445_v31 = vld [vmem:[%s16169_s12 + $0x180] sm:$0xff] }
 0xb5c   : > { %11553 = vmatpush3.msra.mxu1 %v7409_v55  ;;  %11591 = vmatpush3.msra.mxu0 %v7441_v29  ;;  %v7397_v45 = vld [vmem:[%s16169_s12] sm:$0xff] }
 0xb5d   : > { %11554 = vmatprep.subr.mxu1 %v7424_v39  ;;  %11592 = vmatprep.subr.mxu0 %v7456_v63  ;;  %v7429_v55 = vld [vmem:[%s16169_s12 + $0x100] sm:$0xff] }
 0xb5e   : > { %11555 = vmatpush3.msra.mxu1 %v7408_v48  ;;  %11593 = vmatpush3.msra.mxu0 %v7440_v2 }
 0xb5f   : > { %11556 = vmatprep.subr.mxu1 %v7423_v32  ;;  %11594 = vmatprep.subr.mxu0 %v7455_v6 }
 0xb60   : > { %11557 = vmatpush3.msra.mxu1 %v7407_v40  ;;  %11595 = vmatpush3.msra.mxu0 %v7439_v13 }
 0xb61   : > { %11558 = vmatprep.subr.mxu1 %v7422_v14  ;;  %11596 = vmatprep.subr.mxu0 %v7454_v15 }
 0xb62   : > { %11559 = vmatpush3.msra.mxu1 %v7406_v16  ;;  %11597 = vmatpush3.msra.mxu0 %v7438_v21 }
 0xb63   : > { %11560 = vmatprep.subr.mxu1 %v7421_v22  ;;  %11598 = vmatprep.subr.mxu0 %v7453_v23 }
 0xb64   : > { %11561 = vmatpush3.msra.mxu1 %v7405_v9  ;;  %11599 = vmatpush3.msra.mxu0 %v7437_v26 }
 0xb65   : > { %11562 = vmatprep.subr.mxu1 %v7420_v28  ;;  %11600 = vmatprep.subr.mxu0 %v7452_v24 }
 0xb66   : > { %11563 = vmatpush3.msra.mxu1 %v7404_v50  ;;  %11601 = vmatpush3.msra.mxu0 %v7436_v54 }
 0xb67   : > { %11564 = vmatprep.subr.mxu1 %v7419_v34  ;;  %11602 = vmatprep.subr.mxu0 %v7451_v38 }
 0xb68   : > { %11565 = vmatpush3.msra.mxu1 %v7403_v19  ;;  %11603 = vmatpush3.msra.mxu0 %v7435_v46 }
 0xb69   : > { %11566 = vmatprep.subr.mxu1 %v7418_v25  ;;  %11604 = vmatprep.subr.mxu0 %v7450_v52 }
 0xb6a   : > { %11567 = vmatpush3.msra.mxu1 %v7402_v12  ;;  %11605 = vmatpush3.msra.mxu0 %v7434_v53 }
 0xb6b   : > { %11568 = vmatprep.subr.mxu1 %v7417_v20  ;;  %11606 = vmatprep.subr.mxu0 %v7449_v56 }
 0xb6c   : > { %11569 = vmatpush3.msra.mxu1 %v7401_v61  ;;  %11607 = vmatpush3.msra.mxu0 %v7433_v58 }
 0xb6d   : > { %11570 = vmatprep.subr.mxu1 %v7416_v33  ;;  %11608 = vmatprep.subr.mxu0 %v7448_v0 }
 0xb6e   : > { %11571 = vmatpush3.msra.mxu1 %v7400_v1  ;;  %11609 = vmatpush3.msra.mxu0 %v7432_v30 }
 0xb6f   : > { %11572 = vmatprep.subr.mxu1 %v7415_v27  ;;  %11610 = vmatprep.subr.mxu0 %v7447_v18 }
 0xb70   : > { %11573 = vmatpush3.msra.mxu1 %v7399_v4  ;;  %11611 = vmatpush3.msra.mxu0 %v7431_v43 }
 0xb71   : > { %11574 = vmatprep.subr.mxu1 %v7414_v3  ;;  %11612 = vmatprep.subr.mxu0 %v7446_v35 }
 0xb72   : > { %11575 = vmatpush3.msra.mxu1 %v7398_v8  ;;  %11613 = vmatpush3.msra.mxu0 %v7430_v10 }
 0xb73   : > { %11576 = vmatprep.subr.mxu1 %v7413_v62  ;;  %11614 = vmatprep.subr.mxu0 %v7445_v31 }
 0xb74   : > { %11577 = vmatpush3.msra.mxu1 %v7397_v45  ;;  %11615 = vmatpush3.msra.mxu0 %v7429_v55 }
 0xc15   : > { %v7297_v29 = vpop.f32.mrf.mxu1  ;;  %v7368_v39 = vpop.f32.mrf.mxu0 }
 0xc16   : > { %v7376_v63 = vrot.slane %v7297_v29, %v14870_v36  ;;  %v7384_v6 = vrot.slane %v7368_v39, %v14870_v36 }
 0xc17   : > { %v7299_v48 = vpop.f32.mrf.mxu1  ;;  %v7370_v2 = vpop.f32.mrf.mxu0 }
 0xc18   : > { %v15464_v32 = vmul.f32 %v7376_v63, %v15344_v60  ;;  %v7380_v40 = vrot.slane %v7299_v48, %v14870_v36  ;;  %v7388_v13 = vrot.slane %v7370_v2, %v14870_v36  ;;  %v15474_v16 = vmul.f32 %v7376_v63, %v15346_v47 }
 0xc19   : > { %v15483_v22 = vmul.f32 %v7384_v6, %v15348_v17 }
 0xc1a   : > { %v7618_v14 = vsel %vm7617_vm7, %v15464_v32, -inf  ;;  %v7611_v15 = vsel %vm7041_vm4, %v15464_v32, -inf  ;;  %v15477_v21 = vmul.f32 %v7380_v40, %v15360_v49  ;;  %v15480_v60 = vmul.f32 %v7388_v13, %v15364_v59 }
 0xc1b   : > { %7619 = vmax.xlane.f32.xlu1 %v7618_v14  ;;  %7612 = vmax.xlane.f32.xlu0 %v7611_v15  ;;  %v15486_v23 = vmul.f32 %v7380_v40, %v15362_v44  ;;  %v15489_v9 = vmul.f32 %v7388_v13, %v15366_v11  ;;  %v7625_v47 = vsel %vm7624_vm8, %v15464_v32, -inf  ;;  %v7614_v17 = vsel %vm7041_vm4, %v15474_v16, -inf }
 0xc1c   : > { %7525 = vmatprep.mubr.f32.mxu1 %v15477_v21  ;;  %7600 = vmatprep.mubr.f32.mxu0 %v15480_v60  ;;  %v15502_v49 = vmul.f32 %v7384_v6, %v15350_v57  ;;  %v7632_v44 = vsel %vm7631_vm9, %v15464_v32, -inf  ;;  %v7621_v59 = vsel %vm7617_vm7, %v15474_v16, -inf  ;;  %v7628_v11 = vsel %vm7624_vm8, %v15474_v16, -inf }
 0xc1d   : > { %7526 = vmatmul.mubr.f32.vlgmr.msra.gmra.mxu1 %v15464_v32  ;;  %7601 = vmatmul.mubr.f32.vlgmr.msra.gmra.mxu0 %v15483_v22  ;;  %v7662_v57 = vsel %vm7041_vm4, %v15483_v22, -inf  ;;  %v7635_v26 = vsel %vm7631_vm9, %v15474_v16, -inf  ;;  %v7668_v28 = vsel %vm7617_vm7, %v15483_v22, -inf  ;;  %v7674_v50 = vsel %vm7624_vm8, %v15483_v22, -inf }
 0xc1e   : > { %7530 = vmatprep.mubr.f32.mxu1 %v15486_v23  ;;  %7605 = vmatprep.mubr.f32.mxu0 %v15489_v9  ;;  %v7665_v24 = vsel %vm7041_vm4, %v15502_v49, -inf  ;;  %v7671_v54 = vsel %vm7617_vm7, %v15502_v49, -inf  ;;  %v7680_v34 = vsel %vm7631_vm9, %v15483_v22, -inf  ;;  %v7677_v38 = vsel %vm7624_vm8, %v15502_v49, -inf }
 0xc1f   : > { %7626 = vmax.xlane.f32.xlu1 %v7625_v47  ;;  %7615 = vmax.xlane.f32.xlu0 %v7614_v17  ;;  %v7638_v19 = vsel %vm7041_vm4, %v15477_v21, -inf  ;;  %v7683_v46 = vsel %vm7631_vm9, %v15502_v49, -inf  ;;  %v7644_v25 = vsel %vm7617_vm7, %v15477_v21, -inf  ;;  %v7641_v52 = vsel %vm7041_vm4, %v15486_v23, -inf }
 0xc20   : > { %v7650_v12 = vsel %vm7624_vm8, %v15477_v21, -inf  ;;  %v7647_v53 = vsel %vm7617_vm7, %v15486_v23, -inf  ;;  %v7656_v20 = vsel %vm7631_vm9, %v15477_v21, -inf  ;;  %v7653_v56 = vsel %vm7624_vm8, %v15486_v23, -inf }
 0xc21   : > { %7531 = vmatmul.mubr.f32.gmra.mxu1 %v15474_v16  ;;  %7606 = vmatmul.mubr.f32.gmra.mxu0 %v15502_v49  ;;  %v7686_v61 = vsel %vm7041_vm4, %v15480_v60, -inf  ;;  %v7659_v58 = vsel %vm7631_vm9, %v15486_v23, -inf  ;;  %v7692_v33 = vsel %vm7617_vm7, %v15480_v60, -inf  ;;  %v7689_v0 = vsel %vm7041_vm4, %v15489_v9, -inf }
 0xc22   : > { %v7698_v1 = vsel %vm7624_vm8, %v15480_v60, -inf  ;;  %v7695_v30 = vsel %vm7617_vm7, %v15489_v9, -inf  ;;  %v7704_v27 = vsel %vm7631_vm9, %v15480_v60, -inf  ;;  %v7701_v18 = vsel %vm7624_vm8, %v15489_v9, -inf }
 0xc23   : > { %7633 = vmax.xlane.f32.xlu1 %v7632_v44  ;;  %7622 = vmax.xlane.f32.xlu0 %v7621_v59  ;;  %v7707_v4 = vsel %vm7631_vm9, %v15489_v9, -inf  ;;  %vm7735_vm7 = vcmask 80896   ;;  %vm7738_vm8 = vcmask 89088   ;;  %vm7744_vm9 = vcmask 105472  }
 0xc27   : > { %7629 = vmax.xlane.f32.xlu0 %v7628_v11  ;;  %7663 = vmax.xlane.f32.xlu1 %v7662_v57 }
 0xc2b   : > { %7636 = vmax.xlane.f32.xlu0 %v7635_v26  ;;  %7669 = vmax.xlane.f32.xlu1 %v7668_v28 }
 0xc2f   : > { %7666 = vmax.xlane.f32.xlu0 %v7665_v24  ;;  %7675 = vmax.xlane.f32.xlu1 %v7674_v50 }
 0xc33   : > { %7672 = vmax.xlane.f32.xlu0 %v7671_v54  ;;  %7681 = vmax.xlane.f32.xlu1 %v7680_v34 }
 0xc37   : > { %7678 = vmax.xlane.f32.xlu0 %v7677_v38  ;;  %7639 = vmax.xlane.f32.xlu1 %v7638_v19 }
 0xc3b   : > { %7684 = vmax.xlane.f32.xlu0 %v7683_v46  ;;  %7645 = vmax.xlane.f32.xlu1 %v7644_v25 }
 0xc3f   : > { %7642 = vmax.xlane.f32.xlu0 %v7641_v52  ;;  %7651 = vmax.xlane.f32.xlu1 %v7650_v12  ;;  %v7769_v12 = vld [vmem:[%s16117_s4 + $0x18] sm:$0xff] }
 0xc40   : > { %11827 = vmatprep.subr.mxu1 %v7769_v12 }
 0xc41   : > { %11828 = vmatpush3.msra.mxu1 %v7769_v12 }
 0xc43   : > { %7648 = vmax.xlane.f32.xlu0 %v7647_v53  ;;  %7657 = vmax.xlane.f32.xlu1 %v7656_v20  ;;  %v11211_v53 = vld [vmem:[%s16117_s4 + $0x38] sm:$0xff] }
 0xc44   : > { %11838 = vmatprep.subr.mxu0 %v11211_v53 }
 0xc45   : > { %11839 = vmatpush3.msra.mxu0 %v11211_v53 }
 0xc47   : > { %7654 = vmax.xlane.f32.xlu0 %v7653_v56  ;;  %7687 = vmax.xlane.f32.xlu1 %v7686_v61  ;;  %v7768_v56 = vld [vmem:[%s16117_s4 + $0x10] sm:$0xff] }
 0xc48   : > { %v11210_v61 = vld [vmem:[%s16117_s4 + $0x30] sm:$0xff]  ;;  %11829 = vmatprep.subr.mxu1 %v7768_v56 }
 0xc49   : > { %11840 = vmatprep.subr.mxu0 %v11210_v61  ;;  %11830 = vmatpush3.msra.mxu1 %v7768_v56 }
 0xc4a   : > { %11841 = vmatpush3.msra.mxu0 %v11210_v61 }
 0xc4b   : > { %7660 = vmax.xlane.f32.xlu0 %v7659_v58  ;;  %7693 = vmax.xlane.f32.xlu1 %v7692_v33  ;;  %v7767_v33 = vld [vmem:[%s16117_s4 + $0x8] sm:$0xff] }
 0xc4c   : > { %11831 = vmatprep.subr.mxu1 %v7767_v33 }
 0xc4d   : > { %11832 = vmatpush3.msra.mxu1 %v7767_v33  ;;  %v11222_v33 = vld [vmem:[%s16117_s4 + $0x70] sm:$0xff] }
 0xc4f   : > { %7690 = vmax.xlane.f32.xlu0 %v7689_v0  ;;  %7699 = vmax.xlane.f32.xlu1 %v7698_v1  ;;  %v11209_v0 = vld [vmem:[%s16117_s4 + $0x28] sm:$0xff] }
 0xc50   : > { %11842 = vmatprep.subr.mxu0 %v11209_v0 }
 0xc51   : > { %11843 = vmatpush3.msra.mxu0 %v11209_v0  ;;  %v11215_v0 = vld [vmem:[%s16117_s4 + $0x48] sm:$0xff] }
 0xc53   : > { %7696 = vmax.xlane.f32.xlu0 %v7695_v30  ;;  %7705 = vmax.xlane.f32.xlu1 %v7704_v27 }
 0xc57   : > { %7702 = vmax.xlane.f32.xlu0 %v7701_v18 }
 0xc5b   : > { %7708 = vmax.xlane.f32.xlu0 %v7707_v4 }
 0xca4   : > { %v7620_v43 = vpop.xlane.xlu1 %7619  ;;  %v7613_v3 = vpop.xlane.xlu0 %7612 }
 0xca5   : > { %v7711_v15 = vsel %vm7710_vm10, %v7613_v3, %v7620_v43  ;;  %v7766_v43 = vld [vmem:[%s16117_s4] sm:$0xff] }
 0xca6   : > { %v11208_v3 = vld [vmem:[%s16117_s4 + $0x20] sm:$0xff]  ;;  %11833 = vmatprep.subr.mxu1 %v7766_v43 }
 0xca7   : > { %11844 = vmatprep.subr.mxu0 %v11208_v3  ;;  %11834 = vmatpush3.msra.mxu1 %v7766_v43  ;;  %v11228_v43 = vld [vmem:[%s16117_s4 + $0x90] sm:$0xff] }
 0xca8   : > { %v7627_v35 = vpop.xlane.xlu1 %7626  ;;  %v7616_v8 = vpop.xlane.xlu0 %7615  ;;  %11845 = vmatpush3.msra.mxu0 %v11208_v3  ;;  %v11234_v3 = vld [vmem:[%s16117_s4 + $0xb0] sm:$0xff] }
 0xca9   : > { %v7714_v47 = vsel %vm7713_vm11, %v7711_v15, %v7627_v35 }
 0xcac   : > { %v7634_v10 = vpop.xlane.xlu1 %7633  ;;  %v7623_v62 = vpop.xlane.xlu0 %7622 }
 0xcad   : > { %v7717_v59 = vsel %vm7716_vm12, %v7714_v47, %v7634_v10  ;;  %v7712_v34 = vsel %vm7710_vm10, %v7616_v8, %v7623_v62  ;;  %vm7747_vm10 = vcmask 113664  }
 0xcb0   : > { %v7630_v31 = vpop.xlane.xlu0 %7629  ;;  %v7664_v45 = vpop.xlane.xlu1 %7663 }
 0xcb1   : > { %v7715_v38 = vsel %vm7713_vm11, %v7712_v34, %v7630_v31 }
 0xcb4   : > { %v7637_v55 = vpop.xlane.xlu0 %7636  ;;  %v7670_v29 = vpop.xlane.xlu1 %7669 }
 0xcb5   : > { %v7718_v25 = vsel %vm7716_vm12, %v7715_v38, %v7637_v55  ;;  %v11223_v55 = vld [vmem:[%s16117_s4 + $0x78] sm:$0xff]  ;;  %vm7750_vm12 = vcmask 121856  }
 0xcb6   : > { %11860 = vmatprep.subr.mxu0 %v11223_v55 }
 0xcb8   : > { %v7667_v39 = vpop.xlane.xlu0 %7666  ;;  %v7676_v63 = vpop.xlane.xlu1 %7675 }
 0xcbc   : > { %v15562_v48 = vpop.xlane.xlu0 %7672  ;;  %v7682_v2 = vpop.xlane.xlu1 %7681 }
 0xcc0   : > { %v15564_v6 = vpop.xlane.xlu0 %7678  ;;  %v7640_v40 = vpop.xlane.xlu1 %7639 }
 0xcc1   : > { %v7719_v11 = vsel %vm7124_vm6, %v7717_v59, %v7640_v40 }
 0xcc4   : > { %v15566_v13 = vpop.xlane.xlu0 %7684  ;;  %v7646_v14 = vpop.xlane.xlu1 %7645 }
 0xcc5   : > { %v7722_v57 = vsel %vm7721_vm13, %v7719_v11, %v7646_v14 }
 0xcc8   : > { %v7643_v17 = vpop.xlane.xlu0 %7642  ;;  %v7652_v44 = vpop.xlane.xlu1 %7651 }
 0xcc9   : > { %v7725_v26 = vsel %vm7724_vm14, %v7722_v57, %v7652_v44  ;;  %v7720_v20 = vsel %vm7124_vm6, %v7718_v25, %v7643_v17  ;;  %vm7741_vm6 = vcmask 97280  }
 0xccc   : > { %v7649_v28 = vpop.xlane.xlu0 %7648  ;;  %v7658_v24 = vpop.xlane.xlu1 %7657 }
 0xccd   : > { %v7728_v50 = vsel %vm7727_vm15, %v7725_v26, %v7658_v24  ;;  %v7723_v58 = vsel %vm7721_vm13, %v7720_v20, %v7649_v28  ;;  %vm7761_vm13 = vcmask 130048  }
 0xcce   : > { %v7730_v54 = vsel %vm2989_vm2, %v7728_v50, %v7664_v45  ;;  %v11217_v45 = vld [vmem:[%s16117_s4 + $0x58] sm:$0xff] }
 0xccf   : > { %v7733_v52 = vsel %vm7732_vm5, %v7730_v54, %v7670_v29  ;;  %11849 = vmatprep.subr.mxu1 %v11217_v45 }
 0xcd0   : > { %v7655_v19 = vpop.xlane.xlu0 %7654  ;;  %v7688_v46 = vpop.xlane.xlu1 %7687  ;;  %v7736_v30 = vsel %vm7735_vm7, %v7733_v52, %v7676_v63 }
 0xcd1   : > { %v7726_v1 = vsel %vm7724_vm14, %v7723_v58, %v7655_v19  ;;  %v7739_v8 = vsel %vm7738_vm8, %v7736_v30, %v7682_v2  ;;  %v11216_v58 = vld [vmem:[%s16117_s4 + $0x50] sm:$0xff]  ;;  %v11214_v30 = vld [vmem:[%s16117_s4 + $0x40] sm:$0xff]  ;;  %vm7853_vm14 = vcmask 1042432  }
 0xcd2   : > { %v7742_v29 = vsel %vm7741_vm6, %v7739_v8, %v7688_v46  ;;  %v11233_v8 = vld [vmem:[%s16117_s4 + $0xa8] sm:$0xff] }
 0xcd4   : > { %v7661_v27 = vpop.xlane.xlu0 %7660  ;;  %v7694_v18 = vpop.xlane.xlu1 %7693 }
 0xcd5   : > { %v7729_v4 = vsel %vm7727_vm15, %v7726_v1, %v7661_v27  ;;  %v11221_v1 = vld [vmem:[%s16117_s4 + $0x68] sm:$0xff]  ;;  %v11220_v27 = vld [vmem:[%s16117_s4 + $0x60] sm:$0xff]  ;;  %vm7944_vm15 = vcmask 1041408  }
 0xcd6   : > { %v7731_v35 = vsel %vm2989_vm2, %v7729_v4, %v7667_v39  ;;  %v7745_v39 = vsel %vm7744_vm9, %v7742_v29, %v7694_v18  ;;  %v11229_v18 = vld [vmem:[%s16117_s4 + $0x98] sm:$0xff]  ;;  %v11238_v29 = vld [vmem:[%s16117_s4 + $0xc0] sm:$0xff] }
 0xcd7   : > { %v7734_v31 = vsel %vm7732_vm5, %v7731_v35, %v15562_v48  ;;  %v11235_v4 = vld [vmem:[%s16117_s4 + $0xb8] sm:$0xff]  ;;  %v11227_v35 = vld [vmem:[%s16117_s4 + $0x88] sm:$0xff]  ;;  %vm8297_vm5 = vcmask 1045504  }
 0xcd8   : > { %v7691_v10 = vpop.xlane.xlu0 %7690  ;;  %v7700_v62 = vpop.xlane.xlu1 %7699  ;;  %v7737_v63 = vsel %vm7735_vm7, %v7734_v31, %v15564_v6  ;;  %v11241_v31 = vld [vmem:[%s16117_s4 + $0xd8] sm:$0xff]  ;;  %vm8388_vm7 = vcmask 1044480  }
 0xcd9   : > { %v7748_v2 = vsel %vm7747_vm10, %v7745_v39, %v7700_v62  ;;  %v7740_v15 = vsel %vm7738_vm8, %v7737_v63, %v15566_v13  ;;  %v11232_v62 = vld [vmem:[%s16117_s4 + $0xa0] sm:$0xff]  ;;  %v8416_v63 = vld [vmem:[#allocation20 + $0x38] sm:$0xff] }
 0xcda   : > { %v7743_v17 = vsel %vm7741_vm6, %v7740_v15, %v7691_v10  ;;  %v11226_v10 = vld [vmem:[%s16117_s4 + $0x80] sm:$0xff]  ;;  %v8409_v15 = vld [vmem:[#allocation20] sm:$0xff] }
 0xcdb   : > { %v8414_v39 = vld [vmem:[#allocation20 + $0x28] sm:$0xff] }
 0xcdc   : > { %v7697_v40 = vpop.xlane.xlu0 %7696  ;;  %v7706_v14 = vpop.xlane.xlu1 %7705 }
 0xcdd   : > { %v7751_v48 = vsel %vm7750_vm12, %v7748_v2, %v7706_v14  ;;  %v7746_v44 = vsel %vm7744_vm9, %v7743_v17, %v7697_v40  ;;  %v11578_v57 = vpop.f32.mrf.mxu1  ;;  %v11616_v26 = vpop.f32.mrf.mxu0  ;;  %v8413_v2 = vld [vmem:[#allocation20 + $0x20] sm:$0xff]  ;;  %v8415_v40 = vld [vmem:[#allocation20 + $0x30] sm:$0xff]  ;;  %v8410_v14 = vld [vmem:[#allocation20 + $0x8] sm:$0xff] }
 0xcde   : > { %7755 = vrot.lane.b32.xlu1 %v7751_v48, %s14150_s11  ;;  %v8412_v48 = vld [vmem:[#allocation20 + $0x18] sm:$0xff]  ;;  %v13289_v17 = vld [vmem:[%s16167_s18 + $0xf8] sm:$0xff] }
 0xcdf   : > { %v11579_v28 = vpop.f32.mrf.mxu1  ;;  %v11617_v24 = vpop.f32.mrf.mxu0 }
 0xce0   : > { %v7703_v47 = vpop.xlane.xlu0 %7702  ;;  %v11580_v50 = vadd.f32 %v11579_v28, %v11578_v57  ;;  %v11618_v54 = vadd.f32 %v11617_v24, %v11616_v26 }
 0xce1   : > { %v7749_v59 = vsel %vm7747_vm10, %v7746_v44, %v7703_v47  ;;  %v11581_v34 = vpop.f32.mrf.mxu1  ;;  %v11619_v13 = vpop.f32.mrf.mxu0  ;;  %v8411_v47 = vld [vmem:[#allocation20 + $0x10] sm:$0xff]  ;;  %v13290_v44 = vld [vmem:[%s16167_s18 + $0x1f8] sm:$0xff] }
 0xce2   : > { %v7603_v38 = vadd.f32 %v11618_v54, %v11580_v50  ;;  %v7765_v50 = vstv %s7764_s2  ;;  %s11328_s2 = sshll.u32 %s14327_s16, 10 }
 0xce3   : > { %v11582_v19 = vpop.f32.mrf.mxu1  ;;  %v11620_v46 = vpop.f32.mrf.mxu0 }
 0xce4   : > { %v7709_v11 = vpop.xlane.xlu0 %7708  ;;  %v11583_v12 = vadd.f32 %v11582_v19, %v11581_v34  ;;  %v11621_v53 = vadd.f32 %v11620_v46, %v11619_v13 }
 0xce5   : > { %v7752_v6 = vsel %vm7750_vm12, %v7749_v59, %v7709_v11 }
 0xce6   : > { %7757 = vrot.lane.b32.xlu0 %v7752_v6, %s14150_s11  ;;  %v7608_v20 = vadd.f32 %v11621_v53, %v11583_v12  ;;  %s16171_s11 = sld [smem:[#allocation69_spill]] }
 0xcec   : > { %s16032_s28 = scalar_lea.hbm %s16171_s11, %s11328_s2 }
 0xd50   : > { %v7756_v25 = vpop.permute.xlu1 %7755 }
 0xd51   : > { %v15612_v52 = vsel %vm7761_vm13, %v7603_v38, %v7756_v25 }
 0xd52   : > { %11835 = vmatprep.mubr.msk.f32.mxu1 %vm7041_vm4, %v15612_v52  ;;  %11846 = vmatprep.mubr.msk.f32.mxu0 %vm7041_vm4, %v15612_v52 }
 0xd58   : > { %v7758_v56 = vpop.permute.xlu0 %7757 }
 0xd59   : > { %v15619_v61 = vsel %vm7761_vm13, %v7608_v20, %v7758_v56 }
 0xd5a   : > { %11836 = vmatmul.mubr.msk.f32.vlgmr.msra.gmra.mxu1 %vm7041_vm4, %v15619_v61  ;;  %11847 = vmatmul.mubr.msk.f32.vlgmr.msra.gmra.mxu0 %vm7041_vm4, %v15619_v61 }
 0xd5b   : > { %11850 = vmatpush3.msra.mxu1 %v11217_v45  ;;  %11861 = vmatpush3.msra.mxu0 %v11223_v55  ;;  %v11240_v45 = vld [vmem:[%s16117_s4 + $0xd0] sm:$0xff]  ;;  %v11239_v55 = vld [vmem:[%s16117_s4 + $0xc8] sm:$0xff]  ;;  %s14151_s4 = smov [#allocation36]  }
 0xd5c   : > { %11851 = vmatprep.subr.mxu1 %v11216_v58  ;;  %11857 = vmatprep.mubr.msk.f32.mxu1 %vm7041_vm4, %v15612_v52 }
 0xd5d   : > { %11862 = vmatprep.subr.mxu0 %v11222_v33  ;;  %11868 = vmatprep.mubr.msk.f32.mxu0 %vm7041_vm4, %v15612_v52 }
 0xd5e   : > { %11852 = vmatpush3.msra.mxu1 %v11216_v58  ;;  %11863 = vmatpush3.msra.mxu0 %v11222_v33 }
 0xd5f   : > { %11853 = vmatprep.subr.mxu1 %v11215_v0  ;;  %11864 = vmatprep.subr.mxu0 %v11221_v1 }
 0xd60   : > { %11854 = vmatpush3.msra.mxu1 %v11215_v0  ;;  %11865 = vmatpush3.msra.mxu0 %v11221_v1 }
 0xd61   : > { %11855 = vmatprep.subr.mxu1 %v11214_v30  ;;  %11866 = vmatprep.subr.mxu0 %v11220_v27 }
 0xd62   : > { %11856 = vmatpush3.msra.mxu1 %v11214_v30  ;;  %11867 = vmatpush3.msra.mxu0 %v11220_v27 }
 0xd63   : > { %11858 = vmatmul.mubr.msk.f32.vlgmr.msra.gmra.mxu1 %vm7041_vm4, %v15619_v61  ;;  %11869 = vmatmul.mubr.msk.f32.vlgmr.msra.gmra.mxu0 %vm7041_vm4, %v15619_v61 }
 0xd64   : > { %11871 = vmatprep.subr.mxu1 %v11229_v18  ;;  %11882 = vmatprep.subr.mxu0 %v11235_v4 }
 0xd65   : > { %11872 = vmatpush3.msra.mxu1 %v11229_v18  ;;  %11879 = vmatprep.mubr.msk.f32.mxu1 %vm7041_vm4, %v15612_v52 }
 0xd66   : > { %11883 = vmatpush3.msra.mxu0 %v11235_v4  ;;  %11890 = vmatprep.mubr.msk.f32.mxu0 %vm7041_vm4, %v15612_v52 }
 0xd67   : > { %11873 = vmatprep.subr.mxu1 %v11228_v43  ;;  %11884 = vmatprep.subr.mxu0 %v11234_v3 }
 0xd68   : > { %11874 = vmatpush3.msra.mxu1 %v11228_v43  ;;  %11885 = vmatpush3.msra.mxu0 %v11234_v3 }
 0xd69   : > { %11875 = vmatprep.subr.mxu1 %v11227_v35  ;;  %11886 = vmatprep.subr.mxu0 %v11233_v8 }
 0xd6a   : > { %11876 = vmatpush3.msra.mxu1 %v11227_v35  ;;  %11887 = vmatpush3.msra.mxu0 %v11233_v8 }
 0xd6b   : > { %11877 = vmatprep.subr.mxu1 %v11226_v10  ;;  %11888 = vmatprep.subr.mxu0 %v11232_v62 }
 0xd6c   : > { %11878 = vmatpush3.msra.mxu1 %v11226_v10  ;;  %11889 = vmatpush3.msra.mxu0 %v11232_v62 }
 0xd6d   : > { %11880 = vmatmul.mubr.msk.f32.vlgmr.msra.gmra.mxu1 %vm7041_vm4, %v15619_v61  ;;  %11891 = vmatmul.mubr.msk.f32.vlgmr.msra.gmra.mxu0 %vm7041_vm4, %v15619_v61 }
 0xd6e   : > { %11893 = vmatprep.subr.mxu1 %v11241_v31  ;;  %11901 = vmatprep.mubr.msk.f32.mxu1 %vm7041_vm4, %v15612_v52 }
 0xd6f   : > { %11894 = vmatpush3.msra.mxu1 %v11241_v31  ;;  %8487 = vmatprep.mubr.f32.mxu0 %v14145_v5 }
 0xd70   : > { %11895 = vmatprep.subr.mxu1 %v11240_v45  ;;  %8451 = vmatprep.subr.mxu0 %v8414_v39 }
 0xd71   : > { %11896 = vmatpush3.msra.mxu1 %v11240_v45  ;;  %8452 = vmatpush1.msra.mxu0 %v8413_v2 }
 0xd72   : > { %11897 = vmatprep.subr.mxu1 %v11239_v55  ;;  %8453 = vmatprep.subr.mxu0 %v8410_v14 }
 0xd73   : > { %11898 = vmatpush3.msra.mxu1 %v11239_v55  ;;  %8454 = vmatpush1.msra.mxu0 %v8409_v15 }
 0xd74   : > { %11899 = vmatprep.subr.mxu1 %v11238_v29  ;;  %11664 = vmatprep.subr.mxu0 %v13289_v17 }
 0xd75   : > { %11900 = vmatpush3.msra.mxu1 %v11238_v29 }
 0xd76   : > { %11902 = vmatmul.mubr.msk.f32.vlgmr.msra.gmra.mxu1 %vm7041_vm4, %v15619_v61  ;;  %8528 = vmatprep.subr.mxu1 %v8416_v63 }
 0xd77   : > { %8564 = vmatprep.mubr.f32.mxu1 %v14145_v5  ;;  %8529 = vmatpush1.msra.mxu1 %v8415_v40 }
 0xd78   : > { %8530 = vmatprep.subr.mxu1 %v8412_v48 }
 0xd79   : > { %8531 = vmatpush1.msra.mxu1 %v8411_v47 }
 0xd7a   : > { %11699 = vmatprep.subr.mxu1 %v13290_v44 }
 0xe1a   : > { %v11837_v59 = vpop.f32.mrf.mxu1  ;;  %v11848_v6 = vpop.f32.mrf.mxu0 }
 0xe1b   : > { %v7855_v26 = vrot.slane %v11837_v59, 5  ;;  %v7946_v52 = vrot.slane %v11848_v6, 6 }
 0xe1c   : > { %v7842_v11 = vpop.f32.mrf.mxu1  ;;  %v7933_v24 = vpop.f32.mrf.mxu0 }
 0xe1d   : > { %v7854_v57 = vrot.slane %v7842_v11, 5  ;;  %v7945_v38 = vrot.slane %v7933_v24, 6 }
 0xe1f   : > { %v7856_v54 = vsel %vm7853_vm14, %v7854_v57, %v7855_v26  ;;  %v7859_v13 = vsel %vm7853_vm14, 0.0, %v7854_v57  ;;  %v7947_v20 = vsel %vm7944_vm15, %v7945_v38, %v7946_v52  ;;  %v7950_v33 = vsel %vm7944_vm15, 0.0, %v7945_v38  ;;  %v13291_v38 = vld [vmem:[%s16167_s18 + $0x78] sm:$0xff]  ;;  %v13294_v52 = vld [vmem:[%s16167_s18 + $0x1f0] sm:$0xff] }
 0xe20   : > { %v7861_v46 = vadd.f32 %v7856_v54, %v7765_v50  ;;  %v7860_v53 = vadd.f32 %v7859_v13, %v7765_v50 }
 0xe22   : > { %v7952_v61 = vadd.f32 %v7947_v20, %v7861_v46  ;;  %v7951_v30 = vadd.f32 %v7950_v33, %v7860_v53  ;;  %v13296_v53 = vld [vmem:[%s16167_s18 + $0x170] sm:$0xff]  ;;  %v13297_v20 = vld [vmem:[%s16167_s18 + $0xe8] sm:$0xff]  ;;  %v13301_v33 = vld [vmem:[%s16167_s18 + $0xe0] sm:$0xff] }
 0xe23   : > { %v11859_v28 = vpop.f32.mrf.mxu1  ;;  %v11870_v25 = vpop.f32.mrf.mxu0 }
 0xe24   : > { %v8036_v12 = vrot.slane %v11859_v28, 7 }
 0xe25   : > { %v8024_v34 = vpop.f32.mrf.mxu1  ;;  %v8114_v58 = vpop.f32.mrf.mxu0 }
 0xe26   : > { %v8035_v19 = vrot.slane %v8024_v34, 7 }
 0xe28   : > { %v8037_v56 = vsel %vm1730_vm0, %v8035_v19, %v8036_v12  ;;  %v8040_v0 = vsel %vm1730_vm0, 0.0, %v8035_v19  ;;  %v13292_v19 = vld [vmem:[%s16167_s18 + $0x178] sm:$0xff]  ;;  %v13295_v12 = vld [vmem:[%s16167_s18 + $0x70] sm:$0xff] }
 0xe29   : > { %v8042_v27 = vadd.f32 %v8037_v56, %v7952_v61  ;;  %v8041_v3 = vadd.f32 %v8040_v0, %v7951_v30  ;;  %v13298_v56 = vld [vmem:[%s16167_s18 + $0x1e8] sm:$0xff]  ;;  %v13302_v0 = vld [vmem:[%s16167_s18 + $0x1e0] sm:$0xff] }
 0xe2a   : > { %v13299_v61 = vld [vmem:[%s16167_s18 + $0x68] sm:$0xff]  ;;  %v13304_v30 = vld [vmem:[%s16167_s18 + $0x160] sm:$0xff] }
 0xe2b   : > { %v8124_v10 = vadd.f32 %v11870_v25, %v8042_v27  ;;  %v8123_v55 = vadd.f32 %v8114_v58, %v8041_v3  ;;  %v13293_v25 = vld [vmem:[%s16167_s18 + $0xf0] sm:$0xff]  ;;  %v13300_v58 = vld [vmem:[%s16167_s18 + $0x168] sm:$0xff]  ;;  %v13305_v27 = vld [vmem:[%s16167_s18 + $0xd8] sm:$0xff] }
 0xe2c   : > { %v13309_v3 = vld [vmem:[%s16167_s18 + $0xd0] sm:$0xff] }
 0xe2d   : > { %v11881_v1 = vpop.f32.mrf.mxu1  ;;  %v11892_v4 = vpop.f32.mrf.mxu0 }
 0xe2e   : > { %v8208_v18 = vrot.slane %v11881_v1, 1  ;;  %v8299_v31 = vrot.slane %v11892_v4, 2  ;;  %v13303_v1 = vld [vmem:[%s16167_s18 + $0x60] sm:$0xff]  ;;  %v13307_v4 = vld [vmem:[%s16167_s18 + $0x58] sm:$0xff] }
 0xe2f   : > { %v8196_v43 = vpop.f32.mrf.mxu1  ;;  %v8286_v62 = vpop.f32.mrf.mxu0 }
 0xe30   : > { %v8207_v35 = vrot.slane %v8196_v43, 1  ;;  %v8212_v8 = vsel %vm2640_vm1, %v8208_v18, 0.0  ;;  %v8298_v39 = vrot.slane %v8286_v62, 2  ;;  %v8303_v40 = vsel %vm8297_vm5, %v8299_v31, 0.0  ;;  %v13308_v43 = vld [vmem:[%s16167_s18 + $0x158] sm:$0xff]  ;;  %v13313_v62 = vld [vmem:[%s16167_s18 + $0xc8] sm:$0xff] }
 0xe31   : > { %v8214_v29 = vadd.f32 %v8212_v8, %v8124_v10  ;;  %v13311_v8 = vld [vmem:[%s16167_s18 + $0x50] sm:$0xff] }
 0xe32   : > { %v8209_v45 = vsel %vm2640_vm1, %v8207_v35, %v8208_v18  ;;  %v8300_v47 = vsel %vm8297_vm5, %v8298_v39, %v8299_v31  ;;  %v13306_v18 = vld [vmem:[%s16167_s18 + $0x1d8] sm:$0xff]  ;;  %v13310_v35 = vld [vmem:[%s16167_s18 + $0x1d0] sm:$0xff]  ;;  %v13314_v31 = vld [vmem:[%s16167_s18 + $0x1c8] sm:$0xff] }
 0xe33   : > { %v8213_v63 = vadd.f32 %v8209_v45, %v8123_v55  ;;  %v8305_v48 = vadd.f32 %v8303_v40, %v8214_v29  ;;  %v13312_v10 = vld [vmem:[%s16167_s18 + $0x150] sm:$0xff]  ;;  %v13315_v45 = vld [vmem:[%s16167_s18 + $0x48] sm:$0xff]  ;;  %v13317_v29 = vld [vmem:[%s16167_s18 + $0xc0] sm:$0xff] }
 0xe34   : > { %v13316_v55 = vld [vmem:[%s16167_s18 + $0x148] sm:$0xff]  ;;  %v13318_v39 = vld [vmem:[%s16167_s18 + $0x1c0] sm:$0xff]  ;;  %v13321_v40 = vld [vmem:[%s16167_s18 + $0xb8] sm:$0xff] }
 0xe35   : > { %v8304_v59 = vadd.f32 %v8300_v47, %v8213_v63  ;;  %v13319_v63 = vld [vmem:[%s16167_s18 + $0x40] sm:$0xff]  ;;  %v13325_v47 = vld [vmem:[%s16167_s18 + $0xb0] sm:$0xff] }
 0xe36   : > { %v11903_v2 = vpop.f32.mrf.mxu1 }
 0xe37   : > { %v8390_v14 = vrot.slane %v11903_v2, 3  ;;  %v13320_v2 = vld [vmem:[%s16167_s18 + $0x140] sm:$0xff] }
 0xe38   : > { %v8377_v15 = vpop.f32.mrf.mxu1 }
 0xe39   : > { %v8394_v17 = vsel %vm8388_vm7, %v8390_v14, 0.0  ;;  %v8389_v44 = vrot.slane %v8377_v15, 3  ;;  %v13324_v15 = vld [vmem:[%s16167_s18 + $0x138] sm:$0xff] }
 0xe3a   : > { %v8396_v11 = vadd.f32 %v8394_v17, %v8305_v48  ;;  %v13323_v48 = vld [vmem:[%s16167_s18 + $0x38] sm:$0xff]  ;;  %v13326_v17 = vld [vmem:[%s16167_s18 + $0x1b0] sm:$0xff] }
 0xe3b   : > { %v8391_v6 = vsel %vm8388_vm7, %v8389_v44, %v8390_v14  ;;  %v13322_v14 = vld [vmem:[%s16167_s18 + $0x1b8] sm:$0xff]  ;;  %v13327_v44 = vld [vmem:[%s16167_s18 + $0x30] sm:$0xff] }
 0xe3c   : > { %v11245_v57 = vmul.f32 -1.442695, %v8396_v11  ;;  %v8395_v26 = vadd.f32 %v8391_v6, %v8304_v59  ;;  %v13328_v59 = vld [vmem:[%s16167_s18 + $0x130] sm:$0xff]  ;;  %v13329_v11 = vld [vmem:[%s16167_s18 + $0xa8] sm:$0xff] }
 0xe3d   : > { %v13330_v6 = vld [vmem:[%s16167_s18 + $0x1a8] sm:$0xff] }
 0xe3e   : > { %v11244_v28 = vmul.f32 -1.442695, %v8395_v26  ;;  %13191 = vpow2.f32 %v11245_v57  ;;  %v13331_v57 = vld [vmem:[%s16167_s18 + $0x28] sm:$0xff] }
 0xe3f   : > { %v13332_v26 = vld [vmem:[%s16167_s18 + $0x128] sm:$0xff] }
 0xe40   : > { %13193 = vpow2.f32 %v11244_v28  ;;  %v13333_v28 = vld [vmem:[%s16167_s18 + $0xa0] sm:$0xff] }
 0xe4b   : > { %v13192_v24 = vpop.eup %13191 }
 0xe4c   : > { %v8404_v34 = vadd.f32 1.0, %v13192_v24  ;;  %v13334_v24 = vld [vmem:[%s16167_s18 + $0x1a0] sm:$0xff] }
 0xe4d   : > { %v13194_v50 = vpop.eup %13193 }
 0xe4e   : > { %v8403_v54 = vadd.f32 1.0, %v13194_v50  ;;  %v13335_v50 = vld [vmem:[%s16167_s18 + $0x20] sm:$0xff] }
 0xe50   : > { %13195 = vrcp.f32 %v8403_v54  ;;  %v13336_v54 = vld [vmem:[%s16167_s18 + $0x120] sm:$0xff] }
 0xe51   : > { %13197 = vrcp.f32 %v8404_v34  ;;  %v13337_v34 = vld [vmem:[%s16167_s18 + $0x98] sm:$0xff] }
 0xe5d   : > { %v13196_v13 = vpop.eup %13195 }
 0xe5e   : > { %11246 = vmatmul.mubr.msk.f32.vlgmr.msra.gmra.mxu0 %vm7761_vm13, %v13196_v13  ;;  %11248 = vmatmul.mubr.msk.f32.vlgmr.msra.gmra.mxu1 %vm7761_vm13, %v13196_v13  ;;  %v13198_v46 = vpop.eup %13197  ;;  %v13338_v13 = vld [vmem:[%s16167_s18 + $0x198] sm:$0xff] }
 0xe5f   : > { %8493 = vmatprep.mubr.f32.mxu0 %v14145_v5  ;;  %8570 = vmatprep.mubr.f32.mxu1 %v14145_v5 }
 0xe60   : > { %11665 = vmatpush3.msra.mxu0 %v13291_v38  ;;  %11700 = vmatpush3.msra.mxu1 %v13292_v19  ;;  %v13339_v38 = vld [vmem:[%s16167_s18 + $0x18] sm:$0xff] }
 0xe61   : > { %11666 = vmatprep.subr.mxu0 %v13293_v25  ;;  %11701 = vmatprep.subr.mxu1 %v13294_v52  ;;  %v13340_v19 = vld [vmem:[%s16167_s18 + $0x118] sm:$0xff]  ;;  %v13342_v25 = vld [vmem:[%s16167_s18 + $0x190] sm:$0xff] }
 0xe62   : > { %11247 = vmatmul.mubr.msk.f32.gmra.mxu0 %vm7761_vm13, %v13198_v46  ;;  %11249 = vmatmul.mubr.msk.f32.gmra.mxu1 %vm7761_vm13, %v13198_v46  ;;  %v13341_v46 = vld [vmem:[%s16167_s18 + $0x90] sm:$0xff] }
 0xe63   : > { %11667 = vmatpush3.msra.mxu0 %v13295_v12  ;;  %11702 = vmatpush3.msra.mxu1 %v13296_v53  ;;  %v13343_v52 = vld [vmem:[%s16167_s18 + $0x10] sm:$0xff]  ;;  %v13345_v53 = vld [vmem:[%s16167_s18 + $0x88] sm:$0xff] }
 0xe64   : > { %11668 = vmatprep.subr.mxu0 %v13297_v20  ;;  %11703 = vmatprep.subr.mxu1 %v13298_v56  ;;  %v13344_v12 = vld [vmem:[%s16167_s18 + $0x110] sm:$0xff]  ;;  %v13346_v20 = vld [vmem:[%s16167_s18 + $0x188] sm:$0xff] }
 0xe65   : > { %11669 = vmatpush3.msra.mxu0 %v13299_v61  ;;  %11704 = vmatpush3.msra.mxu1 %v13300_v58  ;;  %v13347_v56 = vld [vmem:[%s16167_s18 + $0x8] sm:$0xff]  ;;  %v13349_v58 = vld [vmem:[%s16167_s18 + $0x80] sm:$0xff] }
 0xe66   : > { %11670 = vmatprep.subr.mxu0 %v13301_v33  ;;  %11705 = vmatprep.subr.mxu1 %v13302_v0  ;;  %v13348_v61 = vld [vmem:[%s16167_s18 + $0x108] sm:$0xff]  ;;  %v13350_v33 = vld [vmem:[%s16167_s18 + $0x180] sm:$0xff] }
 0xe67   : > { %11671 = vmatpush3.msra.mxu0 %v13303_v1  ;;  %11706 = vmatpush3.msra.mxu1 %v13304_v30  ;;  %v13351_v0 = vld [vmem:[%s16167_s18] sm:$0xff] }
 0xe68   : > { %11672 = vmatprep.subr.mxu0 %v13305_v27  ;;  %11707 = vmatprep.subr.mxu1 %v13306_v18  ;;  %v13352_v1 = vld [vmem:[%s16167_s18 + $0x100] sm:$0xff] }
 0xe69   : > { %11673 = vmatpush3.msra.mxu0 %v13307_v4  ;;  %11708 = vmatpush3.msra.mxu1 %v13308_v43 }
 0xe6a   : > { %11674 = vmatprep.subr.mxu0 %v13309_v3  ;;  %11709 = vmatprep.subr.mxu1 %v13310_v35 }
 0xe6b   : > { %11675 = vmatpush3.msra.mxu0 %v13311_v8  ;;  %11710 = vmatpush3.msra.mxu1 %v13312_v10 }
 0xe6c   : > { %11676 = vmatprep.subr.mxu0 %v13313_v62  ;;  %11711 = vmatprep.subr.mxu1 %v13314_v31 }
 0xe6d   : > { %11677 = vmatpush3.msra.mxu0 %v13315_v45  ;;  %11712 = vmatpush3.msra.mxu1 %v13316_v55 }
 0xe6e   : > { %11678 = vmatprep.subr.mxu0 %v13317_v29  ;;  %11713 = vmatprep.subr.mxu1 %v13318_v39 }
 0xe6f   : > { %11679 = vmatpush3.msra.mxu0 %v13319_v63  ;;  %11714 = vmatpush3.msra.mxu1 %v13320_v2 }
 0xe70   : > { %11680 = vmatprep.subr.mxu0 %v13321_v40  ;;  %11715 = vmatprep.subr.mxu1 %v13322_v14 }
 0xe71   : > { %11681 = vmatpush3.msra.mxu0 %v13323_v48  ;;  %11716 = vmatpush3.msra.mxu1 %v13324_v15 }
 0xe72   : > { %11682 = vmatprep.subr.mxu0 %v13325_v47  ;;  %11717 = vmatprep.subr.mxu1 %v13326_v17 }
 0xe73   : > { %11683 = vmatpush3.msra.mxu0 %v13327_v44  ;;  %11718 = vmatpush3.msra.mxu1 %v13328_v59 }
 0xe74   : > { %11684 = vmatprep.subr.mxu0 %v13329_v11  ;;  %11719 = vmatprep.subr.mxu1 %v13330_v6 }
 0xe75   : > { %11685 = vmatpush3.msra.mxu0 %v13331_v57  ;;  %11720 = vmatpush3.msra.mxu1 %v13332_v26 }
 0xe76   : > { %11686 = vmatprep.subr.mxu0 %v13333_v28  ;;  %11721 = vmatprep.subr.mxu1 %v13334_v24 }
 0xe77   : > { %11687 = vmatpush3.msra.mxu0 %v13335_v50  ;;  %11722 = vmatpush3.msra.mxu1 %v13336_v54 }
 0xe78   : > { %11688 = vmatprep.subr.mxu0 %v13337_v34  ;;  %11723 = vmatprep.subr.mxu1 %v13338_v13 }
 0xe79   : > { %11689 = vmatpush3.msra.mxu0 %v13339_v38  ;;  %11724 = vmatpush3.msra.mxu1 %v13340_v19  ;;  %v8756_v19 = vld [vmem:[%s16170_s6 + $0x18] sm:$0xff] }
 0xe7a   : > { %11690 = vmatprep.subr.mxu0 %v13341_v46  ;;  %11725 = vmatprep.subr.mxu1 %v13342_v25  ;;  %v8755_v46 = vld [vmem:[%s16170_s6 + $0x10] sm:$0xff]  ;;  %v8754_v25 = vld [vmem:[%s16170_s6 + $0x8] sm:$0xff] }
 0xe7b   : > { %11691 = vmatpush3.msra.mxu0 %v13343_v52  ;;  %11726 = vmatpush3.msra.mxu1 %v13344_v12  ;;  %v8753_v52 = vld [vmem:[%s16170_s6] sm:$0xff]  ;;  %s13989_s6 = sshll.u32 %s14151_s4, 4  ;;  %s13990_s6 = int_to_ptr.vmem [resolvable:$false] %s13989_s6 }
 0xe7c   : > { %11692 = vmatprep.subr.mxu0 %v13345_v53  ;;  %11727 = vmatprep.subr.mxu1 %v13346_v20  ;;  %v13353_v12 = vld [vmem:[#allocation18 + $0x68] sm:$0xff]  ;;  %s13991_s2 = scalar_lea.vmem %s13990_s6, 2048  ;;  %p13992_p2 = scmp.lt.s32.totalorder %s16035_s23, %s13990_s6 }
 0xe7d   : > { %11693 = vmatpush3.msra.mxu0 %v13347_v56  ;;  %11728 = vmatpush3.msra.mxu1 %v13348_v61  ;;  %p13993_p1 = scmp.lt.s32.totalorder %s13991_s2, %s13985_s3 }
 0xe7e   : > { %11694 = vmatprep.subr.mxu0 %v13349_v58  ;;  %11729 = vmatprep.subr.mxu1 %v13350_v33 }
 0xe7f   : > { %11695 = vmatpush3.msra.mxu0 %v13351_v0  ;;  %11730 = vmatpush3.msra.mxu1 %v13352_v1  ;;  %v13354_v1 = vld [vmem:[#allocation18 + $0x60] sm:$0xff]  ;;  %p13994_p7 = por %p13993_p1, %p13992_p2 }
 0xe80   : > { %11904 = vmatprep.subr.mxu0 %v14145_v5  ;;  %11915 = vmatprep.subr.mxu1 %v14145_v5 }
 0xe81   : > { %p13995_p6 = pnand %p13994_p7, %p13988_p11 }
 0xf1e   : > { %v8489_v30 = vpop.f32.mrf.mxu0  ;;  %v8566_v27 = vpop.f32.mrf.mxu1 }
 0xf1f   : > { %v15744_v35 = vmul.f32 %v8489_v30, %v15464_v32  ;;  %v15747_v8 = vmul.f32 %v8566_v27, %v15483_v22  ;;  %v13355_v30 = vld [vmem:[#allocation18 + $0x48] sm:$0xff]  ;;  %v13356_v27 = vld [vmem:[#allocation18 + $0x40] sm:$0xff] }
 0xf20   : > { %v8491_v18 = vpop.f32.mrf.mxu0  ;;  %v8568_v4 = vpop.f32.mrf.mxu1 }
 0xf21   : > { %v15756_v31 = vmul.f32 %v8491_v18, %v15477_v21  ;;  %v15759_v45 = vmul.f32 %v8568_v4, %v15480_v60  ;;  %v13357_v18 = vld [vmem:[#allocation18 + $0x28] sm:$0xff]  ;;  %v13358_v4 = vld [vmem:[#allocation18 + $0x20] sm:$0xff] }
 0xf22   : > { %v8495_v43 = vpop.f32.mrf.mxu0  ;;  %v8572_v3 = vpop.f32.mrf.mxu1 }
 0xf23   : > { %v15750_v10 = vmul.f32 %v8495_v43, %v15474_v16  ;;  %v15753_v62 = vmul.f32 %v8572_v3, %v15502_v49  ;;  %v13359_v43 = vld [vmem:[#allocation18 + $0x8] sm:$0xff]  ;;  %v13360_v3 = vld [vmem:[#allocation18] sm:$0xff] }
 0xf24   : > { %v8497_v55 = vpop.f32.mrf.mxu0  ;;  %v8574_v29 = vpop.f32.mrf.mxu1 }
 0xf25   : > { %v8585_v32 = vadd.f32 %v15750_v10, %v15744_v35  ;;  %v8599_v22 = vadd.f32 %v15753_v62, %v15747_v8  ;;  %v15766_v16 = vmul.f32 %v8497_v55, %v15486_v23  ;;  %v15769_v49 = vmul.f32 %v8574_v29, %v15489_v9  ;;  %v8832_v55 = vld [vmem:[#allocation27] sm:$0x3]  ;;  %v13361_v29 = vld [vmem:[#allocation18 + $0x78] sm:$0xff] }
 0xf27   : > { %v8586_v39 = vrot.slane %v8585_v32, 4  ;;  %v8600_v21 = vrot.slane %v8599_v22, 4  ;;  %v8592_v60 = vadd.f32 %v15766_v16, %v15756_v31  ;;  %v8606_v63 = vadd.f32 %v15769_v49, %v15759_v45 }
 0xf29   : > { %v8587_v2 = vadd.f32 %v8586_v39, %v8585_v32  ;;  %v8601_v40 = vadd.f32 %v8600_v21, %v8599_v22  ;;  %v8593_v14 = vrot.slane %v8592_v60, 4  ;;  %v8607_v48 = vrot.slane %v8606_v63, 4  ;;  %v8757_v32 = vld [vmem:[#allocation26] sm:$0x1] }
 0xf2b   : > { %v8588_v15 = vrot.slane %v8587_v2, 2  ;;  %v8602_v47 = vrot.slane %v8601_v40, 2  ;;  %v8594_v17 = vadd.f32 %v8593_v14, %v8592_v60  ;;  %v8608_v23 = vadd.f32 %v8607_v48, %v8606_v63  ;;  %v13362_v63 = vld [vmem:[#allocation18 + $0x70] sm:$0xff]  ;;  %v13365_v14 = vld [vmem:[#allocation18 + $0x38] sm:$0xff] }
 0xf2c   : > { %v13366_v48 = vld [vmem:[#allocation18 + $0x30] sm:$0xff] }
 0xf2d   : > { %v8589_v44 = vadd.f32 %v8588_v15, %v8587_v2  ;;  %v8603_v59 = vadd.f32 %v8602_v47, %v8601_v40  ;;  %v8595_v9 = vrot.slane %v8594_v17, 2  ;;  %v8609_v11 = vrot.slane %v8608_v23, 2  ;;  %v13363_v2 = vld [vmem:[#allocation18 + $0x58] sm:$0xff]  ;;  %v13364_v40 = vld [vmem:[#allocation18 + $0x50] sm:$0xff] }
 0xf2e   : > { %v13367_v15 = vld [vmem:[#allocation18 + $0x18] sm:$0xff]  ;;  %v13368_v47 = vld [vmem:[#allocation18 + $0x10] sm:$0xff] }
 0xf2f   : > { %v8596_v6 = vadd.f32 %v8595_v9, %v8594_v17  ;;  %v8610_v57 = vadd.f32 %v8609_v11, %v8608_v23  ;;  %v8590_v26 = vrot.slane %v8589_v44, 1  ;;  %v8604_v28 = vrot.slane %v8603_v59, 1  ;;  %v13073_v17 = vld [vmem:[#allocation30 + $0xe4] ss:$16 sps:$4 sm:$0xff]   ;;  %v13076_v23 = vld [vmem:[#allocation30 + $0xec] ss:$16 sps:$4 sm:$0xff]  }
 0xf31   : > { %v8597_v24 = vrot.slane %v8596_v6, 1  ;;  %v8611_v50 = vrot.slane %v8610_v57, 1  ;;  %v8591_v13 = vadd.f32 %v8590_v26, %v8589_v44  ;;  %v8605_v38 = vadd.f32 %v8604_v28, %v8603_v59  ;;  %v8833_v44 = vld [vmem:[#allocation29] sm:$0x1]  ;;  %v13071_v28 = vld [vmem:[#allocation30 + $0xe0] ss:$16 sps:$4 sm:$0xff]  }
 0xf33   : > { %v8598_v54 = vadd.f32 %v8597_v24, %v8596_v6  ;;  %v8612_v34 = vadd.f32 %v8611_v50, %v8610_v57  ;;  %v13074_v24 = vld [vmem:[#allocation30 + $0xe8] ss:$16 sps:$4 sm:$0xff]   ;;  %v13079_v50 = vld [vmem:[#allocation30 + $0xc4] ss:$16 sps:$4 sm:$0xff]  }
 0xf35   : > { %8677 = vmatprep.mubr.f32.mxu0 %v8598_v54  ;;  %8747 = vmatprep.mubr.f32.mxu1 %v8612_v34  ;;  %v13082_v54 = vld [vmem:[#allocation30 + $0xcc] ss:$16 sps:$4 sm:$0xff]  }
 0xf36   : > { %8678 = vmatmul.mubr.f32.vlgmr.msra.gmra.mxu0 %v8591_v13  ;;  %8748 = vmatmul.mubr.f32.vlgmr.msra.gmra.mxu1 %v8605_v38  ;;  %v13077_v13 = vld [vmem:[#allocation30 + $0xc0] ss:$16 sps:$4 sm:$0xff]   ;;  %v13080_v38 = vld [vmem:[#allocation30 + $0xc8] ss:$16 sps:$4 sm:$0xff]  }
 0xf37   : > { %11912 = vmatprep.mubr.msk.f32.mxu0 %vm14149_vm3, %v14145_v5  ;;  %11917 = vmatprep.mubr.msk.f32.mxu1 %vm14149_vm3, %v14145_v5 }
 0xf38   : > { %11905 = vmatpush3.msra.mxu0 %v8756_v19  ;;  %11916 = vmatpush3.msk.msra.mxu1 %vm7944_vm15, %v8832_v55  ;;  %v13085_v19 = vld [vmem:[#allocation30 + $0xa4] ss:$16 sps:$4 sm:$0xff]  }
 0xf39   : > { %11906 = vmatprep.subr.mxu0 %v14145_v5  ;;  %9014 = vmatprep.subr.mxu1 %v13361_v29  ;;  %v13115_v55 = vld [vmem:[#allocation30 + $0x4] ss:$16 sps:$4 sm:$0xff]   ;;  %v13118_v29 = vld [vmem:[#allocation30 + $0xc] ss:$16 sps:$4 sm:$0xff]  }
 0xf3a   : > { %11907 = vmatpush3.msra.mxu0 %v8755_v46  ;;  %v13088_v46 = vld [vmem:[#allocation30 + $0xac] ss:$16 sps:$4 sm:$0xff]  }
 0xf3b   : > { %11908 = vmatprep.subr.mxu0 %v14145_v5 }
 0xf3c   : > { %11909 = vmatpush3.msra.mxu0 %v8754_v25  ;;  %v13083_v25 = vld [vmem:[#allocation30 + $0xa0] ss:$16 sps:$4 sm:$0xff]  }
 0xf3d   : > { %11910 = vmatprep.subr.mxu0 %v14145_v5 }
 0xf3e   : > { %11911 = vmatpush3.msra.mxu0 %v8753_v52  ;;  %v13086_v52 = vld [vmem:[#allocation30 + $0xa8] ss:$16 sps:$4 sm:$0xff]  }
 0xf3f   : > { %8943 = vmatprep.subr.mxu0 %v13353_v12  ;;  %v13091_v12 = vld [vmem:[#allocation30 + $0x84] ss:$16 sps:$4 sm:$0xff]  }
 0xff6   : > { %v11696_v53 = vpop.f32.mrf.mxu0  ;;  %v11731_v20 = vpop.f32.mrf.mxu1 }
 0xff8   : > { %v11697_v56 = vpop.f32.mrf.mxu0  ;;  %v11732_v61 = vpop.f32.mrf.mxu1 }
 0xff9   : > { %v11698_v58 = vadd.f32 %v11697_v56, %v11696_v53  ;;  %v11733_v33 = vadd.f32 %v11732_v61, %v11731_v20  ;;  %v13094_v53 = vld [vmem:[#allocation30 + $0x8c] ss:$16 sps:$4 sm:$0xff]   ;;  %v13089_v20 = vld [vmem:[#allocation30 + $0x80] ss:$16 sps:$4 sm:$0xff]   ;;  %v13092_v56 = vld [vmem:[#allocation30 + $0x88] ss:$16 sps:$4 sm:$0xff]  }
 0xffa   : > { %v13097_v61 = vld [vmem:[#allocation30 + $0x64] ss:$16 sps:$4 sm:$0xff]  }
 0xffb   : > { %v8750_v0 = vadd.f32 %v11733_v33, %v11698_v58  ;;  %v13100_v58 = vld [vmem:[#allocation30 + $0x6c] ss:$16 sps:$4 sm:$0xff]   ;;  %v13095_v33 = vld [vmem:[#allocation30 + $0x60] ss:$16 sps:$4 sm:$0xff]  }
 0xffd   : > { %11913 = vmatmul.mubr.msk.f32.vlgmr.msra.gmra.mxu0 %vm7041_vm4, %v8750_v0  ;;  %v13103_v0 = vld [vmem:[#allocation30 + $0x44] ss:$16 sps:$4 sm:$0xff]  }
 0xffe   : > { %8944 = vmatpush1.msra.mxu0 %v13354_v1  ;;  %8983 = vmatprep.mubr.f32.mxu0 %v14145_v5  ;;  %v13106_v1 = vld [vmem:[#allocation30 + $0x4c] ss:$16 sps:$4 sm:$0xff]  }
 0xfff   : > { %8945 = vmatprep.subr.mxu0 %v13355_v30  ;;  %v13101_v30 = vld [vmem:[#allocation30 + $0x40] ss:$16 sps:$4 sm:$0xff]  }
0x1000   : > { %8946 = vmatpush1.msra.mxu0 %v13356_v27  ;;  %v13104_v27 = vld [vmem:[#allocation30 + $0x48] ss:$16 sps:$4 sm:$0xff]  }
0x1001   : > { %8947 = vmatprep.subr.mxu0 %v13357_v18  ;;  %v13109_v18 = vld [vmem:[#allocation30 + $0x24] ss:$16 sps:$4 sm:$0xff]  }
0x1002   : > { %8948 = vmatpush1.msra.mxu0 %v13358_v4  ;;  %v13112_v4 = vld [vmem:[#allocation30 + $0x2c] ss:$16 sps:$4 sm:$0xff]  }
0x1003   : > { %8949 = vmatprep.subr.mxu0 %v13359_v43  ;;  %v13107_v43 = vld [vmem:[#allocation30 + $0x20] ss:$16 sps:$4 sm:$0xff]  }
0x1004   : > { %8950 = vmatpush1.msra.mxu0 %v13360_v3  ;;  %v13110_v3 = vld [vmem:[#allocation30 + $0x28] ss:$16 sps:$4 sm:$0xff]  }
0x1005   : > { %9491 = vmatprep.subr.bf16.mxu0 %v13073_v17  ;;  %v13131_v17 = vld [vmem:[#allocation30 + $0x1a0] ss:$16 sps:$4 sm:$0xff]  }
0x10bd   : > { %v8827_v22 = vpop.f32.mrf.mxu0 }
0x10be   : > { %v8828_v39 = vadd.f32 %v8827_v22, %v8757_v32  ;;  %v13113_v32 = vld [vmem:[#allocation30] ss:$16 sps:$4 sm:$0xff]   ;;  %v13116_v22 = vld [vmem:[#allocation30 + $0x8] ss:$16 sps:$4 sm:$0xff]  }
0x10bf   : > { %v11914_v21 = vpop.f32.mrf.mxu0 }
0x10c0   : > { %v8831_v60 = vmax.f32 %v8828_v39, 0.0  ;;  %v13121_v39 = vld [vmem:[#allocation30 + $0x1e4] ss:$16 sps:$4 sm:$0xff]   ;;  %v13124_v21 = vld [vmem:[#allocation30 + $0x1ec] ss:$16 sps:$4 sm:$0xff]  }
0x10c2   : > { %11918 = vmatmul.mubr.msk.f32.vlgmr.msra.gmra.mxu1 %vm7713_vm11, %v8831_v60  ;;  %v13119_v60 = vld [vmem:[#allocation30 + $0x1e0] ss:$16 sps:$4 sm:$0xff]  }
0x10c3   : > { %9015 = vmatpush1.msra.mxu1 %v13362_v63  ;;  %9054 = vmatprep.mubr.f32.mxu1 %v14145_v5  ;;  %v13122_v63 = vld [vmem:[#allocation30 + $0x1e8] ss:$16 sps:$4 sm:$0xff]  }
0x10c4   : > { %9016 = vmatprep.subr.mxu1 %v13363_v2  ;;  %v13127_v2 = vld [vmem:[#allocation30 + $0x1c4] ss:$16 sps:$4 sm:$0xff]  }
0x10c5   : > { %9017 = vmatpush1.msra.mxu1 %v13364_v40  ;;  %v13130_v40 = vld [vmem:[#allocation30 + $0x1cc] ss:$16 sps:$4 sm:$0xff]  }
0x10c6   : > { %9018 = vmatprep.subr.mxu1 %v13365_v14  ;;  %v13125_v14 = vld [vmem:[#allocation30 + $0x1c0] ss:$16 sps:$4 sm:$0xff]  }
0x10c7   : > { %9019 = vmatpush1.msra.mxu1 %v13366_v48  ;;  %v13128_v48 = vld [vmem:[#allocation30 + $0x1c8] ss:$16 sps:$4 sm:$0xff]  }
0x10c8   : > { %9020 = vmatprep.subr.mxu1 %v13367_v15  ;;  %v13133_v15 = vld [vmem:[#allocation30 + $0x1a4] ss:$16 sps:$4 sm:$0xff]  }
0x10c9   : > { %9021 = vmatpush1.msra.mxu1 %v13368_v47  ;;  %v13136_v47 = vld [vmem:[#allocation30 + $0x1ac] ss:$16 sps:$4 sm:$0xff]  }
0x10ca   : > { %9534 = vmatprep.subr.bf16.mxu1 %v13076_v23  ;;  %v13134_v23 = vld [vmem:[#allocation30 + $0x1a8] ss:$16 sps:$4 sm:$0xff]  }
0x1182   : > { %v8906_v59 = vpop.f32.mrf.mxu1 }
0x1183   : > { %v8907_v9 = vadd.f32 %v8906_v59, %v8833_v44  ;;  %v13139_v44 = vld [vmem:[#allocation30 + $0x184] ss:$16 sps:$4 sm:$0xff]   ;;  %v13142_v59 = vld [vmem:[#allocation30 + $0x18c] ss:$16 sps:$4 sm:$0xff]  }
0x1184   : > { %v11919_v11 = vpop.f32.mrf.mxu1 }
0x1185   : > { %v11253_v6 = vmul.f32 -1.442695, %v8907_v9  ;;  %v13137_v9 = vld [vmem:[#allocation30 + $0x180] ss:$16 sps:$4 sm:$0xff]   ;;  %v13140_v11 = vld [vmem:[#allocation30 + $0x188] ss:$16 sps:$4 sm:$0xff]  }
0x1187   : > { %13199 = vpow2.f32 %v11253_v6  ;;  %v13145_v6 = vld [vmem:[#allocation30 + $0x164] ss:$16 sps:$4 sm:$0xff]  }
0x1194   : > { %v13200_v57 = vpop.eup %13199 }
0x1195   : > { %v8913_v26 = vadd.f32 1.0, %v13200_v57  ;;  %v13148_v57 = vld [vmem:[#allocation30 + $0x16c] ss:$16 sps:$4 sm:$0xff]  }
0x1197   : > { %13201 = vrcp.f32 %v8913_v26  ;;  %v13143_v26 = vld [vmem:[#allocation30 + $0x160] ss:$16 sps:$4 sm:$0xff]  }
0x11a4   : > { %v13202_v34 = vpop.eup %13201 }
0x11a5   : > { %11254 = vmatmul.mubr.msk.f32.vlgmr.msra.gmra.mxu0 %vm7041_vm4, %v13202_v34  ;;  %11255 = vmatmul.mubr.msk.f32.vlgmr.msra.gmra.mxu1 %vm7041_vm4, %v13202_v34  ;;  %v13152_v34 = vld [vmem:[#allocation30 + $0x148] ss:$16 sps:$4 sm:$0xff]  }
0x11a6   : > { %9492 = vmatpush1.bf16.msra.mxu0 %v13071_v28  ;;  %9535 = vmatpush1.bf16.msra.mxu1 %v13074_v24  ;;  %v13146_v28 = vld [vmem:[#allocation30 + $0x168] ss:$16 sps:$4 sm:$0xff]   ;;  %v13151_v24 = vld [vmem:[#allocation30 + $0x144] ss:$16 sps:$4 sm:$0xff]  }
0x11a7   : > { %9493 = vmatprep.subr.bf16.mxu0 %v13079_v50  ;;  %9536 = vmatprep.subr.bf16.mxu1 %v13082_v54  ;;  %v13154_v50 = vld [vmem:[#allocation30 + $0x14c] ss:$16 sps:$4 sm:$0xff]   ;;  %v13149_v54 = vld [vmem:[#allocation30 + $0x140] ss:$16 sps:$4 sm:$0xff]  }
0x11a8   : > { %9523 = vmatprep.mubr.bf16.mxu0 %v14645_v51  ;;  %9566 = vmatprep.mubr.bf16.mxu1 %v14645_v51  ;;  %v13098_v51 = vld [vmem:[#allocation30 + $0x68] ss:$16 sps:$4 sm:$0xff]  }
0x11aa   : > { %9494 = vmatpush1.bf16.msra.mxu0 %v13077_v13  ;;  %9537 = vmatpush1.bf16.msra.mxu1 %v13080_v38  ;;  %v13157_v13 = vld [vmem:[#allocation30 + $0x124] ss:$16 sps:$4 sm:$0xff]   ;;  %v13160_v38 = vld [vmem:[#allocation30 + $0x12c] ss:$16 sps:$4 sm:$0xff]  }
0x11ab   : > { %9495 = vmatprep.subr.bf16.mxu0 %v13085_v19  ;;  %9538 = vmatprep.subr.bf16.mxu1 %v13088_v46  ;;  %v13155_v19 = vld [vmem:[#allocation30 + $0x120] ss:$16 sps:$4 sm:$0xff]   ;;  %v13158_v46 = vld [vmem:[#allocation30 + $0x128] ss:$16 sps:$4 sm:$0xff]  }
0x11ae   : > { %9496 = vmatpush1.bf16.msra.mxu0 %v13083_v25  ;;  %9539 = vmatpush1.bf16.msra.mxu1 %v13086_v52  ;;  %v13163_v25 = vld [vmem:[#allocation30 + $0x104] ss:$16 sps:$4 sm:$0xff]   ;;  %v13166_v52 = vld [vmem:[#allocation30 + $0x10c] ss:$16 sps:$4 sm:$0xff]  }
0x11af   : > { %9497 = vmatprep.subr.bf16.mxu0 %v13091_v12  ;;  %9540 = vmatprep.subr.bf16.mxu1 %v13094_v53  ;;  %v13161_v12 = vld [vmem:[#allocation30 + $0x100] ss:$16 sps:$4 sm:$0xff]   ;;  %v13164_v53 = vld [vmem:[#allocation30 + $0x108] ss:$16 sps:$4 sm:$0xff]  }
0x11b2   : > { %9498 = vmatpush1.bf16.msra.mxu0 %v13089_v20  ;;  %9541 = vmatpush1.bf16.msra.mxu1 %v13092_v56  ;;  %v13369_v20 = vld [vmem:[%s16166_s14 + $0xf8] sm:$0xff] }
0x11b3   : > { %9499 = vmatprep.subr.bf16.mxu0 %v13097_v61  ;;  %9542 = vmatprep.subr.bf16.mxu1 %v13100_v58  ;;  %v13370_v56 = vld [vmem:[%s16166_s14 + $0x1f8] sm:$0xff] }
0x11b4   : > { %v13371_v61 = vld [vmem:[%s16166_s14 + $0x78] sm:$0xff] }
0x11b5   : > { %v13372_v58 = vld [vmem:[%s16166_s14 + $0x178] sm:$0xff] }
0x11b6   : > { %9500 = vmatpush1.bf16.msra.mxu0 %v13095_v33  ;;  %9543 = vmatpush1.bf16.msra.mxu1 %v13098_v51  ;;  %v13373_v33 = vld [vmem:[%s16166_s14 + $0xf0] sm:$0xff] }
0x11b7   : > { %9501 = vmatprep.subr.bf16.mxu0 %v13103_v0  ;;  %9544 = vmatprep.subr.bf16.mxu1 %v13106_v1  ;;  %v13374_v51 = vld [vmem:[%s16166_s14 + $0x1f0] sm:$0xff] }
0x11b8   : > { %v13375_v0 = vld [vmem:[%s16166_s14 + $0x70] sm:$0xff] }
0x11b9   : > { %v13376_v1 = vld [vmem:[%s16166_s14 + $0x170] sm:$0xff] }
0x11ba   : > { %9502 = vmatpush1.bf16.msra.mxu0 %v13101_v30  ;;  %9545 = vmatpush1.bf16.msra.mxu1 %v13104_v27  ;;  %v13377_v30 = vld [vmem:[%s16166_s14 + $0xe8] sm:$0xff] }
0x11bb   : > { %9503 = vmatprep.subr.bf16.mxu0 %v13109_v18  ;;  %9546 = vmatprep.subr.bf16.mxu1 %v13112_v4  ;;  %v13379_v27 = vld [vmem:[%s16166_s14 + $0x68] sm:$0xff]  ;;  %v13381_v4 = vld [vmem:[%s16166_s14 + $0xe0] sm:$0xff] }
0x11bc   : > { %v13380_v18 = vld [vmem:[%s16166_s14 + $0x168] sm:$0xff] }
0x11be   : > { %9504 = vmatpush1.bf16.msra.mxu0 %v13107_v43  ;;  %9547 = vmatpush1.bf16.msra.mxu1 %v13110_v3  ;;  %v13382_v43 = vld [vmem:[%s16166_s14 + $0x1e0] sm:$0xff] }
0x11bf   : > { %9505 = vmatprep.subr.bf16.mxu0 %v13115_v55  ;;  %9548 = vmatprep.subr.bf16.mxu1 %v13118_v29  ;;  %v13383_v3 = vld [vmem:[%s16166_s14 + $0x60] sm:$0xff]  ;;  %v13385_v29 = vld [vmem:[%s16166_s14 + $0xd8] sm:$0xff] }
0x11c0   : > { %v13384_v55 = vld [vmem:[%s16166_s14 + $0x160] sm:$0xff] }
0x11c2   : > { %9506 = vmatpush1.bf16.msra.mxu0 %v13113_v32  ;;  %9549 = vmatpush1.bf16.msra.mxu1 %v13116_v22  ;;  %v13386_v32 = vld [vmem:[%s16166_s14 + $0x1d8] sm:$0xff] }
0x11c3   : > { %9507 = vmatprep.subr.bf16.mxu0 %v13121_v39  ;;  %9550 = vmatprep.subr.bf16.mxu1 %v13124_v21  ;;  %v13387_v22 = vld [vmem:[%s16166_s14 + $0x58] sm:$0xff]  ;;  %v13389_v21 = vld [vmem:[%s16166_s14 + $0xd0] sm:$0xff] }
0x11c4   : > { %v13388_v39 = vld [vmem:[%s16166_s14 + $0x158] sm:$0xff] }
0x11c6   : > { %9508 = vmatpush2.bf16.msra.mxu0 %v13119_v60  ;;  %9551 = vmatpush2.bf16.msra.mxu1 %v13122_v63  ;;  %v13390_v60 = vld [vmem:[%s16166_s14 + $0x1d0] sm:$0xff] }
0x11c7   : > { %9509 = vmatprep.subr.bf16.mxu0 %v13127_v2  ;;  %9552 = vmatprep.subr.bf16.mxu1 %v13130_v40  ;;  %v13391_v63 = vld [vmem:[%s16166_s14 + $0x50] sm:$0xff]  ;;  %v13393_v40 = vld [vmem:[%s16166_s14 + $0xc8] sm:$0xff] }
0x11c8   : > { %v13392_v2 = vld [vmem:[%s16166_s14 + $0x150] sm:$0xff] }
0x11ca   : > { %9510 = vmatpush2.bf16.msra.mxu0 %v13125_v14  ;;  %9553 = vmatpush2.bf16.msra.mxu1 %v13128_v48  ;;  %v13394_v14 = vld [vmem:[%s16166_s14 + $0x1c8] sm:$0xff] }
0x11cb   : > { %9511 = vmatprep.subr.bf16.mxu0 %v13133_v15  ;;  %9554 = vmatprep.subr.bf16.mxu1 %v13136_v47  ;;  %v13395_v48 = vld [vmem:[%s16166_s14 + $0x48] sm:$0xff]  ;;  %v13397_v47 = vld [vmem:[%s16166_s14 + $0xc0] sm:$0xff] }
0x11cc   : > { %v13396_v15 = vld [vmem:[%s16166_s14 + $0x148] sm:$0xff] }
0x11ce   : > { %9512 = vmatpush2.bf16.msra.mxu0 %v13131_v17  ;;  %9555 = vmatpush2.bf16.msra.mxu1 %v13134_v23  ;;  %v13398_v17 = vld [vmem:[%s16166_s14 + $0x1c0] sm:$0xff] }
0x11cf   : > { %9513 = vmatprep.subr.bf16.mxu0 %v13139_v44  ;;  %9556 = vmatprep.subr.bf16.mxu1 %v13142_v59  ;;  %v13399_v23 = vld [vmem:[%s16166_s14 + $0x40] sm:$0xff]  ;;  %v13401_v59 = vld [vmem:[%s16166_s14 + $0xb8] sm:$0xff] }
0x11d0   : > { %v13400_v44 = vld [vmem:[%s16166_s14 + $0x140] sm:$0xff] }
0x11d2   : > { %9514 = vmatpush2.bf16.msra.mxu0 %v13137_v9  ;;  %9557 = vmatpush2.bf16.msra.mxu1 %v13140_v11  ;;  %v13402_v9 = vld [vmem:[%s16166_s14 + $0x1b8] sm:$0xff] }
0x11d3   : > { %9515 = vmatprep.subr.bf16.mxu0 %v13145_v6  ;;  %9558 = vmatprep.subr.bf16.mxu1 %v13148_v57  ;;  %v13403_v11 = vld [vmem:[%s16166_s14 + $0x38] sm:$0xff]  ;;  %v13405_v57 = vld [vmem:[%s16166_s14 + $0xb0] sm:$0xff] }
0x11d4   : > { %v13404_v6 = vld [vmem:[%s16166_s14 + $0x138] sm:$0xff] }
0x11d6   : > { %9516 = vmatpush2.bf16.msra.mxu0 %v13143_v26  ;;  %9559 = vmatpush2.bf16.msra.mxu1 %v13146_v28  ;;  %v13406_v26 = vld [vmem:[%s16166_s14 + $0x1b0] sm:$0xff] }
0x11d7   : > { %9517 = vmatprep.subr.bf16.mxu0 %v13151_v24  ;;  %9560 = vmatprep.subr.bf16.mxu1 %v13154_v50  ;;  %v13407_v28 = vld [vmem:[%s16166_s14 + $0x30] sm:$0xff]  ;;  %v13409_v50 = vld [vmem:[%s16166_s14 + $0xa8] sm:$0xff] }
0x11d8   : > { %v13408_v24 = vld [vmem:[%s16166_s14 + $0x130] sm:$0xff] }
0x11da   : > { %9518 = vmatpush2.bf16.msra.mxu0 %v13149_v54  ;;  %9561 = vmatpush2.bf16.msra.mxu1 %v13152_v34  ;;  %v13410_v54 = vld [vmem:[%s16166_s14 + $0x1a8] sm:$0xff] }
0x11db   : > { %9519 = vmatprep.subr.bf16.mxu0 %v13157_v13  ;;  %9562 = vmatprep.subr.bf16.mxu1 %v13160_v38  ;;  %v13411_v34 = vld [vmem:[%s16166_s14 + $0x28] sm:$0xff]  ;;  %v13413_v38 = vld [vmem:[%s16166_s14 + $0xa0] sm:$0xff] }
0x11dc   : > { %v13412_v13 = vld [vmem:[%s16166_s14 + $0x128] sm:$0xff] }
0x11de   : > { %9520 = vmatpush2.bf16.msra.mxu0 %v13155_v19  ;;  %9563 = vmatpush2.bf16.msra.mxu1 %v13158_v46  ;;  %v13414_v19 = vld [vmem:[%s16166_s14 + $0x1a0] sm:$0xff] }
0x11df   : > { %9521 = vmatprep.subr.bf16.mxu0 %v13163_v25  ;;  %9564 = vmatprep.subr.bf16.mxu1 %v13166_v52  ;;  %v13415_v46 = vld [vmem:[%s16166_s14 + $0x20] sm:$0xff]  ;;  %v13417_v52 = vld [vmem:[%s16166_s14 + $0x98] sm:$0xff] }
0x11e0   : > { %v13416_v25 = vld [vmem:[%s16166_s14 + $0x120] sm:$0xff] }
0x11e2   : > { %9522 = vmatpush2.bf16.msra.mxu0 %v13161_v12  ;;  %9565 = vmatpush2.bf16.msra.mxu1 %v13164_v53  ;;  %v13418_v12 = vld [vmem:[%s16166_s14 + $0x198] sm:$0xff] }
0x11e3   : > { %11741 = vmatprep.subr.mxu0 %v13369_v20  ;;  %11776 = vmatprep.subr.mxu1 %v13370_v56  ;;  %v13419_v53 = vld [vmem:[%s16166_s14 + $0x18] sm:$0xff]  ;;  %v13421_v56 = vld [vmem:[%s16166_s14 + $0x90] sm:$0xff] }
0x11e4   : > { %v13420_v20 = vld [vmem:[%s16166_s14 + $0x118] sm:$0xff] }
0x11e5   : > { %9524 = vmatmul.mubr.bf16.vlgmr.msra.gmra.mxu0 %v14668_v7  ;;  %9567 = vmatmul.mubr.bf16.vlgmr.msra.gmra.mxu1 %v14668_v7  ;;  %v13378_v7 = vld [vmem:[%s16166_s14 + $0x1e8] sm:$0xff] }
0x11e6   : > { %11742 = vmatpush3.msra.mxu0 %v13371_v61  ;;  %11777 = vmatpush3.msra.mxu1 %v13372_v58  ;;  %v13422_v61 = vld [vmem:[%s16166_s14 + $0x190] sm:$0xff] }
0x11e7   : > { %11743 = vmatprep.subr.mxu0 %v13373_v33  ;;  %11778 = vmatprep.subr.mxu1 %v13374_v51  ;;  %v13423_v58 = vld [vmem:[%s16166_s14 + $0x10] sm:$0xff]  ;;  %v13425_v51 = vld [vmem:[%s16166_s14 + $0x88] sm:$0xff] }
0x11e8   : > { %11744 = vmatpush3.msra.mxu0 %v13375_v0  ;;  %11779 = vmatpush3.msra.mxu1 %v13376_v1  ;;  %v13424_v33 = vld [vmem:[%s16166_s14 + $0x110] sm:$0xff]  ;;  %v13426_v0 = vld [vmem:[%s16166_s14 + $0x188] sm:$0xff] }
0x11e9   : > { %11745 = vmatprep.subr.mxu0 %v13377_v30  ;;  %11780 = vmatprep.subr.mxu1 %v13378_v7  ;;  %v13427_v1 = vld [vmem:[%s16166_s14 + $0x8] sm:$0xff]  ;;  %v13429_v7 = vld [vmem:[%s16166_s14 + $0x80] sm:$0xff] }
0x11ea   : > { %11746 = vmatpush3.msra.mxu0 %v13379_v27  ;;  %11781 = vmatpush3.msra.mxu1 %v13380_v18  ;;  %v13428_v30 = vld [vmem:[%s16166_s14 + $0x108] sm:$0xff]  ;;  %v13430_v27 = vld [vmem:[%s16166_s14 + $0x180] sm:$0xff] }
0x11eb   : > { %11747 = vmatprep.subr.mxu0 %v13381_v4  ;;  %11782 = vmatprep.subr.mxu1 %v13382_v43  ;;  %v13431_v18 = vld [vmem:[%s16166_s14] sm:$0xff] }
0x11ec   : > { %11748 = vmatpush3.msra.mxu0 %v13383_v3  ;;  %11783 = vmatpush3.msra.mxu1 %v13384_v55  ;;  %v13432_v4 = vld [vmem:[%s16166_s14 + $0x100] sm:$0xff]  ;;  %v13434_v3 = vld [vmem:[#allocation17 + $0x18] sm:$0xff] }
0x11ed   : > { %11749 = vmatprep.subr.mxu0 %v13385_v29  ;;  %11784 = vmatprep.subr.mxu1 %v13386_v32  ;;  %v13433_v43 = vld [vmem:[#allocation17 + $0x8] sm:$0xff] }
0x11ee   : > { %11750 = vmatpush3.msra.mxu0 %v13387_v22  ;;  %11785 = vmatpush3.msra.mxu1 %v13388_v39  ;;  %v9149_v32 = vld [vmem:[#allocation32] sm:$0xf] }
0x11ef   : > { %11751 = vmatprep.subr.mxu0 %v13389_v21  ;;  %11786 = vmatprep.subr.mxu1 %v13390_v60  ;;  %v9154_v21 = vrot.slane %v9149_v32, %v14870_v36  ;;  %v9162_v60 = vrot.slane %v9149_v32, %v14872_v37 }
0x11f0   : > { %11752 = vmatpush3.msra.mxu0 %v13391_v63  ;;  %11787 = vmatpush3.msra.mxu1 %v13392_v2 }
0x11f1   : > { %11753 = vmatprep.subr.mxu0 %v13393_v40  ;;  %11788 = vmatprep.subr.mxu1 %v13394_v14  ;;  %v9158_v40 = vrot.slane %v9149_v32, %v14874_v41  ;;  %v9166_v14 = vrot.slane %v9149_v32, %v14876_v42 }
0x11f2   : > { %11754 = vmatpush3.msra.mxu0 %v13395_v48  ;;  %11789 = vmatpush3.msra.mxu1 %v13396_v15 }
0x11f3   : > { %11755 = vmatprep.subr.mxu0 %v13397_v47  ;;  %11790 = vmatprep.subr.mxu1 %v13398_v17 }
0x11f4   : > { %11756 = vmatpush3.msra.mxu0 %v13399_v23  ;;  %11791 = vmatpush3.msra.mxu1 %v13400_v44 }
0x11f5   : > { %11757 = vmatprep.subr.mxu0 %v13401_v59  ;;  %11792 = vmatprep.subr.mxu1 %v13402_v9 }
0x11f6   : > { %11758 = vmatpush3.msra.mxu0 %v13403_v11  ;;  %11793 = vmatpush3.msra.mxu1 %v13404_v6 }
0x11f7   : > { %11759 = vmatprep.subr.mxu0 %v13405_v57  ;;  %11794 = vmatprep.subr.mxu1 %v13406_v26 }
0x11f8   : > { %11760 = vmatpush3.msra.mxu0 %v13407_v28  ;;  %11795 = vmatpush3.msra.mxu1 %v13408_v24 }
0x11f9   : > { %11761 = vmatprep.subr.mxu0 %v13409_v50  ;;  %11796 = vmatprep.subr.mxu1 %v13410_v54 }
0x11fa   : > { %11762 = vmatpush3.msra.mxu0 %v13411_v34  ;;  %11797 = vmatpush3.msra.mxu1 %v13412_v13 }
0x11fb   : > { %11763 = vmatprep.subr.mxu0 %v13413_v38  ;;  %11798 = vmatprep.subr.mxu1 %v13414_v19 }
0x11fc   : > { %11764 = vmatpush3.msra.mxu0 %v13415_v46  ;;  %11799 = vmatpush3.msra.mxu1 %v13416_v25 }
0x11fd   : > { %11765 = vmatprep.subr.mxu0 %v13417_v52  ;;  %11800 = vmatprep.subr.mxu1 %v13418_v12 }
0x11fe   : > { %11766 = vmatpush3.msra.mxu0 %v13419_v53  ;;  %11801 = vmatpush3.msra.mxu1 %v13420_v20 }
0x11ff   : > { %11767 = vmatprep.subr.mxu0 %v13421_v56  ;;  %11802 = vmatprep.subr.mxu1 %v13422_v61 }
0x1200   : > { %11768 = vmatpush3.msra.mxu0 %v13423_v58  ;;  %11803 = vmatpush3.msra.mxu1 %v13424_v33 }
0x1201   : > { %11769 = vmatprep.subr.mxu0 %v13425_v51  ;;  %11804 = vmatprep.subr.mxu1 %v13426_v0 }
0x1202   : > { %11770 = vmatpush3.msra.mxu0 %v13427_v1  ;;  %11805 = vmatpush3.msra.mxu1 %v13428_v30 }
0x1203   : > { %11771 = vmatprep.subr.mxu0 %v13429_v7  ;;  %11806 = vmatprep.subr.mxu1 %v13430_v27 }
0x1204   : > { %11772 = vmatpush3.msra.mxu0 %v13431_v18  ;;  %11807 = vmatpush3.msra.mxu1 %v13432_v4 }
0x1205   : > { %9829 = vmatprep.subr.mxu0 %v13433_v43  ;;  %9900 = vmatprep.subr.mxu1 %v13434_v3 }
0x1265   : > { %v15861_v55 = vpop.f32.mrf.mxu0  ;;  %v15863_v29 = vpop.f32.mrf.mxu1 }
0x1267   : > { %v15865_v22 = vpop.f32.mrf.mxu0  ;;  %v15867_v39 = vpop.f32.mrf.mxu1 }
0x12a5   : > { %v9525_v63 = vpop.f32.mrf.mxu0  ;;  %v9568_v2 = vpop.f32.mrf.mxu1 }
0x12a6   : > { %v15873_v48 = vadd.f32 %v9525_v63, %v9154_v21  ;;  %v15875_v15 = vadd.f32 %v9568_v2, %v9162_v60 }
0x12a7   : > { %v9527_v47 = vpop.f32.mrf.mxu0  ;;  %v9570_v17 = vpop.f32.mrf.mxu1 }
0x12a8   : > { %v15877_v23 = vadd.f32 %v9527_v47, %v9158_v40  ;;  %v15879_v44 = vadd.f32 %v9570_v17, %v9166_v14  ;;  %v9607_v57 = vmul.f32 %v15873_v48, %v15873_v48  ;;  %v9609_v26 = vmul.f32 %v15875_v15, %v15875_v15 }
0x12a9   : > { %v9529_v59 = vpop.f32.mrf.mxu0  ;;  %v9572_v9 = vpop.f32.mrf.mxu1 }
0x12aa   : > { %v15881_v11 = vadd.f32 %v9529_v59, %v9154_v21  ;;  %v15883_v6 = vadd.f32 %v9572_v9, %v9162_v60  ;;  %v9608_v38 = vmul.f32 %v15877_v23, %v15877_v23  ;;  %v9610_v19 = vmul.f32 %v15879_v44, %v15879_v44 }
0x12ab   : > { %v9531_v28 = vpop.f32.mrf.mxu0  ;;  %v9574_v24 = vpop.f32.mrf.mxu1 }
0x12ac   : > { %v9579_v50 = vadd.f32 %v15881_v11, %v15873_v48  ;;  %v9611_v54 = vmul.f32 %v15881_v11, %v15881_v11  ;;  %v9593_v34 = vadd.f32 %v15883_v6, %v15875_v15  ;;  %v9613_v13 = vmul.f32 %v15883_v6, %v15883_v6 }
0x12ad   : > { %v15901_v46 = vadd.f32 %v9531_v28, %v9158_v40  ;;  %v15903_v25 = vadd.f32 %v9574_v24, %v9166_v14 }
0x12ae   : > { %v9580_v52 = vrot.slane %v9579_v50, 4  ;;  %v9615_v12 = vadd.f32 %v9611_v54, %v9607_v57  ;;  %v9594_v53 = vrot.slane %v9593_v34, 4  ;;  %v9629_v20 = vadd.f32 %v9613_v13, %v9609_v26 }
0x12af   : > { %v9586_v56 = vadd.f32 %v15901_v46, %v15877_v23  ;;  %v9612_v61 = vmul.f32 %v15901_v46, %v15901_v46  ;;  %v9600_v58 = vadd.f32 %v15903_v25, %v15879_v44  ;;  %v9614_v33 = vmul.f32 %v15903_v25, %v15903_v25 }
0x12b0   : > { %v9581_v51 = vadd.f32 %v9580_v52, %v9579_v50  ;;  %v9616_v0 = vrot.slane %v9615_v12, 4  ;;  %v9595_v1 = vadd.f32 %v9594_v53, %v9593_v34  ;;  %v9630_v30 = vrot.slane %v9629_v20, 4 }
0x12b1   : > { %v9587_v7 = vrot.slane %v9586_v56, 4  ;;  %v9622_v27 = vadd.f32 %v9612_v61, %v9608_v38  ;;  %v9601_v18 = vrot.slane %v9600_v58, 4  ;;  %v9636_v4 = vadd.f32 %v9614_v33, %v9610_v19 }
0x12b2   : > { %v9582_v43 = vrot.slane %v9581_v51, 2  ;;  %v9617_v3 = vadd.f32 %v9616_v0, %v9615_v12  ;;  %v9596_v32 = vrot.slane %v9595_v1, 2  ;;  %v9631_v21 = vadd.f32 %v9630_v30, %v9629_v20 }
0x12b3   : > { %v9588_v60 = vadd.f32 %v9587_v7, %v9586_v56  ;;  %v9623_v63 = vrot.slane %v9622_v27, 4  ;;  %v9602_v2 = vadd.f32 %v9601_v18, %v9600_v58  ;;  %v9637_v40 = vrot.slane %v9636_v4, 4 }
0x12b4   : > { %v9618_v14 = vrot.slane %v9617_v3, 2  ;;  %v9632_v47 = vrot.slane %v9631_v21, 2  ;;  %v9583_v26 = vadd.f32 %v9582_v43, %v9581_v51  ;;  %v9597_v28 = vadd.f32 %v9596_v32, %v9595_v1 }
0x12b5   : > { %v9589_v17 = vrot.slane %v9588_v60, 2  ;;  %v9624_v59 = vadd.f32 %v9623_v63, %v9622_v27  ;;  %v9603_v9 = vrot.slane %v9602_v2, 2  ;;  %v9638_v57 = vadd.f32 %v9637_v40, %v9636_v4  ;;  %v13435_v63 = vld [vmem:[#allocation17] sm:$0xff] }
0x12b6   : > { %v9619_v24 = vadd.f32 %v9618_v14, %v9617_v3  ;;  %v9633_v50 = vadd.f32 %v9632_v47, %v9631_v21  ;;  %v9584_v61 = vrot.slane %v9583_v26, 1  ;;  %v9598_v58 = vrot.slane %v9597_v28, 1 }
0x12b7   : > { %v9590_v54 = vadd.f32 %v9589_v17, %v9588_v60  ;;  %v9625_v34 = vrot.slane %v9624_v59, 2  ;;  %v9604_v13 = vadd.f32 %v9603_v9, %v9602_v2  ;;  %v9639_v38 = vrot.slane %v9638_v57, 2  ;;  %v13436_v2 = vld [vmem:[#allocation17 + $0x10] sm:$0xff] }
0x12b8   : > { %v9620_v19 = vrot.slane %v9619_v24, 1  ;;  %v9634_v52 = vrot.slane %v9633_v50, 1  ;;  %v9585_v4 = vadd.f32 %v9584_v61, %v9583_v26  ;;  %v9599_v43 = vadd.f32 %v9598_v58, %v9597_v28 }
0x12b9   : > { %v9591_v12 = vrot.slane %v9590_v54, 1  ;;  %v9626_v53 = vadd.f32 %v9625_v34, %v9624_v59  ;;  %v9605_v20 = vrot.slane %v9604_v13, 1  ;;  %v9640_v56 = vadd.f32 %v9639_v38, %v9638_v57 }
0x12ba   : > { %v9621_v30 = vadd.f32 %v9620_v19, %v9619_v24  ;;  %v9635_v7 = vadd.f32 %v9634_v52, %v9633_v50  ;;  %v9072_v38 = vrot.slane %v15863_v29, %v14870_v36  ;;  %v9068_v19 = vrot.slane %v15865_v22, %v14870_v36 }
0x12bb   : > { %v9627_v33 = vrot.slane %v9626_v53, 1  ;;  %v9641_v0 = vrot.slane %v9640_v56, 1  ;;  %v9592_v51 = vadd.f32 %v9591_v12, %v9590_v54  ;;  %v9606_v27 = vadd.f32 %v9605_v20, %v9604_v13  ;;  %v9577_v12 = vld [vmem:[#allocation33] sm:$0xf] }
0x12bc   : > { %v9643_v21 = vsel %vm1730_vm0, %v9585_v4, %v9621_v30  ;;  %v9645_v60 = vsel %vm1730_vm0, %v9599_v43, %v9635_v7  ;;  %v9076_v52 = vrot.slane %v15867_v39, %v14870_v36  ;;  %v9079_v61 = vmul.f32 %v9072_v38, %v15747_v8 }
0x12bd   : > { %v9628_v1 = vadd.f32 %v9627_v33, %v9626_v53  ;;  %v9642_v18 = vadd.f32 %v9641_v0, %v9640_v56  ;;  %v9578_v53 = vld [vmem:[#allocation35] sm:$0xf]  ;;  %v9083_v58 = vmul.f32 %v9072_v38, %v15753_v62  ;;  %v15938_v29 = vmul.f32 %v9068_v19, %v15766_v16 }
0x12be   : > { %v15941_v22 = vmul.f32 %v9076_v52, %v15759_v45  ;;  %v15944_v39 = vmul.f32 %v9076_v52, %v15769_v49  ;;  %v10001_v62 = vrot.slane %v9577_v12, %v14872_v37  ;;  %v9997_v45 = vrot.slane %v9577_v12, %v14874_v41 }
0x12bf   : > { %v9644_v3 = vsel %vm1730_vm0, %v9592_v51, %v9628_v1  ;;  %v9646_v32 = vsel %vm1730_vm0, %v9606_v27, %v9642_v18  ;;  %v10005_v30 = vrot.slane %v9577_v12, %v14876_v42  ;;  %v10026_v1 = vrot.slane %v9578_v53, %v14874_v41 }
0x12c0   : > { %9711 = vmatprep.mubr.f32.mxu0 %v9644_v3  ;;  %9781 = vmatprep.mubr.f32.mxu1 %v9646_v32  ;;  %v10034_v18 = vrot.slane %v9578_v53, %v14876_v42 }
0x12c1   : > { %9712 = vmatmul.mubr.f32.vlgmr.msra.gmra.mxu0 %v9643_v21  ;;  %9782 = vmatmul.mubr.f32.vlgmr.msra.gmra.mxu1 %v9645_v60 }
0x12c2   : > { %9830 = vmatpush1.msra.mxu0 %v13435_v63  ;;  %9901 = vmatpush1.msra.mxu1 %v13436_v2 }
0x12c3   : > { %9863 = vmatprep.mubr.f32.mxu0 %v14145_v5  ;;  %9934 = vmatprep.mubr.f32.mxu1 %v14145_v5  ;;  %v9064_v5 = vrot.slane %v15861_v55, %v14870_v36  ;;  %v15935_v55 = vmul.f32 %v9068_v19, %v15756_v31  ;;  %v10030_v31 = vrot.slane %v9578_v53, %v14872_v37 }
0x12c5   : > { %v9077_v20 = vmul.f32 %v9064_v5, %v15744_v35  ;;  %v9081_v56 = vmul.f32 %v9064_v5, %v15750_v10  ;;  %v9993_v35 = vrot.slane %v9577_v12, %v14870_v36  ;;  %v10022_v10 = vrot.slane %v9578_v53, %v14870_v36 }
0x1381   : > { %v11773_v40 = vpop.f32.mrf.mxu0  ;;  %v11808_v14 = vpop.f32.mrf.mxu1 }
0x1383   : > { %v11774_v47 = vpop.f32.mrf.mxu0  ;;  %v11809_v17 = vpop.f32.mrf.mxu1 }
0x1384   : > { %v11775_v59 = vadd.f32 %v11774_v47, %v11773_v40  ;;  %v11810_v9 = vadd.f32 %v11809_v17, %v11808_v14 }
0x1386   : > { %v9784_v57 = vadd.f32 %v11810_v9, %v11775_v59 }
0x1388   : > { %v9787_v26 = vmul.f32 %v9784_v57, %v9784_v57 }
0x138a   : > { %v9789_v28 = vrot.slane %v9787_v26, 7 }
0x138c   : > { %v9791_v24 = vsub.f32 %v9784_v57, %v9789_v28 }
0x138e   : > { %v9792_v50 = vmax.f32 %v9791_v24, 0.0 }
0x1390   : > { %v9793_v54 = vadd.f32 1e-05, %v9792_v50 }
0x1392   : > { %13203 = vrsqrt.f32 %v9793_v54 }
0x139f   : > { %v13204_v34 = vpop.eup %13203 }
0x13a0   : > { %v9795_v13 = vsel %vm1730_vm0, %v9784_v57, %v13204_v34 }
0x13a1   : > { %11320 = vmatmul.mubr.msk.f32.vlgmr.msra.gmra.mxu0 %vm2989_vm2, %v9795_v13  ;;  %11321 = vmatmul.mubr.msk.f32.vlgmr.msra.gmra.mxu1 %vm2989_vm2, %v9795_v13 }
0x1461   : > { %v9865_v33 = vpop.f32.mrf.mxu0  ;;  %v9936_v8 = vpop.f32.mrf.mxu1 }
0x1462   : > { %v9944_v0 = vrot.slane %v9865_v33, %v14870_v36  ;;  %v9952_v16 = vrot.slane %v9936_v8, %v14870_v36  ;;  %v9968_v49 = vrot.slane %v9865_v33, %v14874_v41  ;;  %v9976_v7 = vrot.slane %v9936_v8, %v14874_v41 }
0x1463   : > { %v9867_v51 = vpop.f32.mrf.mxu0  ;;  %v9938_v27 = vpop.f32.mrf.mxu1 }
0x1464   : > { %v9957_v37 = vsub.f32 %v15873_v48, %v9944_v0  ;;  %v9961_v4 = vsub.f32 %v15881_v11, %v9944_v0  ;;  %v9959_v43 = vsub.f32 %v15875_v15, %v9952_v16  ;;  %v9963_v3 = vsub.f32 %v15883_v6, %v9952_v16 }
0x1465   : > { %v9948_v32 = vrot.slane %v9867_v51, %v14870_v36  ;;  %v9972_v21 = vrot.slane %v9867_v51, %v14874_v41  ;;  %v9956_v60 = vrot.slane %v9938_v27, %v14870_v36  ;;  %v9980_v63 = vrot.slane %v9938_v27, %v14874_v41 }
0x1466   : > { %v9981_v2 = vmul.f32 %v9968_v49, %v9957_v37  ;;  %v9985_v40 = vmul.f32 %v9968_v49, %v9961_v4  ;;  %v9983_v14 = vmul.f32 %v9976_v7, %v9959_v43  ;;  %v9987_v42 = vmul.f32 %v9976_v7, %v9963_v3 }
0x1467   : > { %v9958_v48 = vsub.f32 %v15877_v23, %v9948_v32  ;;  %v9962_v11 = vsub.f32 %v15901_v46, %v9948_v32  ;;  %v9960_v15 = vsub.f32 %v15879_v44, %v9956_v60  ;;  %v9964_v6 = vsub.f32 %v15903_v25, %v9956_v60 }
0x1468   : > { %v10010_v47 = vmul.f32 %v9993_v35, %v9981_v2  ;;  %v10014_v17 = vmul.f32 %v9993_v35, %v9985_v40  ;;  %v10012_v59 = vmul.f32 %v10001_v62, %v9983_v14  ;;  %v10016_v9 = vmul.f32 %v10001_v62, %v9987_v42 }
0x1469   : > { %v9982_v57 = vmul.f32 %v9972_v21, %v9958_v48  ;;  %v9986_v36 = vmul.f32 %v9972_v21, %v9962_v11  ;;  %v9984_v26 = vmul.f32 %v9980_v63, %v9960_v15  ;;  %v9988_v41 = vmul.f32 %v9980_v63, %v9964_v6 }
0x146a   : > { %v10039_v28 = vadd.f32 %v10022_v10, %v10010_v47  ;;  %v10043_v24 = vadd.f32 %v10022_v10, %v10014_v17  ;;  %v10041_v50 = vadd.f32 %v10030_v31, %v10012_v59  ;;  %v10045_v54 = vadd.f32 %v10030_v31, %v10016_v9 }
0x146b   : > { %v10011_v34 = vmul.f32 %v9997_v45, %v9982_v57  ;;  %v10015_v23 = vmul.f32 %v9997_v45, %v9986_v36  ;;  %v10013_v13 = vmul.f32 %v10005_v30, %v9984_v26  ;;  %v10017_v46 = vmul.f32 %v10005_v30, %v9988_v41 }
0x146c   : > { %v15970_v5 = vadd.f32 %v10039_v28, %v9077_v20  ;;  %v15972_v44 = vadd.f32 %v10043_v24, %v9081_v56  ;;  %v15974_v25 = vadd.f32 %v10041_v50, %v9079_v61  ;;  %v15976_v38 = vadd.f32 %v10045_v54, %v9083_v58 }
0x146d   : > { %v10040_v19 = vadd.f32 %v10026_v1, %v10011_v34  ;;  %v10044_v52 = vadd.f32 %v10026_v1, %v10015_v23  ;;  %v10042_v12 = vadd.f32 %v10034_v18, %v10013_v13  ;;  %v10046_v53 = vadd.f32 %v10034_v18, %v10017_v46 }
0x146e   : > { %v10055_v33 = vmul.f32 %v15970_v5, %v15970_v5  ;;  %v10059_v35 = vmul.f32 %v15972_v44, %v15972_v44  ;;  %v10057_v20 = vmul.f32 %v15974_v25, %v15974_v25  ;;  %v10061_v56 = vmul.f32 %v15976_v38, %v15976_v38 }
0x146f   : > { %v15987_v61 = vadd.f32 %v10040_v19, %v15935_v55  ;;  %v15990_v58 = vadd.f32 %v10044_v52, %v15938_v29  ;;  %v15993_v10 = vadd.f32 %v10042_v12, %v15941_v22  ;;  %v15996_v8 = vadd.f32 %v10046_v53, %v15944_v39 }
0x1470   : > { %v10063_v62 = vmul.f32 %v10055_v33, %v15970_v5  ;;  %v10067_v31 = vmul.f32 %v10059_v35, %v15972_v44  ;;  %v10065_v0 = vmul.f32 %v10057_v20, %v15974_v25  ;;  %v10069_v16 = vmul.f32 %v10061_v56, %v15976_v38 }
0x1471   : > { %v10056_v55 = vmul.f32 %v15987_v61, %v15987_v61  ;;  %v10060_v29 = vmul.f32 %v15990_v58, %v15990_v58  ;;  %v10058_v22 = vmul.f32 %v15993_v10, %v15993_v10  ;;  %v10062_v39 = vmul.f32 %v15996_v8, %v15996_v8 }
0x1472   : > { %v10071_v45 = vmul.f32 0.044715, %v10063_v62  ;;  %v10075_v30 = vmul.f32 0.044715, %v10067_v31  ;;  %v10073_v49 = vmul.f32 0.044715, %v10065_v0 }
0x1473   : > { %v10077_v7 = vmul.f32 0.044715, %v10069_v16  ;;  %v10064_v51 = vmul.f32 %v10056_v55, %v15987_v61  ;;  %v10068_v1 = vmul.f32 %v10060_v29, %v15990_v58  ;;  %v10066_v27 = vmul.f32 %v10058_v22, %v15993_v10 }
0x1474   : > { %v10079_v18 = vadd.f32 %v10071_v45, %v15970_v5  ;;  %v10083_v37 = vadd.f32 %v10075_v30, %v15972_v44  ;;  %v10081_v4 = vadd.f32 %v10073_v49, %v15974_v25  ;;  %v10070_v43 = vmul.f32 %v10062_v39, %v15996_v8 }
0x1475   : > { %v10085_v3 = vadd.f32 %v10077_v7, %v15976_v38  ;;  %v10072_v32 = vmul.f32 0.044715, %v10064_v51  ;;  %v10076_v21 = vmul.f32 0.044715, %v10068_v1  ;;  %v10074_v60 = vmul.f32 0.044715, %v10066_v27 }
0x1476   : > { %v10087_v63 = vmul.f32 0.7978846, %v10079_v18  ;;  %v10091_v2 = vmul.f32 0.7978846, %v10083_v37  ;;  %v10089_v40 = vmul.f32 0.7978846, %v10081_v4 }
0x1477   : > { %v10093_v14 = vmul.f32 0.7978846, %v10085_v3  ;;  %v10080_v42 = vadd.f32 %v10072_v32, %v15987_v61  ;;  %v10084_v48 = vadd.f32 %v10076_v21, %v15990_v58  ;;  %v10078_v11 = vmul.f32 0.044715, %v10070_v43 }
0x1478   : > { %13205 = vtanh.f32 %v10087_v63  ;;  %v10082_v15 = vadd.f32 %v10074_v60, %v15993_v10 }
0x1479   : > { %13207 = vtanh.f32 %v10091_v2  ;;  %v10088_v6 = vmul.f32 0.7978846, %v10080_v42  ;;  %v10092_v47 = vmul.f32 0.7978846, %v10084_v48  ;;  %v10086_v17 = vadd.f32 %v10078_v11, %v15996_v8 }
0x147a   : > { %13209 = vtanh.f32 %v10089_v40  ;;  %v10090_v59 = vmul.f32 0.7978846, %v10082_v15 }
0x147b   : > { %13211 = vtanh.f32 %v10093_v14  ;;  %v10094_v9 = vmul.f32 0.7978846, %v10086_v17 }
0x147c   : > { %13213 = vtanh.f32 %v10088_v6 }
0x147d   : > { %13215 = vtanh.f32 %v10092_v47 }
0x147e   : > { %13217 = vtanh.f32 %v10090_v59 }
0x147f   : > { %13219 = vtanh.f32 %v10094_v9 }
0x1485   : > { %v13206_v57 = vpop.eup %13205 }
0x1486   : > { %v13208_v36 = vpop.eup %13207  ;;  %v10103_v26 = vadd.f32 1.0, %v13206_v57 }
0x1487   : > { %v13210_v41 = vpop.eup %13209  ;;  %v10107_v28 = vadd.f32 1.0, %v13208_v36 }
0x1488   : > { %v13212_v24 = vpop.eup %13211  ;;  %v10111_v50 = vmul.f32 0.5, %v10103_v26  ;;  %v10105_v54 = vadd.f32 1.0, %v13210_v41 }
0x1489   : > { %v13214_v34 = vpop.eup %13213  ;;  %v10115_v23 = vmul.f32 0.5, %v10107_v28  ;;  %v10109_v13 = vadd.f32 1.0, %v13212_v24 }
0x148a   : > { %v13216_v46 = vpop.eup %13215  ;;  %v10119_v19 = vmul.f32 %v10111_v50, %v15970_v5  ;;  %v10113_v52 = vmul.f32 0.5, %v10105_v54  ;;  %v10104_v12 = vadd.f32 1.0, %v13214_v34 }
0x148b   : > { %v13218_v53 = vpop.eup %13217  ;;  %v10123_v33 = vmul.f32 %v10115_v23, %v15972_v44  ;;  %v10117_v35 = vmul.f32 0.5, %v10109_v13  ;;  %v10108_v20 = vadd.f32 1.0, %v13216_v46 }
0x148c   : > { %v13220_v56 = vpop.eup %13219  ;;  %10127 = vst [vmem:[%s1179_s15] sm:$0xff] %v10119_v19  ;;  %v10121_v62 = vmul.f32 %v10113_v52, %v15974_v25  ;;  %v10112_v31 = vmul.f32 0.5, %v10104_v12  ;;  %v10106_v0 = vadd.f32 1.0, %v13218_v53 }
0x148d   : > { %10131 = vst [vmem:[%s1179_s15 + $0x20] sm:$0xff] %v10123_v33  ;;  %v10125_v16 = vmul.f32 %v10117_v35, %v15976_v38  ;;  %v10116_v5 = vmul.f32 0.5, %v10108_v20  ;;  %v10110_v55 = vadd.f32 1.0, %v13220_v56 }
0x148e   : > { %10129 = vst [vmem:[%s1179_s15 + $0x10] sm:$0xff] %v10121_v62  ;;  %v10120_v44 = vmul.f32 %v10112_v31, %v15987_v61  ;;  %v10114_v29 = vmul.f32 0.5, %v10106_v0 }
0x148f   : > { %10133 = vst [vmem:[%s1179_s15 + $0x30] sm:$0xff] %v10125_v16  ;;  %v10124_v22 = vmul.f32 %v10116_v5, %v15990_v58  ;;  %v10118_v25 = vmul.f32 0.5, %v10110_v55 }
0x1490   : > { %10128 = vst [vmem:[%s1179_s15 + $0x8] sm:$0xff] %v10120_v44  ;;  %v10122_v39 = vmul.f32 %v10114_v29, %v15993_v10 }
0x1491   : > { %10132 = vst [vmem:[%s1179_s15 + $0x28] sm:$0xff] %v10124_v22  ;;  %v10126_v38 = vmul.f32 %v10118_v25, %v15996_v8 }
0x1492   : > { %10130 = vst [vmem:[%s1179_s15 + $0x18] sm:$0xff] %v10122_v39 }
0x1493   : > { %10134 = vst [vmem:[%s1179_s15 + $0x38] sm:$0xff] %v10126_v38 }
0x1494   : > { %13998 = shalt.err (!%p13995_p6)
}
0x1495   : > { %s13999_s15 = scalar_lea.hbm %s16032_s28, 1024  ;;  %s14003_s16 = scalar_lea.hbm %s16171_s11, 2048 }
0x1496   : > { %p14000_p12 = scmp.ne.s32.totalorder %s16032_s28, %s13999_s15  ;;  %p14004_p3 = scmp.lt.s32.totalorder %s16032_s28, %s16171_s11 }
0x1497   : > { %p14005_p4 = scmp.lt.s32.totalorder %s14003_s16, %s13999_s15 }
0x1498   : > { %p14001_p13 = pnand %p14000_p12, %p16172_p10 }
0x1499   : > { %p14006_p8 = por %p14005_p4, %p14004_p3 }
0x149a   : > { %p14002_p0 = pneg %p14001_p13 }
0x149c   : > { %p14007_p9 = pnand %p14006_p8, %p14002_p0 }
0x149e   : > { %14010 = shalt.err (!%p14007_p9)
}
0x149f   : > { %s14152_s4 = smov 512   ;;  %s16173_s3 = smov 32  }
0x14a0   : > { %s16174_s6 = scalar_lea.sflag [#allocation5], %s14544_s1 }
0x14a1   : > { %12002 = dma.vmem_to_hbm [thread:$0]  (%p16172_p10), %s16035_s23, 1024, %s16032_s28, %s16174_s6, %s14152_s4, %s14152_s4, %s16173_s3  }
0x14a2 PF: > { %s10164_s2 = sand.u32 1, %s14077_s7   ;;  %p16175_p5 = scmp.ne.s32.totalorder %s16140_s26, 0 }
0x14a3   : > { %p16176_p11 = scmp.ge.s32.totalorder %s14089_s5, 2  ;;  %s10165_s16 = scalar_lea.sflag [#allocation5], %s10164_s2 }
0x14a5   : > { %p12070_p2 = pnand %p16176_p11, %p16175_p5 }
0x14a7   : > { %p12071_p1 = pneg %p12070_p2 }
0x14a9   : > { %14072 = dma.done.wait (%p12071_p1), %s10165_s16, 1024  }
0x14aa   : > { %14074 = vsyncadd (%p12071_p1), %s10165_s16, 4294966272  ;;  %p83_p7 = scmp.ge.s32.totalorder %s14475_s8, 4   ;;  %s16177_s7 = smov %s14081_s10 }
0x14ab   : > { %s16178_s10 = smov %s14085_s0  ;;  %s16179_s0 = smov %s14486_s13 }
0x14ac   : > { %s16180_s5 = smov %s14475_s8  ;;  %85 = sbr.rel (!%p83_p7) target bundleno = 70 (0x46), region = 300 }
0x14b1   :  { %10170 = vsyncpa [#allocation4], 1 }
0x14b2   :  { %10172 = vsyncpa [#allocation4 + $0x1], 1 }
0x14b3   :  { %10173 = vsyncpa [#allocation7], 1 }
0x14b4   :  { %10174 = vsyncpa [#allocation10], 1 }
0x14b5   :  { %10175 = vsyncpa [#allocation13], 1 }
0x14b6   :  { %10176 = vsyncpa [#allocation16], 1 }
0x14b7   :  { %10177 = vsyncpa [#allocation19], 1 }
0x14b8   :  { %10178 = vsyncpa [#allocation22], 1 }
0x14b9   :  { %10179 = vsyncpa [#allocation25], 1 }
0x14ba   :  { %10180 = vsyncpa [#allocation28], 1 }
0x14bb   :  { %10181 = vsyncpa [#allocation31], 1 }
0x14bc   :  { %10182 = vsyncpa [#allocation34], 1 }
0x14bd   :  { %10183 = vsyncpa [#allocation5], 1 }
0x14be   :  { %10185 = vsyncpa [#allocation5 + $0x1], 1 }

</bundles_post_ra>
